<compile_context>
chip_gen: v6e
topology: v6e:2x2x1
jax: 0.10.0
libtpu: 0.0.40
codegen_flags: <defaults>
</compile_context>

<pallas_src>
import jax
import jax.numpy as jnp
from jax import lax
from jax.experimental import pallas as pl
from jax.experimental.pallas import tpu as pltpu


# ---------------------------------------------------------------------------
# helpers
# ---------------------------------------------------------------------------
def _round_up(x, m):
    return (x + m - 1) // m * m


def _pad_gate_cols(w, h, hp):
    """Pad the gate axis of a (R, 4H) tensor to (R, 4*Hp), gate-block-wise."""
    r = w.shape[0]
    w = w.reshape(r, 4, h)
    w = jnp.pad(w, ((0, 0), (0, 0), (0, hp - h)))
    return w.reshape(r, 4 * hp)


def _pad_rows(w, r, rp):
    return jnp.pad(w, ((0, rp - r), (0, 0)))


# ---------------------------------------------------------------------------
# fused multi-layer LSTM kernel
# ---------------------------------------------------------------------------
def _make_lstm_stack_kernel(num_layers, seq_len, bp, hp):
    # Fully unroll short recurrences so the LLO scheduler sees across steps.
    unroll = seq_len if seq_len <= 16 else 8

    def kernel(x_ref, *rest):
        w_refs = rest[: 3 * num_layers]
        out_ref = rest[3 * num_layers]
        gx_refs = rest[3 * num_layers + 1:]      # 1 or 2 x (T, Bp, 4Hp) ping-pong scratch

        # ---- layer 0 input projection for ALL timesteps: one big MXU GEMM ----
        wih0 = w_refs[0][...]                    # (Din_p, 4Hp)
        b0 = w_refs[2][...]                      # (1, 4Hp)
        x = x_ref[...]                           # (T, Bp, Din_p)
        d0 = x.shape[-1]
        gx0 = (
            jnp.dot(x.reshape(seq_len * bp, d0), wih0,
                    preferred_element_type=jnp.float32)
            + b0
        )
        gx_refs[0][...] = gx0.reshape(seq_len, bp, 4 * hp)

        for layer in range(num_layers):
            whh = w_refs[3 * layer + 1][...]     # (Hp, 4Hp), hoisted out of the loop
            is_last = layer == num_layers - 1
            gx_cur = gx_refs[layer % 2]
            if is_last:
                gx_next = None
                wih_next = None
                b_next = None
            else:
                gx_next = gx_refs[(layer + 1) % 2]
                wih_next = w_refs[3 * (layer + 1)][...]      # (Hp, 4Hp)
                b_next = w_refs[3 * (layer + 1) + 2][...]    # (1, 4Hp)

            # ---- serial recurrence: only h @ W_hh^T on the critical path ----
            def step(t, carry, whh=whh, gx_cur=gx_cur, gx_next=gx_next,
                     wih_next=wih_next, b_next=b_next, is_last=is_last):
                h, c = carry
                gates = gx_cur[t] + jnp.dot(h, whh,
                                            preferred_element_type=jnp.float32)
                i_g = jax.nn.sigmoid(gates[:, 0 * hp:1 * hp])
                f_g = jax.nn.sigmoid(gates[:, 1 * hp:2 * hp])
                g_g = jnp.tanh(gates[:, 2 * hp:3 * hp])
                o_g = jax.nn.sigmoid(gates[:, 3 * hp:4 * hp])
                c_n = f_g * c + i_g * g_g
                h_n = o_g * jnp.tanh(c_n)
                if not is_last:
                    # Next layer's input projection for timestep t.  Result is not
                    # needed until the next layer -> off the critical path, fills
                    # otherwise-idle MXU slots under the EUP/VALU work above.
                    gx_next[t] = (
                        jnp.dot(h_n, wih_next, preferred_element_type=jnp.float32)
                        + b_next
                    )
                return h_n, c_n

            h0 = jnp.zeros((bp, hp), jnp.float32)
            c0 = jnp.zeros((bp, hp), jnp.float32)
            h_last, _ = lax.fori_loop(0, seq_len, step, (h0, c0), unroll=unroll)

            if is_last:
                out_ref[...] = h_last            # only the last timestep leaves the chip

    return kernel


def _lstm_stack_pallas(x_p, flat_w, *, seq_len, bp, hp, num_layers):
    n_gx = 1 if num_layers == 1 else 2
    vmem = pl.BlockSpec(memory_space=pltpu.MemorySpace.VMEM)
    kernel = _make_lstm_stack_kernel(num_layers, seq_len, bp, hp)

    # advisory cost estimate for XLA's scheduler
    flops = 0
    bytes_accessed = int(x_p.size) * 4 + bp * hp * 4
    for layer in range(num_layers):
        d_in = int(flat_w[3 * layer].shape[0])
        flops += 2 * seq_len * bp * d_in * (4 * hp)      # input projection GEMM
        flops += 2 * seq_len * bp * hp * (4 * hp)        # recurrent projection
        bytes_accessed += sum(int(a.size) * 4 for a in flat_w[3 * layer:3 * layer + 3])
    transcendentals = 5 * seq_len * bp * hp * num_layers

    needed = (int(x_p.size) + sum(int(a.size) for a in flat_w)
              + bp * hp + n_gx * seq_len * bp * 4 * hp) * 4
    vmem_limit = int(min(max(2 * needed, 16 * 2 ** 20), 64 * 2 ** 20))

    return pl.pallas_call(
        kernel,
        out_shape=jax.ShapeDtypeStruct((bp, hp), jnp.float32),
        in_specs=[vmem] * (1 + 3 * num_layers),
        out_specs=vmem,
        scratch_shapes=[pltpu.VMEM((seq_len, bp, 4 * hp), jnp.float32)] * n_gx,
        compiler_params=pltpu.CompilerParams(vmem_limit_bytes=vmem_limit),
        cost_estimate=pl.CostEstimate(
            flops=int(flops),
            transcendentals=int(transcendentals),
            bytes_accessed=int(bytes_accessed),
        ),
    )(x_p, *flat_w)


# ---------------------------------------------------------------------------
# parameters & forward
# ---------------------------------------------------------------------------
def init_price_embedding_params(key, n_feat, out_dim, rnn_layers):
    """Deterministic init mimicking PyTorch's U(-1/sqrt(H), 1/sqrt(H))."""
    params = []
    k = 1.0 / jnp.sqrt(jnp.float32(out_dim))
    for layer in range(rnn_layers):
        d_in = n_feat if layer == 0 else out_dim
        key, k1, k2, k3, k4 = jax.random.split(key, 5)
        w_ih = jax.random.uniform(k1, (4 * out_dim, d_in), jnp.float32, -k, k)
        w_hh = jax.random.uniform(k2, (4 * out_dim, out_dim), jnp.float32, -k, k)
        b_ih = jax.random.uniform(k3, (4 * out_dim,), jnp.float32, -k, k)
        b_hh = jax.random.uniform(k4, (4 * out_dim,), jnp.float32, -k, k)
        params.append(
            dict(
                wih_t=w_ih.T,                 # (D_in, 4H)
                whh_t=w_hh.T,                 # (H, 4H)
                b=(b_ih + b_hh)[None, :],     # (1, 4H)
            )
        )
    return params


@jax.jit
def price_embedding_forward(x, params):
    """x: (B, T, n_feat) batch_first, like the PyTorch module.  -> (B, out_dim)."""
    batch, seq_len, n_feat = x.shape
    hidden = params[0]["whh_t"].shape[0]
    num_layers = len(params)

    bp = _round_up(max(batch, 8), 8)          # sublane multiple
    hp = _round_up(max(hidden, 128), 128)     # lane multiple
    dp0 = _round_up(max(n_feat, 128), 128)

    # time-major + zero padding (padding rows/cols stay exactly zero through the LSTM)
    x_tm = jnp.transpose(x, (1, 0, 2)).astype(jnp.float32)
    x_p = jnp.pad(x_tm, ((0, 0), (0, bp - batch), (0, dp0 - n_feat)))

    flat_w = []
    for layer, p in enumerate(params):
        d_in = p["wih_t"].shape[0]
        d_in_p = dp0 if layer == 0 else hp
        wih_p = _pad_rows(_pad_gate_cols(p["wih_t"], hidden, hp), d_in, d_in_p)
        whh_p = _pad_rows(_pad_gate_cols(p["whh_t"], hidden, hp), hidden, hp)
        b_p = _pad_gate_cols(p["b"], hidden, hp)
        flat_w += [wih_p, whh_p, b_p]

    out_p = _lstm_stack_pallas(
        x_p, flat_w, seq_len=seq_len, bp=bp, hp=hp, num_layers=num_layers
    )
    return out_p[:batch, :hidden]             # == x_hidden[:, -1, :]


# ---------------------------------------------------------------------------
# pure-JAX reference (PyTorch semantics) for validation
# ---------------------------------------------------------------------------
def _reference_forward(x, params):
    batch = x.shape[0]
    out = x
    for p in params:
        hidden = p["whh_t"].shape[0]
        h = jnp.zeros((batch, hidden), jnp.float32)
        c = jnp.zeros((batch, hidden), jnp.float32)
        hs = []
        for t in range(out.shape[1]):
            gates = out[:, t, :] @ p["wih_t"] + h @ p["whh_t"] + p["b"]
            i_g = jax.nn.sigmoid(gates[:, 0 * hidden:1 * hidden])
            f_g = jax.nn.sigmoid(gates[:, 1 * hidden:2 * hidden])
            g_g = jnp.tanh(gates[:, 2 * hidden:3 * hidden])
            o_g = jax.nn.sigmoid(gates[:, 3 * hidden:4 * hidden])
            c = f_g * c + i_g * g_g
            h = o_g * jnp.tanh(c)
            hs.append(h)
        out = jnp.stack(hs, axis=1)
    return out[:, -1, :]


if __name__ == "__main__":
    batch, seq, n_feat, out_dim, rnn_layers = 2, 8, 4, 32, 2

    key = jax.random.PRNGKey(0)
    key, kx = jax.random.split(key)
    x = jax.random.normal(kx, (batch, seq, n_feat), jnp.float32)

    params = init_price_embedding_params(key, n_feat, out_dim, rnn_layers)

    out = price_embedding_forward(x, params)
    out = jax.block_until_ready(out)
    assert out.shape == (batch, out_dim), out.shape

    ref = _reference_forward(x, params)
    assert jnp.allclose(out, ref, atol=5e-5, rtol=5e-5), (
        float(jnp.max(jnp.abs(out - ref)))
    )

    print("KERNEL_OK")
</pallas_src>

<mosaic_0001>
module attributes {stable_mosaic.version = 11 : i64} {
  func.func @kernel(%arg0: memref<8x8x128xf32, #tpu.memory_space<vmem>>, %arg1: memref<128x512xf32, #tpu.memory_space<vmem>>, %arg2: memref<128x512xf32, #tpu.memory_space<vmem>>, %arg3: memref<1x512xf32, #tpu.memory_space<vmem>>, %arg4: memref<128x512xf32, #tpu.memory_space<vmem>>, %arg5: memref<128x512xf32, #tpu.memory_space<vmem>>, %arg6: memref<1x512xf32, #tpu.memory_space<vmem>>, %arg7: memref<8x128xf32, #tpu.memory_space<vmem>>, %arg8: memref<8x8x512xf32, #tpu.memory_space<vmem>>, %arg9: memref<8x8x512xf32, #tpu.memory_space<vmem>>) attributes {dimension_semantics = [], scalar_prefetch = 0 : i64, scratch_operands = 2 : i64, tpu.core_type = #tpu.core_type<tc>} {
    %c0 = arith.constant 0 : index
    %c0_0 = arith.constant 0 : index
    %0 = vector.load %arg1[%c0, %c0_0] : memref<128x512xf32, #tpu.memory_space<vmem>>, vector<128x512xf32>
    %c0_1 = arith.constant 0 : index
    %c0_2 = arith.constant 0 : index
    %1 = vector.load %arg3[%c0_1, %c0_2] : memref<1x512xf32, #tpu.memory_space<vmem>>, vector<1x512xf32>
    %c0_3 = arith.constant 0 : index
    %c0_4 = arith.constant 0 : index
    %c0_5 = arith.constant 0 : index
    %2 = vector.load %arg0[%c0_3, %c0_4, %c0_5] : memref<8x8x128xf32, #tpu.memory_space<vmem>>, vector<8x8x128xf32>
    %3 = vector.shape_cast %2 : vector<8x8x128xf32> to vector<64x128xf32>
    %cst = arith.constant dense<0.000000e+00> : vector<64x512xf32>
    %4 = tpu.matmul %3, %0, %cst {dimension_numbers = #tpu.dot_dimension_numbers<[1], [0], [0], [1], [0, 0, 1, 1], [], []>} : vector<64x128xf32>, vector<128x512xf32>, vector<64x512xf32> -> vector<64x512xf32>
    %5 = vector.broadcast %1 : vector<1x512xf32> to vector<64x512xf32>
    %6 = arith.addf %4, %5 : vector<64x512xf32>
    %7 = vector.shape_cast %6 : vector<64x512xf32> to vector<8x8x512xf32>
    %c0_6 = arith.constant 0 : index
    %c0_7 = arith.constant 0 : index
    %c0_8 = arith.constant 0 : index
    %8 = vector.load %arg8[%c0_6, %c0_7, %c0_8] : memref<8x8x512xf32, #tpu.memory_space<vmem>>, vector<8x8x512xf32>
    tpu.vector_store %arg8[%c0_6, %c0_7, %c0_8], %7 {strides = array<i32>} : memref<8x8x512xf32, #tpu.memory_space<vmem>>, vector<8x8x512xf32>,
    %c0_9 = arith.constant 0 : index
    %c0_10 = arith.constant 0 : index
    %9 = vector.load %arg2[%c0_9, %c0_10] : memref<128x512xf32, #tpu.memory_space<vmem>>, vector<128x512xf32>
    %c0_11 = arith.constant 0 : index
    %c0_12 = arith.constant 0 : index
    %10 = vector.load %arg4[%c0_11, %c0_12] : memref<128x512xf32, #tpu.memory_space<vmem>>, vector<128x512xf32>
    %c0_13 = arith.constant 0 : index
    %c0_14 = arith.constant 0 : index
    %11 = vector.load %arg6[%c0_13, %c0_14] : memref<1x512xf32, #tpu.memory_space<vmem>>, vector<1x512xf32>
    %cst_15 = arith.constant 0.000000e+00 : f32
    %12 = vector.broadcast %cst_15 : f32 to vector<8x128xf32>
    %cst_16 = arith.constant 0.000000e+00 : f32
    %13 = vector.broadcast %cst_16 : f32 to vector<8x128xf32>
    %c0_i32 = arith.constant 0 : i32
    %14 = arith.index_cast %c0_i32 : i32 to index
    %c0_17 = arith.constant 0 : index
    %c0_18 = arith.constant 0 : index
    %15 = vector.load %arg8[%14, %c0_17, %c0_18] : memref<8x8x512xf32, #tpu.memory_space<vmem>>, vector<1x8x512xf32>
    %16 = vector.shape_cast %15 : vector<1x8x512xf32> to vector<8x512xf32>
    %cst_19 = arith.constant dense<0.000000e+00> : vector<8x512xf32>
    %17 = tpu.matmul %12, %9, %cst_19 {dimension_numbers = #tpu.dot_dimension_numbers<[1], [0], [0], [1], [0, 0, 1, 1], [], []>} : vector<8x128xf32>, vector<128x512xf32>, vector<8x512xf32> -> vector<8x512xf32>
    %18 = arith.addf %16, %17 : vector<8x512xf32>
    %19 = vector.extract_strided_slice %18 {offsets = [0, 0], sizes = [8, 128], strides = [1, 1]} : vector<8x512xf32> to vector<8x128xf32>
    %20 = arith.negf %19 : vector<8x128xf32>
    %21 = math.exp %20 : vector<8x128xf32>
    %cst_20 = arith.constant 1.000000e+00 : f32
    %22 = vector.broadcast %cst_20 : f32 to vector<8x128xf32>
    %23 = arith.addf %22, %21 : vector<8x128xf32>
    %24 = arith.divf %22, %23 : vector<8x128xf32>
    %25 = vector.extract_strided_slice %18 {offsets = [0, 128], sizes = [8, 128], strides = [1, 1]} : vector<8x512xf32> to vector<8x128xf32>
    %26 = arith.negf %25 : vector<8x128xf32>
    %27 = math.exp %26 : vector<8x128xf32>
    %cst_21 = arith.constant 1.000000e+00 : f32
    %28 = vector.broadcast %cst_21 : f32 to vector<8x128xf32>
    %29 = arith.addf %28, %27 : vector<8x128xf32>
    %30 = arith.divf %28, %29 : vector<8x128xf32>
    %31 = vector.extract_strided_slice %18 {offsets = [0, 256], sizes = [8, 128], strides = [1, 1]} : vector<8x512xf32> to vector<8x128xf32>
    %32 = math.tanh %31 : vector<8x128xf32>
    %33 = vector.extract_strided_slice %18 {offsets = [0, 384], sizes = [8, 128], strides = [1, 1]} : vector<8x512xf32> to vector<8x128xf32>
    %34 = arith.negf %33 : vector<8x128xf32>
    %35 = math.exp %34 : vector<8x128xf32>
    %cst_22 = arith.constant 1.000000e+00 : f32
    %36 = vector.broadcast %cst_22 : f32 to vector<8x128xf32>
    %37 = arith.addf %36, %35 : vector<8x128xf32>
    %38 = arith.divf %36, %37 : vector<8x128xf32>
    %39 = arith.mulf %30, %13 : vector<8x128xf32>
    %40 = arith.mulf %24, %32 : vector<8x128xf32>
    %41 = arith.addf %39, %40 : vector<8x128xf32>
    %42 = math.tanh %41 : vector<8x128xf32>
    %43 = arith.mulf %38, %42 : vector<8x128xf32>
    %cst_23 = arith.constant dense<0.000000e+00> : vector<8x512xf32>
    %44 = tpu.matmul %43, %10, %cst_23 {dimension_numbers = #tpu.dot_dimension_numbers<[1], [0], [0], [1], [0, 0, 1, 1], [], []>} : vector<8x128xf32>, vector<128x512xf32>, vector<8x512xf32> -> vector<8x512xf32>
    %45 = vector.broadcast %11 : vector<1x512xf32> to vector<8x512xf32>
    %46 = arith.addf %44, %45 : vector<8x512xf32>
    %47 = arith.index_cast %c0_i32 : i32 to index
    %c0_24 = arith.constant 0 : index
    %c0_25 = arith.constant 0 : index
    %48 = vector.load %arg9[%47, %c0_24, %c0_25] : memref<8x8x512xf32, #tpu.memory_space<vmem>>, vector<1x8x512xf32>
    %49 = vector.shape_cast %48 : vector<1x8x512xf32> to vector<8x512xf32>
    %50 = vector.shape_cast %46 : vector<8x512xf32> to vector<1x8x512xf32>
    tpu.vector_store %arg9[%47, %c0_24, %c0_25], %50 {strides = array<i32>} : memref<8x8x512xf32, #tpu.memory_space<vmem>>, vector<1x8x512xf32>,
    %c1_i32 = arith.constant 1 : i32
    %51 = arith.index_cast %c1_i32 : i32 to index
    %c0_26 = arith.constant 0 : index
    %c0_27 = arith.constant 0 : index
    %52 = vector.load %arg8[%51, %c0_26, %c0_27] : memref<8x8x512xf32, #tpu.memory_space<vmem>>, vector<1x8x512xf32>
    %53 = vector.shape_cast %52 : vector<1x8x512xf32> to vector<8x512xf32>
    %cst_28 = arith.constant dense<0.000000e+00> : vector<8x512xf32>
    %54 = tpu.matmul %43, %9, %cst_28 {dimension_numbers = #tpu.dot_dimension_numbers<[1], [0], [0], [1], [0, 0, 1, 1], [], []>} : vector<8x128xf32>, vector<128x512xf32>, vector<8x512xf32> -> vector<8x512xf32>
    %55 = arith.addf %53, %54 : vector<8x512xf32>
    %56 = vector.extract_strided_slice %55 {offsets = [0, 0], sizes = [8, 128], strides = [1, 1]} : vector<8x512xf32> to vector<8x128xf32>
    %57 = arith.negf %56 : vector<8x128xf32>
    %58 = math.exp %57 : vector<8x128xf32>
    %cst_29 = arith.constant 1.000000e+00 : f32
    %59 = vector.broadcast %cst_29 : f32 to vector<8x128xf32>
    %60 = arith.addf %59, %58 : vector<8x128xf32>
    %61 = arith.divf %59, %60 : vector<8x128xf32>
    %62 = vector.extract_strided_slice %55 {offsets = [0, 128], sizes = [8, 128], strides = [1, 1]} : vector<8x512xf32> to vector<8x128xf32>
    %63 = arith.negf %62 : vector<8x128xf32>
    %64 = math.exp %63 : vector<8x128xf32>
    %cst_30 = arith.constant 1.000000e+00 : f32
    %65 = vector.broadcast %cst_30 : f32 to vector<8x128xf32>
    %66 = arith.addf %65, %64 : vector<8x128xf32>
    %67 = arith.divf %65, %66 : vector<8x128xf32>
    %68 = vector.extract_strided_slice %55 {offsets = [0, 256], sizes = [8, 128], strides = [1, 1]} : vector<8x512xf32> to vector<8x128xf32>
    %69 = math.tanh %68 : vector<8x128xf32>
    %70 = vector.extract_strided_slice %55 {offsets = [0, 384], sizes = [8, 128], strides = [1, 1]} : vector<8x512xf32> to vector<8x128xf32>
    %71 = arith.negf %70 : vector<8x128xf32>
    %72 = math.exp %71 : vector<8x128xf32>
    %cst_31 = arith.constant 1.000000e+00 : f32
    %73 = vector.broadcast %cst_31 : f32 to vector<8x128xf32>
    %74 = arith.addf %73, %72 : vector<8x128xf32>
    %75 = arith.divf %73, %74 : vector<8x128xf32>
    %76 = arith.mulf %67, %41 : vector<8x128xf32>
    %77 = arith.mulf %61, %69 : vector<8x128xf32>
    %78 = arith.addf %76, %77 : vector<8x128xf32>
    %79 = math.tanh %78 : vector<8x128xf32>
    %80 = arith.mulf %75, %79 : vector<8x128xf32>
    %cst_32 = arith.constant dense<0.000000e+00> : vector<8x512xf32>
    %81 = tpu.matmul %80, %10, %cst_32 {dimension_numbers = #tpu.dot_dimension_numbers<[1], [0], [0], [1], [0, 0, 1, 1], [], []>} : vector<8x128xf32>, vector<128x512xf32>, vector<8x512xf32> -> vector<8x512xf32>
    %82 = vector.broadcast %11 : vector<1x512xf32> to vector<8x512xf32>
    %83 = arith.addf %81, %82 : vector<8x512xf32>
    %84 = arith.index_cast %c1_i32 : i32 to index
    %c0_33 = arith.constant 0 : index
    %c0_34 = arith.constant 0 : index
    %85 = vector.load %arg9[%84, %c0_33, %c0_34] : memref<8x8x512xf32, #tpu.memory_space<vmem>>, vector<1x8x512xf32>
    %86 = vector.shape_cast %85 : vector<1x8x512xf32> to vector<8x512xf32>
    %87 = vector.shape_cast %83 : vector<8x512xf32> to vector<1x8x512xf32>
    tpu.vector_store %arg9[%84, %c0_33, %c0_34], %87 {strides = array<i32>} : memref<8x8x512xf32, #tpu.memory_space<vmem>>, vector<1x8x512xf32>,
    %c2_i32 = arith.constant 2 : i32
    %88 = arith.index_cast %c2_i32 : i32 to index
    %c0_35 = arith.constant 0 : index
    %c0_36 = arith.constant 0 : index
    %89 = vector.load %arg8[%88, %c0_35, %c0_36] : memref<8x8x512xf32, #tpu.memory_space<vmem>>, vector<1x8x512xf32>
    %90 = vector.shape_cast %89 : vector<1x8x512xf32> to vector<8x512xf32>
    %cst_37 = arith.constant dense<0.000000e+00> : vector<8x512xf32>
    %91 = tpu.matmul %80, %9, %cst_37 {dimension_numbers = #tpu.dot_dimension_numbers<[1], [0], [0], [1], [0, 0, 1, 1], [], []>} : vector<8x128xf32>, vector<128x512xf32>, vector<8x512xf32> -> vector<8x512xf32>
    %92 = arith.addf %90, %91 : vector<8x512xf32>
    %93 = vector.extract_strided_slice %92 {offsets = [0, 0], sizes = [8, 128], strides = [1, 1]} : vector<8x512xf32> to vector<8x128xf32>
    %94 = arith.negf %93 : vector<8x128xf32>
    %95 = math.exp %94 : vector<8x128xf32>
    %cst_38 = arith.constant 1.000000e+00 : f32
    %96 = vector.broadcast %cst_38 : f32 to vector<8x128xf32>
    %97 = arith.addf %96, %95 : vector<8x128xf32>
    %98 = arith.divf %96, %97 : vector<8x128xf32>
    %99 = vector.extract_strided_slice %92 {offsets = [0, 128], sizes = [8, 128], strides = [1, 1]} : vector<8x512xf32> to vector<8x128xf32>
    %100 = arith.negf %99 : vector<8x128xf32>
    %101 = math.exp %100 : vector<8x128xf32>
    %cst_39 = arith.constant 1.000000e+00 : f32
    %102 = vector.broadcast %cst_39 : f32 to vector<8x128xf32>
    %103 = arith.addf %102, %101 : vector<8x128xf32>
    %104 = arith.divf %102, %103 : vector<8x128xf32>
    %105 = vector.extract_strided_slice %92 {offsets = [0, 256], sizes = [8, 128], strides = [1, 1]} : vector<8x512xf32> to vector<8x128xf32>
    %106 = math.tanh %105 : vector<8x128xf32>
    %107 = vector.extract_strided_slice %92 {offsets = [0, 384], sizes = [8, 128], strides = [1, 1]} : vector<8x512xf32> to vector<8x128xf32>
    %108 = arith.negf %107 : vector<8x128xf32>
    %109 = math.exp %108 : vector<8x128xf32>
    %cst_40 = arith.constant 1.000000e+00 : f32
    %110 = vector.broadcast %cst_40 : f32 to vector<8x128xf32>
    %111 = arith.addf %110, %109 : vector<8x128xf32>
    %112 = arith.divf %110, %111 : vector<8x128xf32>
    %113 = arith.mulf %104, %78 : vector<8x128xf32>
    %114 = arith.mulf %98, %106 : vector<8x128xf32>
    %115 = arith.addf %113, %114 : vector<8x128xf32>
    %116 = math.tanh %115 : vector<8x128xf32>
    %117 = arith.mulf %112, %116 : vector<8x128xf32>
    %cst_41 = arith.constant dense<0.000000e+00> : vector<8x512xf32>
    %118 = tpu.matmul %117, %10, %cst_41 {dimension_numbers = #tpu.dot_dimension_numbers<[1], [0], [0], [1], [0, 0, 1, 1], [], []>} : vector<8x128xf32>, vector<128x512xf32>, vector<8x512xf32> -> vector<8x512xf32>
    %119 = vector.broadcast %11 : vector<1x512xf32> to vector<8x512xf32>
    %120 = arith.addf %118, %119 : vector<8x512xf32>
    %121 = arith.index_cast %c2_i32 : i32 to index
    %c0_42 = arith.constant 0 : index
    %c0_43 = arith.constant 0 : index
    %122 = vector.load %arg9[%121, %c0_42, %c0_43] : memref<8x8x512xf32, #tpu.memory_space<vmem>>, vector<1x8x512xf32>
    %123 = vector.shape_cast %122 : vector<1x8x512xf32> to vector<8x512xf32>
    %124 = vector.shape_cast %120 : vector<8x512xf32> to vector<1x8x512xf32>
    tpu.vector_store %arg9[%121, %c0_42, %c0_43], %124 {strides = array<i32>} : memref<8x8x512xf32, #tpu.memory_space<vmem>>, vector<1x8x512xf32>,
    %c3_i32 = arith.constant 3 : i32
    %125 = arith.index_cast %c3_i32 : i32 to index
    %c0_44 = arith.constant 0 : index
    %c0_45 = arith.constant 0 : index
    %126 = vector.load %arg8[%125, %c0_44, %c0_45] : memref<8x8x512xf32, #tpu.memory_space<vmem>>, vector<1x8x512xf32>
    %127 = vector.shape_cast %126 : vector<1x8x512xf32> to vector<8x512xf32>
    %cst_46 = arith.constant dense<0.000000e+00> : vector<8x512xf32>
    %128 = tpu.matmul %117, %9, %cst_46 {dimension_numbers = #tpu.dot_dimension_numbers<[1], [0], [0], [1], [0, 0, 1, 1], [], []>} : vector<8x128xf32>, vector<128x512xf32>, vector<8x512xf32> -> vector<8x512xf32>
    %129 = arith.addf %127, %128 : vector<8x512xf32>
    %130 = vector.extract_strided_slice %129 {offsets = [0, 0], sizes = [8, 128], strides = [1, 1]} : vector<8x512xf32> to vector<8x128xf32>
    %131 = arith.negf %130 : vector<8x128xf32>
    %132 = math.exp %131 : vector<8x128xf32>
    %cst_47 = arith.constant 1.000000e+00 : f32
    %133 = vector.broadcast %cst_47 : f32 to vector<8x128xf32>
    %134 = arith.addf %133, %132 : vector<8x128xf32>
    %135 = arith.divf %133, %134 : vector<8x128xf32>
    %136 = vector.extract_strided_slice %129 {offsets = [0, 128], sizes = [8, 128], strides = [1, 1]} : vector<8x512xf32> to vector<8x128xf32>
    %137 = arith.negf %136 : vector<8x128xf32>
    %138 = math.exp %137 : vector<8x128xf32>
    %cst_48 = arith.constant 1.000000e+00 : f32
    %139 = vector.broadcast %cst_48 : f32 to vector<8x128xf32>
    %140 = arith.addf %139, %138 : vector<8x128xf32>
    %141 = arith.divf %139, %140 : vector<8x128xf32>
    %142 = vector.extract_strided_slice %129 {offsets = [0, 256], sizes = [8, 128], strides = [1, 1]} : vector<8x512xf32> to vector<8x128xf32>
    %143 = math.tanh %142 : vector<8x128xf32>
    %144 = vector.extract_strided_slice %129 {offsets = [0, 384], sizes = [8, 128], strides = [1, 1]} : vector<8x512xf32> to vector<8x128xf32>
    %145 = arith.negf %144 : vector<8x128xf32>
    %146 = math.exp %145 : vector<8x128xf32>
    %cst_49 = arith.constant 1.000000e+00 : f32
    %147 = vector.broadcast %cst_49 : f32 to vector<8x128xf32>
    %148 = arith.addf %147, %146 : vector<8x128xf32>
    %149 = arith.divf %147, %148 : vector<8x128xf32>
    %150 = arith.mulf %141, %115 : vector<8x128xf32>
    %151 = arith.mulf %135, %143 : vector<8x128xf32>
    %152 = arith.addf %150, %151 : vector<8x128xf32>
    %153 = math.tanh %152 : vector<8x128xf32>
    %154 = arith.mulf %149, %153 : vector<8x128xf32>
    %cst_50 = arith.constant dense<0.000000e+00> : vector<8x512xf32>
    %155 = tpu.matmul %154, %10, %cst_50 {dimension_numbers = #tpu.dot_dimension_numbers<[1], [0], [0], [1], [0, 0, 1, 1], [], []>} : vector<8x128xf32>, vector<128x512xf32>, vector<8x512xf32> -> vector<8x512xf32>
    %156 = vector.broadcast %11 : vector<1x512xf32> to vector<8x512xf32>
    %157 = arith.addf %155, %156 : vector<8x512xf32>
    %158 = arith.index_cast %c3_i32 : i32 to index
    %c0_51 = arith.constant 0 : index
    %c0_52 = arith.constant 0 : index
    %159 = vector.load %arg9[%158, %c0_51, %c0_52] : memref<8x8x512xf32, #tpu.memory_space<vmem>>, vector<1x8x512xf32>
    %160 = vector.shape_cast %159 : vector<1x8x512xf32> to vector<8x512xf32>
    %161 = vector.shape_cast %157 : vector<8x512xf32> to vector<1x8x512xf32>
    tpu.vector_store %arg9[%158, %c0_51, %c0_52], %161 {strides = array<i32>} : memref<8x8x512xf32, #tpu.memory_space<vmem>>, vector<1x8x512xf32>,
    %c4_i32 = arith.constant 4 : i32
    %162 = arith.index_cast %c4_i32 : i32 to index
    %c0_53 = arith.constant 0 : index
    %c0_54 = arith.constant 0 : index
    %163 = vector.load %arg8[%162, %c0_53, %c0_54] : memref<8x8x512xf32, #tpu.memory_space<vmem>>, vector<1x8x512xf32>
    %164 = vector.shape_cast %163 : vector<1x8x512xf32> to vector<8x512xf32>
    %cst_55 = arith.constant dense<0.000000e+00> : vector<8x512xf32>
    %165 = tpu.matmul %154, %9, %cst_55 {dimension_numbers = #tpu.dot_dimension_numbers<[1], [0], [0], [1], [0, 0, 1, 1], [], []>} : vector<8x128xf32>, vector<128x512xf32>, vector<8x512xf32> -> vector<8x512xf32>
    %166 = arith.addf %164, %165 : vector<8x512xf32>
    %167 = vector.extract_strided_slice %166 {offsets = [0, 0], sizes = [8, 128], strides = [1, 1]} : vector<8x512xf32> to vector<8x128xf32>
    %168 = arith.negf %167 : vector<8x128xf32>
    %169 = math.exp %168 : vector<8x128xf32>
    %cst_56 = arith.constant 1.000000e+00 : f32
    %170 = vector.broadcast %cst_56 : f32 to vector<8x128xf32>
    %171 = arith.addf %170, %169 : vector<8x128xf32>
    %172 = arith.divf %170, %171 : vector<8x128xf32>
    %173 = vector.extract_strided_slice %166 {offsets = [0, 128], sizes = [8, 128], strides = [1, 1]} : vector<8x512xf32> to vector<8x128xf32>
    %174 = arith.negf %173 : vector<8x128xf32>
    %175 = math.exp %174 : vector<8x128xf32>
    %cst_57 = arith.constant 1.000000e+00 : f32
    %176 = vector.broadcast %cst_57 : f32 to vector<8x128xf32>
    %177 = arith.addf %176, %175 : vector<8x128xf32>
    %178 = arith.divf %176, %177 : vector<8x128xf32>
    %179 = vector.extract_strided_slice %166 {offsets = [0, 256], sizes = [8, 128], strides = [1, 1]} : vector<8x512xf32> to vector<8x128xf32>
    %180 = math.tanh %179 : vector<8x128xf32>
    %181 = vector.extract_strided_slice %166 {offsets = [0, 384], sizes = [8, 128], strides = [1, 1]} : vector<8x512xf32> to vector<8x128xf32>
    %182 = arith.negf %181 : vector<8x128xf32>
    %183 = math.exp %182 : vector<8x128xf32>
    %cst_58 = arith.constant 1.000000e+00 : f32
    %184 = vector.broadcast %cst_58 : f32 to vector<8x128xf32>
    %185 = arith.addf %184, %183 : vector<8x128xf32>
    %186 = arith.divf %184, %185 : vector<8x128xf32>
    %187 = arith.mulf %178, %152 : vector<8x128xf32>
    %188 = arith.mulf %172, %180 : vector<8x128xf32>
    %189 = arith.addf %187, %188 : vector<8x128xf32>
    %190 = math.tanh %189 : vector<8x128xf32>
    %191 = arith.mulf %186, %190 : vector<8x128xf32>
    %cst_59 = arith.constant dense<0.000000e+00> : vector<8x512xf32>
    %192 = tpu.matmul %191, %10, %cst_59 {dimension_numbers = #tpu.dot_dimension_numbers<[1], [0], [0], [1], [0, 0, 1, 1], [], []>} : vector<8x128xf32>, vector<128x512xf32>, vector<8x512xf32> -> vector<8x512xf32>
    %193 = vector.broadcast %11 : vector<1x512xf32> to vector<8x512xf32>
    %194 = arith.addf %192, %193 : vector<8x512xf32>
    %195 = arith.index_cast %c4_i32 : i32 to index
    %c0_60 = arith.constant 0 : index
    %c0_61 = arith.constant 0 : index
    %196 = vector.load %arg9[%195, %c0_60, %c0_61] : memref<8x8x512xf32, #tpu.memory_space<vmem>>, vector<1x8x512xf32>
    %197 = vector.shape_cast %196 : vector<1x8x512xf32> to vector<8x512xf32>
    %198 = vector.shape_cast %194 : vector<8x512xf32> to vector<1x8x512xf32>
    tpu.vector_store %arg9[%195, %c0_60, %c0_61], %198 {strides = array<i32>} : memref<8x8x512xf32, #tpu.memory_space<vmem>>, vector<1x8x512xf32>,
    %c5_i32 = arith.constant 5 : i32
    %199 = arith.index_cast %c5_i32 : i32 to index
    %c0_62 = arith.constant 0 : index
    %c0_63 = arith.constant 0 : index
    %200 = vector.load %arg8[%199, %c0_62, %c0_63] : memref<8x8x512xf32, #tpu.memory_space<vmem>>, vector<1x8x512xf32>
    %201 = vector.shape_cast %200 : vector<1x8x512xf32> to vector<8x512xf32>
    %cst_64 = arith.constant dense<0.000000e+00> : vector<8x512xf32>
    %202 = tpu.matmul %191, %9, %cst_64 {dimension_numbers = #tpu.dot_dimension_numbers<[1], [0], [0], [1], [0, 0, 1, 1], [], []>} : vector<8x128xf32>, vector<128x512xf32>, vector<8x512xf32> -> vector<8x512xf32>
    %203 = arith.addf %201, %202 : vector<8x512xf32>
    %204 = vector.extract_strided_slice %203 {offsets = [0, 0], sizes = [8, 128], strides = [1, 1]} : vector<8x512xf32> to vector<8x128xf32>
    %205 = arith.negf %204 : vector<8x128xf32>
    %206 = math.exp %205 : vector<8x128xf32>
    %cst_65 = arith.constant 1.000000e+00 : f32
    %207 = vector.broadcast %cst_65 : f32 to vector<8x128xf32>
    %208 = arith.addf %207, %206 : vector<8x128xf32>
    %209 = arith.divf %207, %208 : vector<8x128xf32>
    %210 = vector.extract_strided_slice %203 {offsets = [0, 128], sizes = [8, 128], strides = [1, 1]} : vector<8x512xf32> to vector<8x128xf32>
    %211 = arith.negf %210 : vector<8x128xf32>
    %212 = math.exp %211 : vector<8x128xf32>
    %cst_66 = arith.constant 1.000000e+00 : f32
    %213 = vector.broadcast %cst_66 : f32 to vector<8x128xf32>
    %214 = arith.addf %213, %212 : vector<8x128xf32>
    %215 = arith.divf %213, %214 : vector<8x128xf32>
    %216 = vector.extract_strided_slice %203 {offsets = [0, 256], sizes = [8, 128], strides = [1, 1]} : vector<8x512xf32> to vector<8x128xf32>
    %217 = math.tanh %216 : vector<8x128xf32>
    %218 = vector.extract_strided_slice %203 {offsets = [0, 384], sizes = [8, 128], strides = [1, 1]} : vector<8x512xf32> to vector<8x128xf32>
    %219 = arith.negf %218 : vector<8x128xf32>
    %220 = math.exp %219 : vector<8x128xf32>
    %cst_67 = arith.constant 1.000000e+00 : f32
    %221 = vector.broadcast %cst_67 : f32 to vector<8x128xf32>
    %222 = arith.addf %221, %220 : vector<8x128xf32>
    %223 = arith.divf %221, %222 : vector<8x128xf32>
    %224 = arith.mulf %215, %189 : vector<8x128xf32>
    %225 = arith.mulf %209, %217 : vector<8x128xf32>
    %226 = arith.addf %224, %225 : vector<8x128xf32>
    %227 = math.tanh %226 : vector<8x128xf32>
    %228 = arith.mulf %223, %227 : vector<8x128xf32>
    %cst_68 = arith.constant dense<0.000000e+00> : vector<8x512xf32>
    %229 = tpu.matmul %228, %10, %cst_68 {dimension_numbers = #tpu.dot_dimension_numbers<[1], [0], [0], [1], [0, 0, 1, 1], [], []>} : vector<8x128xf32>, vector<128x512xf32>, vector<8x512xf32> -> vector<8x512xf32>
    %230 = vector.broadcast %11 : vector<1x512xf32> to vector<8x512xf32>
    %231 = arith.addf %229, %230 : vector<8x512xf32>
    %232 = arith.index_cast %c5_i32 : i32 to index
    %c0_69 = arith.constant 0 : index
    %c0_70 = arith.constant 0 : index
    %233 = vector.load %arg9[%232, %c0_69, %c0_70] : memref<8x8x512xf32, #tpu.memory_space<vmem>>, vector<1x8x512xf32>
    %234 = vector.shape_cast %233 : vector<1x8x512xf32> to vector<8x512xf32>
    %235 = vector.shape_cast %231 : vector<8x512xf32> to vector<1x8x512xf32>
    tpu.vector_store %arg9[%232, %c0_69, %c0_70], %235 {strides = array<i32>} : memref<8x8x512xf32, #tpu.memory_space<vmem>>, vector<1x8x512xf32>,
    %c6_i32 = arith.constant 6 : i32
    %236 = arith.index_cast %c6_i32 : i32 to index
    %c0_71 = arith.constant 0 : index
    %c0_72 = arith.constant 0 : index
    %237 = vector.load %arg8[%236, %c0_71, %c0_72] : memref<8x8x512xf32, #tpu.memory_space<vmem>>, vector<1x8x512xf32>
    %238 = vector.shape_cast %237 : vector<1x8x512xf32> to vector<8x512xf32>
    %cst_73 = arith.constant dense<0.000000e+00> : vector<8x512xf32>
    %239 = tpu.matmul %228, %9, %cst_73 {dimension_numbers = #tpu.dot_dimension_numbers<[1], [0], [0], [1], [0, 0, 1, 1], [], []>} : vector<8x128xf32>, vector<128x512xf32>, vector<8x512xf32> -> vector<8x512xf32>
    %240 = arith.addf %238, %239 : vector<8x512xf32>
    %241 = vector.extract_strided_slice %240 {offsets = [0, 0], sizes = [8, 128], strides = [1, 1]} : vector<8x512xf32> to vector<8x128xf32>
    %242 = arith.negf %241 : vector<8x128xf32>
    %243 = math.exp %242 : vector<8x128xf32>
    %cst_74 = arith.constant 1.000000e+00 : f32
    %244 = vector.broadcast %cst_74 : f32 to vector<8x128xf32>
    %245 = arith.addf %244, %243 : vector<8x128xf32>
    %246 = arith.divf %244, %245 : vector<8x128xf32>
    %247 = vector.extract_strided_slice %240 {offsets = [0, 128], sizes = [8, 128], strides = [1, 1]} : vector<8x512xf32> to vector<8x128xf32>
    %248 = arith.negf %247 : vector<8x128xf32>
    %249 = math.exp %248 : vector<8x128xf32>
    %cst_75 = arith.constant 1.000000e+00 : f32
    %250 = vector.broadcast %cst_75 : f32 to vector<8x128xf32>
    %251 = arith.addf %250, %249 : vector<8x128xf32>
    %252 = arith.divf %250, %251 : vector<8x128xf32>
    %253 = vector.extract_strided_slice %240 {offsets = [0, 256], sizes = [8, 128], strides = [1, 1]} : vector<8x512xf32> to vector<8x128xf32>
    %254 = math.tanh %253 : vector<8x128xf32>
    %255 = vector.extract_strided_slice %240 {offsets = [0, 384], sizes = [8, 128], strides = [1, 1]} : vector<8x512xf32> to vector<8x128xf32>
    %256 = arith.negf %255 : vector<8x128xf32>
    %257 = math.exp %256 : vector<8x128xf32>
    %cst_76 = arith.constant 1.000000e+00 : f32
    %258 = vector.broadcast %cst_76 : f32 to vector<8x128xf32>
    %259 = arith.addf %258, %257 : vector<8x128xf32>
    %260 = arith.divf %258, %259 : vector<8x128xf32>
    %261 = arith.mulf %252, %226 : vector<8x128xf32>
    %262 = arith.mulf %246, %254 : vector<8x128xf32>
    %263 = arith.addf %261, %262 : vector<8x128xf32>
    %264 = math.tanh %263 : vector<8x128xf32>
    %265 = arith.mulf %260, %264 : vector<8x128xf32>
    %cst_77 = arith.constant dense<0.000000e+00> : vector<8x512xf32>
    %266 = tpu.matmul %265, %10, %cst_77 {dimension_numbers = #tpu.dot_dimension_numbers<[1], [0], [0], [1], [0, 0, 1, 1], [], []>} : vector<8x128xf32>, vector<128x512xf32>, vector<8x512xf32> -> vector<8x512xf32>
    %267 = vector.broadcast %11 : vector<1x512xf32> to vector<8x512xf32>
    %268 = arith.addf %266, %267 : vector<8x512xf32>
    %269 = arith.index_cast %c6_i32 : i32 to index
    %c0_78 = arith.constant 0 : index
    %c0_79 = arith.constant 0 : index
    %270 = vector.load %arg9[%269, %c0_78, %c0_79] : memref<8x8x512xf32, #tpu.memory_space<vmem>>, vector<1x8x512xf32>
    %271 = vector.shape_cast %270 : vector<1x8x512xf32> to vector<8x512xf32>
    %272 = vector.shape_cast %268 : vector<8x512xf32> to vector<1x8x512xf32>
    tpu.vector_store %arg9[%269, %c0_78, %c0_79], %272 {strides = array<i32>} : memref<8x8x512xf32, #tpu.memory_space<vmem>>, vector<1x8x512xf32>,
    %c7_i32 = arith.constant 7 : i32
    %273 = arith.index_cast %c7_i32 : i32 to index
    %c0_80 = arith.constant 0 : index
    %c0_81 = arith.constant 0 : index
    %274 = vector.load %arg8[%273, %c0_80, %c0_81] : memref<8x8x512xf32, #tpu.memory_space<vmem>>, vector<1x8x512xf32>
    %275 = vector.shape_cast %274 : vector<1x8x512xf32> to vector<8x512xf32>
    %cst_82 = arith.constant dense<0.000000e+00> : vector<8x512xf32>
    %276 = tpu.matmul %265, %9, %cst_82 {dimension_numbers = #tpu.dot_dimension_numbers<[1], [0], [0], [1], [0, 0, 1, 1], [], []>} : vector<8x128xf32>, vector<128x512xf32>, vector<8x512xf32> -> vector<8x512xf32>
    %277 = arith.addf %275, %276 : vector<8x512xf32>
    %278 = vector.extract_strided_slice %277 {offsets = [0, 0], sizes = [8, 128], strides = [1, 1]} : vector<8x512xf32> to vector<8x128xf32>
    %279 = arith.negf %278 : vector<8x128xf32>
    %280 = math.exp %279 : vector<8x128xf32>
    %cst_83 = arith.constant 1.000000e+00 : f32
    %281 = vector.broadcast %cst_83 : f32 to vector<8x128xf32>
    %282 = arith.addf %281, %280 : vector<8x128xf32>
    %283 = arith.divf %281, %282 : vector<8x128xf32>
    %284 = vector.extract_strided_slice %277 {offsets = [0, 128], sizes = [8, 128], strides = [1, 1]} : vector<8x512xf32> to vector<8x128xf32>
    %285 = arith.negf %284 : vector<8x128xf32>
    %286 = math.exp %285 : vector<8x128xf32>
    %cst_84 = arith.constant 1.000000e+00 : f32
    %287 = vector.broadcast %cst_84 : f32 to vector<8x128xf32>
    %288 = arith.addf %287, %286 : vector<8x128xf32>
    %289 = arith.divf %287, %288 : vector<8x128xf32>
    %290 = vector.extract_strided_slice %277 {offsets = [0, 256], sizes = [8, 128], strides = [1, 1]} : vector<8x512xf32> to vector<8x128xf32>
    %291 = math.tanh %290 : vector<8x128xf32>
    %292 = vector.extract_strided_slice %277 {offsets = [0, 384], sizes = [8, 128], strides = [1, 1]} : vector<8x512xf32> to vector<8x128xf32>
    %293 = arith.negf %292 : vector<8x128xf32>
    %294 = math.exp %293 : vector<8x128xf32>
    %cst_85 = arith.constant 1.000000e+00 : f32
    %295 = vector.broadcast %cst_85 : f32 to vector<8x128xf32>
    %296 = arith.addf %295, %294 : vector<8x128xf32>
    %297 = arith.divf %295, %296 : vector<8x128xf32>
    %298 = arith.mulf %289, %263 : vector<8x128xf32>
    %299 = arith.mulf %283, %291 : vector<8x128xf32>
    %300 = arith.addf %298, %299 : vector<8x128xf32>
    %301 = math.tanh %300 : vector<8x128xf32>
    %302 = arith.mulf %297, %301 : vector<8x128xf32>
    %cst_86 = arith.constant dense<0.000000e+00> : vector<8x512xf32>
    %303 = tpu.matmul %302, %10, %cst_86 {dimension_numbers = #tpu.dot_dimension_numbers<[1], [0], [0], [1], [0, 0, 1, 1], [], []>} : vector<8x128xf32>, vector<128x512xf32>, vector<8x512xf32> -> vector<8x512xf32>
    %304 = vector.broadcast %11 : vector<1x512xf32> to vector<8x512xf32>
    %305 = arith.addf %303, %304 : vector<8x512xf32>
    %306 = arith.index_cast %c7_i32 : i32 to index
    %c0_87 = arith.constant 0 : index
    %c0_88 = arith.constant 0 : index
    %307 = vector.load %arg9[%306, %c0_87, %c0_88] : memref<8x8x512xf32, #tpu.memory_space<vmem>>, vector<1x8x512xf32>
    %308 = vector.shape_cast %307 : vector<1x8x512xf32> to vector<8x512xf32>
    %309 = vector.shape_cast %305 : vector<8x512xf32> to vector<1x8x512xf32>
    tpu.vector_store %arg9[%306, %c0_87, %c0_88], %309 {strides = array<i32>} : memref<8x8x512xf32, #tpu.memory_space<vmem>>, vector<1x8x512xf32>,
    %c8_i32 = arith.constant 8 : i32
    %c0_89 = arith.constant 0 : index
    %c0_90 = arith.constant 0 : index
    %310 = vector.load %arg5[%c0_89, %c0_90] : memref<128x512xf32, #tpu.memory_space<vmem>>, vector<128x512xf32>
    %cst_91 = arith.constant 0.000000e+00 : f32
    %311 = vector.broadcast %cst_91 : f32 to vector<8x128xf32>
    %cst_92 = arith.constant 0.000000e+00 : f32
    %312 = vector.broadcast %cst_92 : f32 to vector<8x128xf32>
    %c0_i32_93 = arith.constant 0 : i32
    %313 = arith.index_cast %c0_i32_93 : i32 to index
    %c0_94 = arith.constant 0 : index
    %c0_95 = arith.constant 0 : index
    %314 = vector.load %arg9[%313, %c0_94, %c0_95] : memref<8x8x512xf32, #tpu.memory_space<vmem>>, vector<1x8x512xf32>
    %315 = vector.shape_cast %314 : vector<1x8x512xf32> to vector<8x512xf32>
    %cst_96 = arith.constant dense<0.000000e+00> : vector<8x512xf32>
    %316 = tpu.matmul %311, %310, %cst_96 {dimension_numbers = #tpu.dot_dimension_numbers<[1], [0], [0], [1], [0, 0, 1, 1], [], []>} : vector<8x128xf32>, vector<128x512xf32>, vector<8x512xf32> -> vector<8x512xf32>
    %317 = arith.addf %315, %316 : vector<8x512xf32>
    %318 = vector.extract_strided_slice %317 {offsets = [0, 0], sizes = [8, 128], strides = [1, 1]} : vector<8x512xf32> to vector<8x128xf32>
    %319 = arith.negf %318 : vector<8x128xf32>
    %320 = math.exp %319 : vector<8x128xf32>
    %cst_97 = arith.constant 1.000000e+00 : f32
    %321 = vector.broadcast %cst_97 : f32 to vector<8x128xf32>
    %322 = arith.addf %321, %320 : vector<8x128xf32>
    %323 = arith.divf %321, %322 : vector<8x128xf32>
    %324 = vector.extract_strided_slice %317 {offsets = [0, 128], sizes = [8, 128], strides = [1, 1]} : vector<8x512xf32> to vector<8x128xf32>
    %325 = arith.negf %324 : vector<8x128xf32>
    %326 = math.exp %325 : vector<8x128xf32>
    %cst_98 = arith.constant 1.000000e+00 : f32
    %327 = vector.broadcast %cst_98 : f32 to vector<8x128xf32>
    %328 = arith.addf %327, %326 : vector<8x128xf32>
    %329 = arith.divf %327, %328 : vector<8x128xf32>
    %330 = vector.extract_strided_slice %317 {offsets = [0, 256], sizes = [8, 128], strides = [1, 1]} : vector<8x512xf32> to vector<8x128xf32>
    %331 = math.tanh %330 : vector<8x128xf32>
    %332 = vector.extract_strided_slice %317 {offsets = [0, 384], sizes = [8, 128], strides = [1, 1]} : vector<8x512xf32> to vector<8x128xf32>
    %333 = arith.negf %332 : vector<8x128xf32>
    %334 = math.exp %333 : vector<8x128xf32>
    %cst_99 = arith.constant 1.000000e+00 : f32
    %335 = vector.broadcast %cst_99 : f32 to vector<8x128xf32>
    %336 = arith.addf %335, %334 : vector<8x128xf32>
    %337 = arith.divf %335, %336 : vector<8x128xf32>
    %338 = arith.mulf %329, %312 : vector<8x128xf32>
    %339 = arith.mulf %323, %331 : vector<8x128xf32>
    %340 = arith.addf %338, %339 : vector<8x128xf32>
    %341 = math.tanh %340 : vector<8x128xf32>
    %342 = arith.mulf %337, %341 : vector<8x128xf32>
    %c1_i32_100 = arith.constant 1 : i32
    %343 = arith.index_cast %c1_i32_100 : i32 to index
    %c0_101 = arith.constant 0 : index
    %c0_102 = arith.constant 0 : index
    %344 = vector.load %arg9[%343, %c0_101, %c0_102] : memref<8x8x512xf32, #tpu.memory_space<vmem>>, vector<1x8x512xf32>
    %345 = vector.shape_cast %344 : vector<1x8x512xf32> to vector<8x512xf32>
    %cst_103 = arith.constant dense<0.000000e+00> : vector<8x512xf32>
    %346 = tpu.matmul %342, %310, %cst_103 {dimension_numbers = #tpu.dot_dimension_numbers<[1], [0], [0], [1], [0, 0, 1, 1], [], []>} : vector<8x128xf32>, vector<128x512xf32>, vector<8x512xf32> -> vector<8x512xf32>
    %347 = arith.addf %345, %346 : vector<8x512xf32>
    %348 = vector.extract_strided_slice %347 {offsets = [0, 0], sizes = [8, 128], strides = [1, 1]} : vector<8x512xf32> to vector<8x128xf32>
    %349 = arith.negf %348 : vector<8x128xf32>
    %350 = math.exp %349 : vector<8x128xf32>
    %cst_104 = arith.constant 1.000000e+00 : f32
    %351 = vector.broadcast %cst_104 : f32 to vector<8x128xf32>
    %352 = arith.addf %351, %350 : vector<8x128xf32>
    %353 = arith.divf %351, %352 : vector<8x128xf32>
    %354 = vector.extract_strided_slice %347 {offsets = [0, 128], sizes = [8, 128], strides = [1, 1]} : vector<8x512xf32> to vector<8x128xf32>
    %355 = arith.negf %354 : vector<8x128xf32>
    %356 = math.exp %355 : vector<8x128xf32>
    %cst_105 = arith.constant 1.000000e+00 : f32
    %357 = vector.broadcast %cst_105 : f32 to vector<8x128xf32>
    %358 = arith.addf %357, %356 : vector<8x128xf32>
    %359 = arith.divf %357, %358 : vector<8x128xf32>
    %360 = vector.extract_strided_slice %347 {offsets = [0, 256], sizes = [8, 128], strides = [1, 1]} : vector<8x512xf32> to vector<8x128xf32>
    %361 = math.tanh %360 : vector<8x128xf32>
    %362 = vector.extract_strided_slice %347 {offsets = [0, 384], sizes = [8, 128], strides = [1, 1]} : vector<8x512xf32> to vector<8x128xf32>
    %363 = arith.negf %362 : vector<8x128xf32>
    %364 = math.exp %363 : vector<8x128xf32>
    %cst_106 = arith.constant 1.000000e+00 : f32
    %365 = vector.broadcast %cst_106 : f32 to vector<8x128xf32>
    %366 = arith.addf %365, %364 : vector<8x128xf32>
    %367 = arith.divf %365, %366 : vector<8x128xf32>
    %368 = arith.mulf %359, %340 : vector<8x128xf32>
    %369 = arith.mulf %353, %361 : vector<8x128xf32>
    %370 = arith.addf %368, %369 : vector<8x128xf32>
    %371 = math.tanh %370 : vector<8x128xf32>
    %372 = arith.mulf %367, %371 : vector<8x128xf32>
    %c2_i32_107 = arith.constant 2 : i32
    %373 = arith.index_cast %c2_i32_107 : i32 to index
    %c0_108 = arith.constant 0 : index
    %c0_109 = arith.constant 0 : index
    %374 = vector.load %arg9[%373, %c0_108, %c0_109] : memref<8x8x512xf32, #tpu.memory_space<vmem>>, vector<1x8x512xf32>
    %375 = vector.shape_cast %374 : vector<1x8x512xf32> to vector<8x512xf32>
    %cst_110 = arith.constant dense<0.000000e+00> : vector<8x512xf32>
    %376 = tpu.matmul %372, %310, %cst_110 {dimension_numbers = #tpu.dot_dimension_numbers<[1], [0], [0], [1], [0, 0, 1, 1], [], []>} : vector<8x128xf32>, vector<128x512xf32>, vector<8x512xf32> -> vector<8x512xf32>
    %377 = arith.addf %375, %376 : vector<8x512xf32>
    %378 = vector.extract_strided_slice %377 {offsets = [0, 0], sizes = [8, 128], strides = [1, 1]} : vector<8x512xf32> to vector<8x128xf32>
    %379 = arith.negf %378 : vector<8x128xf32>
    %380 = math.exp %379 : vector<8x128xf32>
    %cst_111 = arith.constant 1.000000e+00 : f32
    %381 = vector.broadcast %cst_111 : f32 to vector<8x128xf32>
    %382 = arith.addf %381, %380 : vector<8x128xf32>
    %383 = arith.divf %381, %382 : vector<8x128xf32>
    %384 = vector.extract_strided_slice %377 {offsets = [0, 128], sizes = [8, 128], strides = [1, 1]} : vector<8x512xf32> to vector<8x128xf32>
    %385 = arith.negf %384 : vector<8x128xf32>
    %386 = math.exp %385 : vector<8x128xf32>
    %cst_112 = arith.constant 1.000000e+00 : f32
    %387 = vector.broadcast %cst_112 : f32 to vector<8x128xf32>
    %388 = arith.addf %387, %386 : vector<8x128xf32>
    %389 = arith.divf %387, %388 : vector<8x128xf32>
    %390 = vector.extract_strided_slice %377 {offsets = [0, 256], sizes = [8, 128], strides = [1, 1]} : vector<8x512xf32> to vector<8x128xf32>
    %391 = math.tanh %390 : vector<8x128xf32>
    %392 = vector.extract_strided_slice %377 {offsets = [0, 384], sizes = [8, 128], strides = [1, 1]} : vector<8x512xf32> to vector<8x128xf32>
    %393 = arith.negf %392 : vector<8x128xf32>
    %394 = math.exp %393 : vector<8x128xf32>
    %cst_113 = arith.constant 1.000000e+00 : f32
    %395 = vector.broadcast %cst_113 : f32 to vector<8x128xf32>
    %396 = arith.addf %395, %394 : vector<8x128xf32>
    %397 = arith.divf %395, %396 : vector<8x128xf32>
    %398 = arith.mulf %389, %370 : vector<8x128xf32>
    %399 = arith.mulf %383, %391 : vector<8x128xf32>
    %400 = arith.addf %398, %399 : vector<8x128xf32>
    %401 = math.tanh %400 : vector<8x128xf32>
    %402 = arith.mulf %397, %401 : vector<8x128xf32>
    %c3_i32_114 = arith.constant 3 : i32
    %403 = arith.index_cast %c3_i32_114 : i32 to index
    %c0_115 = arith.constant 0 : index
    %c0_116 = arith.constant 0 : index
    %404 = vector.load %arg9[%403, %c0_115, %c0_116] : memref<8x8x512xf32, #tpu.memory_space<vmem>>, vector<1x8x512xf32>
    %405 = vector.shape_cast %404 : vector<1x8x512xf32> to vector<8x512xf32>
    %cst_117 = arith.constant dense<0.000000e+00> : vector<8x512xf32>
    %406 = tpu.matmul %402, %310, %cst_117 {dimension_numbers = #tpu.dot_dimension_numbers<[1], [0], [0], [1], [0, 0, 1, 1], [], []>} : vector<8x128xf32>, vector<128x512xf32>, vector<8x512xf32> -> vector<8x512xf32>
    %407 = arith.addf %405, %406 : vector<8x512xf32>
    %408 = vector.extract_strided_slice %407 {offsets = [0, 0], sizes = [8, 128], strides = [1, 1]} : vector<8x512xf32> to vector<8x128xf32>
    %409 = arith.negf %408 : vector<8x128xf32>
    %410 = math.exp %409 : vector<8x128xf32>
    %cst_118 = arith.constant 1.000000e+00 : f32
    %411 = vector.broadcast %cst_118 : f32 to vector<8x128xf32>
    %412 = arith.addf %411, %410 : vector<8x128xf32>
    %413 = arith.divf %411, %412 : vector<8x128xf32>
    %414 = vector.extract_strided_slice %407 {offsets = [0, 128], sizes = [8, 128], strides = [1, 1]} : vector<8x512xf32> to vector<8x128xf32>
    %415 = arith.negf %414 : vector<8x128xf32>
    %416 = math.exp %415 : vector<8x128xf32>
    %cst_119 = arith.constant 1.000000e+00 : f32
    %417 = vector.broadcast %cst_119 : f32 to vector<8x128xf32>
    %418 = arith.addf %417, %416 : vector<8x128xf32>
    %419 = arith.divf %417, %418 : vector<8x128xf32>
    %420 = vector.extract_strided_slice %407 {offsets = [0, 256], sizes = [8, 128], strides = [1, 1]} : vector<8x512xf32> to vector<8x128xf32>
    %421 = math.tanh %420 : vector<8x128xf32>
    %422 = vector.extract_strided_slice %407 {offsets = [0, 384], sizes = [8, 128], strides = [1, 1]} : vector<8x512xf32> to vector<8x128xf32>
    %423 = arith.negf %422 : vector<8x128xf32>
    %424 = math.exp %423 : vector<8x128xf32>
    %cst_120 = arith.constant 1.000000e+00 : f32
    %425 = vector.broadcast %cst_120 : f32 to vector<8x128xf32>
    %426 = arith.addf %425, %424 : vector<8x128xf32>
    %427 = arith.divf %425, %426 : vector<8x128xf32>
    %428 = arith.mulf %419, %400 : vector<8x128xf32>
    %429 = arith.mulf %413, %421 : vector<8x128xf32>
    %430 = arith.addf %428, %429 : vector<8x128xf32>
    %431 = math.tanh %430 : vector<8x128xf32>
    %432 = arith.mulf %427, %431 : vector<8x128xf32>
    %c4_i32_121 = arith.constant 4 : i32
    %433 = arith.index_cast %c4_i32_121 : i32 to index
    %c0_122 = arith.constant 0 : index
    %c0_123 = arith.constant 0 : index
    %434 = vector.load %arg9[%433, %c0_122, %c0_123] : memref<8x8x512xf32, #tpu.memory_space<vmem>>, vector<1x8x512xf32>
    %435 = vector.shape_cast %434 : vector<1x8x512xf32> to vector<8x512xf32>
    %cst_124 = arith.constant dense<0.000000e+00> : vector<8x512xf32>
    %436 = tpu.matmul %432, %310, %cst_124 {dimension_numbers = #tpu.dot_dimension_numbers<[1], [0], [0], [1], [0, 0, 1, 1], [], []>} : vector<8x128xf32>, vector<128x512xf32>, vector<8x512xf32> -> vector<8x512xf32>
    %437 = arith.addf %435, %436 : vector<8x512xf32>
    %438 = vector.extract_strided_slice %437 {offsets = [0, 0], sizes = [8, 128], strides = [1, 1]} : vector<8x512xf32> to vector<8x128xf32>
    %439 = arith.negf %438 : vector<8x128xf32>
    %440 = math.exp %439 : vector<8x128xf32>
    %cst_125 = arith.constant 1.000000e+00 : f32
    %441 = vector.broadcast %cst_125 : f32 to vector<8x128xf32>
    %442 = arith.addf %441, %440 : vector<8x128xf32>
    %443 = arith.divf %441, %442 : vector<8x128xf32>
    %444 = vector.extract_strided_slice %437 {offsets = [0, 128], sizes = [8, 128], strides = [1, 1]} : vector<8x512xf32> to vector<8x128xf32>
    %445 = arith.negf %444 : vector<8x128xf32>
    %446 = math.exp %445 : vector<8x128xf32>
    %cst_126 = arith.constant 1.000000e+00 : f32
    %447 = vector.broadcast %cst_126 : f32 to vector<8x128xf32>
    %448 = arith.addf %447, %446 : vector<8x128xf32>
    %449 = arith.divf %447, %448 : vector<8x128xf32>
    %450 = vector.extract_strided_slice %437 {offsets = [0, 256], sizes = [8, 128], strides = [1, 1]} : vector<8x512xf32> to vector<8x128xf32>
    %451 = math.tanh %450 : vector<8x128xf32>
    %452 = vector.extract_strided_slice %437 {offsets = [0, 384], sizes = [8, 128], strides = [1, 1]} : vector<8x512xf32> to vector<8x128xf32>
    %453 = arith.negf %452 : vector<8x128xf32>
    %454 = math.exp %453 : vector<8x128xf32>
    %cst_127 = arith.constant 1.000000e+00 : f32
    %455 = vector.broadcast %cst_127 : f32 to vector<8x128xf32>
    %456 = arith.addf %455, %454 : vector<8x128xf32>
    %457 = arith.divf %455, %456 : vector<8x128xf32>
    %458 = arith.mulf %449, %430 : vector<8x128xf32>
    %459 = arith.mulf %443, %451 : vector<8x128xf32>
    %460 = arith.addf %458, %459 : vector<8x128xf32>
    %461 = math.tanh %460 : vector<8x128xf32>
    %462 = arith.mulf %457, %461 : vector<8x128xf32>
    %c5_i32_128 = arith.constant 5 : i32
    %463 = arith.index_cast %c5_i32_128 : i32 to index
    %c0_129 = arith.constant 0 : index
    %c0_130 = arith.constant 0 : index
    %464 = vector.load %arg9[%463, %c0_129, %c0_130] : memref<8x8x512xf32, #tpu.memory_space<vmem>>, vector<1x8x512xf32>
    %465 = vector.shape_cast %464 : vector<1x8x512xf32> to vector<8x512xf32>
    %cst_131 = arith.constant dense<0.000000e+00> : vector<8x512xf32>
    %466 = tpu.matmul %462, %310, %cst_131 {dimension_numbers = #tpu.dot_dimension_numbers<[1], [0], [0], [1], [0, 0, 1, 1], [], []>} : vector<8x128xf32>, vector<128x512xf32>, vector<8x512xf32> -> vector<8x512xf32>
    %467 = arith.addf %465, %466 : vector<8x512xf32>
    %468 = vector.extract_strided_slice %467 {offsets = [0, 0], sizes = [8, 128], strides = [1, 1]} : vector<8x512xf32> to vector<8x128xf32>
    %469 = arith.negf %468 : vector<8x128xf32>
    %470 = math.exp %469 : vector<8x128xf32>
    %cst_132 = arith.constant 1.000000e+00 : f32
    %471 = vector.broadcast %cst_132 : f32 to vector<8x128xf32>
    %472 = arith.addf %471, %470 : vector<8x128xf32>
    %473 = arith.divf %471, %472 : vector<8x128xf32>
    %474 = vector.extract_strided_slice %467 {offsets = [0, 128], sizes = [8, 128], strides = [1, 1]} : vector<8x512xf32> to vector<8x128xf32>
    %475 = arith.negf %474 : vector<8x128xf32>
    %476 = math.exp %475 : vector<8x128xf32>
    %cst_133 = arith.constant 1.000000e+00 : f32
    %477 = vector.broadcast %cst_133 : f32 to vector<8x128xf32>
    %478 = arith.addf %477, %476 : vector<8x128xf32>
    %479 = arith.divf %477, %478 : vector<8x128xf32>
    %480 = vector.extract_strided_slice %467 {offsets = [0, 256], sizes = [8, 128], strides = [1, 1]} : vector<8x512xf32> to vector<8x128xf32>
    %481 = math.tanh %480 : vector<8x128xf32>
    %482 = vector.extract_strided_slice %467 {offsets = [0, 384], sizes = [8, 128], strides = [1, 1]} : vector<8x512xf32> to vector<8x128xf32>
    %483 = arith.negf %482 : vector<8x128xf32>
    %484 = math.exp %483 : vector<8x128xf32>
    %cst_134 = arith.constant 1.000000e+00 : f32
    %485 = vector.broadcast %cst_134 : f32 to vector<8x128xf32>
    %486 = arith.addf %485, %484 : vector<8x128xf32>
    %487 = arith.divf %485, %486 : vector<8x128xf32>
    %488 = arith.mulf %479, %460 : vector<8x128xf32>
    %489 = arith.mulf %473, %481 : vector<8x128xf32>
    %490 = arith.addf %488, %489 : vector<8x128xf32>
    %491 = math.tanh %490 : vector<8x128xf32>
    %492 = arith.mulf %487, %491 : vector<8x128xf32>
    %c6_i32_135 = arith.constant 6 : i32
    %493 = arith.index_cast %c6_i32_135 : i32 to index
    %c0_136 = arith.constant 0 : index
    %c0_137 = arith.constant 0 : index
    %494 = vector.load %arg9[%493, %c0_136, %c0_137] : memref<8x8x512xf32, #tpu.memory_space<vmem>>, vector<1x8x512xf32>
    %495 = vector.shape_cast %494 : vector<1x8x512xf32> to vector<8x512xf32>
    %cst_138 = arith.constant dense<0.000000e+00> : vector<8x512xf32>
    %496 = tpu.matmul %492, %310, %cst_138 {dimension_numbers = #tpu.dot_dimension_numbers<[1], [0], [0], [1], [0, 0, 1, 1], [], []>} : vector<8x128xf32>, vector<128x512xf32>, vector<8x512xf32> -> vector<8x512xf32>
    %497 = arith.addf %495, %496 : vector<8x512xf32>
    %498 = vector.extract_strided_slice %497 {offsets = [0, 0], sizes = [8, 128], strides = [1, 1]} : vector<8x512xf32> to vector<8x128xf32>
    %499 = arith.negf %498 : vector<8x128xf32>
    %500 = math.exp %499 : vector<8x128xf32>
    %cst_139 = arith.constant 1.000000e+00 : f32
    %501 = vector.broadcast %cst_139 : f32 to vector<8x128xf32>
    %502 = arith.addf %501, %500 : vector<8x128xf32>
    %503 = arith.divf %501, %502 : vector<8x128xf32>
    %504 = vector.extract_strided_slice %497 {offsets = [0, 128], sizes = [8, 128], strides = [1, 1]} : vector<8x512xf32> to vector<8x128xf32>
    %505 = arith.negf %504 : vector<8x128xf32>
    %506 = math.exp %505 : vector<8x128xf32>
    %cst_140 = arith.constant 1.000000e+00 : f32
    %507 = vector.broadcast %cst_140 : f32 to vector<8x128xf32>
    %508 = arith.addf %507, %506 : vector<8x128xf32>
    %509 = arith.divf %507, %508 : vector<8x128xf32>
    %510 = vector.extract_strided_slice %497 {offsets = [0, 256], sizes = [8, 128], strides = [1, 1]} : vector<8x512xf32> to vector<8x128xf32>
    %511 = math.tanh %510 : vector<8x128xf32>
    %512 = vector.extract_strided_slice %497 {offsets = [0, 384], sizes = [8, 128], strides = [1, 1]} : vector<8x512xf32> to vector<8x128xf32>
    %513 = arith.negf %512 : vector<8x128xf32>
    %514 = math.exp %513 : vector<8x128xf32>
    %cst_141 = arith.constant 1.000000e+00 : f32
    %515 = vector.broadcast %cst_141 : f32 to vector<8x128xf32>
    %516 = arith.addf %515, %514 : vector<8x128xf32>
    %517 = arith.divf %515, %516 : vector<8x128xf32>
    %518 = arith.mulf %509, %490 : vector<8x128xf32>
    %519 = arith.mulf %503, %511 : vector<8x128xf32>
    %520 = arith.addf %518, %519 : vector<8x128xf32>
    %521 = math.tanh %520 : vector<8x128xf32>
    %522 = arith.mulf %517, %521 : vector<8x128xf32>
    %c7_i32_142 = arith.constant 7 : i32
    %523 = arith.index_cast %c7_i32_142 : i32 to index
    %c0_143 = arith.constant 0 : index
    %c0_144 = arith.constant 0 : index
    %524 = vector.load %arg9[%523, %c0_143, %c0_144] : memref<8x8x512xf32, #tpu.memory_space<vmem>>, vector<1x8x512xf32>
    %525 = vector.shape_cast %524 : vector<1x8x512xf32> to vector<8x512xf32>
    %cst_145 = arith.constant dense<0.000000e+00> : vector<8x512xf32>
    %526 = tpu.matmul %522, %310, %cst_145 {dimension_numbers = #tpu.dot_dimension_numbers<[1], [0], [0], [1], [0, 0, 1, 1], [], []>} : vector<8x128xf32>, vector<128x512xf32>, vector<8x512xf32> -> vector<8x512xf32>
    %527 = arith.addf %525, %526 : vector<8x512xf32>
    %528 = vector.extract_strided_slice %527 {offsets = [0, 0], sizes = [8, 128], strides = [1, 1]} : vector<8x512xf32> to vector<8x128xf32>
    %529 = arith.negf %528 : vector<8x128xf32>
    %530 = math.exp %529 : vector<8x128xf32>
    %cst_146 = arith.constant 1.000000e+00 : f32
    %531 = vector.broadcast %cst_146 : f32 to vector<8x128xf32>
    %532 = arith.addf %531, %530 : vector<8x128xf32>
    %533 = arith.divf %531, %532 : vector<8x128xf32>
    %534 = vector.extract_strided_slice %527 {offsets = [0, 128], sizes = [8, 128], strides = [1, 1]} : vector<8x512xf32> to vector<8x128xf32>
    %535 = arith.negf %534 : vector<8x128xf32>
    %536 = math.exp %535 : vector<8x128xf32>
    %cst_147 = arith.constant 1.000000e+00 : f32
    %537 = vector.broadcast %cst_147 : f32 to vector<8x128xf32>
    %538 = arith.addf %537, %536 : vector<8x128xf32>
    %539 = arith.divf %537, %538 : vector<8x128xf32>
    %540 = vector.extract_strided_slice %527 {offsets = [0, 256], sizes = [8, 128], strides = [1, 1]} : vector<8x512xf32> to vector<8x128xf32>
    %541 = math.tanh %540 : vector<8x128xf32>
    %542 = vector.extract_strided_slice %527 {offsets = [0, 384], sizes = [8, 128], strides = [1, 1]} : vector<8x512xf32> to vector<8x128xf32>
    %543 = arith.negf %542 : vector<8x128xf32>
    %544 = math.exp %543 : vector<8x128xf32>
    %cst_148 = arith.constant 1.000000e+00 : f32
    %545 = vector.broadcast %cst_148 : f32 to vector<8x128xf32>
    %546 = arith.addf %545, %544 : vector<8x128xf32>
    %547 = arith.divf %545, %546 : vector<8x128xf32>
    %548 = arith.mulf %539, %520 : vector<8x128xf32>
    %549 = arith.mulf %533, %541 : vector<8x128xf32>
    %550 = arith.addf %548, %549 : vector<8x128xf32>
    %551 = math.tanh %550 : vector<8x128xf32>
    %552 = arith.mulf %547, %551 : vector<8x128xf32>
    %c8_i32_149 = arith.constant 8 : i32
    %c0_150 = arith.constant 0 : index
    %c0_151 = arith.constant 0 : index
    %553 = vector.load %arg7[%c0_150, %c0_151] : memref<8x128xf32, #tpu.memory_space<vmem>>, vector<8x128xf32>
    tpu.vector_store %arg7[%c0_150, %c0_151], %552 {strides = array<i32>} : memref<8x128xf32, #tpu.memory_space<vmem>>, vector<8x128xf32>,
    return
  }
}

</mosaic_0001>

<bundles_post_ra>
// kernel: price_embedding_forward.1
= control target key start
LH: loop header
LB: loop body
LE: loop exit
PB: predicated region body
PF: predicated region fallthrough
CT: control target
= control target key end

     0   :  { %v9994_v3 = vmov 0.0   ;;  %s9986_s1 = inlined_call_operand.vmem [shape: f32[128,512], index: 1, kind: input, shape index: {}]   ;;  %s9987_s0 = inlined_call_operand.vmem [shape: f32[8,8,128], index: 0, kind: input, shape index: {}]   ;;  %s9988_s2 = inlined_call_operand.vmem [shape: f32[128,512], index: 2, kind: input, shape index: {}]   ;;  %s9989_s4 = inlined_call_operand.vmem [shape: f32[128,512], index: 4, kind: input, shape index: {}]   ;;  %s9990_s3 = inlined_call_operand.vmem [shape: f32[1,512], index: 3, kind: input, shape index: {}]   ;;  %s9991_s5 = inlined_call_operand.vmem [shape: f32[128,512], index: 5, kind: input, shape index: {}]   ;;  %s9992_s6 = inlined_call_operand.vmem [shape: f32[1,512], index: 6, kind: input, shape index: {}]   ;;  %s9993_s7 = inlined_call_operand.vmem [shape: f32[8,128], index: 7, kind: output, shape index: {}]  }
   0x1   :  { %v87_v0 = vld [vmem:[%s9986_s1 + $0x1e8] sm:$0xff]  ;;  %v89_v1 = vld [vmem:[%s9986_s1 + $0x1f8] sm:$0xff]  ;;  %v86_v2 = vld [vmem:[%s9986_s1 + $0x1e0] sm:$0xff]  ;;  %184 = vmatprep.mubr.f32.mxu0 %v9994_v3  ;;  %297 = vmatprep.mubr.f32.mxu1 %v9994_v3 }
   0x2   :  { %120 = vmatprep.subr.mxu0 %v87_v0  ;;  %233 = vmatprep.subr.mxu1 %v89_v1  ;;  %v88_v4 = vld [vmem:[%s9986_s1 + $0x1f0] sm:$0xff]  ;;  %v83_v5 = vld [vmem:[%s9986_s1 + $0x1c8] sm:$0xff]  ;;  %v85_v6 = vld [vmem:[%s9986_s1 + $0x1d8] sm:$0xff] }
   0x3   :  { %121 = vmatpush1.msra.mxu0 %v86_v2  ;;  %234 = vmatpush1.msra.mxu1 %v88_v4  ;;  %v82_v7 = vld [vmem:[%s9986_s1 + $0x1c0] sm:$0xff]  ;;  %v84_v8 = vld [vmem:[%s9986_s1 + $0x1d0] sm:$0xff]  ;;  %v79_v9 = vld [vmem:[%s9986_s1 + $0x1a8] sm:$0xff] }
   0x4   :  { %122 = vmatprep.subr.mxu0 %v83_v5  ;;  %235 = vmatprep.subr.mxu1 %v85_v6  ;;  %v81_v10 = vld [vmem:[%s9986_s1 + $0x1b8] sm:$0xff]  ;;  %v78_v11 = vld [vmem:[%s9986_s1 + $0x1a0] sm:$0xff]  ;;  %v80_v12 = vld [vmem:[%s9986_s1 + $0x1b0] sm:$0xff] }
   0x5   :  { %123 = vmatpush1.msra.mxu0 %v82_v7  ;;  %236 = vmatpush1.msra.mxu1 %v84_v8  ;;  %v75_v13 = vld [vmem:[%s9986_s1 + $0x188] sm:$0xff]  ;;  %v77_v14 = vld [vmem:[%s9986_s1 + $0x198] sm:$0xff]  ;;  %v74_v15 = vld [vmem:[%s9986_s1 + $0x180] sm:$0xff] }
   0x6   :  { %124 = vmatprep.subr.mxu0 %v79_v9  ;;  %237 = vmatprep.subr.mxu1 %v81_v10  ;;  %v76_v16 = vld [vmem:[%s9986_s1 + $0x190] sm:$0xff]  ;;  %v71_v17 = vld [vmem:[%s9986_s1 + $0x168] sm:$0xff]  ;;  %v73_v18 = vld [vmem:[%s9986_s1 + $0x178] sm:$0xff] }
   0x7   :  { %125 = vmatpush1.msra.mxu0 %v78_v11  ;;  %238 = vmatpush1.msra.mxu1 %v80_v12  ;;  %v70_v19 = vld [vmem:[%s9986_s1 + $0x160] sm:$0xff]  ;;  %v72_v20 = vld [vmem:[%s9986_s1 + $0x170] sm:$0xff]  ;;  %v67_v21 = vld [vmem:[%s9986_s1 + $0x148] sm:$0xff] }
   0x8   :  { %126 = vmatprep.subr.mxu0 %v75_v13  ;;  %239 = vmatprep.subr.mxu1 %v77_v14  ;;  %v69_v22 = vld [vmem:[%s9986_s1 + $0x158] sm:$0xff]  ;;  %v66_v23 = vld [vmem:[%s9986_s1 + $0x140] sm:$0xff]  ;;  %v68_v24 = vld [vmem:[%s9986_s1 + $0x150] sm:$0xff] }
   0x9   :  { %127 = vmatpush1.msra.mxu0 %v74_v15  ;;  %240 = vmatpush1.msra.mxu1 %v76_v16  ;;  %v63_v25 = vld [vmem:[%s9986_s1 + $0x128] sm:$0xff]  ;;  %v65_v26 = vld [vmem:[%s9986_s1 + $0x138] sm:$0xff]  ;;  %v62_v27 = vld [vmem:[%s9986_s1 + $0x120] sm:$0xff] }
   0xa   :  { %128 = vmatprep.subr.mxu0 %v71_v17  ;;  %241 = vmatprep.subr.mxu1 %v73_v18  ;;  %v64_v28 = vld [vmem:[%s9986_s1 + $0x130] sm:$0xff]  ;;  %v59_v29 = vld [vmem:[%s9986_s1 + $0x108] sm:$0xff]  ;;  %v61_v30 = vld [vmem:[%s9986_s1 + $0x118] sm:$0xff] }
   0xb   :  { %129 = vmatpush1.msra.mxu0 %v70_v19  ;;  %242 = vmatpush1.msra.mxu1 %v72_v20  ;;  %v58_v31 = vld [vmem:[%s9986_s1 + $0x100] sm:$0xff]  ;;  %v60_v32 = vld [vmem:[%s9986_s1 + $0x110] sm:$0xff]  ;;  %v55_v33 = vld [vmem:[%s9986_s1 + $0xe8] sm:$0xff] }
   0xc   :  { %130 = vmatprep.subr.mxu0 %v67_v21  ;;  %243 = vmatprep.subr.mxu1 %v69_v22  ;;  %v57_v34 = vld [vmem:[%s9986_s1 + $0xf8] sm:$0xff]  ;;  %v54_v35 = vld [vmem:[%s9986_s1 + $0xe0] sm:$0xff]  ;;  %v56_v36 = vld [vmem:[%s9986_s1 + $0xf0] sm:$0xff] }
   0xd   :  { %131 = vmatpush1.msra.mxu0 %v66_v23  ;;  %244 = vmatpush1.msra.mxu1 %v68_v24  ;;  %v51_v37 = vld [vmem:[%s9986_s1 + $0xc8] sm:$0xff]  ;;  %v53_v38 = vld [vmem:[%s9986_s1 + $0xd8] sm:$0xff]  ;;  %v50_v39 = vld [vmem:[%s9986_s1 + $0xc0] sm:$0xff] }
   0xe   :  { %132 = vmatprep.subr.mxu0 %v63_v25  ;;  %245 = vmatprep.subr.mxu1 %v65_v26  ;;  %v52_v40 = vld [vmem:[%s9986_s1 + $0xd0] sm:$0xff]  ;;  %v47_v41 = vld [vmem:[%s9986_s1 + $0xa8] sm:$0xff]  ;;  %v49_v42 = vld [vmem:[%s9986_s1 + $0xb8] sm:$0xff] }
   0xf   :  { %133 = vmatpush1.msra.mxu0 %v62_v27  ;;  %246 = vmatpush1.msra.mxu1 %v64_v28  ;;  %v46_v43 = vld [vmem:[%s9986_s1 + $0xa0] sm:$0xff]  ;;  %v48_v44 = vld [vmem:[%s9986_s1 + $0xb0] sm:$0xff]  ;;  %v43_v45 = vld [vmem:[%s9986_s1 + $0x88] sm:$0xff] }
  0x10   :  { %134 = vmatprep.subr.mxu0 %v59_v29  ;;  %247 = vmatprep.subr.mxu1 %v61_v30  ;;  %v45_v46 = vld [vmem:[%s9986_s1 + $0x98] sm:$0xff]  ;;  %v42_v47 = vld [vmem:[%s9986_s1 + $0x80] sm:$0xff]  ;;  %v44_v48 = vld [vmem:[%s9986_s1 + $0x90] sm:$0xff] }
  0x11   :  { %135 = vmatpush1.msra.mxu0 %v58_v31  ;;  %248 = vmatpush1.msra.mxu1 %v60_v32  ;;  %v39_v49 = vld [vmem:[%s9986_s1 + $0x68] sm:$0xff]  ;;  %v41_v50 = vld [vmem:[%s9986_s1 + $0x78] sm:$0xff]  ;;  %v38_v51 = vld [vmem:[%s9986_s1 + $0x60] sm:$0xff] }
  0x12   :  { %136 = vmatprep.subr.mxu0 %v55_v33  ;;  %249 = vmatprep.subr.mxu1 %v57_v34  ;;  %v40_v52 = vld [vmem:[%s9986_s1 + $0x70] sm:$0xff]  ;;  %v35_v53 = vld [vmem:[%s9986_s1 + $0x48] sm:$0xff]  ;;  %v37_v54 = vld [vmem:[%s9986_s1 + $0x58] sm:$0xff] }
  0x13   :  { %137 = vmatpush1.msra.mxu0 %v54_v35  ;;  %250 = vmatpush1.msra.mxu1 %v56_v36  ;;  %v34_v55 = vld [vmem:[%s9986_s1 + $0x40] sm:$0xff]  ;;  %v36_v56 = vld [vmem:[%s9986_s1 + $0x50] sm:$0xff]  ;;  %v31_v57 = vld [vmem:[%s9986_s1 + $0x28] sm:$0xff] }
  0x14   :  { %138 = vmatprep.subr.mxu0 %v51_v37  ;;  %251 = vmatprep.subr.mxu1 %v53_v38  ;;  %v33_v58 = vld [vmem:[%s9986_s1 + $0x38] sm:$0xff]  ;;  %v30_v59 = vld [vmem:[%s9986_s1 + $0x20] sm:$0xff]  ;;  %v32_v60 = vld [vmem:[%s9986_s1 + $0x30] sm:$0xff] }
  0x15   :  { %139 = vmatpush1.msra.mxu0 %v50_v39  ;;  %252 = vmatpush1.msra.mxu1 %v52_v40  ;;  %v27_v61 = vld [vmem:[%s9986_s1 + $0x8] sm:$0xff]  ;;  %v29_v62 = vld [vmem:[%s9986_s1 + $0x18] sm:$0xff]  ;;  %v26_v63 = vld [vmem:[%s9986_s1] sm:$0xff] }
  0x16   :  { %140 = vmatprep.subr.mxu0 %v47_v41  ;;  %253 = vmatprep.subr.mxu1 %v49_v42  ;;  %v28_v0 = vld [vmem:[%s9986_s1 + $0x10] sm:$0xff]  ;;  %v91_v1 = vld [vmem:[%s9987_s0] sm:$0xff]  ;;  %v5429_v2 = vld [vmem:[%s9988_s2 + $0x1e8] sm:$0xff] }
  0x17   :  { %141 = vmatpush1.msra.mxu0 %v46_v43  ;;  %254 = vmatpush1.msra.mxu1 %v48_v44  ;;  %v5434_v4 = vld [vmem:[%s9988_s2 + $0x1f8] sm:$0xff]  ;;  %v5439_v5 = vld [vmem:[%s9988_s2 + $0x1e0] sm:$0xff]  ;;  %v5444_v6 = vld [vmem:[%s9988_s2 + $0x1f0] sm:$0xff] }
  0x18   :  { %142 = vmatprep.subr.mxu0 %v43_v45  ;;  %255 = vmatprep.subr.mxu1 %v45_v46  ;;  %v5449_v7 = vld [vmem:[%s9988_s2 + $0x1c8] sm:$0xff]  ;;  %v5454_v8 = vld [vmem:[%s9988_s2 + $0x1d8] sm:$0xff]  ;;  %v5463_v9 = vld [vmem:[%s9988_s2 + $0x1c0] sm:$0xff] }
  0x19   :  { %143 = vmatpush1.msra.mxu0 %v42_v47  ;;  %256 = vmatpush1.msra.mxu1 %v44_v48  ;;  %v5468_v10 = vld [vmem:[%s9988_s2 + $0x1d0] sm:$0xff]  ;;  %v92_v11 = vld [vmem:[%s9987_s0 + $0x8] sm:$0xff]  ;;  %v5485_v13 = vld [vmem:[%s9988_s2 + $0x1b8] sm:$0xff] }
  0x1a   :  { %144 = vmatprep.subr.mxu0 %v39_v49  ;;  %257 = vmatprep.subr.mxu1 %v41_v50  ;;  %v5480_v12 = vld [vmem:[%s9988_s2 + $0x1a8] sm:$0xff]  ;;  %v5492_v14 = vld [vmem:[%s9988_s2 + $0x1a0] sm:$0xff]  ;;  %v5497_v15 = vld [vmem:[%s9988_s2 + $0x1b0] sm:$0xff] }
  0x1b   :  { %145 = vmatpush1.msra.mxu0 %v38_v51  ;;  %258 = vmatpush1.msra.mxu1 %v40_v52  ;;  %v5502_v16 = vld [vmem:[%s9988_s2 + $0x188] sm:$0xff]  ;;  %v5507_v17 = vld [vmem:[%s9988_s2 + $0x198] sm:$0xff]  ;;  %v5516_v18 = vld [vmem:[%s9988_s2 + $0x180] sm:$0xff] }
  0x1c   :  { %146 = vmatprep.subr.mxu0 %v35_v53  ;;  %259 = vmatprep.subr.mxu1 %v37_v54  ;;  %v5521_v19 = vld [vmem:[%s9988_s2 + $0x190] sm:$0xff]  ;;  %v5533_v21 = vld [vmem:[%s9988_s2 + $0x168] sm:$0xff]  ;;  %v5538_v22 = vld [vmem:[%s9988_s2 + $0x178] sm:$0xff] }
  0x1d   :  { %147 = vmatpush1.msra.mxu0 %v34_v55  ;;  %260 = vmatpush1.msra.mxu1 %v36_v56  ;;  %v93_v20 = vld [vmem:[%s9987_s0 + $0x10] sm:$0xff]  ;;  %v5545_v23 = vld [vmem:[%s9988_s2 + $0x160] sm:$0xff]  ;;  %v5555_v25 = vld [vmem:[%s9988_s2 + $0x148] sm:$0xff] }
  0x1e   :  { %148 = vmatprep.subr.mxu0 %v31_v57  ;;  %261 = vmatprep.subr.mxu1 %v33_v58  ;;  %v5550_v24 = vld [vmem:[%s9988_s2 + $0x170] sm:$0xff]  ;;  %v5560_v26 = vld [vmem:[%s9988_s2 + $0x158] sm:$0xff]  ;;  %v5569_v27 = vld [vmem:[%s9988_s2 + $0x140] sm:$0xff] }
  0x1f   :  { %149 = vmatpush1.msra.mxu0 %v30_v59  ;;  %262 = vmatpush1.msra.mxu1 %v32_v60  ;;  %v5574_v28 = vld [vmem:[%s9988_s2 + $0x150] sm:$0xff]  ;;  %v94_v29 = vld [vmem:[%s9987_s0 + $0x18] sm:$0xff]  ;;  %v5586_v30 = vld [vmem:[%s9988_s2 + $0x128] sm:$0xff] }
  0x20   :  { %150 = vmatprep.subr.mxu0 %v27_v61  ;;  %263 = vmatprep.subr.mxu1 %v29_v62  ;;  %v5591_v31 = vld [vmem:[%s9988_s2 + $0x138] sm:$0xff]  ;;  %v5598_v32 = vld [vmem:[%s9988_s2 + $0x120] sm:$0xff]  ;;  %v5603_v33 = vld [vmem:[%s9988_s2 + $0x130] sm:$0xff] }
  0x21   :  { %151 = vmatpush1.msra.mxu0 %v26_v63  ;;  %264 = vmatpush1.msra.mxu1 %v28_v0  ;;  %v5608_v34 = vld [vmem:[%s9988_s2 + $0x108] sm:$0xff]  ;;  %v5613_v35 = vld [vmem:[%s9988_s2 + $0x118] sm:$0xff]  ;;  %v5622_v36 = vld [vmem:[%s9988_s2 + $0x100] sm:$0xff] }
  0x22   :  { %185 = vmatmul.mubr.f32.vlgmr.msra.gmra.mxu0 %v91_v1  ;;  %298 = vmatmul.mubr.f32.vlgmr.msra.gmra.mxu1 %v91_v1  ;;  %v5627_v37 = vld [vmem:[%s9988_s2 + $0x110] sm:$0xff]  ;;  %v95_v38 = vld [vmem:[%s9987_s0 + $0x20] sm:$0xff]  ;;  %v5639_v39 = vld [vmem:[%s9988_s2 + $0xe8] sm:$0xff] }
  0x23   :  { %511 = vmatprep.subr.mxu0 %v5429_v2  ;;  %582 = vmatprep.subr.mxu1 %v5434_v4  ;;  %v5644_v40 = vld [vmem:[%s9988_s2 + $0xf8] sm:$0xff]  ;;  %v5651_v41 = vld [vmem:[%s9988_s2 + $0xe0] sm:$0xff]  ;;  %v5656_v42 = vld [vmem:[%s9988_s2 + $0xf0] sm:$0xff] }
  0x24   :  { %512 = vmatpush1.msra.mxu0 %v5439_v5  ;;  %583 = vmatpush1.msra.mxu1 %v5444_v6  ;;  %v5661_v43 = vld [vmem:[%s9988_s2 + $0xc8] sm:$0xff]  ;;  %v5666_v44 = vld [vmem:[%s9988_s2 + $0xd8] sm:$0xff]  ;;  %v5675_v45 = vld [vmem:[%s9988_s2 + $0xc0] sm:$0xff] }
  0x25   :  { %513 = vmatprep.subr.mxu0 %v5449_v7  ;;  %584 = vmatprep.subr.mxu1 %v5454_v8  ;;  %v5680_v46 = vld [vmem:[%s9988_s2 + $0xd0] sm:$0xff]  ;;  %v96_v47 = vld [vmem:[%s9987_s0 + $0x28] sm:$0xff]  ;;  %v5697_v49 = vld [vmem:[%s9988_s2 + $0xb8] sm:$0xff] }
  0x26   :  { %190 = vmatprep.mubr.f32.mxu0 %v9994_v3  ;;  %303 = vmatprep.mubr.f32.mxu1 %v9994_v3  ;;  %v5692_v48 = vld [vmem:[%s9988_s2 + $0xa8] sm:$0xff]  ;;  %v5704_v50 = vld [vmem:[%s9988_s2 + $0xa0] sm:$0xff]  ;;  %v5709_v51 = vld [vmem:[%s9988_s2 + $0xb0] sm:$0xff] }
  0x27   :  { %514 = vmatpush1.msra.mxu0 %v5463_v9  ;;  %585 = vmatpush1.msra.mxu1 %v5468_v10  ;;  %10632 = vst [vmem:[#allocation4_spill] sm:$0xff] %v5709_v51  ;;  %v5714_v52 = vld [vmem:[%s9988_s2 + $0x88] sm:$0xff]  ;;  %v5719_v53 = vld [vmem:[%s9988_s2 + $0x98] sm:$0xff]  ;;  %v5728_v54 = vld [vmem:[%s9988_s2 + $0x80] sm:$0xff] }
  0x28   :  { %191 = vmatmul.mubr.f32.gmra.mxu0 %v92_v11  ;;  %304 = vmatmul.mubr.f32.gmra.mxu1 %v92_v11  ;;  %10633 = vst [vmem:[#allocation5_spill] sm:$0xff] %v5714_v52  ;;  %10634 = vst [vmem:[#allocation6_spill] sm:$0xff] %v5719_v53  ;;  %v5733_v55 = vld [vmem:[%s9988_s2 + $0x90] sm:$0xff]  ;;  %v5745_v57 = vld [vmem:[%s9988_s2 + $0x68] sm:$0xff] }
  0x29   :  { %515 = vmatprep.subr.mxu0 %v5480_v12  ;;  %586 = vmatprep.subr.mxu1 %v5485_v13  ;;  %10635 = vst [vmem:[#allocation7_spill] sm:$0xff] %v5728_v54  ;;  %10636 = vst [vmem:[#allocation8_spill] sm:$0xff] %v5733_v55  ;;  %v97_v56 = vld [vmem:[%s9987_s0 + $0x30] sm:$0xff]  ;;  %v5750_v58 = vld [vmem:[%s9988_s2 + $0x78] sm:$0xff] }
  0x2a   :  { %516 = vmatpush1.msra.mxu0 %v5492_v14  ;;  %587 = vmatpush1.msra.mxu1 %v5497_v15  ;;  %10637 = vst [vmem:[#allocation9_spill] sm:$0xff] %v5745_v57  ;;  %10638 = vst [vmem:[#allocation10_spill] sm:$0xff] %v5750_v58  ;;  %v5757_v59 = vld [vmem:[%s9988_s2 + $0x60] sm:$0xff]  ;;  %v5762_v60 = vld [vmem:[%s9988_s2 + $0x70] sm:$0xff] }
  0x2b   :  { %517 = vmatprep.subr.mxu0 %v5502_v16  ;;  %588 = vmatprep.subr.mxu1 %v5507_v17  ;;  %10639 = vst [vmem:[#allocation11_spill] sm:$0xff] %v5757_v59  ;;  %10640 = vst [vmem:[#allocation12_spill] sm:$0xff] %v5762_v60  ;;  %v5767_v61 = vld [vmem:[%s9988_s2 + $0x48] sm:$0xff]  ;;  %v5772_v62 = vld [vmem:[%s9988_s2 + $0x58] sm:$0xff] }
  0x2c   :  { %196 = vmatprep.mubr.f32.mxu0 %v9994_v3  ;;  %309 = vmatprep.mubr.f32.mxu1 %v9994_v3  ;;  %10641 = vst [vmem:[#allocation13_spill] sm:$0xff] %v5767_v61  ;;  %10642 = vst [vmem:[#allocation14_spill] sm:$0xff] %v5772_v62  ;;  %v5781_v63 = vld [vmem:[%s9988_s2 + $0x40] sm:$0xff]  ;;  %v5786_v0 = vld [vmem:[%s9988_s2 + $0x50] sm:$0xff] }
  0x2d   :  { %518 = vmatpush1.msra.mxu0 %v5516_v18  ;;  %589 = vmatpush1.msra.mxu1 %v5521_v19  ;;  %10643 = vst [vmem:[#allocation15_spill] sm:$0xff] %v5781_v63  ;;  %10644 = vst [vmem:[#allocation16_spill] sm:$0xff] %v5786_v0  ;;  %v98_v1 = vld [vmem:[%s9987_s0 + $0x38] sm:$0xff]  ;;  %v5798_v11 = vld [vmem:[%s9988_s2 + $0x28] sm:$0xff] }
  0x2e   :  { %197 = vmatmul.mubr.f32.gmra.mxu0 %v93_v20  ;;  %310 = vmatmul.mubr.f32.gmra.mxu1 %v93_v20  ;;  %10645 = vst [vmem:[#allocation17_spill] sm:$0xff] %v5798_v11  ;;  %v5803_v20 = vld [vmem:[%s9988_s2 + $0x38] sm:$0xff] }
  0x2f   :  { %519 = vmatprep.subr.mxu0 %v5533_v21  ;;  %590 = vmatprep.subr.mxu1 %v5538_v22  ;;  %10646 = vst [vmem:[#allocation18_spill] sm:$0xff] %v5803_v20 }
  0x30   :  { %520 = vmatpush1.msra.mxu0 %v5545_v23  ;;  %591 = vmatpush1.msra.mxu1 %v5550_v24 }
  0x31   :  { %521 = vmatprep.subr.mxu0 %v5555_v25  ;;  %592 = vmatprep.subr.mxu1 %v5560_v26 }
  0x32   :  { %202 = vmatprep.mubr.f32.mxu0 %v9994_v3  ;;  %315 = vmatprep.mubr.f32.mxu1 %v9994_v3 }
  0x33   :  { %522 = vmatpush1.msra.mxu0 %v5569_v27  ;;  %593 = vmatpush1.msra.mxu1 %v5574_v28 }
  0x34   :  { %203 = vmatmul.mubr.f32.gmra.mxu0 %v94_v29  ;;  %316 = vmatmul.mubr.f32.gmra.mxu1 %v94_v29  ;;  %v5810_v29 = vld [vmem:[%s9988_s2 + $0x20] sm:$0xff] }
  0x35   :  { %523 = vmatprep.subr.mxu0 %v5586_v30  ;;  %594 = vmatprep.subr.mxu1 %v5591_v31  ;;  %10647 = vst [vmem:[#allocation19_spill] sm:$0xff] %v5810_v29 }
  0x36   :  { %524 = vmatpush1.msra.mxu0 %v5598_v32  ;;  %595 = vmatpush1.msra.mxu1 %v5603_v33 }
  0x37   :  { %525 = vmatprep.subr.mxu0 %v5608_v34  ;;  %596 = vmatprep.subr.mxu1 %v5613_v35 }
  0x38   :  { %208 = vmatprep.mubr.f32.mxu0 %v9994_v3  ;;  %321 = vmatprep.mubr.f32.mxu1 %v9994_v3 }
  0x39   :  { %526 = vmatpush1.msra.mxu0 %v5622_v36  ;;  %597 = vmatpush1.msra.mxu1 %v5627_v37 }
  0x3a   :  { %209 = vmatmul.mubr.f32.gmra.mxu0 %v95_v38  ;;  %322 = vmatmul.mubr.f32.gmra.mxu1 %v95_v38  ;;  %v5815_v38 = vld [vmem:[%s9988_s2 + $0x30] sm:$0xff] }
  0x3b   :  { %527 = vmatprep.subr.mxu0 %v5639_v39  ;;  %598 = vmatprep.subr.mxu1 %v5644_v40  ;;  %10648 = vst [vmem:[#allocation20_spill] sm:$0xff] %v5815_v38 }
  0x3c   :  { %528 = vmatpush1.msra.mxu0 %v5651_v41  ;;  %599 = vmatpush1.msra.mxu1 %v5656_v42 }
  0x3d   :  { %529 = vmatprep.subr.mxu0 %v5661_v43  ;;  %600 = vmatprep.subr.mxu1 %v5666_v44 }
  0x3e   :  { %214 = vmatprep.mubr.f32.mxu0 %v9994_v3  ;;  %327 = vmatprep.mubr.f32.mxu1 %v9994_v3 }
  0x3f   :  { %530 = vmatpush1.msra.mxu0 %v5675_v45  ;;  %601 = vmatpush1.msra.mxu1 %v5680_v46 }
  0x40   :  { %215 = vmatmul.mubr.f32.gmra.mxu0 %v96_v47  ;;  %328 = vmatmul.mubr.f32.gmra.mxu1 %v96_v47  ;;  %v5820_v47 = vld [vmem:[%s9988_s2 + $0x8] sm:$0xff] }
  0x41   :  { %531 = vmatprep.subr.mxu0 %v5692_v48  ;;  %602 = vmatprep.subr.mxu1 %v5697_v49  ;;  %10649 = vst [vmem:[#allocation21_spill] sm:$0xff] %v5820_v47 }
  0x42   :  { %532 = vmatpush1.msra.mxu0 %v5704_v50  ;;  %603 = vmatpush1.msra.mxu1 %v5709_v51 }
  0x43   :  { %533 = vmatprep.subr.mxu0 %v5714_v52  ;;  %604 = vmatprep.subr.mxu1 %v5719_v53 }
  0x44   :  { %220 = vmatprep.mubr.f32.mxu0 %v9994_v3  ;;  %333 = vmatprep.mubr.f32.mxu1 %v9994_v3 }
  0x45   :  { %534 = vmatpush1.msra.mxu0 %v5728_v54  ;;  %605 = vmatpush1.msra.mxu1 %v5733_v55 }
  0x46   :  { %221 = vmatmul.mubr.f32.gmra.mxu0 %v97_v56  ;;  %334 = vmatmul.mubr.f32.gmra.mxu1 %v97_v56  ;;  %v5825_v56 = vld [vmem:[%s9988_s2 + $0x18] sm:$0xff] }
  0x47   :  { %535 = vmatprep.subr.mxu0 %v5745_v57  ;;  %606 = vmatprep.subr.mxu1 %v5750_v58  ;;  %10650 = vst [vmem:[#allocation22_spill] sm:$0xff] %v5825_v56 }
  0x48   :  { %536 = vmatpush1.msra.mxu0 %v5757_v59  ;;  %607 = vmatpush1.msra.mxu1 %v5762_v60 }
  0x49   :  { %537 = vmatprep.subr.mxu0 %v5767_v61  ;;  %608 = vmatprep.subr.mxu1 %v5772_v62 }
  0x4a   :  { %226 = vmatprep.mubr.f32.mxu0 %v9994_v3  ;;  %339 = vmatprep.mubr.f32.mxu1 %v9994_v3  ;;  %v5832_v3 = vld [vmem:[%s9988_s2] sm:$0xff] }
  0x4b   :  { %538 = vmatpush1.msra.mxu0 %v5781_v63  ;;  %609 = vmatpush1.msra.mxu1 %v5786_v0  ;;  %10651 = vst [vmem:[#allocation23_spill] sm:$0xff] %v5832_v3 }
  0x4c   :  { %227 = vmatmul.mubr.f32.gmra.mxu0 %v98_v1  ;;  %340 = vmatmul.mubr.f32.gmra.mxu1 %v98_v1  ;;  %v5839_v1 = vld [vmem:[%s9988_s2 + $0x10] sm:$0xff] }
  0x4d   :  { %539 = vmatprep.subr.mxu0 %v5798_v11  ;;  %610 = vmatprep.subr.mxu1 %v5803_v20  ;;  %10652 = vst [vmem:[#allocation24_spill] sm:$0xff] %v5839_v1  ;;  %v10653_v20 = vmov 0.0   ;;  %v6119_v11 = vld [vmem:[%s9989_s4 + $0x98] sm:$0xff] }
  0x4e   :  { %540 = vmatpush1.msra.mxu0 %v5810_v29  ;;  %611 = vmatpush1.msra.mxu1 %v5815_v38  ;;  %v6085_v38 = vld [vmem:[%s9989_s4 + $0xd0] sm:$0xff]  ;;  %v6102_v29 = vld [vmem:[%s9989_s4 + $0xa0] sm:$0xff]  ;;  %10699 = vst [vmem:[#allocation70_spill] sm:$0xff] %v6119_v11 }
  0x4f   :  { %541 = vmatprep.subr.mxu0 %v5820_v47  ;;  %612 = vmatprep.subr.mxu1 %v5825_v56  ;;  %v5854_v56 = vld [vmem:[%s9989_s4 + $0x1e8] sm:$0xff]  ;;  %10693 = vst [vmem:[#allocation64_spill] sm:$0xff] %v6085_v38  ;;  %10696 = vst [vmem:[#allocation67_spill] sm:$0xff] %v6102_v29 }
  0x50   :  { %542 = vmatpush1.msra.mxu0 %v5832_v3  ;;  %575 = vmatprep.mubr.f32.mxu0 %v10653_v20  ;;  %10654 = vst [vmem:[#allocation25_spill] sm:$0xff] %v5854_v56  ;;  %v5859_v3 = vld [vmem:[%s9989_s4 + $0x1f8] sm:$0xff]  ;;  %v6068_v47 = vld [vmem:[%s9989_s4 + $0xc8] sm:$0xff] }
  0x51   :  { %613 = vmatpush1.msra.mxu1 %v5839_v1  ;;  %646 = vmatprep.mubr.f32.mxu1 %v10653_v20  ;;  %10655 = vst [vmem:[#allocation26_spill] sm:$0xff] %v5859_v3  ;;  %v5866_v1 = vld [vmem:[%s9989_s4 + $0x1e0] sm:$0xff]  ;;  %10690 = vst [vmem:[#allocation61_spill] sm:$0xff] %v6068_v47 }
  0x52   :  { %576 = vmatmul.mubr.f32.vlgmr.msra.gmra.mxu0 %v10653_v20  ;;  %647 = vmatmul.mubr.f32.vlgmr.msra.gmra.mxu1 %v10653_v20  ;;  %10656 = vst [vmem:[#allocation27_spill] sm:$0xff] %v5866_v1 }
  0x53   :  { %766 = vmatprep.mubr.f32.mxu0 %v10653_v20  ;;  %837 = vmatprep.mubr.f32.mxu1 %v10653_v20  ;;  %v5871_v20 = vld [vmem:[%s9989_s4 + $0x1f0] sm:$0xff] }
  0x54   :  { %702 = vmatprep.subr.mxu0 %v5854_v56  ;;  %773 = vmatprep.subr.mxu1 %v5859_v3  ;;  %10657 = vst [vmem:[#allocation28_spill] sm:$0xff] %v5871_v20  ;;  %v5878_v56 = vld [vmem:[%s9989_s4 + $0x1c8] sm:$0xff]  ;;  %v5883_v3 = vld [vmem:[%s9989_s4 + $0x1d8] sm:$0xff] }
  0x55   :  { %703 = vmatpush1.msra.mxu0 %v5866_v1  ;;  %774 = vmatpush1.msra.mxu1 %v5871_v20  ;;  %10658 = vst [vmem:[#allocation29_spill] sm:$0xff] %v5878_v56  ;;  %10659 = vst [vmem:[#allocation30_spill] sm:$0xff] %v5883_v3  ;;  %v5890_v1 = vld [vmem:[%s9989_s4 + $0x1c0] sm:$0xff]  ;;  %v5895_v20 = vld [vmem:[%s9989_s4 + $0x1d0] sm:$0xff] }
  0x56   :  { %704 = vmatprep.subr.mxu0 %v5878_v56  ;;  %775 = vmatprep.subr.mxu1 %v5883_v3  ;;  %10660 = vst [vmem:[#allocation31_spill] sm:$0xff] %v5890_v1  ;;  %10661 = vst [vmem:[#allocation32_spill] sm:$0xff] %v5895_v20  ;;  %v5902_v56 = vld [vmem:[%s9989_s4 + $0x1a8] sm:$0xff]  ;;  %v5907_v3 = vld [vmem:[%s9989_s4 + $0x1b8] sm:$0xff] }
  0x57   :  { %705 = vmatpush1.msra.mxu0 %v5890_v1  ;;  %776 = vmatpush1.msra.mxu1 %v5895_v20  ;;  %10662 = vst [vmem:[#allocation33_spill] sm:$0xff] %v5902_v56  ;;  %10663 = vst [vmem:[#allocation34_spill] sm:$0xff] %v5907_v3  ;;  %v5914_v1 = vld [vmem:[%s9989_s4 + $0x1a0] sm:$0xff]  ;;  %v5919_v20 = vld [vmem:[%s9989_s4 + $0x1b0] sm:$0xff] }
  0x58   :  { %706 = vmatprep.subr.mxu0 %v5902_v56  ;;  %777 = vmatprep.subr.mxu1 %v5907_v3  ;;  %10664 = vst [vmem:[#allocation35_spill] sm:$0xff] %v5914_v1  ;;  %10665 = vst [vmem:[#allocation36_spill] sm:$0xff] %v5919_v20  ;;  %v5926_v56 = vld [vmem:[%s9989_s4 + $0x188] sm:$0xff]  ;;  %v5931_v3 = vld [vmem:[%s9989_s4 + $0x198] sm:$0xff] }
  0x59   :  { %707 = vmatpush1.msra.mxu0 %v5914_v1  ;;  %778 = vmatpush1.msra.mxu1 %v5919_v20  ;;  %10666 = vst [vmem:[#allocation37_spill] sm:$0xff] %v5926_v56  ;;  %10667 = vst [vmem:[#allocation38_spill] sm:$0xff] %v5931_v3  ;;  %v5938_v1 = vld [vmem:[%s9989_s4 + $0x180] sm:$0xff]  ;;  %v5943_v20 = vld [vmem:[%s9989_s4 + $0x190] sm:$0xff] }
  0x5a   :  { %708 = vmatprep.subr.mxu0 %v5926_v56  ;;  %779 = vmatprep.subr.mxu1 %v5931_v3  ;;  %10668 = vst [vmem:[#allocation39_spill] sm:$0xff] %v5938_v1  ;;  %10669 = vst [vmem:[#allocation40_spill] sm:$0xff] %v5943_v20  ;;  %v5950_v56 = vld [vmem:[%s9989_s4 + $0x168] sm:$0xff]  ;;  %v5955_v3 = vld [vmem:[%s9989_s4 + $0x178] sm:$0xff] }
  0x5b   :  { %709 = vmatpush1.msra.mxu0 %v5938_v1  ;;  %780 = vmatpush1.msra.mxu1 %v5943_v20  ;;  %10670 = vst [vmem:[#allocation41_spill] sm:$0xff] %v5950_v56  ;;  %10671 = vst [vmem:[#allocation42_spill] sm:$0xff] %v5955_v3  ;;  %v5962_v1 = vld [vmem:[%s9989_s4 + $0x160] sm:$0xff]  ;;  %v5967_v20 = vld [vmem:[%s9989_s4 + $0x170] sm:$0xff] }
  0x5c   :  { %710 = vmatprep.subr.mxu0 %v5950_v56  ;;  %781 = vmatprep.subr.mxu1 %v5955_v3  ;;  %10672 = vst [vmem:[#allocation43_spill] sm:$0xff] %v5962_v1  ;;  %10673 = vst [vmem:[#allocation44_spill] sm:$0xff] %v5967_v20  ;;  %v5974_v56 = vld [vmem:[%s9989_s4 + $0x148] sm:$0xff]  ;;  %v5979_v3 = vld [vmem:[%s9989_s4 + $0x158] sm:$0xff] }
  0x5d   :  { %711 = vmatpush1.msra.mxu0 %v5962_v1  ;;  %782 = vmatpush1.msra.mxu1 %v5967_v20  ;;  %10674 = vst [vmem:[#allocation45_spill] sm:$0xff] %v5974_v56  ;;  %10675 = vst [vmem:[#allocation46_spill] sm:$0xff] %v5979_v3  ;;  %v5986_v1 = vld [vmem:[%s9989_s4 + $0x140] sm:$0xff]  ;;  %v5991_v20 = vld [vmem:[%s9989_s4 + $0x150] sm:$0xff] }
  0x5e   :  { %712 = vmatprep.subr.mxu0 %v5974_v56  ;;  %783 = vmatprep.subr.mxu1 %v5979_v3  ;;  %10676 = vst [vmem:[#allocation47_spill] sm:$0xff] %v5986_v1  ;;  %10677 = vst [vmem:[#allocation48_spill] sm:$0xff] %v5991_v20  ;;  %v5998_v56 = vld [vmem:[%s9989_s4 + $0x128] sm:$0xff]  ;;  %v6003_v3 = vld [vmem:[%s9989_s4 + $0x138] sm:$0xff] }
  0x5f   :  { %713 = vmatpush1.msra.mxu0 %v5986_v1  ;;  %784 = vmatpush1.msra.mxu1 %v5991_v20  ;;  %10678 = vst [vmem:[#allocation49_spill] sm:$0xff] %v5998_v56  ;;  %10679 = vst [vmem:[#allocation50_spill] sm:$0xff] %v6003_v3  ;;  %v6010_v1 = vld [vmem:[%s9989_s4 + $0x120] sm:$0xff]  ;;  %v6015_v20 = vld [vmem:[%s9989_s4 + $0x130] sm:$0xff] }
  0x60   :  { %714 = vmatprep.subr.mxu0 %v5998_v56  ;;  %785 = vmatprep.subr.mxu1 %v6003_v3  ;;  %10680 = vst [vmem:[#allocation51_spill] sm:$0xff] %v6010_v1  ;;  %10681 = vst [vmem:[#allocation52_spill] sm:$0xff] %v6015_v20  ;;  %v6022_v56 = vld [vmem:[%s9989_s4 + $0x108] sm:$0xff]  ;;  %v6027_v3 = vld [vmem:[%s9989_s4 + $0x118] sm:$0xff] }
  0x61   :  { %715 = vmatpush1.msra.mxu0 %v6010_v1  ;;  %786 = vmatpush1.msra.mxu1 %v6015_v20  ;;  %10682 = vst [vmem:[#allocation53_spill] sm:$0xff] %v6022_v56  ;;  %10683 = vst [vmem:[#allocation54_spill] sm:$0xff] %v6027_v3  ;;  %v6034_v1 = vld [vmem:[%s9989_s4 + $0x100] sm:$0xff]  ;;  %v6039_v20 = vld [vmem:[%s9989_s4 + $0x110] sm:$0xff] }
  0x62   :  { %716 = vmatprep.subr.mxu0 %v6022_v56  ;;  %787 = vmatprep.subr.mxu1 %v6027_v3  ;;  %10684 = vst [vmem:[#allocation55_spill] sm:$0xff] %v6034_v1  ;;  %10685 = vst [vmem:[#allocation56_spill] sm:$0xff] %v6039_v20  ;;  %v6046_v56 = vld [vmem:[%s9989_s4 + $0xe8] sm:$0xff]  ;;  %v6051_v3 = vld [vmem:[%s9989_s4 + $0xf8] sm:$0xff] }
  0x63   :  { %717 = vmatpush1.msra.mxu0 %v6034_v1  ;;  %788 = vmatpush1.msra.mxu1 %v6039_v20  ;;  %10686 = vst [vmem:[#allocation57_spill] sm:$0xff] %v6046_v56  ;;  %10687 = vst [vmem:[#allocation58_spill] sm:$0xff] %v6051_v3  ;;  %v6058_v1 = vld [vmem:[%s9989_s4 + $0xe0] sm:$0xff]  ;;  %v6063_v20 = vld [vmem:[%s9989_s4 + $0xf0] sm:$0xff] }
  0x64   :  { %718 = vmatprep.subr.mxu0 %v6046_v56  ;;  %789 = vmatprep.subr.mxu1 %v6051_v3  ;;  %10688 = vst [vmem:[#allocation59_spill] sm:$0xff] %v6058_v1  ;;  %10689 = vst [vmem:[#allocation60_spill] sm:$0xff] %v6063_v20  ;;  %v6075_v3 = vld [vmem:[%s9989_s4 + $0xd8] sm:$0xff]  ;;  %v6080_v56 = vld [vmem:[%s9989_s4 + $0xc0] sm:$0xff] }
  0x65   :  { %719 = vmatpush1.msra.mxu0 %v6058_v1  ;;  %790 = vmatpush1.msra.mxu1 %v6063_v20  ;;  %10691 = vst [vmem:[#allocation62_spill] sm:$0xff] %v6075_v3  ;;  %10692 = vst [vmem:[#allocation63_spill] sm:$0xff] %v6080_v56  ;;  %v6092_v20 = vld [vmem:[%s9989_s4 + $0xa8] sm:$0xff]  ;;  %v6097_v1 = vld [vmem:[%s9989_s4 + $0xb8] sm:$0xff] }
  0x66   :  { %720 = vmatprep.subr.mxu0 %v6068_v47  ;;  %791 = vmatprep.subr.mxu1 %v6075_v3  ;;  %10694 = vst [vmem:[#allocation65_spill] sm:$0xff] %v6092_v20  ;;  %10695 = vst [vmem:[#allocation66_spill] sm:$0xff] %v6097_v1  ;;  %v6109_v3 = vld [vmem:[%s9989_s4 + $0xb0] sm:$0xff]  ;;  %v6114_v47 = vld [vmem:[%s9989_s4 + $0x88] sm:$0xff] }
  0x67   :  { %721 = vmatpush1.msra.mxu0 %v6080_v56  ;;  %792 = vmatpush1.msra.mxu1 %v6085_v38  ;;  %10697 = vst [vmem:[#allocation68_spill] sm:$0xff] %v6109_v3  ;;  %10698 = vst [vmem:[#allocation69_spill] sm:$0xff] %v6114_v47  ;;  %v6126_v38 = vld [vmem:[%s9989_s4 + $0x80] sm:$0xff]  ;;  %v6131_v56 = vld [vmem:[%s9989_s4 + $0x90] sm:$0xff] }
  0x68   :  { %722 = vmatprep.subr.mxu0 %v6092_v20  ;;  %793 = vmatprep.subr.mxu1 %v6097_v1  ;;  %10700 = vst [vmem:[#allocation71_spill] sm:$0xff] %v6126_v38  ;;  %10701 = vst [vmem:[#allocation72_spill] sm:$0xff] %v6131_v56  ;;  %v6138_v20 = vld [vmem:[%s9989_s4 + $0x68] sm:$0xff]  ;;  %v6143_v1 = vld [vmem:[%s9989_s4 + $0x78] sm:$0xff] }
  0x69   :  { %723 = vmatpush1.msra.mxu0 %v6102_v29  ;;  %794 = vmatpush1.msra.mxu1 %v6109_v3  ;;  %10702 = vst [vmem:[#allocation73_spill] sm:$0xff] %v6138_v20  ;;  %10703 = vst [vmem:[#allocation74_spill] sm:$0xff] %v6143_v1  ;;  %v6150_v29 = vld [vmem:[%s9989_s4 + $0x60] sm:$0xff]  ;;  %v6155_v3 = vld [vmem:[%s9989_s4 + $0x70] sm:$0xff] }
  0x6a   :  { %724 = vmatprep.subr.mxu0 %v6114_v47  ;;  %795 = vmatprep.subr.mxu1 %v6119_v11  ;;  %10704 = vst [vmem:[#allocation75_spill] sm:$0xff] %v6150_v29  ;;  %10705 = vst [vmem:[#allocation76_spill] sm:$0xff] %v6155_v3  ;;  %v6162_v47 = vld [vmem:[%s9989_s4 + $0x48] sm:$0xff]  ;;  %v6167_v11 = vld [vmem:[%s9989_s4 + $0x58] sm:$0xff] }
  0x6b   :  { %725 = vmatpush1.msra.mxu0 %v6126_v38  ;;  %796 = vmatpush1.msra.mxu1 %v6131_v56  ;;  %10706 = vst [vmem:[#allocation77_spill] sm:$0xff] %v6162_v47  ;;  %10707 = vst [vmem:[#allocation78_spill] sm:$0xff] %v6167_v11  ;;  %v6174_v38 = vld [vmem:[%s9989_s4 + $0x40] sm:$0xff]  ;;  %v6179_v56 = vld [vmem:[%s9989_s4 + $0x50] sm:$0xff] }
  0x6c   :  { %726 = vmatprep.subr.mxu0 %v6138_v20  ;;  %797 = vmatprep.subr.mxu1 %v6143_v1  ;;  %10708 = vst [vmem:[#allocation79_spill] sm:$0xff] %v6174_v38  ;;  %10709 = vst [vmem:[#allocation80_spill] sm:$0xff] %v6179_v56  ;;  %v6186_v20 = vld [vmem:[%s9989_s4 + $0x28] sm:$0xff]  ;;  %v6191_v1 = vld [vmem:[%s9989_s4 + $0x38] sm:$0xff] }
  0x6d   :  { %727 = vmatpush1.msra.mxu0 %v6150_v29  ;;  %798 = vmatpush1.msra.mxu1 %v6155_v3  ;;  %10710 = vst [vmem:[#allocation81_spill] sm:$0xff] %v6186_v20  ;;  %10711 = vst [vmem:[#allocation82_spill] sm:$0xff] %v6191_v1  ;;  %v6198_v29 = vld [vmem:[%s9989_s4 + $0x20] sm:$0xff]  ;;  %v6203_v3 = vld [vmem:[%s9989_s4 + $0x30] sm:$0xff] }
  0x6e   :  { %728 = vmatprep.subr.mxu0 %v6162_v47  ;;  %799 = vmatprep.subr.mxu1 %v6167_v11  ;;  %10712 = vst [vmem:[#allocation83_spill] sm:$0xff] %v6198_v29  ;;  %10713 = vst [vmem:[#allocation84_spill] sm:$0xff] %v6203_v3  ;;  %v6210_v47 = vld [vmem:[%s9989_s4 + $0x8] sm:$0xff]  ;;  %v6215_v11 = vld [vmem:[%s9989_s4 + $0x18] sm:$0xff] }
  0x6f   :  { %729 = vmatpush1.msra.mxu0 %v6174_v38  ;;  %800 = vmatpush1.msra.mxu1 %v6179_v56  ;;  %10714 = vst [vmem:[#allocation85_spill] sm:$0xff] %v6210_v47  ;;  %10715 = vst [vmem:[#allocation86_spill] sm:$0xff] %v6215_v11  ;;  %v6222_v38 = vld [vmem:[%s9989_s4] sm:$0xff]  ;;  %v6227_v56 = vld [vmem:[%s9989_s4 + $0x10] sm:$0xff] }
  0x70   :  { %730 = vmatprep.subr.mxu0 %v6186_v20  ;;  %801 = vmatprep.subr.mxu1 %v6191_v1  ;;  %10716 = vst [vmem:[#allocation87_spill] sm:$0xff] %v6222_v38  ;;  %10717 = vst [vmem:[#allocation88_spill] sm:$0xff] %v6227_v56  ;;  %v100_v1 = vlaneseq }
  0x71   :  { %731 = vmatpush1.msra.mxu0 %v6198_v29  ;;  %802 = vmatpush1.msra.mxu1 %v6203_v3 }
  0x72   :  { %732 = vmatprep.subr.mxu0 %v6210_v47  ;;  %803 = vmatprep.subr.mxu1 %v6215_v11  ;;  %v6237_v20 = vshrl.u32 %v100_v1, 7 }
  0x73   :  { %733 = vmatpush1.msra.mxu0 %v6222_v38  ;;  %804 = vmatpush1.msra.mxu1 %v6227_v56  ;;  %v90_v38 = vld [vmem:[%s9990_s3] sm:$0xf] }
  0x74   :  { %853 = vmatprep.subr.mxu0 %v5429_v2  ;;  %924 = vmatprep.subr.mxu1 %v5434_v4  ;;  %10718 = vst [vmem:[#allocation89_spill] sm:$0xff] %v6237_v20  ;;  %v10158_v3 = vsub.s32 0, %v6237_v20  ;;  %v10160_v47 = vsub.s32 2, %v6237_v20  ;;  %v10164_v4 = vsub.s32 1, %v6237_v20  ;;  %v10165_v1 = vsub.s32 3, %v6237_v20 }
  0x76   :  { %v103_v11 = vrot.slane %v90_v38, %v10158_v3  ;;  %v6258_v63 = vrot.slane %v90_v38, %v10160_v47  ;;  %v107_v60 = vrot.slane %v90_v38, %v10164_v4  ;;  %v6264_v59 = vrot.slane %v90_v38, %v10165_v1 }
  0xe2   :  { %v6239_v0 = vpop.f32.mrf.mxu0  ;;  %v6241_v29 = vpop.f32.mrf.mxu1 }
  0xe4   :  { %v6248_v56 = vpop.f32.mrf.mxu0  ;;  %v6250_v2 = vpop.f32.mrf.mxu1 }
  0xe8   :  { %v192_v62 = vpop.f32.mrf.mxu0  ;;  %v305_v61 = vpop.f32.mrf.mxu1 }
  0xe9   :  { %v6266_v58 = vadd.f32 %v192_v62, %v103_v11  ;;  %v6269_v57 = vadd.f32 %v305_v61, %v6258_v63 }
  0xea   :  { %v194_v55 = vpop.f32.mrf.mxu0  ;;  %v307_v3 = vpop.f32.mrf.mxu1 }
  0xeb   :  { %10719 = vst [vmem:[#allocation90_spill] sm:$0xff] %v6269_v57  ;;  %v6271_v54 = vadd.f32 %v194_v55, %v107_v60  ;;  %v6274_v47 = vadd.f32 %v307_v3, %v6264_v59 }
  0xed   :  { %10720 = vst [vmem:[#allocation91_spill] sm:$0xff] %v6271_v54  ;;  %10721 = vst [vmem:[#allocation92_spill] sm:$0xff] %v6274_v47 }
  0xee   :  { %v198_v53 = vpop.f32.mrf.mxu0  ;;  %v311_v52 = vpop.f32.mrf.mxu1 }
  0xef   :  { %v6276_v51 = vadd.f32 %v198_v53, %v103_v11  ;;  %v6279_v4 = vadd.f32 %v311_v52, %v6258_v63 }
  0xf0   :  { %v200_v38 = vpop.f32.mrf.mxu0  ;;  %v313_v62 = vpop.f32.mrf.mxu1 }
  0xf1   :  { %10722 = vst [vmem:[#allocation93_spill] sm:$0xff] %v6276_v51  ;;  %10723 = vst [vmem:[#allocation94_spill] sm:$0xff] %v6279_v4  ;;  %v6281_v1 = vadd.f32 %v200_v38, %v107_v60  ;;  %v6284_v61 = vadd.f32 %v313_v62, %v6264_v59 }
  0xf3   :  { %10724 = vst [vmem:[#allocation95_spill] sm:$0xff] %v6281_v1  ;;  %10725 = vst [vmem:[#allocation96_spill] sm:$0xff] %v6284_v61 }
  0xf4   :  { %v204_v20 = vpop.f32.mrf.mxu0  ;;  %v317_v55 = vpop.f32.mrf.mxu1 }
  0xf5   :  { %v6286_v57 = vadd.f32 %v204_v20, %v103_v11  ;;  %v6289_v3 = vadd.f32 %v317_v55, %v6258_v63 }
  0xf6   :  { %v206_v47 = vpop.f32.mrf.mxu0  ;;  %v319_v53 = vpop.f32.mrf.mxu1 }
  0xf7   :  { %10726 = vst [vmem:[#allocation97_spill] sm:$0xff] %v6286_v57  ;;  %10727 = vst [vmem:[#allocation98_spill] sm:$0xff] %v6289_v3  ;;  %v6291_v51 = vadd.f32 %v206_v47, %v107_v60  ;;  %v6294_v52 = vadd.f32 %v319_v53, %v6264_v59 }
  0xf9   :  { %10728 = vst [vmem:[#allocation99_spill] sm:$0xff] %v6291_v51  ;;  %10729 = vst [vmem:[#allocation100_spill] sm:$0xff] %v6294_v52 }
  0xfa   :  { %v210_v4 = vpop.f32.mrf.mxu0  ;;  %v323_v38 = vpop.f32.mrf.mxu1 }
  0xfb   :  { %v6296_v1 = vadd.f32 %v210_v4, %v103_v11  ;;  %v6299_v62 = vadd.f32 %v323_v38, %v6258_v63 }
  0xfc   :  { %v212_v61 = vpop.f32.mrf.mxu0  ;;  %v325_v20 = vpop.f32.mrf.mxu1 }
  0xfd   :  { %10730 = vst [vmem:[#allocation101_spill] sm:$0xff] %v6296_v1  ;;  %10731 = vst [vmem:[#allocation102_spill] sm:$0xff] %v6299_v62  ;;  %v6301_v57 = vadd.f32 %v212_v61, %v107_v60  ;;  %v6304_v55 = vadd.f32 %v325_v20, %v6264_v59 }
  0xff   :  { %10732 = vst [vmem:[#allocation103_spill] sm:$0xff] %v6301_v57  ;;  %10733 = vst [vmem:[#allocation104_spill] sm:$0xff] %v6304_v55 }
 0x100   :  { %v216_v3 = vpop.f32.mrf.mxu0  ;;  %v329_v47 = vpop.f32.mrf.mxu1 }
 0x101   :  { %v6306_v51 = vadd.f32 %v216_v3, %v103_v11  ;;  %v6309_v53 = vadd.f32 %v329_v47, %v6258_v63 }
 0x102   :  { %v218_v52 = vpop.f32.mrf.mxu0  ;;  %v331_v4 = vpop.f32.mrf.mxu1 }
 0x103   :  { %10734 = vst [vmem:[#allocation105_spill] sm:$0xff] %v6306_v51  ;;  %10735 = vst [vmem:[#allocation106_spill] sm:$0xff] %v6309_v53  ;;  %v6311_v1 = vadd.f32 %v218_v52, %v107_v60  ;;  %v6314_v38 = vadd.f32 %v331_v4, %v6264_v59 }
 0x105   :  { %10736 = vst [vmem:[#allocation107_spill] sm:$0xff] %v6311_v1  ;;  %10737 = vst [vmem:[#allocation108_spill] sm:$0xff] %v6314_v38 }
 0x106   :  { %v222_v62 = vpop.f32.mrf.mxu0  ;;  %v335_v61 = vpop.f32.mrf.mxu1 }
 0x107   :  { %v6316_v57 = vadd.f32 %v222_v62, %v103_v11  ;;  %v6319_v20 = vadd.f32 %v335_v61, %v6258_v63 }
 0x108   :  { %v224_v55 = vpop.f32.mrf.mxu0  ;;  %v337_v3 = vpop.f32.mrf.mxu1 }
 0x109   :  { %10738 = vst [vmem:[#allocation109_spill] sm:$0xff] %v6316_v57  ;;  %10739 = vst [vmem:[#allocation110_spill] sm:$0xff] %v6319_v20  ;;  %v6321_v51 = vadd.f32 %v224_v55, %v107_v60  ;;  %v6324_v47 = vadd.f32 %v337_v3, %v6264_v59  ;;  %v187_v55 = vadd.f32 %v6239_v0, %v103_v11 }
 0x10a   :  { %v189_v3 = vadd.f32 %v6248_v56, %v107_v60 }
 0x10b   :  { %10740 = vst [vmem:[#allocation111_spill] sm:$0xff] %v6321_v51  ;;  %10741 = vst [vmem:[#allocation112_spill] sm:$0xff] %v6324_v47 }
 0x10c   :  { %v228_v53 = vpop.f32.mrf.mxu0  ;;  %v341_v52 = vpop.f32.mrf.mxu1 }
 0x10d   :  { %v6326_v1 = vadd.f32 %v228_v53, %v103_v11  ;;  %v6329_v4 = vadd.f32 %v341_v52, %v6258_v63 }
 0x10e   :  { %v230_v38 = vpop.f32.mrf.mxu0  ;;  %v343_v62 = vpop.f32.mrf.mxu1 }
 0x10f   :  { %10742 = vst [vmem:[#allocation113_spill] sm:$0xff] %v6326_v1  ;;  %10743 = vst [vmem:[#allocation114_spill] sm:$0xff] %v6329_v4  ;;  %v6331_v57 = vadd.f32 %v230_v38, %v107_v60  ;;  %v6334_v61 = vadd.f32 %v343_v62, %v6264_v59  ;;  %v302_v38 = vadd.f32 %v6250_v2, %v6264_v59 }
 0x110   :  { %v300_v62 = vadd.f32 %v6241_v29, %v6258_v63 }
 0x111   :  { %10744 = vst [vmem:[#allocation115_spill] sm:$0xff] %v6331_v57  ;;  %10745 = vst [vmem:[#allocation116_spill] sm:$0xff] %v6334_v61 }
 0x112   :  { %v577_v20 = vpop.f32.mrf.mxu0  ;;  %v648_v1 = vpop.f32.mrf.mxu1 }
 0x113   :  { %v653_v47 = vadd.f32 %v577_v20, %v187_v55  ;;  %v655_v61 = vadd.f32 %v648_v1, %v300_v62  ;;  %v10787_v1 = vld [vmem:[#allocation44_spill] sm:$0xff]  ;;  %v10792_v62 = vld [vmem:[#allocation49_spill] sm:$0xff] }
 0x114   :  { %v579_v51 = vpop.f32.mrf.mxu0  ;;  %v650_v4 = vpop.f32.mrf.mxu1 }
 0x115   :  { %v4563_v54 = vmul.f32 -1.442695, %v653_v47  ;;  %v654_v53 = vadd.f32 %v579_v51, %v189_v3  ;;  %v656_v57 = vadd.f32 %v650_v4, %v302_v38  ;;  %v10791_v38 = vld [vmem:[#allocation48_spill] sm:$0xff] }
 0x117   :  { %4612 = vpow2.f32 %v4563_v54  ;;  %v4564_v52 = vmul.f32 -1.442695, %v654_v53  ;;  %v4565_v0 = vmul.f32 -1.442695, %v656_v57  ;;  %v10789_v53 = vld [vmem:[#allocation46_spill] sm:$0xff] }
 0x119   :  { %4614 = vpow2.f32 %v4564_v52  ;;  %v10790_v52 = vld [vmem:[#allocation47_spill] sm:$0xff] }
 0x11a   :  { %4616 = vpow2.f32 %v4565_v0  ;;  %v10793_v0 = vld [vmem:[#allocation50_spill] sm:$0xff] }
 0x124   :  { %v4613_v11 = vpop.eup %4612 }
 0x125   :  { %v660_v60 = vadd.f32 1.0, %v4613_v11  ;;  %v10794_v11 = vld [vmem:[#allocation51_spill] sm:$0xff] }
 0x126   :  { %v4615_v56 = vpop.eup %4614 }
 0x127   :  { %4618 = vrcp.f32 %v660_v60  ;;  %v666_v51 = vadd.f32 1.0, %v4615_v56  ;;  %v4617_v54 = vpop.eup %4616  ;;  %v10795_v60 = vld [vmem:[#allocation52_spill] sm:$0xff]  ;;  %v10796_v56 = vld [vmem:[#allocation53_spill] sm:$0xff] }
 0x128   :  { %4620 = vtanh.f32 %v655_v61  ;;  %v673_v3 = vadd.f32 1.0, %v4617_v54  ;;  %v10788_v61 = vld [vmem:[#allocation45_spill] sm:$0xff]  ;;  %v10798_v54 = vld [vmem:[#allocation55_spill] sm:$0xff] }
 0x129   :  { %4622 = vrcp.f32 %v666_v51  ;;  %v10797_v51 = vld [vmem:[#allocation54_spill] sm:$0xff] }
 0x12a   :  { %4624 = vrcp.f32 %v673_v3  ;;  %v10802_v3 = vld [vmem:[#allocation59_spill] sm:$0xff] }
 0x134   :  { %v4619_v20 = vpop.eup %4618 }
 0x135   :  { %v4621_v47 = vpop.eup %4620 }
 0x136   :  { %v4623_v55 = vpop.eup %4622  ;;  %v677_v2 = vmul.f32 %v4621_v47, %v4619_v20  ;;  %v10799_v20 = vld [vmem:[#allocation56_spill] sm:$0xff]  ;;  %v10800_v47 = vld [vmem:[#allocation57_spill] sm:$0xff] }
 0x137   :  { %v676_v59 = vmul.f32 0.0, %v4623_v55  ;;  %v4625_v57 = vpop.eup %4624  ;;  %v10801_v55 = vld [vmem:[#allocation58_spill] sm:$0xff] }
 0x139   :  { %v6342_v4 = vadd.f32 %v677_v2, %v676_v59  ;;  %v10803_v59 = vld [vmem:[#allocation60_spill] sm:$0xff]  ;;  %v10804_v2 = vld [vmem:[#allocation61_spill] sm:$0xff] }
 0x13b   :  { %4626 = vtanh.f32 %v6342_v4 }
 0x148   :  { %v4627_v63 = vpop.eup %4626 }
 0x149   :  { %v6345_v29 = vmul.f32 %v4627_v63, %v4625_v57  ;;  %v10805_v57 = vld [vmem:[#allocation62_spill] sm:$0xff]  ;;  %v10806_v63 = vld [vmem:[#allocation63_spill] sm:$0xff] }
 0x14b   :  { %767 = vmatmul.mubr.f32.vlgmr.msra.gmra.mxu0 %v6345_v29  ;;  %838 = vmatmul.mubr.f32.vlgmr.msra.gmra.mxu1 %v6345_v29 }
 0x14c   :  { %854 = vmatpush1.msra.mxu0 %v5439_v5  ;;  %925 = vmatpush1.msra.mxu1 %v5444_v6  ;;  %v10746_v5 = vld [vmem:[#allocation4_spill] sm:$0xff]  ;;  %v10747_v6 = vld [vmem:[#allocation5_spill] sm:$0xff] }
 0x14d   :  { %855 = vmatprep.subr.mxu0 %v5449_v7  ;;  %926 = vmatprep.subr.mxu1 %v5454_v8  ;;  %v10748_v7 = vld [vmem:[#allocation6_spill] sm:$0xff]  ;;  %v10749_v8 = vld [vmem:[#allocation7_spill] sm:$0xff] }
 0x14e   :  { %856 = vmatpush1.msra.mxu0 %v5463_v9  ;;  %927 = vmatpush1.msra.mxu1 %v5468_v10  ;;  %v10750_v9 = vld [vmem:[#allocation8_spill] sm:$0xff]  ;;  %v10751_v10 = vld [vmem:[#allocation9_spill] sm:$0xff] }
 0x14f   :  { %857 = vmatprep.subr.mxu0 %v5480_v12  ;;  %928 = vmatprep.subr.mxu1 %v5485_v13  ;;  %v10752_v12 = vld [vmem:[#allocation10_spill] sm:$0xff]  ;;  %v10753_v13 = vld [vmem:[#allocation11_spill] sm:$0xff] }
 0x150   :  { %858 = vmatpush1.msra.mxu0 %v5492_v14  ;;  %929 = vmatpush1.msra.mxu1 %v5497_v15  ;;  %v10754_v14 = vld [vmem:[#allocation12_spill] sm:$0xff]  ;;  %v10755_v15 = vld [vmem:[#allocation13_spill] sm:$0xff] }
 0x151   :  { %859 = vmatprep.subr.mxu0 %v5502_v16  ;;  %930 = vmatprep.subr.mxu1 %v5507_v17  ;;  %v10756_v16 = vld [vmem:[#allocation14_spill] sm:$0xff]  ;;  %v10757_v17 = vld [vmem:[#allocation15_spill] sm:$0xff] }
 0x152   :  { %860 = vmatpush1.msra.mxu0 %v5516_v18  ;;  %931 = vmatpush1.msra.mxu1 %v5521_v19  ;;  %v10758_v18 = vld [vmem:[#allocation16_spill] sm:$0xff]  ;;  %v10759_v19 = vld [vmem:[#allocation17_spill] sm:$0xff] }
 0x153   :  { %861 = vmatprep.subr.mxu0 %v5533_v21  ;;  %932 = vmatprep.subr.mxu1 %v5538_v22  ;;  %v10760_v21 = vld [vmem:[#allocation18_spill] sm:$0xff]  ;;  %v10761_v22 = vld [vmem:[#allocation19_spill] sm:$0xff] }
 0x154   :  { %862 = vmatpush1.msra.mxu0 %v5545_v23  ;;  %933 = vmatpush1.msra.mxu1 %v5550_v24  ;;  %v10762_v23 = vld [vmem:[#allocation20_spill] sm:$0xff]  ;;  %v10763_v24 = vld [vmem:[#allocation21_spill] sm:$0xff] }
 0x155   :  { %863 = vmatprep.subr.mxu0 %v5555_v25  ;;  %934 = vmatprep.subr.mxu1 %v5560_v26  ;;  %v10764_v25 = vld [vmem:[#allocation22_spill] sm:$0xff]  ;;  %v10765_v26 = vld [vmem:[#allocation23_spill] sm:$0xff] }
 0x156   :  { %864 = vmatpush1.msra.mxu0 %v5569_v27  ;;  %935 = vmatpush1.msra.mxu1 %v5574_v28  ;;  %v10766_v27 = vmov 0.0   ;;  %v10767_v28 = vld [vmem:[#allocation24_spill] sm:$0xff] }
 0x157   :  { %865 = vmatprep.subr.mxu0 %v5586_v30  ;;  %936 = vmatprep.subr.mxu1 %v5591_v31  ;;  %v10768_v30 = vld [vmem:[#allocation25_spill] sm:$0xff]  ;;  %v10769_v31 = vld [vmem:[#allocation26_spill] sm:$0xff] }
 0x158   :  { %866 = vmatpush1.msra.mxu0 %v5598_v32  ;;  %937 = vmatpush1.msra.mxu1 %v5603_v33  ;;  %v10770_v32 = vld [vmem:[#allocation27_spill] sm:$0xff]  ;;  %v10771_v33 = vld [vmem:[#allocation28_spill] sm:$0xff] }
 0x159   :  { %867 = vmatprep.subr.mxu0 %v5608_v34  ;;  %938 = vmatprep.subr.mxu1 %v5613_v35  ;;  %v10772_v34 = vld [vmem:[#allocation29_spill] sm:$0xff]  ;;  %v10773_v35 = vld [vmem:[#allocation30_spill] sm:$0xff] }
 0x15a   :  { %868 = vmatpush1.msra.mxu0 %v5622_v36  ;;  %939 = vmatpush1.msra.mxu1 %v5627_v37  ;;  %v10774_v36 = vld [vmem:[#allocation31_spill] sm:$0xff]  ;;  %v10775_v37 = vld [vmem:[#allocation32_spill] sm:$0xff] }
 0x15b   :  { %869 = vmatprep.subr.mxu0 %v5639_v39  ;;  %940 = vmatprep.subr.mxu1 %v5644_v40  ;;  %v10776_v39 = vld [vmem:[#allocation33_spill] sm:$0xff]  ;;  %v10777_v40 = vld [vmem:[#allocation34_spill] sm:$0xff] }
 0x15c   :  { %870 = vmatpush1.msra.mxu0 %v5651_v41  ;;  %941 = vmatpush1.msra.mxu1 %v5656_v42  ;;  %v10778_v41 = vld [vmem:[#allocation35_spill] sm:$0xff]  ;;  %v10779_v42 = vld [vmem:[#allocation36_spill] sm:$0xff] }
 0x15d   :  { %871 = vmatprep.subr.mxu0 %v5661_v43  ;;  %942 = vmatprep.subr.mxu1 %v5666_v44  ;;  %v10780_v43 = vld [vmem:[#allocation37_spill] sm:$0xff]  ;;  %v10781_v44 = vld [vmem:[#allocation38_spill] sm:$0xff] }
 0x15e   :  { %872 = vmatpush1.msra.mxu0 %v5675_v45  ;;  %943 = vmatpush1.msra.mxu1 %v5680_v46  ;;  %v10782_v45 = vld [vmem:[#allocation39_spill] sm:$0xff]  ;;  %v10783_v46 = vld [vmem:[#allocation40_spill] sm:$0xff] }
 0x15f   :  { %873 = vmatprep.subr.mxu0 %v5692_v48  ;;  %944 = vmatprep.subr.mxu1 %v5697_v49  ;;  %v10784_v48 = vld [vmem:[#allocation41_spill] sm:$0xff]  ;;  %v10785_v49 = vld [vmem:[#allocation42_spill] sm:$0xff] }
 0x160   :  { %874 = vmatpush1.msra.mxu0 %v5704_v50  ;;  %945 = vmatpush1.msra.mxu1 %v10746_v5  ;;  %v10786_v50 = vld [vmem:[#allocation43_spill] sm:$0xff]  ;;  %v10808_v5 = vld [vmem:[#allocation65_spill] sm:$0xff] }
 0x161   :  { %875 = vmatprep.subr.mxu0 %v10747_v6  ;;  %946 = vmatprep.subr.mxu1 %v10748_v7  ;;  %v10809_v6 = vld [vmem:[#allocation66_spill] sm:$0xff]  ;;  %v10810_v7 = vld [vmem:[#allocation67_spill] sm:$0xff] }
 0x162   :  { %876 = vmatpush1.msra.mxu0 %v10749_v8  ;;  %947 = vmatpush1.msra.mxu1 %v10750_v9  ;;  %v10811_v8 = vld [vmem:[#allocation68_spill] sm:$0xff]  ;;  %v10812_v9 = vld [vmem:[#allocation69_spill] sm:$0xff] }
 0x163   :  { %877 = vmatprep.subr.mxu0 %v10751_v10  ;;  %948 = vmatprep.subr.mxu1 %v10752_v12 }
 0x164   :  { %878 = vmatpush1.msra.mxu0 %v10753_v13  ;;  %949 = vmatpush1.msra.mxu1 %v10754_v14 }
 0x165   :  { %879 = vmatprep.subr.mxu0 %v10755_v15  ;;  %950 = vmatprep.subr.mxu1 %v10756_v16 }
 0x166   :  { %880 = vmatpush1.msra.mxu0 %v10757_v17  ;;  %951 = vmatpush1.msra.mxu1 %v10758_v18 }
 0x167   :  { %881 = vmatprep.subr.mxu0 %v10759_v19  ;;  %952 = vmatprep.subr.mxu1 %v10760_v21 }
 0x168   :  { %882 = vmatpush1.msra.mxu0 %v10761_v22  ;;  %953 = vmatpush1.msra.mxu1 %v10762_v23 }
 0x169   :  { %883 = vmatprep.subr.mxu0 %v10763_v24  ;;  %954 = vmatprep.subr.mxu1 %v10764_v25 }
 0x16a   :  { %884 = vmatpush1.msra.mxu0 %v10765_v26  ;;  %917 = vmatprep.mubr.f32.mxu0 %v10766_v27 }
 0x16b   :  { %955 = vmatpush1.msra.mxu1 %v10767_v28  ;;  %988 = vmatprep.mubr.f32.mxu1 %v10766_v27 }
 0x16c   :  { %918 = vmatmul.mubr.f32.vlgmr.msra.gmra.mxu0 %v6345_v29  ;;  %989 = vmatmul.mubr.f32.vlgmr.msra.gmra.mxu1 %v6345_v29  ;;  %v10807_v29 = vld [vmem:[#allocation64_spill] sm:$0xff] }
 0x16d   :  { %1023 = vmatprep.subr.mxu0 %v10768_v30  ;;  %1094 = vmatprep.subr.mxu1 %v10769_v31 }
 0x16e   :  { %1024 = vmatpush1.msra.mxu0 %v10770_v32  ;;  %1095 = vmatpush1.msra.mxu1 %v10771_v33 }
 0x16f   :  { %1025 = vmatprep.subr.mxu0 %v10772_v34  ;;  %1096 = vmatprep.subr.mxu1 %v10773_v35 }
 0x170   :  { %1026 = vmatpush1.msra.mxu0 %v10774_v36  ;;  %1097 = vmatpush1.msra.mxu1 %v10775_v37 }
 0x171   :  { %1027 = vmatprep.subr.mxu0 %v10776_v39  ;;  %1098 = vmatprep.subr.mxu1 %v10777_v40 }
 0x172   :  { %1028 = vmatpush1.msra.mxu0 %v10778_v41  ;;  %1099 = vmatpush1.msra.mxu1 %v10779_v42 }
 0x173   :  { %1029 = vmatprep.subr.mxu0 %v10780_v43  ;;  %1100 = vmatprep.subr.mxu1 %v10781_v44 }
 0x174   :  { %1030 = vmatpush1.msra.mxu0 %v10782_v45  ;;  %1101 = vmatpush1.msra.mxu1 %v10783_v46 }
 0x175   :  { %1031 = vmatprep.subr.mxu0 %v10784_v48  ;;  %1102 = vmatprep.subr.mxu1 %v10785_v49 }
 0x176   :  { %1032 = vmatpush1.msra.mxu0 %v10786_v50  ;;  %1103 = vmatpush1.msra.mxu1 %v10787_v1 }
 0x177   :  { %1033 = vmatprep.subr.mxu0 %v10788_v61  ;;  %1104 = vmatprep.subr.mxu1 %v10789_v53 }
 0x178   :  { %1034 = vmatpush1.msra.mxu0 %v10790_v52  ;;  %1105 = vmatpush1.msra.mxu1 %v10791_v38 }
 0x179   :  { %1035 = vmatprep.subr.mxu0 %v10792_v62  ;;  %1106 = vmatprep.subr.mxu1 %v10793_v0 }
 0x17a   :  { %1036 = vmatpush1.msra.mxu0 %v10794_v11  ;;  %1107 = vmatpush1.msra.mxu1 %v10795_v60 }
 0x17b   :  { %1037 = vmatprep.subr.mxu0 %v10796_v56  ;;  %1108 = vmatprep.subr.mxu1 %v10797_v51 }
 0x17c   :  { %1038 = vmatpush1.msra.mxu0 %v10798_v54  ;;  %1109 = vmatpush1.msra.mxu1 %v10799_v20  ;;  %v10839_v20 = vld [vmem:[#allocation92_spill] sm:$0xff]  ;;  %v10840_v54 = vld [vmem:[#allocation90_spill] sm:$0xff] }
 0x17d   :  { %1039 = vmatprep.subr.mxu0 %v10800_v47  ;;  %1110 = vmatprep.subr.mxu1 %v10801_v55 }
 0x17e   :  { %1040 = vmatpush1.msra.mxu0 %v10802_v3  ;;  %1111 = vmatpush1.msra.mxu1 %v10803_v59  ;;  %v10813_v3 = vld [vmem:[#allocation70_spill] sm:$0xff]  ;;  %v10814_v59 = vld [vmem:[#allocation71_spill] sm:$0xff] }
 0x17f   :  { %1041 = vmatprep.subr.mxu0 %v10804_v2  ;;  %1112 = vmatprep.subr.mxu1 %v10805_v57  ;;  %v10815_v2 = vld [vmem:[#allocation72_spill] sm:$0xff]  ;;  %v10816_v57 = vld [vmem:[#allocation73_spill] sm:$0xff] }
 0x180   :  { %1042 = vmatpush1.msra.mxu0 %v10806_v63  ;;  %1113 = vmatpush1.msra.mxu1 %v10807_v29  ;;  %v10817_v63 = vld [vmem:[#allocation74_spill] sm:$0xff]  ;;  %v10818_v29 = vld [vmem:[#allocation75_spill] sm:$0xff] }
 0x181   :  { %1043 = vmatprep.subr.mxu0 %v10808_v5  ;;  %1114 = vmatprep.subr.mxu1 %v10809_v6  ;;  %v10819_v5 = vld [vmem:[#allocation76_spill] sm:$0xff]  ;;  %v10820_v6 = vld [vmem:[#allocation77_spill] sm:$0xff] }
 0x182   :  { %1044 = vmatpush1.msra.mxu0 %v10810_v7  ;;  %1115 = vmatpush1.msra.mxu1 %v10811_v8  ;;  %v10821_v7 = vld [vmem:[#allocation78_spill] sm:$0xff]  ;;  %v10822_v8 = vld [vmem:[#allocation79_spill] sm:$0xff] }
 0x183   :  { %1045 = vmatprep.subr.mxu0 %v10812_v9  ;;  %1116 = vmatprep.subr.mxu1 %v10813_v3  ;;  %v10823_v9 = vld [vmem:[#allocation80_spill] sm:$0xff]  ;;  %v10824_v3 = vld [vmem:[#allocation81_spill] sm:$0xff] }
 0x184   :  { %1046 = vmatpush1.msra.mxu0 %v10814_v59  ;;  %1117 = vmatpush1.msra.mxu1 %v10815_v2  ;;  %v10825_v59 = vld [vmem:[#allocation82_spill] sm:$0xff]  ;;  %v10826_v2 = vld [vmem:[#allocation83_spill] sm:$0xff] }
 0x185   :  { %1047 = vmatprep.subr.mxu0 %v10816_v57  ;;  %1118 = vmatprep.subr.mxu1 %v10817_v63  ;;  %v10827_v57 = vld [vmem:[#allocation84_spill] sm:$0xff]  ;;  %v10828_v63 = vld [vmem:[#allocation85_spill] sm:$0xff] }
 0x186   :  { %1048 = vmatpush1.msra.mxu0 %v10818_v29  ;;  %1119 = vmatpush1.msra.mxu1 %v10819_v5  ;;  %v10829_v29 = vld [vmem:[#allocation86_spill] sm:$0xff]  ;;  %v10830_v5 = vld [vmem:[#allocation87_spill] sm:$0xff] }
 0x187   :  { %1049 = vmatprep.subr.mxu0 %v10820_v6  ;;  %1120 = vmatprep.subr.mxu1 %v10821_v7  ;;  %v10831_v6 = vld [vmem:[#allocation88_spill] sm:$0xff] }
 0x188   :  { %1050 = vmatpush1.msra.mxu0 %v10822_v8  ;;  %1121 = vmatpush1.msra.mxu1 %v10823_v9  ;;  %v10838_v8 = vld [vmem:[#allocation91_spill] sm:$0xff] }
 0x189   :  { %1051 = vmatprep.subr.mxu0 %v10824_v3  ;;  %1122 = vmatprep.subr.mxu1 %v10825_v59  ;;  %v6484_v59 = vld [vmem:[%s9988_s2 + $0x1e8] sm:$0xff] }
 0x18a   :  { %1052 = vmatpush1.msra.mxu0 %v10826_v2  ;;  %1123 = vmatpush1.msra.mxu1 %v10827_v57  ;;  %10832 = vst [vmem:[#allocation4_spill] sm:$0xff] %v6484_v59 }
 0x18b   :  { %1053 = vmatprep.subr.mxu0 %v10828_v63  ;;  %1124 = vmatprep.subr.mxu1 %v10829_v29  ;;  %v6490_v63 = vld [vmem:[%s9988_s2 + $0x1f8] sm:$0xff] }
 0x18c   :  { %1054 = vmatpush1.msra.mxu0 %v10830_v5  ;;  %1125 = vmatpush1.msra.mxu1 %v10831_v6  ;;  %10833 = vst [vmem:[#allocation5_spill] sm:$0xff] %v6490_v63 }
 0x18d   :  { %1087 = vmatprep.mubr.f32.mxu0 %v10766_v27  ;;  %1158 = vmatprep.mubr.f32.mxu1 %v10766_v27 }
 0x18e   :  { %1175 = vmatprep.subr.mxu0 %v6484_v59  ;;  %1246 = vmatprep.subr.mxu1 %v6490_v63 }
 0x20b   :  { %v6493_v5 = vpop.f32.mrf.mxu0  ;;  %v6497_v29 = vpop.f32.mrf.mxu1 }
 0x20c   :  { %10834 = vst [vmem:[#allocation6_spill] sm:$0xff] %v6493_v5  ;;  %10836 = vst [vmem:[#allocation8_spill] sm:$0xff] %v6497_v29 }
 0x20d   :  { %v6495_v6 = vpop.f32.mrf.mxu0  ;;  %v6500_v9 = vpop.f32.mrf.mxu1 }
 0x20e   :  { %10835 = vst [vmem:[#allocation7_spill] sm:$0xff] %v6495_v6  ;;  %10837 = vst [vmem:[#allocation9_spill] sm:$0xff] %v6500_v9 }
 0x22c   :  { %v919_v57 = vpop.f32.mrf.mxu0  ;;  %v990_v55 = vpop.f32.mrf.mxu1 }
 0x22d   :  { %v995_v2 = vadd.f32 %v919_v57, %v6266_v58  ;;  %v997_v6 = vadd.f32 %v990_v55, %v10840_v54 }
 0x22e   :  { %v921_v3 = vpop.f32.mrf.mxu0  ;;  %v992_v63 = vpop.f32.mrf.mxu1 }
 0x22f   :  { %v4566_v59 = vmul.f32 -1.442695, %v995_v2  ;;  %v996_v7 = vadd.f32 %v921_v3, %v10838_v8  ;;  %v998_v5 = vadd.f32 %v992_v63, %v10839_v20 }
 0x231   :  { %4628 = vpow2.f32 %v4566_v59  ;;  %v4567_v47 = vmul.f32 -1.442695, %v996_v7  ;;  %v4568_v51 = vmul.f32 -1.442695, %v998_v5  ;;  %v6540_v5 = vld [vmem:[%s9988_s2 + $0x1c0] sm:$0xff] }
 0x233   :  { %4630 = vpow2.f32 %v4567_v47 }
 0x234   :  { %4632 = vtanh.f32 %v997_v6  ;;  %v6546_v6 = vld [vmem:[%s9988_s2 + $0x1d0] sm:$0xff] }
 0x235   :  { %4634 = vpow2.f32 %v4568_v51  ;;  %v6528_v51 = vld [vmem:[%s9988_s2 + $0x1c8] sm:$0xff] }
 0x23e   :  { %v4629_v29 = vpop.eup %4628 }
 0x23f   :  { %v1002_v56 = vadd.f32 1.0, %v4629_v29  ;;  %v6534_v29 = vld [vmem:[%s9988_s2 + $0x1d8] sm:$0xff] }
 0x240   :  { %v4631_v58 = vpop.eup %4630 }
 0x241   :  { %4636 = vrcp.f32 %v1002_v56  ;;  %v1008_v57 = vadd.f32 1.0, %v4631_v58  ;;  %v4633_v2 = vpop.eup %4632  ;;  %v6516_v56 = vld [vmem:[%s9988_s2 + $0x1e0] sm:$0xff]  ;;  %v6558_v58 = vld [vmem:[%s9988_s2 + $0x1b8] sm:$0xff] }
 0x242   :  { %v4635_v3 = vpop.eup %4634 }
 0x243   :  { %4638 = vrcp.f32 %v1008_v57  ;;  %v1015_v47 = vadd.f32 1.0, %v4635_v3  ;;  %v6564_v57 = vld [vmem:[%s9988_s2 + $0x1a0] sm:$0xff]  ;;  %v6576_v3 = vld [vmem:[%s9988_s2 + $0x188] sm:$0xff] }
 0x245   :  { %4640 = vrcp.f32 %v1015_v47  ;;  %v6600_v47 = vld [vmem:[%s9988_s2 + $0x168] sm:$0xff] }
 0x246   :  { %10842 = vst [vmem:[#allocation11_spill] sm:$0xff] %v6600_v47 }
 0x24e   :  { %v4637_v59 = vpop.eup %4636 }
 0x24f   :  { %v1019_v8 = vmul.f32 %v4637_v59, %v4633_v2  ;;  %v6570_v2 = vld [vmem:[%s9988_s2 + $0x1b0] sm:$0xff]  ;;  %v6582_v59 = vld [vmem:[%s9988_s2 + $0x198] sm:$0xff] }
 0x250   :  { %v4639_v7 = vpop.eup %4638 }
 0x251   :  { %v1018_v9 = vmul.f32 %v4639_v7, %v6342_v4  ;;  %v6522_v4 = vld [vmem:[%s9988_s2 + $0x1f0] sm:$0xff] }
 0x252   :  { %v4641_v54 = vpop.eup %4640  ;;  %v6594_v7 = vld [vmem:[%s9988_s2 + $0x190] sm:$0xff] }
 0x253   :  { %v6506_v20 = vadd.f32 %v1019_v8, %v1018_v9  ;;  %v6552_v9 = vld [vmem:[%s9988_s2 + $0x1a8] sm:$0xff]  ;;  %v6588_v8 = vld [vmem:[%s9988_s2 + $0x180] sm:$0xff]  ;;  %10841 = vst [vmem:[#allocation10_spill] sm:$0xff] %v6594_v7 }
 0x255   :  { %4642 = vtanh.f32 %v6506_v20 }
 0x262   :  { %v4643_v55 = vpop.eup %4642 }
 0x263   :  { %v6509_v63 = vmul.f32 %v4643_v55, %v4641_v54  ;;  %v6606_v54 = vld [vmem:[%s9988_s2 + $0x178] sm:$0xff]  ;;  %v6612_v55 = vld [vmem:[%s9988_s2 + $0x160] sm:$0xff] }
 0x264   :  { %10843 = vst [vmem:[#allocation12_spill] sm:$0xff] %v6606_v54  ;;  %10844 = vst [vmem:[#allocation13_spill] sm:$0xff] %v6612_v55 }
 0x265   :  { %1088 = vmatmul.mubr.f32.vlgmr.msra.gmra.mxu0 %v6509_v63  ;;  %1159 = vmatmul.mubr.f32.vlgmr.msra.gmra.mxu1 %v6509_v63 }
 0x266   :  { %1176 = vmatpush1.msra.mxu0 %v6516_v56  ;;  %1247 = vmatpush1.msra.mxu1 %v6522_v4 }
 0x267   :  { %1177 = vmatprep.subr.mxu0 %v6528_v51  ;;  %1248 = vmatprep.subr.mxu1 %v6534_v29 }
 0x268   :  { %1178 = vmatpush1.msra.mxu0 %v6540_v5  ;;  %1249 = vmatpush1.msra.mxu1 %v6546_v6 }
 0x269   :  { %1179 = vmatprep.subr.mxu0 %v6552_v9  ;;  %1250 = vmatprep.subr.mxu1 %v6558_v58 }
 0x26a   :  { %1180 = vmatpush1.msra.mxu0 %v6564_v57  ;;  %1251 = vmatpush1.msra.mxu1 %v6570_v2 }
 0x26b   :  { %1181 = vmatprep.subr.mxu0 %v6576_v3  ;;  %1252 = vmatprep.subr.mxu1 %v6582_v59 }
 0x26c   :  { %1182 = vmatpush1.msra.mxu0 %v6588_v8  ;;  %1253 = vmatpush1.msra.mxu1 %v6594_v7  ;;  %v6618_v7 = vld [vmem:[%s9988_s2 + $0x170] sm:$0xff] }
 0x26d   :  { %1183 = vmatprep.subr.mxu0 %v6600_v47  ;;  %1254 = vmatprep.subr.mxu1 %v6606_v54  ;;  %10845 = vst [vmem:[#allocation14_spill] sm:$0xff] %v6618_v7  ;;  %v6624_v47 = vld [vmem:[%s9988_s2 + $0x148] sm:$0xff]  ;;  %v6630_v54 = vld [vmem:[%s9988_s2 + $0x158] sm:$0xff] }
 0x26e   :  { %1184 = vmatpush1.msra.mxu0 %v6612_v55  ;;  %1255 = vmatpush1.msra.mxu1 %v6618_v7  ;;  %10846 = vst [vmem:[#allocation15_spill] sm:$0xff] %v6624_v47  ;;  %10847 = vst [vmem:[#allocation16_spill] sm:$0xff] %v6630_v54  ;;  %v6636_v55 = vld [vmem:[%s9988_s2 + $0x140] sm:$0xff]  ;;  %v6642_v7 = vld [vmem:[%s9988_s2 + $0x150] sm:$0xff] }
 0x26f   :  { %1185 = vmatprep.subr.mxu0 %v6624_v47  ;;  %1256 = vmatprep.subr.mxu1 %v6630_v54  ;;  %10848 = vst [vmem:[#allocation17_spill] sm:$0xff] %v6636_v55  ;;  %10849 = vst [vmem:[#allocation18_spill] sm:$0xff] %v6642_v7  ;;  %v6648_v47 = vld [vmem:[%s9988_s2 + $0x128] sm:$0xff]  ;;  %v6654_v54 = vld [vmem:[%s9988_s2 + $0x138] sm:$0xff] }
 0x270   :  { %1186 = vmatpush1.msra.mxu0 %v6636_v55  ;;  %1257 = vmatpush1.msra.mxu1 %v6642_v7  ;;  %10850 = vst [vmem:[#allocation19_spill] sm:$0xff] %v6648_v47  ;;  %10851 = vst [vmem:[#allocation20_spill] sm:$0xff] %v6654_v54  ;;  %v6660_v55 = vld [vmem:[%s9988_s2 + $0x120] sm:$0xff]  ;;  %v6666_v7 = vld [vmem:[%s9988_s2 + $0x130] sm:$0xff] }
 0x271   :  { %1187 = vmatprep.subr.mxu0 %v6648_v47  ;;  %1258 = vmatprep.subr.mxu1 %v6654_v54  ;;  %10852 = vst [vmem:[#allocation21_spill] sm:$0xff] %v6660_v55  ;;  %10853 = vst [vmem:[#allocation22_spill] sm:$0xff] %v6666_v7  ;;  %v6672_v47 = vld [vmem:[%s9988_s2 + $0x108] sm:$0xff]  ;;  %v6678_v54 = vld [vmem:[%s9988_s2 + $0x118] sm:$0xff] }
 0x272   :  { %1188 = vmatpush1.msra.mxu0 %v6660_v55  ;;  %1259 = vmatpush1.msra.mxu1 %v6666_v7  ;;  %10854 = vst [vmem:[#allocation23_spill] sm:$0xff] %v6672_v47  ;;  %10855 = vst [vmem:[#allocation24_spill] sm:$0xff] %v6678_v54  ;;  %v6684_v55 = vld [vmem:[%s9988_s2 + $0x100] sm:$0xff]  ;;  %v6690_v7 = vld [vmem:[%s9988_s2 + $0x110] sm:$0xff] }
 0x273   :  { %1189 = vmatprep.subr.mxu0 %v6672_v47  ;;  %1260 = vmatprep.subr.mxu1 %v6678_v54  ;;  %10856 = vst [vmem:[#allocation25_spill] sm:$0xff] %v6684_v55  ;;  %10857 = vst [vmem:[#allocation26_spill] sm:$0xff] %v6690_v7  ;;  %v6696_v47 = vld [vmem:[%s9988_s2 + $0xe8] sm:$0xff]  ;;  %v6702_v54 = vld [vmem:[%s9988_s2 + $0xf8] sm:$0xff] }
 0x274   :  { %1190 = vmatpush1.msra.mxu0 %v6684_v55  ;;  %1261 = vmatpush1.msra.mxu1 %v6690_v7  ;;  %10858 = vst [vmem:[#allocation27_spill] sm:$0xff] %v6696_v47  ;;  %10859 = vst [vmem:[#allocation28_spill] sm:$0xff] %v6702_v54  ;;  %v6708_v55 = vld [vmem:[%s9988_s2 + $0xe0] sm:$0xff]  ;;  %v6714_v7 = vld [vmem:[%s9988_s2 + $0xf0] sm:$0xff] }
 0x275   :  { %1191 = vmatprep.subr.mxu0 %v6696_v47  ;;  %1262 = vmatprep.subr.mxu1 %v6702_v54  ;;  %10860 = vst [vmem:[#allocation29_spill] sm:$0xff] %v6708_v55  ;;  %10861 = vst [vmem:[#allocation30_spill] sm:$0xff] %v6714_v7  ;;  %v6720_v47 = vld [vmem:[%s9988_s2 + $0xc8] sm:$0xff]  ;;  %v6726_v54 = vld [vmem:[%s9988_s2 + $0xd8] sm:$0xff] }
 0x276   :  { %1192 = vmatpush1.msra.mxu0 %v6708_v55  ;;  %1263 = vmatpush1.msra.mxu1 %v6714_v7  ;;  %10862 = vst [vmem:[#allocation31_spill] sm:$0xff] %v6720_v47  ;;  %10863 = vst [vmem:[#allocation32_spill] sm:$0xff] %v6726_v54  ;;  %v6732_v55 = vld [vmem:[%s9988_s2 + $0xc0] sm:$0xff]  ;;  %v6738_v7 = vld [vmem:[%s9988_s2 + $0xd0] sm:$0xff] }
 0x277   :  { %1193 = vmatprep.subr.mxu0 %v6720_v47  ;;  %1264 = vmatprep.subr.mxu1 %v6726_v54  ;;  %10864 = vst [vmem:[#allocation33_spill] sm:$0xff] %v6732_v55  ;;  %10865 = vst [vmem:[#allocation34_spill] sm:$0xff] %v6738_v7  ;;  %v6744_v47 = vld [vmem:[%s9988_s2 + $0xa8] sm:$0xff]  ;;  %v6750_v54 = vld [vmem:[%s9988_s2 + $0xb8] sm:$0xff] }
 0x278   :  { %1194 = vmatpush1.msra.mxu0 %v6732_v55  ;;  %1265 = vmatpush1.msra.mxu1 %v6738_v7  ;;  %10866 = vst [vmem:[#allocation35_spill] sm:$0xff] %v6744_v47  ;;  %10867 = vst [vmem:[#allocation36_spill] sm:$0xff] %v6750_v54  ;;  %v6756_v55 = vld [vmem:[%s9988_s2 + $0xa0] sm:$0xff]  ;;  %v6762_v7 = vld [vmem:[%s9988_s2 + $0xb0] sm:$0xff] }
 0x279   :  { %1195 = vmatprep.subr.mxu0 %v6744_v47  ;;  %1266 = vmatprep.subr.mxu1 %v6750_v54  ;;  %10868 = vst [vmem:[#allocation37_spill] sm:$0xff] %v6756_v55  ;;  %10869 = vst [vmem:[#allocation38_spill] sm:$0xff] %v6762_v7  ;;  %v6768_v47 = vld [vmem:[%s9988_s2 + $0x88] sm:$0xff]  ;;  %v6774_v54 = vld [vmem:[%s9988_s2 + $0x98] sm:$0xff] }
 0x27a   :  { %1196 = vmatpush1.msra.mxu0 %v6756_v55  ;;  %1267 = vmatpush1.msra.mxu1 %v6762_v7  ;;  %v6780_v55 = vld [vmem:[%s9988_s2 + $0x80] sm:$0xff]  ;;  %v6786_v7 = vld [vmem:[%s9988_s2 + $0x90] sm:$0xff] }
 0x27b   :  { %1197 = vmatprep.subr.mxu0 %v6768_v47  ;;  %1268 = vmatprep.subr.mxu1 %v6774_v54  ;;  %10870 = vst [vmem:[#allocation39_spill] sm:$0xff] %v6786_v7 }
 0x27c   :  { %1198 = vmatpush1.msra.mxu0 %v6780_v55  ;;  %1269 = vmatpush1.msra.mxu1 %v6786_v7 }
 0x27d   :  { %1199 = vmatprep.subr.mxu0 %v10751_v10  ;;  %1270 = vmatprep.subr.mxu1 %v10752_v12  ;;  %v10871_v10 = vld [vmem:[#allocation53_spill] sm:$0xff]  ;;  %v10872_v12 = vld [vmem:[#allocation54_spill] sm:$0xff] }
 0x27e   :  { %1200 = vmatpush1.msra.mxu0 %v10753_v13  ;;  %1271 = vmatpush1.msra.mxu1 %v10754_v14  ;;  %v10873_v13 = vld [vmem:[#allocation55_spill] sm:$0xff]  ;;  %v10874_v14 = vld [vmem:[#allocation56_spill] sm:$0xff] }
 0x27f   :  { %1201 = vmatprep.subr.mxu0 %v10755_v15  ;;  %1272 = vmatprep.subr.mxu1 %v10756_v16  ;;  %v10875_v15 = vld [vmem:[#allocation57_spill] sm:$0xff]  ;;  %v10876_v16 = vld [vmem:[#allocation58_spill] sm:$0xff] }
 0x280   :  { %1202 = vmatpush1.msra.mxu0 %v10757_v17  ;;  %1273 = vmatpush1.msra.mxu1 %v10758_v18  ;;  %v10877_v17 = vld [vmem:[#allocation59_spill] sm:$0xff]  ;;  %v10878_v18 = vld [vmem:[#allocation60_spill] sm:$0xff] }
 0x281   :  { %1203 = vmatprep.subr.mxu0 %v10759_v19  ;;  %1274 = vmatprep.subr.mxu1 %v10760_v21  ;;  %v10879_v19 = vld [vmem:[#allocation61_spill] sm:$0xff]  ;;  %v10880_v21 = vld [vmem:[#allocation62_spill] sm:$0xff] }
 0x282   :  { %1204 = vmatpush1.msra.mxu0 %v10761_v22  ;;  %1275 = vmatpush1.msra.mxu1 %v10762_v23  ;;  %v10881_v22 = vld [vmem:[#allocation63_spill] sm:$0xff]  ;;  %v10882_v23 = vld [vmem:[#allocation64_spill] sm:$0xff] }
 0x283   :  { %1205 = vmatprep.subr.mxu0 %v10763_v24  ;;  %1276 = vmatprep.subr.mxu1 %v10764_v25  ;;  %v10883_v24 = vld [vmem:[#allocation65_spill] sm:$0xff]  ;;  %v10884_v25 = vld [vmem:[#allocation66_spill] sm:$0xff] }
 0x284   :  { %1206 = vmatpush1.msra.mxu0 %v10765_v26  ;;  %1239 = vmatprep.mubr.f32.mxu0 %v10766_v27  ;;  %v10885_v26 = vld [vmem:[#allocation67_spill] sm:$0xff] }
 0x285   :  { %1277 = vmatpush1.msra.mxu1 %v10767_v28  ;;  %1310 = vmatprep.mubr.f32.mxu1 %v10766_v27  ;;  %v10886_v28 = vld [vmem:[#allocation68_spill] sm:$0xff] }
 0x286   :  { %1240 = vmatmul.mubr.f32.vlgmr.msra.gmra.mxu0 %v6509_v63  ;;  %1311 = vmatmul.mubr.f32.vlgmr.msra.gmra.mxu1 %v6509_v63 }
 0x287   :  { %1345 = vmatprep.subr.mxu0 %v10768_v30  ;;  %1416 = vmatprep.subr.mxu1 %v10769_v31  ;;  %v10887_v30 = vld [vmem:[#allocation69_spill] sm:$0xff]  ;;  %v10888_v31 = vld [vmem:[#allocation70_spill] sm:$0xff] }
 0x288   :  { %1346 = vmatpush1.msra.mxu0 %v10770_v32  ;;  %1417 = vmatpush1.msra.mxu1 %v10771_v33  ;;  %v10889_v32 = vld [vmem:[#allocation71_spill] sm:$0xff]  ;;  %v10890_v33 = vld [vmem:[#allocation72_spill] sm:$0xff] }
 0x289   :  { %1347 = vmatprep.subr.mxu0 %v10772_v34  ;;  %1418 = vmatprep.subr.mxu1 %v10773_v35  ;;  %v10891_v34 = vld [vmem:[#allocation73_spill] sm:$0xff]  ;;  %v10892_v35 = vld [vmem:[#allocation74_spill] sm:$0xff] }
 0x28a   :  { %1348 = vmatpush1.msra.mxu0 %v10774_v36  ;;  %1419 = vmatpush1.msra.mxu1 %v10775_v37  ;;  %v10893_v36 = vld [vmem:[#allocation75_spill] sm:$0xff]  ;;  %v10894_v37 = vld [vmem:[#allocation76_spill] sm:$0xff] }
 0x28b   :  { %1349 = vmatprep.subr.mxu0 %v10776_v39  ;;  %1420 = vmatprep.subr.mxu1 %v10777_v40  ;;  %v10895_v39 = vld [vmem:[#allocation77_spill] sm:$0xff]  ;;  %v10896_v40 = vld [vmem:[#allocation78_spill] sm:$0xff] }
 0x28c   :  { %1350 = vmatpush1.msra.mxu0 %v10778_v41  ;;  %1421 = vmatpush1.msra.mxu1 %v10779_v42  ;;  %v10897_v41 = vld [vmem:[#allocation79_spill] sm:$0xff]  ;;  %v10898_v42 = vld [vmem:[#allocation80_spill] sm:$0xff] }
 0x28d   :  { %1351 = vmatprep.subr.mxu0 %v10780_v43  ;;  %1422 = vmatprep.subr.mxu1 %v10781_v44  ;;  %v10899_v43 = vld [vmem:[#allocation81_spill] sm:$0xff]  ;;  %v10900_v44 = vld [vmem:[#allocation82_spill] sm:$0xff] }
 0x28e   :  { %1352 = vmatpush1.msra.mxu0 %v10782_v45  ;;  %1423 = vmatpush1.msra.mxu1 %v10783_v46  ;;  %v10901_v45 = vld [vmem:[#allocation83_spill] sm:$0xff]  ;;  %v10902_v46 = vld [vmem:[#allocation84_spill] sm:$0xff] }
 0x28f   :  { %1353 = vmatprep.subr.mxu0 %v10784_v48  ;;  %1424 = vmatprep.subr.mxu1 %v10785_v49  ;;  %v10903_v48 = vld [vmem:[#allocation85_spill] sm:$0xff]  ;;  %v10904_v49 = vld [vmem:[#allocation86_spill] sm:$0xff] }
 0x290   :  { %1354 = vmatpush1.msra.mxu0 %v10786_v50  ;;  %1425 = vmatpush1.msra.mxu1 %v10787_v1  ;;  %v10905_v50 = vld [vmem:[#allocation87_spill] sm:$0xff]  ;;  %v10906_v1 = vld [vmem:[#allocation88_spill] sm:$0xff] }
 0x291   :  { %1355 = vmatprep.subr.mxu0 %v10788_v61  ;;  %1426 = vmatprep.subr.mxu1 %v10789_v53  ;;  %v10907_v61 = vld [vmem:[#allocation4_spill] sm:$0xff]  ;;  %v10908_v53 = vld [vmem:[#allocation5_spill] sm:$0xff] }
 0x292   :  { %1356 = vmatpush1.msra.mxu0 %v10790_v52  ;;  %1427 = vmatpush1.msra.mxu1 %v10791_v38 }
 0x293   :  { %1357 = vmatprep.subr.mxu0 %v10792_v62  ;;  %1428 = vmatprep.subr.mxu1 %v10793_v0 }
 0x294   :  { %1358 = vmatpush1.msra.mxu0 %v10794_v11  ;;  %1429 = vmatpush1.msra.mxu1 %v10795_v60  ;;  %v10912_v11 = vld [vmem:[#allocation93_spill] sm:$0xff] }
 0x295   :  { %1359 = vmatprep.subr.mxu0 %v10871_v10  ;;  %1430 = vmatprep.subr.mxu1 %v10872_v12 }
 0x296   :  { %1360 = vmatpush1.msra.mxu0 %v10873_v13  ;;  %1431 = vmatpush1.msra.mxu1 %v10874_v14  ;;  %v10914_v13 = vld [vmem:[#allocation95_spill] sm:$0xff] }
 0x297   :  { %1361 = vmatprep.subr.mxu0 %v10875_v15  ;;  %1432 = vmatprep.subr.mxu1 %v10876_v16 }
 0x298   :  { %1362 = vmatpush1.msra.mxu0 %v10877_v17  ;;  %1433 = vmatpush1.msra.mxu1 %v10878_v18  ;;  %v10915_v18 = vld [vmem:[#allocation96_spill] sm:$0xff] }
 0x299   :  { %1363 = vmatprep.subr.mxu0 %v10879_v19  ;;  %1434 = vmatprep.subr.mxu1 %v10880_v21  ;;  %v10916_v21 = vld [vmem:[#allocation94_spill] sm:$0xff] }
 0x29a   :  { %1364 = vmatpush1.msra.mxu0 %v10881_v22  ;;  %1435 = vmatpush1.msra.mxu1 %v10882_v23 }
 0x29b   :  { %1365 = vmatprep.subr.mxu0 %v10883_v24  ;;  %1436 = vmatprep.subr.mxu1 %v10884_v25 }
 0x29c   :  { %1366 = vmatpush1.msra.mxu0 %v10885_v26  ;;  %1437 = vmatpush1.msra.mxu1 %v10886_v28 }
 0x29d   :  { %1367 = vmatprep.subr.mxu0 %v10887_v30  ;;  %1438 = vmatprep.subr.mxu1 %v10888_v31 }
 0x29e   :  { %1368 = vmatpush1.msra.mxu0 %v10889_v32  ;;  %1439 = vmatpush1.msra.mxu1 %v10890_v33 }
 0x29f   :  { %1369 = vmatprep.subr.mxu0 %v10891_v34  ;;  %1440 = vmatprep.subr.mxu1 %v10892_v35 }
 0x2a0   :  { %1370 = vmatpush1.msra.mxu0 %v10893_v36  ;;  %1441 = vmatpush1.msra.mxu1 %v10894_v37 }
 0x2a1   :  { %1371 = vmatprep.subr.mxu0 %v10895_v39  ;;  %1442 = vmatprep.subr.mxu1 %v10896_v40 }
 0x2a2   :  { %1372 = vmatpush1.msra.mxu0 %v10897_v41  ;;  %1443 = vmatpush1.msra.mxu1 %v10898_v42  ;;  %v10918_v42 = vld [vmem:[#allocation11_spill] sm:$0xff] }
 0x2a3   :  { %1373 = vmatprep.subr.mxu0 %v10899_v43  ;;  %1444 = vmatprep.subr.mxu1 %v10900_v44  ;;  %v10919_v43 = vld [vmem:[#allocation12_spill] sm:$0xff]  ;;  %v10920_v44 = vld [vmem:[#allocation13_spill] sm:$0xff] }
 0x2a4   :  { %1374 = vmatpush1.msra.mxu0 %v10901_v45  ;;  %1445 = vmatpush1.msra.mxu1 %v10902_v46  ;;  %v10921_v45 = vld [vmem:[#allocation14_spill] sm:$0xff]  ;;  %v10922_v46 = vld [vmem:[#allocation15_spill] sm:$0xff] }
 0x2a5   :  { %1375 = vmatprep.subr.mxu0 %v10903_v48  ;;  %1446 = vmatprep.subr.mxu1 %v10904_v49  ;;  %v10923_v48 = vld [vmem:[#allocation16_spill] sm:$0xff]  ;;  %v10924_v49 = vld [vmem:[#allocation17_spill] sm:$0xff] }
 0x2a6   :  { %1376 = vmatpush1.msra.mxu0 %v10905_v50  ;;  %1447 = vmatpush1.msra.mxu1 %v10906_v1  ;;  %v10925_v50 = vld [vmem:[#allocation18_spill] sm:$0xff]  ;;  %v10926_v1 = vld [vmem:[#allocation19_spill] sm:$0xff] }
 0x2a7   :  { %1409 = vmatprep.mubr.f32.mxu0 %v10766_v27  ;;  %1480 = vmatprep.mubr.f32.mxu1 %v10766_v27 }
 0x2a8   :  { %1497 = vmatprep.subr.mxu0 %v10907_v61  ;;  %1568 = vmatprep.subr.mxu1 %v10908_v53 }
 0x325   :  { %v6877_v52 = vpop.f32.mrf.mxu0  ;;  %v6881_v62 = vpop.f32.mrf.mxu1 }
 0x326   :  { %10909 = vst [vmem:[#allocation40_spill] sm:$0xff] %v6877_v52  ;;  %10911 = vst [vmem:[#allocation42_spill] sm:$0xff] %v6881_v62  ;;  %v7000_v62 = vld [vmem:[%s9988_s2 + $0x38] sm:$0xff]  ;;  %v7018_v52 = vld [vmem:[%s9988_s2 + $0x8] sm:$0xff] }
 0x327   :  { %v6879_v38 = vpop.f32.mrf.mxu0  ;;  %v6884_v10 = vpop.f32.mrf.mxu1  ;;  %10955 = vst [vmem:[#allocation91_spill] sm:$0xff] %v7000_v62  ;;  %10958 = vst [vmem:[#allocation53_spill] sm:$0xff] %v7018_v52 }
 0x328   :  { %10910 = vst [vmem:[#allocation41_spill] sm:$0xff] %v6879_v38  ;;  %10913 = vst [vmem:[#allocation43_spill] sm:$0xff] %v6884_v10  ;;  %v7006_v10 = vld [vmem:[%s9988_s2 + $0x20] sm:$0xff]  ;;  %v7012_v38 = vld [vmem:[%s9988_s2 + $0x30] sm:$0xff] }
 0x329   :  { %10956 = vst [vmem:[#allocation92_spill] sm:$0xff] %v7006_v10  ;;  %10957 = vst [vmem:[#allocation90_spill] sm:$0xff] %v7012_v38 }
 0x346   :  { %v1241_v0 = vpop.f32.mrf.mxu0  ;;  %v1312_v15 = vpop.f32.mrf.mxu1 }
 0x347   :  { %v1317_v60 = vadd.f32 %v1241_v0, %v10912_v11  ;;  %v1319_v22 = vadd.f32 %v1312_v15, %v10916_v21  ;;  %v10927_v0 = vld [vmem:[#allocation20_spill] sm:$0xff]  ;;  %v10928_v11 = vld [vmem:[#allocation21_spill] sm:$0xff]  ;;  %v10934_v15 = vld [vmem:[#allocation27_spill] sm:$0xff] }
 0x348   :  { %v1243_v63 = vpop.f32.mrf.mxu0  ;;  %v1314_v17 = vpop.f32.mrf.mxu1  ;;  %v10939_v21 = vld [vmem:[#allocation32_spill] sm:$0xff] }
 0x349   :  { %v4569_v12 = vmul.f32 -1.442695, %v1317_v60  ;;  %v1318_v14 = vadd.f32 %v1243_v63, %v10914_v13  ;;  %v1320_v19 = vadd.f32 %v1314_v17, %v10915_v18  ;;  %v10929_v60 = vld [vmem:[#allocation22_spill] sm:$0xff]  ;;  %v10930_v63 = vld [vmem:[#allocation23_spill] sm:$0xff]  ;;  %v10932_v13 = vld [vmem:[#allocation25_spill] sm:$0xff] }
 0x34a   :  { %v10936_v17 = vld [vmem:[#allocation29_spill] sm:$0xff]  ;;  %v10937_v18 = vld [vmem:[#allocation30_spill] sm:$0xff] }
 0x34b   :  { %4644 = vpow2.f32 %v4569_v12  ;;  %v4570_v16 = vmul.f32 -1.442695, %v1318_v14  ;;  %v4571_v23 = vmul.f32 -1.442695, %v1320_v19  ;;  %v10931_v12 = vld [vmem:[#allocation24_spill] sm:$0xff]  ;;  %v10933_v14 = vld [vmem:[#allocation26_spill] sm:$0xff] }
 0x34c   :  { %v10938_v19 = vld [vmem:[#allocation31_spill] sm:$0xff] }
 0x34d   :  { %4646 = vpow2.f32 %v4570_v16  ;;  %v10935_v16 = vld [vmem:[#allocation28_spill] sm:$0xff] }
 0x34e   :  { %4648 = vtanh.f32 %v1319_v22  ;;  %v10940_v22 = vld [vmem:[#allocation33_spill] sm:$0xff] }
 0x34f   :  { %4650 = vpow2.f32 %v4571_v23  ;;  %v10941_v23 = vld [vmem:[#allocation34_spill] sm:$0xff] }
 0x358   :  { %v4645_v24 = vpop.eup %4644 }
 0x359   :  { %v1324_v25 = vadd.f32 1.0, %v4645_v24  ;;  %v10942_v24 = vld [vmem:[#allocation35_spill] sm:$0xff] }
 0x35a   :  { %v4647_v26 = vpop.eup %4646 }
 0x35b   :  { %4652 = vrcp.f32 %v1324_v25  ;;  %v1330_v28 = vadd.f32 1.0, %v4647_v26  ;;  %v4649_v30 = vpop.eup %4648  ;;  %v10943_v25 = vld [vmem:[#allocation36_spill] sm:$0xff]  ;;  %v10944_v26 = vld [vmem:[#allocation37_spill] sm:$0xff] }
 0x35c   :  { %v4651_v31 = vpop.eup %4650 }
 0x35d   :  { %4654 = vrcp.f32 %v1330_v28  ;;  %v1337_v35 = vadd.f32 1.0, %v4651_v31  ;;  %v10945_v28 = vld [vmem:[#allocation38_spill] sm:$0xff]  ;;  %v6952_v31 = vld [vmem:[%s9988_s2 + $0x78] sm:$0xff] }
 0x35e   :  { %10947 = vst [vmem:[#allocation45_spill] sm:$0xff] %v6952_v31 }
 0x35f   :  { %4656 = vrcp.f32 %v1337_v35  ;;  %v6976_v35 = vld [vmem:[%s9988_s2 + $0x58] sm:$0xff] }
 0x360   :  { %10951 = vst [vmem:[#allocation49_spill] sm:$0xff] %v6976_v35 }
 0x368   :  { %v4653_v32 = vpop.eup %4652 }
 0x369   :  { %v1341_v33 = vmul.f32 %v4653_v32, %v4649_v30  ;;  %v6946_v30 = vld [vmem:[%s9988_s2 + $0x68] sm:$0xff]  ;;  %v6958_v32 = vld [vmem:[%s9988_s2 + $0x60] sm:$0xff] }
 0x36a   :  { %v4655_v34 = vpop.eup %4654  ;;  %10946 = vst [vmem:[#allocation44_spill] sm:$0xff] %v6946_v30  ;;  %10948 = vst [vmem:[#allocation46_spill] sm:$0xff] %v6958_v32 }
 0x36b   :  { %v1340_v36 = vmul.f32 %v4655_v34, %v6506_v20  ;;  %v10917_v20 = vld [vmem:[#allocation10_spill] sm:$0xff]  ;;  %v6970_v34 = vld [vmem:[%s9988_s2 + $0x48] sm:$0xff] }
 0x36c   :  { %v4657_v39 = vpop.eup %4656  ;;  %10950 = vst [vmem:[#allocation48_spill] sm:$0xff] %v6970_v34 }
 0x36d   :  { %v6890_v37 = vadd.f32 %v1341_v33, %v1340_v36  ;;  %v6964_v33 = vld [vmem:[%s9988_s2 + $0x70] sm:$0xff]  ;;  %v6982_v36 = vld [vmem:[%s9988_s2 + $0x40] sm:$0xff] }
 0x36e   :  { %10949 = vst [vmem:[#allocation47_spill] sm:$0xff] %v6964_v33  ;;  %10952 = vst [vmem:[#allocation50_spill] sm:$0xff] %v6982_v36 }
 0x36f   :  { %4658 = vtanh.f32 %v6890_v37 }
 0x37c   :  { %v4659_v40 = vpop.eup %4658 }
 0x37d   :  { %v6893_v41 = vmul.f32 %v4659_v40, %v4657_v39  ;;  %v6988_v39 = vld [vmem:[%s9988_s2 + $0x50] sm:$0xff]  ;;  %v6994_v40 = vld [vmem:[%s9988_s2 + $0x28] sm:$0xff] }
 0x37e   :  { %10953 = vst [vmem:[#allocation51_spill] sm:$0xff] %v6988_v39  ;;  %10954 = vst [vmem:[#allocation52_spill] sm:$0xff] %v6994_v40 }
 0x37f   :  { %1410 = vmatmul.mubr.f32.vlgmr.msra.gmra.mxu0 %v6893_v41  ;;  %1481 = vmatmul.mubr.f32.vlgmr.msra.gmra.mxu1 %v6893_v41 }
 0x380   :  { %1498 = vmatpush1.msra.mxu0 %v6516_v56  ;;  %1569 = vmatpush1.msra.mxu1 %v6522_v4 }
 0x381   :  { %1499 = vmatprep.subr.mxu0 %v6528_v51  ;;  %1570 = vmatprep.subr.mxu1 %v6534_v29 }
 0x382   :  { %1500 = vmatpush1.msra.mxu0 %v6540_v5  ;;  %1571 = vmatpush1.msra.mxu1 %v6546_v6 }
 0x383   :  { %1501 = vmatprep.subr.mxu0 %v6552_v9  ;;  %1572 = vmatprep.subr.mxu1 %v6558_v58 }
 0x384   :  { %1502 = vmatpush1.msra.mxu0 %v6564_v57  ;;  %1573 = vmatpush1.msra.mxu1 %v6570_v2 }
 0x385   :  { %1503 = vmatprep.subr.mxu0 %v6576_v3  ;;  %1574 = vmatprep.subr.mxu1 %v6582_v59 }
 0x386   :  { %1504 = vmatpush1.msra.mxu0 %v6588_v8  ;;  %1575 = vmatpush1.msra.mxu1 %v10917_v20 }
 0x387   :  { %1505 = vmatprep.subr.mxu0 %v10918_v42  ;;  %1576 = vmatprep.subr.mxu1 %v10919_v43 }
 0x388   :  { %1506 = vmatpush1.msra.mxu0 %v10920_v44  ;;  %1577 = vmatpush1.msra.mxu1 %v10921_v45 }
 0x389   :  { %1507 = vmatprep.subr.mxu0 %v10922_v46  ;;  %1578 = vmatprep.subr.mxu1 %v10923_v48 }
 0x38a   :  { %1508 = vmatpush1.msra.mxu0 %v10924_v49  ;;  %1579 = vmatpush1.msra.mxu1 %v10925_v50 }
 0x38b   :  { %1509 = vmatprep.subr.mxu0 %v10926_v1  ;;  %1580 = vmatprep.subr.mxu1 %v10927_v0 }
 0x38c   :  { %1510 = vmatpush1.msra.mxu0 %v10928_v11  ;;  %1581 = vmatpush1.msra.mxu1 %v10929_v60 }
 0x38d   :  { %1511 = vmatprep.subr.mxu0 %v10930_v63  ;;  %1582 = vmatprep.subr.mxu1 %v10931_v12 }
 0x38e   :  { %1512 = vmatpush1.msra.mxu0 %v10932_v13  ;;  %1583 = vmatpush1.msra.mxu1 %v10933_v14 }
 0x38f   :  { %1513 = vmatprep.subr.mxu0 %v10934_v15  ;;  %1584 = vmatprep.subr.mxu1 %v10935_v16 }
 0x390   :  { %1514 = vmatpush1.msra.mxu0 %v10936_v17  ;;  %1585 = vmatpush1.msra.mxu1 %v10937_v18 }
 0x391   :  { %1515 = vmatprep.subr.mxu0 %v10938_v19  ;;  %1586 = vmatprep.subr.mxu1 %v10939_v21 }
 0x392   :  { %1516 = vmatpush1.msra.mxu0 %v10940_v22  ;;  %1587 = vmatpush1.msra.mxu1 %v10941_v23 }
 0x393   :  { %1517 = vmatprep.subr.mxu0 %v10942_v24  ;;  %1588 = vmatprep.subr.mxu1 %v10943_v25 }
 0x394   :  { %1518 = vmatpush1.msra.mxu0 %v10944_v26  ;;  %1589 = vmatpush1.msra.mxu1 %v10945_v28 }
 0x395   :  { %1519 = vmatprep.subr.mxu0 %v6768_v47  ;;  %1590 = vmatprep.subr.mxu1 %v6774_v54 }
 0x396   :  { %1520 = vmatpush1.msra.mxu0 %v6780_v55  ;;  %1591 = vmatpush1.msra.mxu1 %v6786_v7 }
 0x397   :  { %1521 = vmatprep.subr.mxu0 %v6946_v30  ;;  %1592 = vmatprep.subr.mxu1 %v6952_v31  ;;  %v11033_v31 = vld [vmem:[#allocation98_spill] sm:$0xff] }
 0x398   :  { %1522 = vmatpush1.msra.mxu0 %v6958_v32  ;;  %1593 = vmatpush1.msra.mxu1 %v6964_v33  ;;  %v11032_v32 = vld [vmem:[#allocation100_spill] sm:$0xff] }
 0x399   :  { %1523 = vmatprep.subr.mxu0 %v6970_v34  ;;  %1594 = vmatprep.subr.mxu1 %v6976_v35  ;;  %v11031_v34 = vld [vmem:[#allocation99_spill] sm:$0xff] }
 0x39a   :  { %1524 = vmatpush1.msra.mxu0 %v6982_v36  ;;  %1595 = vmatpush1.msra.mxu1 %v6988_v39 }
 0x39b   :  { %1525 = vmatprep.subr.mxu0 %v6994_v40  ;;  %1596 = vmatprep.subr.mxu1 %v7000_v62  ;;  %v7024_v62 = vld [vmem:[%s9988_s2 + $0x18] sm:$0xff]  ;;  %v11029_v40 = vld [vmem:[#allocation97_spill] sm:$0xff] }
 0x39c   :  { %1526 = vmatpush1.msra.mxu0 %v7006_v10  ;;  %1597 = vmatpush1.msra.mxu1 %v7012_v38  ;;  %10959 = vst [vmem:[#allocation54_spill] sm:$0xff] %v7024_v62  ;;  %v7030_v10 = vld [vmem:[%s9988_s2] sm:$0xff] }
 0x39d   :  { %1527 = vmatprep.subr.mxu0 %v7018_v52  ;;  %1598 = vmatprep.subr.mxu1 %v7024_v62  ;;  %10960 = vst [vmem:[#allocation55_spill] sm:$0xff] %v7030_v10  ;;  %v7037_v52 = vld [vmem:[%s9988_s2 + $0x10] sm:$0xff]  ;;  %v7046_v62 = vld [vmem:[%s9989_s4 + $0x1e8] sm:$0xff] }
 0x39e   :  { %1528 = vmatpush1.msra.mxu0 %v7030_v10  ;;  %1561 = vmatprep.mubr.f32.mxu0 %v10766_v27  ;;  %10961 = vst [vmem:[#allocation56_spill] sm:$0xff] %v7037_v52  ;;  %10962 = vst [vmem:[#allocation57_spill] sm:$0xff] %v7046_v62  ;;  %v7052_v10 = vld [vmem:[%s9989_s4 + $0x1f8] sm:$0xff] }
 0x39f   :  { %1599 = vmatpush1.msra.mxu1 %v7037_v52  ;;  %1632 = vmatprep.mubr.f32.mxu1 %v10766_v27  ;;  %10963 = vst [vmem:[#allocation58_spill] sm:$0xff] %v7052_v10  ;;  %v7058_v52 = vld [vmem:[%s9989_s4 + $0x1e0] sm:$0xff] }
 0x3a0   :  { %1562 = vmatmul.mubr.f32.vlgmr.msra.gmra.mxu0 %v6893_v41  ;;  %1633 = vmatmul.mubr.f32.vlgmr.msra.gmra.mxu1 %v6893_v41  ;;  %10964 = vst [vmem:[#allocation59_spill] sm:$0xff] %v7058_v52  ;;  %v7064_v41 = vld [vmem:[%s9989_s4 + $0x1f0] sm:$0xff] }
 0x3a1   :  { %1667 = vmatprep.subr.mxu0 %v7046_v62  ;;  %1738 = vmatprep.subr.mxu1 %v7052_v10  ;;  %10965 = vst [vmem:[#allocation60_spill] sm:$0xff] %v7064_v41  ;;  %v7070_v62 = vld [vmem:[%s9989_s4 + $0x1c8] sm:$0xff]  ;;  %v7076_v10 = vld [vmem:[%s9989_s4 + $0x1d8] sm:$0xff] }
 0x3a2   :  { %1668 = vmatpush1.msra.mxu0 %v7058_v52  ;;  %1739 = vmatpush1.msra.mxu1 %v7064_v41  ;;  %10966 = vst [vmem:[#allocation61_spill] sm:$0xff] %v7070_v62  ;;  %10967 = vst [vmem:[#allocation62_spill] sm:$0xff] %v7076_v10  ;;  %v7082_v52 = vld [vmem:[%s9989_s4 + $0x1c0] sm:$0xff]  ;;  %v7088_v41 = vld [vmem:[%s9989_s4 + $0x1d0] sm:$0xff] }
 0x3a3   :  { %1669 = vmatprep.subr.mxu0 %v7070_v62  ;;  %1740 = vmatprep.subr.mxu1 %v7076_v10  ;;  %10968 = vst [vmem:[#allocation63_spill] sm:$0xff] %v7082_v52  ;;  %10969 = vst [vmem:[#allocation64_spill] sm:$0xff] %v7088_v41  ;;  %v7094_v62 = vld [vmem:[%s9989_s4 + $0x1a8] sm:$0xff]  ;;  %v7100_v10 = vld [vmem:[%s9989_s4 + $0x1b8] sm:$0xff] }
 0x3a4   :  { %1670 = vmatpush1.msra.mxu0 %v7082_v52  ;;  %1741 = vmatpush1.msra.mxu1 %v7088_v41  ;;  %10970 = vst [vmem:[#allocation65_spill] sm:$0xff] %v7094_v62  ;;  %10971 = vst [vmem:[#allocation66_spill] sm:$0xff] %v7100_v10  ;;  %v7106_v52 = vld [vmem:[%s9989_s4 + $0x1a0] sm:$0xff]  ;;  %v7112_v41 = vld [vmem:[%s9989_s4 + $0x1b0] sm:$0xff] }
 0x3a5   :  { %1671 = vmatprep.subr.mxu0 %v7094_v62  ;;  %1742 = vmatprep.subr.mxu1 %v7100_v10  ;;  %10972 = vst [vmem:[#allocation67_spill] sm:$0xff] %v7106_v52  ;;  %10973 = vst [vmem:[#allocation68_spill] sm:$0xff] %v7112_v41  ;;  %v7118_v62 = vld [vmem:[%s9989_s4 + $0x188] sm:$0xff]  ;;  %v7124_v10 = vld [vmem:[%s9989_s4 + $0x198] sm:$0xff] }
 0x3a6   :  { %1672 = vmatpush1.msra.mxu0 %v7106_v52  ;;  %1743 = vmatpush1.msra.mxu1 %v7112_v41  ;;  %10974 = vst [vmem:[#allocation69_spill] sm:$0xff] %v7118_v62  ;;  %10975 = vst [vmem:[#allocation70_spill] sm:$0xff] %v7124_v10  ;;  %v7130_v52 = vld [vmem:[%s9989_s4 + $0x180] sm:$0xff]  ;;  %v7136_v41 = vld [vmem:[%s9989_s4 + $0x190] sm:$0xff] }
 0x3a7   :  { %1673 = vmatprep.subr.mxu0 %v7118_v62  ;;  %1744 = vmatprep.subr.mxu1 %v7124_v10  ;;  %10976 = vst [vmem:[#allocation71_spill] sm:$0xff] %v7130_v52  ;;  %10977 = vst [vmem:[#allocation72_spill] sm:$0xff] %v7136_v41  ;;  %v7142_v62 = vld [vmem:[%s9989_s4 + $0x168] sm:$0xff]  ;;  %v7148_v10 = vld [vmem:[%s9989_s4 + $0x178] sm:$0xff] }
 0x3a8   :  { %1674 = vmatpush1.msra.mxu0 %v7130_v52  ;;  %1745 = vmatpush1.msra.mxu1 %v7136_v41  ;;  %10978 = vst [vmem:[#allocation73_spill] sm:$0xff] %v7142_v62  ;;  %10979 = vst [vmem:[#allocation74_spill] sm:$0xff] %v7148_v10  ;;  %v7154_v52 = vld [vmem:[%s9989_s4 + $0x160] sm:$0xff]  ;;  %v7160_v41 = vld [vmem:[%s9989_s4 + $0x170] sm:$0xff] }
 0x3a9   :  { %1675 = vmatprep.subr.mxu0 %v7142_v62  ;;  %1746 = vmatprep.subr.mxu1 %v7148_v10  ;;  %10980 = vst [vmem:[#allocation75_spill] sm:$0xff] %v7154_v52  ;;  %10981 = vst [vmem:[#allocation76_spill] sm:$0xff] %v7160_v41  ;;  %v7166_v62 = vld [vmem:[%s9989_s4 + $0x148] sm:$0xff]  ;;  %v7172_v10 = vld [vmem:[%s9989_s4 + $0x158] sm:$0xff] }
 0x3aa   :  { %1676 = vmatpush1.msra.mxu0 %v7154_v52  ;;  %1747 = vmatpush1.msra.mxu1 %v7160_v41  ;;  %10982 = vst [vmem:[#allocation77_spill] sm:$0xff] %v7166_v62  ;;  %10983 = vst [vmem:[#allocation78_spill] sm:$0xff] %v7172_v10  ;;  %v7178_v52 = vld [vmem:[%s9989_s4 + $0x140] sm:$0xff]  ;;  %v7184_v41 = vld [vmem:[%s9989_s4 + $0x150] sm:$0xff] }
 0x3ab   :  { %1677 = vmatprep.subr.mxu0 %v7166_v62  ;;  %1748 = vmatprep.subr.mxu1 %v7172_v10  ;;  %10984 = vst [vmem:[#allocation79_spill] sm:$0xff] %v7178_v52  ;;  %10985 = vst [vmem:[#allocation80_spill] sm:$0xff] %v7184_v41  ;;  %v7190_v62 = vld [vmem:[%s9989_s4 + $0x128] sm:$0xff]  ;;  %v7196_v10 = vld [vmem:[%s9989_s4 + $0x138] sm:$0xff] }
 0x3ac   :  { %1678 = vmatpush1.msra.mxu0 %v7178_v52  ;;  %1749 = vmatpush1.msra.mxu1 %v7184_v41  ;;  %10986 = vst [vmem:[#allocation81_spill] sm:$0xff] %v7190_v62  ;;  %10987 = vst [vmem:[#allocation82_spill] sm:$0xff] %v7196_v10  ;;  %v7202_v52 = vld [vmem:[%s9989_s4 + $0x120] sm:$0xff]  ;;  %v7208_v41 = vld [vmem:[%s9989_s4 + $0x130] sm:$0xff] }
 0x3ad   :  { %1679 = vmatprep.subr.mxu0 %v7190_v62  ;;  %1750 = vmatprep.subr.mxu1 %v7196_v10  ;;  %10988 = vst [vmem:[#allocation83_spill] sm:$0xff] %v7202_v52  ;;  %10989 = vst [vmem:[#allocation84_spill] sm:$0xff] %v7208_v41  ;;  %v7214_v62 = vld [vmem:[%s9989_s4 + $0x108] sm:$0xff]  ;;  %v7220_v10 = vld [vmem:[%s9989_s4 + $0x118] sm:$0xff] }
 0x3ae   :  { %1680 = vmatpush1.msra.mxu0 %v7202_v52  ;;  %1751 = vmatpush1.msra.mxu1 %v7208_v41  ;;  %10990 = vst [vmem:[#allocation85_spill] sm:$0xff] %v7214_v62  ;;  %10991 = vst [vmem:[#allocation86_spill] sm:$0xff] %v7220_v10  ;;  %v7226_v52 = vld [vmem:[%s9989_s4 + $0x100] sm:$0xff]  ;;  %v7232_v41 = vld [vmem:[%s9989_s4 + $0x110] sm:$0xff] }
 0x3af   :  { %1681 = vmatprep.subr.mxu0 %v7214_v62  ;;  %1752 = vmatprep.subr.mxu1 %v7220_v10  ;;  %10992 = vst [vmem:[#allocation87_spill] sm:$0xff] %v7226_v52  ;;  %10993 = vst [vmem:[#allocation88_spill] sm:$0xff] %v7232_v41  ;;  %v7238_v62 = vld [vmem:[%s9989_s4 + $0xe8] sm:$0xff]  ;;  %v7244_v10 = vld [vmem:[%s9989_s4 + $0xf8] sm:$0xff] }
 0x3b0   :  { %1682 = vmatpush1.msra.mxu0 %v7226_v52  ;;  %1753 = vmatpush1.msra.mxu1 %v7232_v41  ;;  %10994 = vst [vmem:[#allocation4_spill] sm:$0xff] %v7238_v62  ;;  %10995 = vst [vmem:[#allocation5_spill] sm:$0xff] %v7244_v10  ;;  %v7250_v52 = vld [vmem:[%s9989_s4 + $0xe0] sm:$0xff]  ;;  %v7256_v41 = vld [vmem:[%s9989_s4 + $0xf0] sm:$0xff] }
 0x3b1   :  { %1683 = vmatprep.subr.mxu0 %v7238_v62  ;;  %1754 = vmatprep.subr.mxu1 %v7244_v10  ;;  %10996 = vst [vmem:[#allocation93_spill] sm:$0xff] %v7250_v52  ;;  %10997 = vst [vmem:[#allocation95_spill] sm:$0xff] %v7256_v41  ;;  %v7262_v62 = vld [vmem:[%s9989_s4 + $0xc8] sm:$0xff]  ;;  %v7268_v10 = vld [vmem:[%s9989_s4 + $0xd8] sm:$0xff] }
 0x3b2   :  { %1684 = vmatpush1.msra.mxu0 %v7250_v52  ;;  %1755 = vmatpush1.msra.mxu1 %v7256_v41  ;;  %10998 = vst [vmem:[#allocation96_spill] sm:$0xff] %v7262_v62  ;;  %10999 = vst [vmem:[#allocation94_spill] sm:$0xff] %v7268_v10  ;;  %v7274_v52 = vld [vmem:[%s9989_s4 + $0xc0] sm:$0xff]  ;;  %v7280_v41 = vld [vmem:[%s9989_s4 + $0xd0] sm:$0xff] }
 0x3b3   :  { %1685 = vmatprep.subr.mxu0 %v7262_v62  ;;  %1756 = vmatprep.subr.mxu1 %v7268_v10  ;;  %11000 = vst [vmem:[#allocation10_spill] sm:$0xff] %v7274_v52  ;;  %11001 = vst [vmem:[#allocation11_spill] sm:$0xff] %v7280_v41  ;;  %v7286_v62 = vld [vmem:[%s9989_s4 + $0xa8] sm:$0xff]  ;;  %v7292_v10 = vld [vmem:[%s9989_s4 + $0xb8] sm:$0xff] }
 0x3b4   :  { %1686 = vmatpush1.msra.mxu0 %v7274_v52  ;;  %1757 = vmatpush1.msra.mxu1 %v7280_v41  ;;  %11002 = vst [vmem:[#allocation12_spill] sm:$0xff] %v7286_v62  ;;  %11003 = vst [vmem:[#allocation13_spill] sm:$0xff] %v7292_v10  ;;  %v7298_v52 = vld [vmem:[%s9989_s4 + $0xa0] sm:$0xff]  ;;  %v7304_v41 = vld [vmem:[%s9989_s4 + $0xb0] sm:$0xff] }
 0x3b5   :  { %1687 = vmatprep.subr.mxu0 %v7286_v62  ;;  %1758 = vmatprep.subr.mxu1 %v7292_v10  ;;  %11004 = vst [vmem:[#allocation14_spill] sm:$0xff] %v7298_v52  ;;  %11005 = vst [vmem:[#allocation15_spill] sm:$0xff] %v7304_v41  ;;  %v7310_v62 = vld [vmem:[%s9989_s4 + $0x88] sm:$0xff]  ;;  %v7316_v10 = vld [vmem:[%s9989_s4 + $0x98] sm:$0xff] }
 0x3b6   :  { %1688 = vmatpush1.msra.mxu0 %v7298_v52  ;;  %1759 = vmatpush1.msra.mxu1 %v7304_v41  ;;  %11006 = vst [vmem:[#allocation16_spill] sm:$0xff] %v7310_v62  ;;  %11007 = vst [vmem:[#allocation17_spill] sm:$0xff] %v7316_v10  ;;  %v7322_v52 = vld [vmem:[%s9989_s4 + $0x80] sm:$0xff]  ;;  %v7328_v41 = vld [vmem:[%s9989_s4 + $0x90] sm:$0xff] }
 0x3b7   :  { %1689 = vmatprep.subr.mxu0 %v7310_v62  ;;  %1760 = vmatprep.subr.mxu1 %v7316_v10  ;;  %11008 = vst [vmem:[#allocation18_spill] sm:$0xff] %v7322_v52  ;;  %11009 = vst [vmem:[#allocation19_spill] sm:$0xff] %v7328_v41  ;;  %v7334_v62 = vld [vmem:[%s9989_s4 + $0x68] sm:$0xff]  ;;  %v7340_v10 = vld [vmem:[%s9989_s4 + $0x78] sm:$0xff] }
 0x3b8   :  { %1690 = vmatpush1.msra.mxu0 %v7322_v52  ;;  %1761 = vmatpush1.msra.mxu1 %v7328_v41  ;;  %11010 = vst [vmem:[#allocation20_spill] sm:$0xff] %v7334_v62  ;;  %11011 = vst [vmem:[#allocation21_spill] sm:$0xff] %v7340_v10  ;;  %v7346_v52 = vld [vmem:[%s9989_s4 + $0x60] sm:$0xff]  ;;  %v7352_v41 = vld [vmem:[%s9989_s4 + $0x70] sm:$0xff] }
 0x3b9   :  { %1691 = vmatprep.subr.mxu0 %v7334_v62  ;;  %1762 = vmatprep.subr.mxu1 %v7340_v10  ;;  %11012 = vst [vmem:[#allocation22_spill] sm:$0xff] %v7346_v52  ;;  %11013 = vst [vmem:[#allocation23_spill] sm:$0xff] %v7352_v41  ;;  %v7358_v62 = vld [vmem:[%s9989_s4 + $0x48] sm:$0xff]  ;;  %v7364_v10 = vld [vmem:[%s9989_s4 + $0x58] sm:$0xff] }
 0x3ba   :  { %1692 = vmatpush1.msra.mxu0 %v7346_v52  ;;  %1763 = vmatpush1.msra.mxu1 %v7352_v41  ;;  %11014 = vst [vmem:[#allocation24_spill] sm:$0xff] %v7358_v62  ;;  %11015 = vst [vmem:[#allocation25_spill] sm:$0xff] %v7364_v10  ;;  %v7370_v52 = vld [vmem:[%s9989_s4 + $0x40] sm:$0xff]  ;;  %v7376_v41 = vld [vmem:[%s9989_s4 + $0x50] sm:$0xff] }
 0x3bb   :  { %1693 = vmatprep.subr.mxu0 %v7358_v62  ;;  %1764 = vmatprep.subr.mxu1 %v7364_v10  ;;  %11016 = vst [vmem:[#allocation26_spill] sm:$0xff] %v7370_v52  ;;  %11017 = vst [vmem:[#allocation27_spill] sm:$0xff] %v7376_v41  ;;  %v7382_v62 = vld [vmem:[%s9989_s4 + $0x28] sm:$0xff]  ;;  %v7388_v10 = vld [vmem:[%s9989_s4 + $0x38] sm:$0xff] }
 0x3bc   :  { %1694 = vmatpush1.msra.mxu0 %v7370_v52  ;;  %1765 = vmatpush1.msra.mxu1 %v7376_v41  ;;  %11018 = vst [vmem:[#allocation28_spill] sm:$0xff] %v7382_v62  ;;  %11019 = vst [vmem:[#allocation29_spill] sm:$0xff] %v7388_v10  ;;  %v7394_v52 = vld [vmem:[%s9989_s4 + $0x20] sm:$0xff]  ;;  %v7400_v41 = vld [vmem:[%s9989_s4 + $0x30] sm:$0xff] }
 0x3bd   :  { %1695 = vmatprep.subr.mxu0 %v7382_v62  ;;  %1766 = vmatprep.subr.mxu1 %v7388_v10  ;;  %11020 = vst [vmem:[#allocation30_spill] sm:$0xff] %v7394_v52  ;;  %11021 = vst [vmem:[#allocation31_spill] sm:$0xff] %v7400_v41  ;;  %v7406_v62 = vld [vmem:[%s9989_s4 + $0x8] sm:$0xff]  ;;  %v7412_v10 = vld [vmem:[%s9989_s4 + $0x18] sm:$0xff] }
 0x3be   :  { %1696 = vmatpush1.msra.mxu0 %v7394_v52  ;;  %1767 = vmatpush1.msra.mxu1 %v7400_v41  ;;  %11022 = vst [vmem:[#allocation32_spill] sm:$0xff] %v7406_v62  ;;  %11023 = vst [vmem:[#allocation33_spill] sm:$0xff] %v7412_v10  ;;  %v7418_v52 = vld [vmem:[%s9989_s4] sm:$0xff]  ;;  %v7424_v41 = vld [vmem:[%s9989_s4 + $0x10] sm:$0xff] }
 0x3bf   :  { %1697 = vmatprep.subr.mxu0 %v7406_v62  ;;  %1768 = vmatprep.subr.mxu1 %v7412_v10  ;;  %11024 = vst [vmem:[#allocation34_spill] sm:$0xff] %v7418_v52  ;;  %11025 = vst [vmem:[#allocation35_spill] sm:$0xff] %v7424_v41 }
 0x3c0   :  { %1698 = vmatpush1.msra.mxu0 %v7418_v52  ;;  %1769 = vmatpush1.msra.mxu1 %v7424_v41 }
 0x3c1   :  { %1731 = vmatprep.mubr.f32.mxu0 %v10766_v27  ;;  %1802 = vmatprep.mubr.f32.mxu1 %v10766_v27 }
 0x3c2   :  { %1819 = vmatprep.subr.mxu0 %v10907_v61  ;;  %1890 = vmatprep.subr.mxu1 %v10908_v53 }
 0x43f   :  { %v7431_v10 = vpop.f32.mrf.mxu0  ;;  %v7435_v52 = vpop.f32.mrf.mxu1 }
 0x440   :  { %11026 = vst [vmem:[#allocation36_spill] sm:$0xff] %v7431_v10  ;;  %11028 = vst [vmem:[#allocation38_spill] sm:$0xff] %v7435_v52 }
 0x441   :  { %v7433_v62 = vpop.f32.mrf.mxu0  ;;  %v7438_v35 = vpop.f32.mrf.mxu1 }
 0x442   :  { %11027 = vst [vmem:[#allocation37_spill] sm:$0xff] %v7433_v62  ;;  %11030 = vst [vmem:[#allocation97_spill] sm:$0xff] %v7438_v35 }
 0x460   :  { %v1563_v38 = vpop.f32.mrf.mxu0  ;;  %v1634_v27 = vpop.f32.mrf.mxu1 }
 0x461   :  { %v1639_v39 = vadd.f32 %v1563_v38, %v11029_v40  ;;  %v1641_v62 = vadd.f32 %v1634_v27, %v11033_v31  ;;  %v11083_v31 = vld [vmem:[#allocation88_spill] sm:$0xff] }
 0x462   :  { %v1565_v36 = vpop.f32.mrf.mxu0  ;;  %v1636_v53 = vpop.f32.mrf.mxu1 }
 0x463   :  { %v4572_v41 = vmul.f32 -1.442695, %v1639_v39  ;;  %v1640_v33 = vadd.f32 %v1565_v36, %v11031_v34  ;;  %v1642_v10 = vadd.f32 %v1636_v53, %v11032_v32  ;;  %v11085_v53 = vld [vmem:[#allocation5_spill] sm:$0xff] }
 0x465   :  { %4660 = vpow2.f32 %v4572_v41  ;;  %v4573_v61 = vmul.f32 -1.442695, %v1640_v33  ;;  %v4574_v30 = vmul.f32 -1.442695, %v1642_v10  ;;  %v11051_v10 = vld [vmem:[#allocation56_spill] sm:$0xff] }
 0x467   :  { %4662 = vpow2.f32 %v4573_v61 }
 0x468   :  { %4664 = vtanh.f32 %v1641_v62 }
 0x469   :  { %4666 = vpow2.f32 %v4574_v30  ;;  %v11082_v30 = vld [vmem:[#allocation87_spill] sm:$0xff] }
 0x472   :  { %v4661_v52 = vpop.eup %4660 }
 0x473   :  { %v1646_v7 = vadd.f32 1.0, %v4661_v52 }
 0x474   :  { %v4663_v38 = vpop.eup %4662 }
 0x475   :  { %4668 = vrcp.f32 %v1646_v7  ;;  %v1652_v40 = vadd.f32 1.0, %v4663_v38  ;;  %v4665_v39 = vpop.eup %4664  ;;  %v11047_v7 = vld [vmem:[#allocation53_spill] sm:$0xff] }
 0x476   :  { %v4667_v34 = vpop.eup %4666  ;;  %v11086_v38 = vld [vmem:[#allocation93_spill] sm:$0xff] }
 0x477   :  { %4670 = vrcp.f32 %v1652_v40  ;;  %v1659_v61 = vadd.f32 1.0, %v4667_v34  ;;  %v11087_v40 = vld [vmem:[#allocation95_spill] sm:$0xff]  ;;  %v11089_v34 = vld [vmem:[#allocation94_spill] sm:$0xff] }
 0x479   :  { %4672 = vrcp.f32 %v1659_v61  ;;  %v11093_v61 = vld [vmem:[#allocation13_spill] sm:$0xff] }
 0x482   :  { %v4669_v36 = vpop.eup %4668 }
 0x483   :  { %v1663_v41 = vmul.f32 %v4669_v36, %v4665_v39  ;;  %v11088_v39 = vld [vmem:[#allocation96_spill] sm:$0xff]  ;;  %v11090_v36 = vld [vmem:[#allocation10_spill] sm:$0xff] }
 0x484   :  { %v4671_v33 = vpop.eup %4670 }
 0x485   :  { %v1662_v35 = vmul.f32 %v4671_v33, %v6890_v37  ;;  %v11052_v37 = vld [vmem:[#allocation57_spill] sm:$0xff]  ;;  %v11092_v33 = vld [vmem:[#allocation12_spill] sm:$0xff] }
 0x486   :  { %v4673_v27 = vpop.eup %4672 }
 0x487   :  { %v7444_v32 = vadd.f32 %v1663_v41, %v1662_v35  ;;  %v11084_v35 = vld [vmem:[#allocation4_spill] sm:$0xff]  ;;  %v11091_v41 = vld [vmem:[#allocation11_spill] sm:$0xff] }
 0x489   :  { %4674 = vtanh.f32 %v7444_v32 }
 0x496   :  { %v4675_v52 = vpop.eup %4674 }
 0x497   :  { %v7447_v62 = vmul.f32 %v4675_v52, %v4673_v27  ;;  %v11094_v27 = vld [vmem:[#allocation14_spill] sm:$0xff]  ;;  %v11095_v52 = vld [vmem:[#allocation15_spill] sm:$0xff] }
 0x499   :  { %1732 = vmatmul.mubr.f32.vlgmr.msra.gmra.mxu0 %v7447_v62  ;;  %1803 = vmatmul.mubr.f32.vlgmr.msra.gmra.mxu1 %v7447_v62 }
 0x49a   :  { %1820 = vmatpush1.msra.mxu0 %v6516_v56  ;;  %1891 = vmatpush1.msra.mxu1 %v6522_v4  ;;  %v11034_v56 = vld [vmem:[#allocation39_spill] sm:$0xff]  ;;  %v11035_v4 = vld [vmem:[#allocation44_spill] sm:$0xff] }
 0x49b   :  { %1821 = vmatprep.subr.mxu0 %v6528_v51  ;;  %1892 = vmatprep.subr.mxu1 %v6534_v29  ;;  %v11036_v51 = vld [vmem:[#allocation45_spill] sm:$0xff]  ;;  %v11037_v29 = vld [vmem:[#allocation46_spill] sm:$0xff] }
 0x49c   :  { %1822 = vmatpush1.msra.mxu0 %v6540_v5  ;;  %1893 = vmatpush1.msra.mxu1 %v6546_v6  ;;  %v11038_v5 = vld [vmem:[#allocation47_spill] sm:$0xff]  ;;  %v11039_v6 = vld [vmem:[#allocation48_spill] sm:$0xff] }
 0x49d   :  { %1823 = vmatprep.subr.mxu0 %v6552_v9  ;;  %1894 = vmatprep.subr.mxu1 %v6558_v58  ;;  %v11040_v9 = vld [vmem:[#allocation49_spill] sm:$0xff]  ;;  %v11041_v58 = vld [vmem:[#allocation50_spill] sm:$0xff] }
 0x49e   :  { %1824 = vmatpush1.msra.mxu0 %v6564_v57  ;;  %1895 = vmatpush1.msra.mxu1 %v6570_v2  ;;  %v11042_v57 = vld [vmem:[#allocation51_spill] sm:$0xff]  ;;  %v11043_v2 = vld [vmem:[#allocation52_spill] sm:$0xff] }
 0x49f   :  { %1825 = vmatprep.subr.mxu0 %v6576_v3  ;;  %1896 = vmatprep.subr.mxu1 %v6582_v59  ;;  %v11044_v3 = vld [vmem:[#allocation91_spill] sm:$0xff]  ;;  %v11045_v59 = vld [vmem:[#allocation92_spill] sm:$0xff] }
 0x4a0   :  { %1826 = vmatpush1.msra.mxu0 %v6588_v8  ;;  %1897 = vmatpush1.msra.mxu1 %v10917_v20  ;;  %v11046_v8 = vld [vmem:[#allocation90_spill] sm:$0xff] }
 0x4a1   :  { %1827 = vmatprep.subr.mxu0 %v10918_v42  ;;  %1898 = vmatprep.subr.mxu1 %v10919_v43  ;;  %v11053_v20 = vld [vmem:[#allocation58_spill] sm:$0xff]  ;;  %v11054_v42 = vld [vmem:[#allocation59_spill] sm:$0xff]  ;;  %v11055_v43 = vld [vmem:[#allocation60_spill] sm:$0xff] }
 0x4a2   :  { %1828 = vmatpush1.msra.mxu0 %v10920_v44  ;;  %1899 = vmatpush1.msra.mxu1 %v10921_v45  ;;  %v11056_v44 = vld [vmem:[#allocation61_spill] sm:$0xff]  ;;  %v11057_v45 = vld [vmem:[#allocation62_spill] sm:$0xff] }
 0x4a3   :  { %1829 = vmatprep.subr.mxu0 %v10922_v46  ;;  %1900 = vmatprep.subr.mxu1 %v10923_v48  ;;  %v11058_v46 = vld [vmem:[#allocation63_spill] sm:$0xff]  ;;  %v11059_v48 = vld [vmem:[#allocation64_spill] sm:$0xff] }
 0x4a4   :  { %1830 = vmatpush1.msra.mxu0 %v10924_v49  ;;  %1901 = vmatpush1.msra.mxu1 %v10925_v50  ;;  %v11060_v49 = vld [vmem:[#allocation65_spill] sm:$0xff]  ;;  %v11061_v50 = vld [vmem:[#allocation66_spill] sm:$0xff] }
 0x4a5   :  { %1831 = vmatprep.subr.mxu0 %v10926_v1  ;;  %1902 = vmatprep.subr.mxu1 %v10927_v0  ;;  %v11062_v1 = vld [vmem:[#allocation67_spill] sm:$0xff]  ;;  %v11063_v0 = vld [vmem:[#allocation68_spill] sm:$0xff] }
 0x4a6   :  { %1832 = vmatpush1.msra.mxu0 %v10928_v11  ;;  %1903 = vmatpush1.msra.mxu1 %v10929_v60  ;;  %v11064_v11 = vld [vmem:[#allocation69_spill] sm:$0xff]  ;;  %v11065_v60 = vld [vmem:[#allocation70_spill] sm:$0xff] }
 0x4a7   :  { %1833 = vmatprep.subr.mxu0 %v10930_v63  ;;  %1904 = vmatprep.subr.mxu1 %v10931_v12  ;;  %v11066_v63 = vld [vmem:[#allocation71_spill] sm:$0xff]  ;;  %v11067_v12 = vld [vmem:[#allocation72_spill] sm:$0xff] }
 0x4a8   :  { %1834 = vmatpush1.msra.mxu0 %v10932_v13  ;;  %1905 = vmatpush1.msra.mxu1 %v10933_v14  ;;  %v11068_v13 = vld [vmem:[#allocation73_spill] sm:$0xff]  ;;  %v11069_v14 = vld [vmem:[#allocation74_spill] sm:$0xff] }
 0x4a9   :  { %1835 = vmatprep.subr.mxu0 %v10934_v15  ;;  %1906 = vmatprep.subr.mxu1 %v10935_v16  ;;  %v11070_v15 = vld [vmem:[#allocation75_spill] sm:$0xff]  ;;  %v11071_v16 = vld [vmem:[#allocation76_spill] sm:$0xff] }
 0x4aa   :  { %1836 = vmatpush1.msra.mxu0 %v10936_v17  ;;  %1907 = vmatpush1.msra.mxu1 %v10937_v18  ;;  %v11072_v17 = vld [vmem:[#allocation77_spill] sm:$0xff]  ;;  %v11073_v18 = vld [vmem:[#allocation78_spill] sm:$0xff] }
 0x4ab   :  { %1837 = vmatprep.subr.mxu0 %v10938_v19  ;;  %1908 = vmatprep.subr.mxu1 %v10939_v21  ;;  %v11074_v19 = vld [vmem:[#allocation79_spill] sm:$0xff]  ;;  %v11075_v21 = vld [vmem:[#allocation80_spill] sm:$0xff] }
 0x4ac   :  { %1838 = vmatpush1.msra.mxu0 %v10940_v22  ;;  %1909 = vmatpush1.msra.mxu1 %v10941_v23  ;;  %v11076_v22 = vld [vmem:[#allocation81_spill] sm:$0xff]  ;;  %v11077_v23 = vld [vmem:[#allocation82_spill] sm:$0xff] }
 0x4ad   :  { %1839 = vmatprep.subr.mxu0 %v10942_v24  ;;  %1910 = vmatprep.subr.mxu1 %v10943_v25  ;;  %v11078_v24 = vld [vmem:[#allocation83_spill] sm:$0xff]  ;;  %v11079_v25 = vld [vmem:[#allocation84_spill] sm:$0xff] }
 0x4ae   :  { %1840 = vmatpush1.msra.mxu0 %v10944_v26  ;;  %1911 = vmatpush1.msra.mxu1 %v10945_v28  ;;  %v11080_v26 = vld [vmem:[#allocation85_spill] sm:$0xff]  ;;  %v11081_v28 = vld [vmem:[#allocation86_spill] sm:$0xff] }
 0x4af   :  { %1841 = vmatprep.subr.mxu0 %v6768_v47  ;;  %1912 = vmatprep.subr.mxu1 %v6774_v54  ;;  %v11048_v47 = vld [vmem:[#allocation54_spill] sm:$0xff]  ;;  %v11049_v54 = vld [vmem:[#allocation55_spill] sm:$0xff] }
 0x4b0   :  { %1842 = vmatpush1.msra.mxu0 %v6780_v55  ;;  %1913 = vmatpush1.msra.mxu1 %v11034_v56  ;;  %v11050_v55 = vmov 0.0   ;;  %v11097_v56 = vld [vmem:[#allocation17_spill] sm:$0xff] }
 0x4b1   :  { %1843 = vmatprep.subr.mxu0 %v11035_v4  ;;  %1914 = vmatprep.subr.mxu1 %v11036_v51 }
 0x4b2   :  { %1844 = vmatpush1.msra.mxu0 %v11037_v29  ;;  %1915 = vmatpush1.msra.mxu1 %v11038_v5 }
 0x4b3   :  { %1845 = vmatprep.subr.mxu0 %v11039_v6  ;;  %1916 = vmatprep.subr.mxu1 %v11040_v9 }
 0x4b4   :  { %1846 = vmatpush1.msra.mxu0 %v11041_v58  ;;  %1917 = vmatpush1.msra.mxu1 %v11042_v57 }
 0x4b5   :  { %1847 = vmatprep.subr.mxu0 %v11043_v2  ;;  %1918 = vmatprep.subr.mxu1 %v11044_v3 }
 0x4b6   :  { %1848 = vmatpush1.msra.mxu0 %v11045_v59  ;;  %1919 = vmatpush1.msra.mxu1 %v11046_v8 }
 0x4b7   :  { %1849 = vmatprep.subr.mxu0 %v11047_v7  ;;  %1920 = vmatprep.subr.mxu1 %v11048_v47 }
 0x4b8   :  { %1850 = vmatpush1.msra.mxu0 %v11049_v54  ;;  %1883 = vmatprep.mubr.f32.mxu0 %v11050_v55 }
 0x4b9   :  { %1921 = vmatpush1.msra.mxu1 %v11051_v10  ;;  %1954 = vmatprep.mubr.f32.mxu1 %v11050_v55 }
 0x4ba   :  { %1884 = vmatmul.mubr.f32.vlgmr.msra.gmra.mxu0 %v7447_v62  ;;  %1955 = vmatmul.mubr.f32.vlgmr.msra.gmra.mxu1 %v7447_v62  ;;  %v11096_v62 = vld [vmem:[#allocation16_spill] sm:$0xff] }
 0x4bb   :  { %1989 = vmatprep.subr.mxu0 %v11052_v37  ;;  %2060 = vmatprep.subr.mxu1 %v11053_v20 }
 0x4bc   :  { %1990 = vmatpush1.msra.mxu0 %v11054_v42  ;;  %2061 = vmatpush1.msra.mxu1 %v11055_v43 }
 0x4bd   :  { %1991 = vmatprep.subr.mxu0 %v11056_v44  ;;  %2062 = vmatprep.subr.mxu1 %v11057_v45 }
 0x4be   :  { %1992 = vmatpush1.msra.mxu0 %v11058_v46  ;;  %2063 = vmatpush1.msra.mxu1 %v11059_v48 }
 0x4bf   :  { %1993 = vmatprep.subr.mxu0 %v11060_v49  ;;  %2064 = vmatprep.subr.mxu1 %v11061_v50 }
 0x4c0   :  { %1994 = vmatpush1.msra.mxu0 %v11062_v1  ;;  %2065 = vmatpush1.msra.mxu1 %v11063_v0 }
 0x4c1   :  { %1995 = vmatprep.subr.mxu0 %v11064_v11  ;;  %2066 = vmatprep.subr.mxu1 %v11065_v60 }
 0x4c2   :  { %1996 = vmatpush1.msra.mxu0 %v11066_v63  ;;  %2067 = vmatpush1.msra.mxu1 %v11067_v12 }
 0x4c3   :  { %1997 = vmatprep.subr.mxu0 %v11068_v13  ;;  %2068 = vmatprep.subr.mxu1 %v11069_v14 }
 0x4c4   :  { %1998 = vmatpush1.msra.mxu0 %v11070_v15  ;;  %2069 = vmatpush1.msra.mxu1 %v11071_v16 }
 0x4c5   :  { %1999 = vmatprep.subr.mxu0 %v11072_v17  ;;  %2070 = vmatprep.subr.mxu1 %v11073_v18 }
 0x4c6   :  { %2000 = vmatpush1.msra.mxu0 %v11074_v19  ;;  %2071 = vmatpush1.msra.mxu1 %v11075_v21 }
 0x4c7   :  { %2001 = vmatprep.subr.mxu0 %v11076_v22  ;;  %2072 = vmatprep.subr.mxu1 %v11077_v23 }
 0x4c8   :  { %2002 = vmatpush1.msra.mxu0 %v11078_v24  ;;  %2073 = vmatpush1.msra.mxu1 %v11079_v25 }
 0x4c9   :  { %2003 = vmatprep.subr.mxu0 %v11080_v26  ;;  %2074 = vmatprep.subr.mxu1 %v11081_v28 }
 0x4ca   :  { %2004 = vmatpush1.msra.mxu0 %v11082_v30  ;;  %2075 = vmatpush1.msra.mxu1 %v11083_v31  ;;  %v11124_v31 = vld [vmem:[#allocation104_spill] sm:$0xff]  ;;  %v11125_v30 = vld [vmem:[#allocation102_spill] sm:$0xff] }
 0x4cb   :  { %2005 = vmatprep.subr.mxu0 %v11084_v35  ;;  %2076 = vmatprep.subr.mxu1 %v11085_v53 }
 0x4cc   :  { %2006 = vmatpush1.msra.mxu0 %v11086_v38  ;;  %2077 = vmatpush1.msra.mxu1 %v11087_v40  ;;  %v11098_v40 = vld [vmem:[#allocation18_spill] sm:$0xff] }
 0x4cd   :  { %2007 = vmatprep.subr.mxu0 %v11088_v39  ;;  %2078 = vmatprep.subr.mxu1 %v11089_v34  ;;  %v11099_v39 = vld [vmem:[#allocation19_spill] sm:$0xff]  ;;  %v11100_v34 = vld [vmem:[#allocation20_spill] sm:$0xff] }
 0x4ce   :  { %2008 = vmatpush1.msra.mxu0 %v11090_v36  ;;  %2079 = vmatpush1.msra.mxu1 %v11091_v41  ;;  %v11101_v36 = vld [vmem:[#allocation21_spill] sm:$0xff]  ;;  %v11102_v41 = vld [vmem:[#allocation22_spill] sm:$0xff] }
 0x4cf   :  { %2009 = vmatprep.subr.mxu0 %v11092_v33  ;;  %2080 = vmatprep.subr.mxu1 %v11093_v61  ;;  %v11103_v33 = vld [vmem:[#allocation23_spill] sm:$0xff]  ;;  %v11104_v61 = vld [vmem:[#allocation24_spill] sm:$0xff] }
 0x4d0   :  { %2010 = vmatpush1.msra.mxu0 %v11094_v27  ;;  %2081 = vmatpush1.msra.mxu1 %v11095_v52  ;;  %v11105_v27 = vld [vmem:[#allocation25_spill] sm:$0xff]  ;;  %v11106_v52 = vld [vmem:[#allocation26_spill] sm:$0xff] }
 0x4d1   :  { %2011 = vmatprep.subr.mxu0 %v11096_v62  ;;  %2082 = vmatprep.subr.mxu1 %v11097_v56  ;;  %v11107_v62 = vld [vmem:[#allocation27_spill] sm:$0xff]  ;;  %v11108_v56 = vld [vmem:[#allocation28_spill] sm:$0xff] }
 0x4d2   :  { %2012 = vmatpush1.msra.mxu0 %v11098_v40  ;;  %2083 = vmatpush1.msra.mxu1 %v11099_v39  ;;  %v11109_v40 = vld [vmem:[#allocation29_spill] sm:$0xff]  ;;  %v11110_v39 = vld [vmem:[#allocation30_spill] sm:$0xff] }
 0x4d3   :  { %2013 = vmatprep.subr.mxu0 %v11100_v34  ;;  %2084 = vmatprep.subr.mxu1 %v11101_v36  ;;  %v11111_v34 = vld [vmem:[#allocation31_spill] sm:$0xff]  ;;  %v11112_v36 = vld [vmem:[#allocation32_spill] sm:$0xff] }
 0x4d4   :  { %2014 = vmatpush1.msra.mxu0 %v11102_v41  ;;  %2085 = vmatpush1.msra.mxu1 %v11103_v33  ;;  %v11113_v41 = vld [vmem:[#allocation33_spill] sm:$0xff]  ;;  %v11114_v33 = vld [vmem:[#allocation34_spill] sm:$0xff] }
 0x4d5   :  { %2015 = vmatprep.subr.mxu0 %v11104_v61  ;;  %2086 = vmatprep.subr.mxu1 %v11105_v27  ;;  %v11115_v61 = vld [vmem:[#allocation35_spill] sm:$0xff] }
 0x4d6   :  { %2016 = vmatpush1.msra.mxu0 %v11106_v52  ;;  %2087 = vmatpush1.msra.mxu1 %v11107_v62  ;;  %v11123_v27 = vld [vmem:[#allocation103_spill] sm:$0xff] }
 0x4d7   :  { %2017 = vmatprep.subr.mxu0 %v11108_v56  ;;  %2088 = vmatprep.subr.mxu1 %v11109_v40  ;;  %v7586_v40 = vld [vmem:[%s9988_s2 + $0x1e8] sm:$0xff] }
 0x4d8   :  { %2018 = vmatpush1.msra.mxu0 %v11110_v39  ;;  %2089 = vmatpush1.msra.mxu1 %v11111_v34  ;;  %11116 = vst [vmem:[#allocation99_spill] sm:$0xff] %v7586_v40  ;;  %v11121_v39 = vld [vmem:[#allocation101_spill] sm:$0xff] }
 0x4d9   :  { %2019 = vmatprep.subr.mxu0 %v11112_v36  ;;  %2090 = vmatprep.subr.mxu1 %v11113_v41  ;;  %v7592_v36 = vld [vmem:[%s9988_s2 + $0x1f8] sm:$0xff] }
 0x4da   :  { %2020 = vmatpush1.msra.mxu0 %v11114_v33  ;;  %2091 = vmatpush1.msra.mxu1 %v11115_v61  ;;  %11117 = vst [vmem:[#allocation100_spill] sm:$0xff] %v7592_v36 }
 0x4db   :  { %2053 = vmatprep.mubr.f32.mxu0 %v11050_v55  ;;  %2124 = vmatprep.mubr.f32.mxu1 %v11050_v55 }
 0x4dc   :  { %2141 = vmatprep.subr.mxu0 %v7586_v40  ;;  %2212 = vmatprep.subr.mxu1 %v7592_v36 }
 0x559   :  { %v7595_v33 = vpop.f32.mrf.mxu0  ;;  %v7599_v41 = vpop.f32.mrf.mxu1 }
 0x55a   :  { %11118 = vst [vmem:[#allocation98_spill] sm:$0xff] %v7595_v33  ;;  %11120 = vst [vmem:[#allocation44_spill] sm:$0xff] %v7599_v41 }
 0x55b   :  { %v7597_v61 = vpop.f32.mrf.mxu0  ;;  %v7602_v52 = vpop.f32.mrf.mxu1 }
 0x55c   :  { %11119 = vst [vmem:[#allocation39_spill] sm:$0xff] %v7597_v61  ;;  %11122 = vst [vmem:[#allocation45_spill] sm:$0xff] %v7602_v52 }
 0x57a   :  { %v1885_v34 = vpop.f32.mrf.mxu0  ;;  %v1956_v53 = vpop.f32.mrf.mxu1 }
 0x57b   :  { %v1961_v56 = vadd.f32 %v1885_v34, %v11121_v39  ;;  %v1963_v61 = vadd.f32 %v1956_v53, %v11125_v30 }
 0x57c   :  { %v1887_v62 = vpop.f32.mrf.mxu0  ;;  %v1958_v36 = vpop.f32.mrf.mxu1 }
 0x57d   :  { %v4575_v40 = vmul.f32 -1.442695, %v1961_v56  ;;  %v1962_v38 = vadd.f32 %v1887_v62, %v11123_v27  ;;  %v1964_v33 = vadd.f32 %v1958_v36, %v11124_v31 }
 0x57f   :  { %4676 = vpow2.f32 %v4575_v40  ;;  %v4576_v35 = vmul.f32 -1.442695, %v1962_v38  ;;  %v4577_v28 = vmul.f32 -1.442695, %v1964_v33  ;;  %v7642_v33 = vld [vmem:[%s9988_s2 + $0x1c0] sm:$0xff] }
 0x581   :  { %4678 = vpow2.f32 %v4576_v35 }
 0x582   :  { %4680 = vtanh.f32 %v1963_v61  ;;  %v7648_v61 = vld [vmem:[%s9988_s2 + $0x1d0] sm:$0xff] }
 0x583   :  { %4682 = vpow2.f32 %v4577_v28  ;;  %v7630_v28 = vld [vmem:[%s9988_s2 + $0x1c8] sm:$0xff] }
 0x58c   :  { %v4677_v41 = vpop.eup %4676 }
 0x58d   :  { %v1968_v26 = vadd.f32 1.0, %v4677_v41  ;;  %v7636_v41 = vld [vmem:[%s9988_s2 + $0x1d8] sm:$0xff] }
 0x58e   :  { %v4679_v39 = vpop.eup %4678 }
 0x58f   :  { %4684 = vrcp.f32 %v1968_v26  ;;  %v1974_v34 = vadd.f32 1.0, %v4679_v39  ;;  %v4681_v56 = vpop.eup %4680  ;;  %v7618_v26 = vld [vmem:[%s9988_s2 + $0x1e0] sm:$0xff]  ;;  %v7660_v39 = vld [vmem:[%s9988_s2 + $0x1b8] sm:$0xff] }
 0x590   :  { %v4683_v27 = vpop.eup %4682 }
 0x591   :  { %4686 = vrcp.f32 %v1974_v34  ;;  %v1981_v35 = vadd.f32 1.0, %v4683_v27  ;;  %v7666_v34 = vld [vmem:[%s9988_s2 + $0x1a0] sm:$0xff]  ;;  %v7678_v27 = vld [vmem:[%s9988_s2 + $0x188] sm:$0xff] }
 0x593   :  { %4688 = vrcp.f32 %v1981_v35  ;;  %v7702_v35 = vld [vmem:[%s9988_s2 + $0x168] sm:$0xff] }
 0x594   :  { %11127 = vst [vmem:[#allocation47_spill] sm:$0xff] %v7702_v35 }
 0x59c   :  { %v4685_v40 = vpop.eup %4684 }
 0x59d   :  { %v1985_v62 = vmul.f32 %v4685_v40, %v4681_v56  ;;  %v7672_v56 = vld [vmem:[%s9988_s2 + $0x1b0] sm:$0xff]  ;;  %v7684_v40 = vld [vmem:[%s9988_s2 + $0x198] sm:$0xff] }
 0x59e   :  { %v4687_v38 = vpop.eup %4686 }
 0x59f   :  { %v1984_v52 = vmul.f32 %v4687_v38, %v7444_v32  ;;  %v7624_v32 = vld [vmem:[%s9988_s2 + $0x1f0] sm:$0xff] }
 0x5a0   :  { %v4689_v30 = vpop.eup %4688  ;;  %v7696_v38 = vld [vmem:[%s9988_s2 + $0x190] sm:$0xff] }
 0x5a1   :  { %v7608_v31 = vadd.f32 %v1985_v62, %v1984_v52  ;;  %v7654_v52 = vld [vmem:[%s9988_s2 + $0x1a8] sm:$0xff]  ;;  %v7690_v62 = vld [vmem:[%s9988_s2 + $0x180] sm:$0xff]  ;;  %11126 = vst [vmem:[#allocation46_spill] sm:$0xff] %v7696_v38 }
 0x5a3   :  { %4690 = vtanh.f32 %v7608_v31 }
 0x5b0   :  { %v4691_v53 = vpop.eup %4690 }
 0x5b1   :  { %v7611_v36 = vmul.f32 %v4691_v53, %v4689_v30  ;;  %v7708_v30 = vld [vmem:[%s9988_s2 + $0x178] sm:$0xff]  ;;  %v7714_v53 = vld [vmem:[%s9988_s2 + $0x160] sm:$0xff] }
 0x5b2   :  { %11128 = vst [vmem:[#allocation48_spill] sm:$0xff] %v7708_v30  ;;  %11129 = vst [vmem:[#allocation49_spill] sm:$0xff] %v7714_v53 }
 0x5b3   :  { %2054 = vmatmul.mubr.f32.vlgmr.msra.gmra.mxu0 %v7611_v36  ;;  %2125 = vmatmul.mubr.f32.vlgmr.msra.gmra.mxu1 %v7611_v36 }
 0x5b4   :  { %2142 = vmatpush1.msra.mxu0 %v7618_v26  ;;  %2213 = vmatpush1.msra.mxu1 %v7624_v32 }
 0x5b5   :  { %2143 = vmatprep.subr.mxu0 %v7630_v28  ;;  %2214 = vmatprep.subr.mxu1 %v7636_v41 }
 0x5b6   :  { %2144 = vmatpush1.msra.mxu0 %v7642_v33  ;;  %2215 = vmatpush1.msra.mxu1 %v7648_v61 }
 0x5b7   :  { %2145 = vmatprep.subr.mxu0 %v7654_v52  ;;  %2216 = vmatprep.subr.mxu1 %v7660_v39 }
 0x5b8   :  { %2146 = vmatpush1.msra.mxu0 %v7666_v34  ;;  %2217 = vmatpush1.msra.mxu1 %v7672_v56 }
 0x5b9   :  { %2147 = vmatprep.subr.mxu0 %v7678_v27  ;;  %2218 = vmatprep.subr.mxu1 %v7684_v40 }
 0x5ba   :  { %2148 = vmatpush1.msra.mxu0 %v7690_v62  ;;  %2219 = vmatpush1.msra.mxu1 %v7696_v38  ;;  %v7720_v38 = vld [vmem:[%s9988_s2 + $0x170] sm:$0xff] }
 0x5bb   :  { %2149 = vmatprep.subr.mxu0 %v7702_v35  ;;  %2220 = vmatprep.subr.mxu1 %v7708_v30  ;;  %11130 = vst [vmem:[#allocation50_spill] sm:$0xff] %v7720_v38  ;;  %v7726_v35 = vld [vmem:[%s9988_s2 + $0x148] sm:$0xff]  ;;  %v7732_v30 = vld [vmem:[%s9988_s2 + $0x158] sm:$0xff] }
 0x5bc   :  { %2150 = vmatpush1.msra.mxu0 %v7714_v53  ;;  %2221 = vmatpush1.msra.mxu1 %v7720_v38  ;;  %11131 = vst [vmem:[#allocation51_spill] sm:$0xff] %v7726_v35  ;;  %11132 = vst [vmem:[#allocation52_spill] sm:$0xff] %v7732_v30  ;;  %v7738_v53 = vld [vmem:[%s9988_s2 + $0x140] sm:$0xff]  ;;  %v7744_v38 = vld [vmem:[%s9988_s2 + $0x150] sm:$0xff] }
 0x5bd   :  { %2151 = vmatprep.subr.mxu0 %v7726_v35  ;;  %2222 = vmatprep.subr.mxu1 %v7732_v30  ;;  %11133 = vst [vmem:[#allocation91_spill] sm:$0xff] %v7738_v53  ;;  %11134 = vst [vmem:[#allocation92_spill] sm:$0xff] %v7744_v38  ;;  %v7750_v35 = vld [vmem:[%s9988_s2 + $0x128] sm:$0xff]  ;;  %v7756_v30 = vld [vmem:[%s9988_s2 + $0x138] sm:$0xff] }
 0x5be   :  { %2152 = vmatpush1.msra.mxu0 %v7738_v53  ;;  %2223 = vmatpush1.msra.mxu1 %v7744_v38  ;;  %11135 = vst [vmem:[#allocation90_spill] sm:$0xff] %v7750_v35  ;;  %11136 = vst [vmem:[#allocation53_spill] sm:$0xff] %v7756_v30  ;;  %v7762_v53 = vld [vmem:[%s9988_s2 + $0x120] sm:$0xff]  ;;  %v7768_v38 = vld [vmem:[%s9988_s2 + $0x130] sm:$0xff] }
 0x5bf   :  { %2153 = vmatprep.subr.mxu0 %v7750_v35  ;;  %2224 = vmatprep.subr.mxu1 %v7756_v30  ;;  %11137 = vst [vmem:[#allocation54_spill] sm:$0xff] %v7762_v53  ;;  %11138 = vst [vmem:[#allocation55_spill] sm:$0xff] %v7768_v38  ;;  %v7774_v35 = vld [vmem:[%s9988_s2 + $0x108] sm:$0xff]  ;;  %v7780_v30 = vld [vmem:[%s9988_s2 + $0x118] sm:$0xff] }
 0x5c0   :  { %2154 = vmatpush1.msra.mxu0 %v7762_v53  ;;  %2225 = vmatpush1.msra.mxu1 %v7768_v38  ;;  %11139 = vst [vmem:[#allocation56_spill] sm:$0xff] %v7774_v35  ;;  %11140 = vst [vmem:[#allocation57_spill] sm:$0xff] %v7780_v30  ;;  %v7786_v53 = vld [vmem:[%s9988_s2 + $0x100] sm:$0xff]  ;;  %v7792_v38 = vld [vmem:[%s9988_s2 + $0x110] sm:$0xff] }
 0x5c1   :  { %2155 = vmatprep.subr.mxu0 %v7774_v35  ;;  %2226 = vmatprep.subr.mxu1 %v7780_v30  ;;  %11141 = vst [vmem:[#allocation58_spill] sm:$0xff] %v7786_v53  ;;  %11142 = vst [vmem:[#allocation59_spill] sm:$0xff] %v7792_v38  ;;  %v7798_v35 = vld [vmem:[%s9988_s2 + $0xe8] sm:$0xff]  ;;  %v7804_v30 = vld [vmem:[%s9988_s2 + $0xf8] sm:$0xff] }
 0x5c2   :  { %2156 = vmatpush1.msra.mxu0 %v7786_v53  ;;  %2227 = vmatpush1.msra.mxu1 %v7792_v38  ;;  %11143 = vst [vmem:[#allocation60_spill] sm:$0xff] %v7798_v35  ;;  %11144 = vst [vmem:[#allocation61_spill] sm:$0xff] %v7804_v30  ;;  %v7810_v53 = vld [vmem:[%s9988_s2 + $0xe0] sm:$0xff]  ;;  %v7816_v38 = vld [vmem:[%s9988_s2 + $0xf0] sm:$0xff] }
 0x5c3   :  { %2157 = vmatprep.subr.mxu0 %v7798_v35  ;;  %2228 = vmatprep.subr.mxu1 %v7804_v30  ;;  %11145 = vst [vmem:[#allocation62_spill] sm:$0xff] %v7810_v53  ;;  %11146 = vst [vmem:[#allocation63_spill] sm:$0xff] %v7816_v38  ;;  %v7822_v35 = vld [vmem:[%s9988_s2 + $0xc8] sm:$0xff]  ;;  %v7828_v30 = vld [vmem:[%s9988_s2 + $0xd8] sm:$0xff] }
 0x5c4   :  { %2158 = vmatpush1.msra.mxu0 %v7810_v53  ;;  %2229 = vmatpush1.msra.mxu1 %v7816_v38  ;;  %11147 = vst [vmem:[#allocation64_spill] sm:$0xff] %v7822_v35  ;;  %11148 = vst [vmem:[#allocation65_spill] sm:$0xff] %v7828_v30  ;;  %v7834_v53 = vld [vmem:[%s9988_s2 + $0xc0] sm:$0xff]  ;;  %v7840_v38 = vld [vmem:[%s9988_s2 + $0xd0] sm:$0xff] }
 0x5c5   :  { %2159 = vmatprep.subr.mxu0 %v7822_v35  ;;  %2230 = vmatprep.subr.mxu1 %v7828_v30  ;;  %11149 = vst [vmem:[#allocation66_spill] sm:$0xff] %v7834_v53  ;;  %11150 = vst [vmem:[#allocation67_spill] sm:$0xff] %v7840_v38  ;;  %v7846_v35 = vld [vmem:[%s9988_s2 + $0xa8] sm:$0xff]  ;;  %v7852_v30 = vld [vmem:[%s9988_s2 + $0xb8] sm:$0xff] }
 0x5c6   :  { %2160 = vmatpush1.msra.mxu0 %v7834_v53  ;;  %2231 = vmatpush1.msra.mxu1 %v7840_v38  ;;  %11151 = vst [vmem:[#allocation68_spill] sm:$0xff] %v7846_v35  ;;  %11152 = vst [vmem:[#allocation69_spill] sm:$0xff] %v7852_v30  ;;  %v7858_v53 = vld [vmem:[%s9988_s2 + $0xa0] sm:$0xff]  ;;  %v7864_v38 = vld [vmem:[%s9988_s2 + $0xb0] sm:$0xff] }
 0x5c7   :  { %2161 = vmatprep.subr.mxu0 %v7846_v35  ;;  %2232 = vmatprep.subr.mxu1 %v7852_v30  ;;  %11153 = vst [vmem:[#allocation70_spill] sm:$0xff] %v7858_v53  ;;  %11154 = vst [vmem:[#allocation71_spill] sm:$0xff] %v7864_v38  ;;  %v7870_v35 = vld [vmem:[%s9988_s2 + $0x88] sm:$0xff]  ;;  %v7876_v30 = vld [vmem:[%s9988_s2 + $0x98] sm:$0xff] }
 0x5c8   :  { %2162 = vmatpush1.msra.mxu0 %v7858_v53  ;;  %2233 = vmatpush1.msra.mxu1 %v7864_v38  ;;  %v7882_v53 = vld [vmem:[%s9988_s2 + $0x80] sm:$0xff]  ;;  %v7888_v38 = vld [vmem:[%s9988_s2 + $0x90] sm:$0xff] }
 0x5c9   :  { %2163 = vmatprep.subr.mxu0 %v7870_v35  ;;  %2234 = vmatprep.subr.mxu1 %v7876_v30  ;;  %11155 = vst [vmem:[#allocation72_spill] sm:$0xff] %v7888_v38 }
 0x5ca   :  { %2164 = vmatpush1.msra.mxu0 %v7882_v53  ;;  %2235 = vmatpush1.msra.mxu1 %v7888_v38 }
 0x5cb   :  { %2165 = vmatprep.subr.mxu0 %v11035_v4  ;;  %2236 = vmatprep.subr.mxu1 %v11036_v51  ;;  %v11156_v4 = vld [vmem:[#allocation85_spill] sm:$0xff]  ;;  %v11157_v51 = vld [vmem:[#allocation86_spill] sm:$0xff] }
 0x5cc   :  { %2166 = vmatpush1.msra.mxu0 %v11037_v29  ;;  %2237 = vmatpush1.msra.mxu1 %v11038_v5  ;;  %v11158_v29 = vld [vmem:[#allocation87_spill] sm:$0xff]  ;;  %v11159_v5 = vld [vmem:[#allocation88_spill] sm:$0xff] }
 0x5cd   :  { %2167 = vmatprep.subr.mxu0 %v11039_v6  ;;  %2238 = vmatprep.subr.mxu1 %v11040_v9  ;;  %v11160_v6 = vld [vmem:[#allocation4_spill] sm:$0xff]  ;;  %v11161_v9 = vld [vmem:[#allocation5_spill] sm:$0xff] }
 0x5ce   :  { %2168 = vmatpush1.msra.mxu0 %v11041_v58  ;;  %2239 = vmatpush1.msra.mxu1 %v11042_v57  ;;  %v11162_v58 = vld [vmem:[#allocation93_spill] sm:$0xff]  ;;  %v11163_v57 = vld [vmem:[#allocation95_spill] sm:$0xff] }
 0x5cf   :  { %2169 = vmatprep.subr.mxu0 %v11043_v2  ;;  %2240 = vmatprep.subr.mxu1 %v11044_v3  ;;  %v11164_v2 = vld [vmem:[#allocation96_spill] sm:$0xff]  ;;  %v11165_v3 = vld [vmem:[#allocation94_spill] sm:$0xff] }
 0x5d0   :  { %2170 = vmatpush1.msra.mxu0 %v11045_v59  ;;  %2241 = vmatpush1.msra.mxu1 %v11046_v8  ;;  %v11166_v59 = vld [vmem:[#allocation10_spill] sm:$0xff]  ;;  %v11167_v8 = vld [vmem:[#allocation11_spill] sm:$0xff] }
 0x5d1   :  { %2171 = vmatprep.subr.mxu0 %v11047_v7  ;;  %2242 = vmatprep.subr.mxu1 %v11048_v47  ;;  %v11168_v7 = vld [vmem:[#allocation12_spill] sm:$0xff]  ;;  %v11169_v47 = vld [vmem:[#allocation13_spill] sm:$0xff] }
 0x5d2   :  { %2172 = vmatpush1.msra.mxu0 %v11049_v54  ;;  %2205 = vmatprep.mubr.f32.mxu0 %v11050_v55  ;;  %v11170_v54 = vld [vmem:[#allocation14_spill] sm:$0xff] }
 0x5d3   :  { %2243 = vmatpush1.msra.mxu1 %v11051_v10  ;;  %2276 = vmatprep.mubr.f32.mxu1 %v11050_v55  ;;  %v11171_v10 = vld [vmem:[#allocation15_spill] sm:$0xff] }
 0x5d4   :  { %2206 = vmatmul.mubr.f32.vlgmr.msra.gmra.mxu0 %v7611_v36  ;;  %2277 = vmatmul.mubr.f32.vlgmr.msra.gmra.mxu1 %v7611_v36 }
 0x5d5   :  { %2311 = vmatprep.subr.mxu0 %v11052_v37  ;;  %2382 = vmatprep.subr.mxu1 %v11053_v20  ;;  %v11172_v37 = vld [vmem:[#allocation16_spill] sm:$0xff]  ;;  %v11173_v20 = vld [vmem:[#allocation17_spill] sm:$0xff] }
 0x5d6   :  { %2312 = vmatpush1.msra.mxu0 %v11054_v42  ;;  %2383 = vmatpush1.msra.mxu1 %v11055_v43  ;;  %v11174_v42 = vld [vmem:[#allocation18_spill] sm:$0xff]  ;;  %v11175_v43 = vld [vmem:[#allocation19_spill] sm:$0xff] }
 0x5d7   :  { %2313 = vmatprep.subr.mxu0 %v11056_v44  ;;  %2384 = vmatprep.subr.mxu1 %v11057_v45  ;;  %v11176_v44 = vld [vmem:[#allocation20_spill] sm:$0xff]  ;;  %v11177_v45 = vld [vmem:[#allocation21_spill] sm:$0xff] }
 0x5d8   :  { %2314 = vmatpush1.msra.mxu0 %v11058_v46  ;;  %2385 = vmatpush1.msra.mxu1 %v11059_v48  ;;  %v11178_v46 = vld [vmem:[#allocation22_spill] sm:$0xff]  ;;  %v11179_v48 = vld [vmem:[#allocation23_spill] sm:$0xff] }
 0x5d9   :  { %2315 = vmatprep.subr.mxu0 %v11060_v49  ;;  %2386 = vmatprep.subr.mxu1 %v11061_v50  ;;  %v11180_v49 = vld [vmem:[#allocation24_spill] sm:$0xff]  ;;  %v11181_v50 = vld [vmem:[#allocation25_spill] sm:$0xff] }
 0x5da   :  { %2316 = vmatpush1.msra.mxu0 %v11062_v1  ;;  %2387 = vmatpush1.msra.mxu1 %v11063_v0  ;;  %v11182_v1 = vld [vmem:[#allocation26_spill] sm:$0xff]  ;;  %v11183_v0 = vld [vmem:[#allocation27_spill] sm:$0xff] }
 0x5db   :  { %2317 = vmatprep.subr.mxu0 %v11064_v11  ;;  %2388 = vmatprep.subr.mxu1 %v11065_v60  ;;  %v11184_v11 = vld [vmem:[#allocation28_spill] sm:$0xff]  ;;  %v11185_v60 = vld [vmem:[#allocation29_spill] sm:$0xff] }
 0x5dc   :  { %2318 = vmatpush1.msra.mxu0 %v11066_v63  ;;  %2389 = vmatpush1.msra.mxu1 %v11067_v12  ;;  %v11186_v63 = vld [vmem:[#allocation30_spill] sm:$0xff]  ;;  %v11187_v12 = vld [vmem:[#allocation31_spill] sm:$0xff] }
 0x5dd   :  { %2319 = vmatprep.subr.mxu0 %v11068_v13  ;;  %2390 = vmatprep.subr.mxu1 %v11069_v14  ;;  %v11188_v13 = vld [vmem:[#allocation32_spill] sm:$0xff]  ;;  %v11189_v14 = vld [vmem:[#allocation33_spill] sm:$0xff] }
 0x5de   :  { %2320 = vmatpush1.msra.mxu0 %v11070_v15  ;;  %2391 = vmatpush1.msra.mxu1 %v11071_v16  ;;  %v11190_v15 = vld [vmem:[#allocation34_spill] sm:$0xff]  ;;  %v11191_v16 = vld [vmem:[#allocation35_spill] sm:$0xff] }
 0x5df   :  { %2321 = vmatprep.subr.mxu0 %v11072_v17  ;;  %2392 = vmatprep.subr.mxu1 %v11073_v18  ;;  %v11192_v17 = vld [vmem:[#allocation99_spill] sm:$0xff]  ;;  %v11193_v18 = vld [vmem:[#allocation100_spill] sm:$0xff] }
 0x5e0   :  { %2322 = vmatpush1.msra.mxu0 %v11074_v19  ;;  %2393 = vmatpush1.msra.mxu1 %v11075_v21 }
 0x5e1   :  { %2323 = vmatprep.subr.mxu0 %v11076_v22  ;;  %2394 = vmatprep.subr.mxu1 %v11077_v23 }
 0x5e2   :  { %2324 = vmatpush1.msra.mxu0 %v11078_v24  ;;  %2395 = vmatpush1.msra.mxu1 %v11079_v25  ;;  %v11197_v24 = vld [vmem:[#allocation105_spill] sm:$0xff] }
 0x5e3   :  { %2325 = vmatprep.subr.mxu0 %v11156_v4  ;;  %2396 = vmatprep.subr.mxu1 %v11157_v51 }
 0x5e4   :  { %2326 = vmatpush1.msra.mxu0 %v11158_v29  ;;  %2397 = vmatpush1.msra.mxu1 %v11159_v5  ;;  %v11199_v29 = vld [vmem:[#allocation107_spill] sm:$0xff] }
 0x5e5   :  { %2327 = vmatprep.subr.mxu0 %v11160_v6  ;;  %2398 = vmatprep.subr.mxu1 %v11161_v9 }
 0x5e6   :  { %2328 = vmatpush1.msra.mxu0 %v11162_v58  ;;  %2399 = vmatpush1.msra.mxu1 %v11163_v57  ;;  %v11200_v57 = vld [vmem:[#allocation108_spill] sm:$0xff] }
 0x5e7   :  { %2329 = vmatprep.subr.mxu0 %v11164_v2  ;;  %2400 = vmatprep.subr.mxu1 %v11165_v3  ;;  %v11201_v3 = vld [vmem:[#allocation106_spill] sm:$0xff] }
 0x5e8   :  { %2330 = vmatpush1.msra.mxu0 %v11166_v59  ;;  %2401 = vmatpush1.msra.mxu1 %v11167_v8 }
 0x5e9   :  { %2331 = vmatprep.subr.mxu0 %v11168_v7  ;;  %2402 = vmatprep.subr.mxu1 %v11169_v47 }
 0x5ea   :  { %2332 = vmatpush1.msra.mxu0 %v11170_v54  ;;  %2403 = vmatpush1.msra.mxu1 %v11171_v10 }
 0x5eb   :  { %2333 = vmatprep.subr.mxu0 %v11172_v37  ;;  %2404 = vmatprep.subr.mxu1 %v11173_v20 }
 0x5ec   :  { %2334 = vmatpush1.msra.mxu0 %v11174_v42  ;;  %2405 = vmatpush1.msra.mxu1 %v11175_v43 }
 0x5ed   :  { %2335 = vmatprep.subr.mxu0 %v11176_v44  ;;  %2406 = vmatprep.subr.mxu1 %v11177_v45 }
 0x5ee   :  { %2336 = vmatpush1.msra.mxu0 %v11178_v46  ;;  %2407 = vmatpush1.msra.mxu1 %v11179_v48 }
 0x5ef   :  { %2337 = vmatprep.subr.mxu0 %v11180_v49  ;;  %2408 = vmatprep.subr.mxu1 %v11181_v50 }
 0x5f0   :  { %2338 = vmatpush1.msra.mxu0 %v11182_v1  ;;  %2409 = vmatpush1.msra.mxu1 %v11183_v0  ;;  %v11203_v0 = vld [vmem:[#allocation47_spill] sm:$0xff] }
 0x5f1   :  { %2339 = vmatprep.subr.mxu0 %v11184_v11  ;;  %2410 = vmatprep.subr.mxu1 %v11185_v60  ;;  %v11204_v11 = vld [vmem:[#allocation48_spill] sm:$0xff]  ;;  %v11205_v60 = vld [vmem:[#allocation49_spill] sm:$0xff] }
 0x5f2   :  { %2340 = vmatpush1.msra.mxu0 %v11186_v63  ;;  %2411 = vmatpush1.msra.mxu1 %v11187_v12  ;;  %v11206_v63 = vld [vmem:[#allocation50_spill] sm:$0xff]  ;;  %v11207_v12 = vld [vmem:[#allocation51_spill] sm:$0xff] }
 0x5f3   :  { %2341 = vmatprep.subr.mxu0 %v11188_v13  ;;  %2412 = vmatprep.subr.mxu1 %v11189_v14  ;;  %v11208_v13 = vld [vmem:[#allocation52_spill] sm:$0xff]  ;;  %v11209_v14 = vld [vmem:[#allocation91_spill] sm:$0xff] }
 0x5f4   :  { %2342 = vmatpush1.msra.mxu0 %v11190_v15  ;;  %2413 = vmatpush1.msra.mxu1 %v11191_v16  ;;  %v11210_v15 = vld [vmem:[#allocation92_spill] sm:$0xff]  ;;  %v11211_v16 = vld [vmem:[#allocation90_spill] sm:$0xff] }
 0x5f5   :  { %2375 = vmatprep.mubr.f32.mxu0 %v11050_v55  ;;  %2446 = vmatprep.mubr.f32.mxu1 %v11050_v55 }
 0x5f6   :  { %2463 = vmatprep.subr.mxu0 %v11192_v17  ;;  %2534 = vmatprep.subr.mxu1 %v11193_v18 }
 0x673   :  { %v7979_v19 = vpop.f32.mrf.mxu0  ;;  %v7983_v22 = vpop.f32.mrf.mxu1 }
 0x674   :  { %11194 = vst [vmem:[#allocation73_spill] sm:$0xff] %v7979_v19  ;;  %11196 = vst [vmem:[#allocation75_spill] sm:$0xff] %v7983_v22  ;;  %v8102_v22 = vld [vmem:[%s9988_s2 + $0x38] sm:$0xff]  ;;  %v8120_v19 = vld [vmem:[%s9988_s2 + $0x8] sm:$0xff] }
 0x675   :  { %v7981_v21 = vpop.f32.mrf.mxu0  ;;  %v7986_v4 = vpop.f32.mrf.mxu1  ;;  %11240 = vst [vmem:[#allocation103_spill] sm:$0xff] %v8102_v22  ;;  %11243 = vst [vmem:[#allocation85_spill] sm:$0xff] %v8120_v19 }
 0x676   :  { %11195 = vst [vmem:[#allocation74_spill] sm:$0xff] %v7981_v21  ;;  %11198 = vst [vmem:[#allocation76_spill] sm:$0xff] %v7986_v4  ;;  %v8108_v4 = vld [vmem:[%s9988_s2 + $0x20] sm:$0xff]  ;;  %v8114_v21 = vld [vmem:[%s9988_s2 + $0x30] sm:$0xff] }
 0x677   :  { %11241 = vst [vmem:[#allocation104_spill] sm:$0xff] %v8108_v4  ;;  %11242 = vst [vmem:[#allocation102_spill] sm:$0xff] %v8114_v21 }
 0x694   :  { %v2207_v23 = vpop.f32.mrf.mxu0  ;;  %v2278_v6 = vpop.f32.mrf.mxu1 }
 0x695   :  { %v2283_v25 = vadd.f32 %v2207_v23, %v11197_v24  ;;  %v2285_v59 = vadd.f32 %v2278_v6, %v11201_v3  ;;  %v11212_v23 = vld [vmem:[#allocation53_spill] sm:$0xff]  ;;  %v11213_v24 = vld [vmem:[#allocation54_spill] sm:$0xff]  ;;  %v11219_v6 = vld [vmem:[#allocation60_spill] sm:$0xff] }
 0x696   :  { %v2209_v36 = vpop.f32.mrf.mxu0  ;;  %v2280_v58 = vpop.f32.mrf.mxu1  ;;  %v11224_v3 = vld [vmem:[#allocation65_spill] sm:$0xff] }
 0x697   :  { %v4578_v51 = vmul.f32 -1.442695, %v2283_v25  ;;  %v2284_v5 = vadd.f32 %v2209_v36, %v11199_v29  ;;  %v2286_v2 = vadd.f32 %v2280_v58, %v11200_v57  ;;  %v11214_v25 = vld [vmem:[#allocation55_spill] sm:$0xff]  ;;  %v11215_v36 = vld [vmem:[#allocation56_spill] sm:$0xff]  ;;  %v11217_v29 = vld [vmem:[#allocation58_spill] sm:$0xff] }
 0x698   :  { %v11221_v58 = vld [vmem:[#allocation62_spill] sm:$0xff]  ;;  %v11222_v57 = vld [vmem:[#allocation63_spill] sm:$0xff] }
 0x699   :  { %4692 = vpow2.f32 %v4578_v51  ;;  %v4579_v9 = vmul.f32 -1.442695, %v2284_v5  ;;  %v4580_v8 = vmul.f32 -1.442695, %v2286_v2  ;;  %v11216_v51 = vld [vmem:[#allocation57_spill] sm:$0xff]  ;;  %v11218_v5 = vld [vmem:[#allocation59_spill] sm:$0xff] }
 0x69a   :  { %v11223_v2 = vld [vmem:[#allocation64_spill] sm:$0xff] }
 0x69b   :  { %4694 = vpow2.f32 %v4579_v9  ;;  %v11220_v9 = vld [vmem:[#allocation61_spill] sm:$0xff] }
 0x69c   :  { %4696 = vtanh.f32 %v2285_v59  ;;  %v11225_v59 = vld [vmem:[#allocation66_spill] sm:$0xff] }
 0x69d   :  { %4698 = vpow2.f32 %v4580_v8  ;;  %v11226_v8 = vld [vmem:[#allocation67_spill] sm:$0xff] }
 0x6a6   :  { %v4693_v7 = vpop.eup %4692 }
 0x6a7   :  { %v2290_v47 = vadd.f32 1.0, %v4693_v7  ;;  %v11227_v7 = vld [vmem:[#allocation68_spill] sm:$0xff] }
 0x6a8   :  { %v4695_v54 = vpop.eup %4694 }
 0x6a9   :  { %4700 = vrcp.f32 %v2290_v47  ;;  %v2296_v10 = vadd.f32 1.0, %v4695_v54  ;;  %v4697_v37 = vpop.eup %4696  ;;  %v11228_v47 = vld [vmem:[#allocation69_spill] sm:$0xff]  ;;  %v11229_v54 = vld [vmem:[#allocation70_spill] sm:$0xff] }
 0x6aa   :  { %v4699_v20 = vpop.eup %4698 }
 0x6ab   :  { %4702 = vrcp.f32 %v2296_v10  ;;  %v2303_v45 = vadd.f32 1.0, %v4699_v20  ;;  %v11230_v10 = vld [vmem:[#allocation71_spill] sm:$0xff] }
 0x6ac   :  { %v8054_v20 = vld [vmem:[%s9988_s2 + $0x78] sm:$0xff] }
 0x6ad   :  { %4704 = vrcp.f32 %v2303_v45  ;;  %11232 = vst [vmem:[#allocation78_spill] sm:$0xff] %v8054_v20  ;;  %v8078_v45 = vld [vmem:[%s9988_s2 + $0x58] sm:$0xff] }
 0x6ae   :  { %11236 = vst [vmem:[#allocation82_spill] sm:$0xff] %v8078_v45 }
 0x6b6   :  { %v4701_v42 = vpop.eup %4700 }
 0x6b7   :  { %v2307_v43 = vmul.f32 %v4701_v42, %v4697_v37  ;;  %v8048_v37 = vld [vmem:[%s9988_s2 + $0x68] sm:$0xff]  ;;  %v8060_v42 = vld [vmem:[%s9988_s2 + $0x60] sm:$0xff] }
 0x6b8   :  { %v4703_v44 = vpop.eup %4702  ;;  %11231 = vst [vmem:[#allocation77_spill] sm:$0xff] %v8048_v37  ;;  %11233 = vst [vmem:[#allocation79_spill] sm:$0xff] %v8060_v42 }
 0x6b9   :  { %v2306_v46 = vmul.f32 %v4703_v44, %v7608_v31  ;;  %v11202_v31 = vld [vmem:[#allocation46_spill] sm:$0xff]  ;;  %v8072_v44 = vld [vmem:[%s9988_s2 + $0x48] sm:$0xff] }
 0x6ba   :  { %v4705_v49 = vpop.eup %4704  ;;  %11235 = vst [vmem:[#allocation81_spill] sm:$0xff] %v8072_v44 }
 0x6bb   :  { %v7992_v48 = vadd.f32 %v2307_v43, %v2306_v46  ;;  %v8066_v43 = vld [vmem:[%s9988_s2 + $0x70] sm:$0xff]  ;;  %v8084_v46 = vld [vmem:[%s9988_s2 + $0x40] sm:$0xff] }
 0x6bc   :  { %11234 = vst [vmem:[#allocation80_spill] sm:$0xff] %v8066_v43  ;;  %11237 = vst [vmem:[#allocation83_spill] sm:$0xff] %v8084_v46 }
 0x6bd   :  { %4706 = vtanh.f32 %v7992_v48 }
 0x6ca   :  { %v4707_v50 = vpop.eup %4706 }
 0x6cb   :  { %v7995_v1 = vmul.f32 %v4707_v50, %v4705_v49  ;;  %v8090_v49 = vld [vmem:[%s9988_s2 + $0x50] sm:$0xff]  ;;  %v8096_v50 = vld [vmem:[%s9988_s2 + $0x28] sm:$0xff] }
 0x6cc   :  { %11238 = vst [vmem:[#allocation84_spill] sm:$0xff] %v8090_v49  ;;  %11239 = vst [vmem:[#allocation101_spill] sm:$0xff] %v8096_v50 }
 0x6cd   :  { %2376 = vmatmul.mubr.f32.vlgmr.msra.gmra.mxu0 %v7995_v1  ;;  %2447 = vmatmul.mubr.f32.vlgmr.msra.gmra.mxu1 %v7995_v1 }
 0x6ce   :  { %2464 = vmatpush1.msra.mxu0 %v7618_v26  ;;  %2535 = vmatpush1.msra.mxu1 %v7624_v32 }
 0x6cf   :  { %2465 = vmatprep.subr.mxu0 %v7630_v28  ;;  %2536 = vmatprep.subr.mxu1 %v7636_v41 }
 0x6d0   :  { %2466 = vmatpush1.msra.mxu0 %v7642_v33  ;;  %2537 = vmatpush1.msra.mxu1 %v7648_v61 }
 0x6d1   :  { %2467 = vmatprep.subr.mxu0 %v7654_v52  ;;  %2538 = vmatprep.subr.mxu1 %v7660_v39 }
 0x6d2   :  { %2468 = vmatpush1.msra.mxu0 %v7666_v34  ;;  %2539 = vmatpush1.msra.mxu1 %v7672_v56 }
 0x6d3   :  { %2469 = vmatprep.subr.mxu0 %v7678_v27  ;;  %2540 = vmatprep.subr.mxu1 %v7684_v40 }
 0x6d4   :  { %2470 = vmatpush1.msra.mxu0 %v7690_v62  ;;  %2541 = vmatpush1.msra.mxu1 %v11202_v31 }
 0x6d5   :  { %2471 = vmatprep.subr.mxu0 %v11203_v0  ;;  %2542 = vmatprep.subr.mxu1 %v11204_v11 }
 0x6d6   :  { %2472 = vmatpush1.msra.mxu0 %v11205_v60  ;;  %2543 = vmatpush1.msra.mxu1 %v11206_v63 }
 0x6d7   :  { %2473 = vmatprep.subr.mxu0 %v11207_v12  ;;  %2544 = vmatprep.subr.mxu1 %v11208_v13 }
 0x6d8   :  { %2474 = vmatpush1.msra.mxu0 %v11209_v14  ;;  %2545 = vmatpush1.msra.mxu1 %v11210_v15 }
 0x6d9   :  { %2475 = vmatprep.subr.mxu0 %v11211_v16  ;;  %2546 = vmatprep.subr.mxu1 %v11212_v23 }
 0x6da   :  { %2476 = vmatpush1.msra.mxu0 %v11213_v24  ;;  %2547 = vmatpush1.msra.mxu1 %v11214_v25 }
 0x6db   :  { %2477 = vmatprep.subr.mxu0 %v11215_v36  ;;  %2548 = vmatprep.subr.mxu1 %v11216_v51 }
 0x6dc   :  { %2478 = vmatpush1.msra.mxu0 %v11217_v29  ;;  %2549 = vmatpush1.msra.mxu1 %v11218_v5 }
 0x6dd   :  { %2479 = vmatprep.subr.mxu0 %v11219_v6  ;;  %2550 = vmatprep.subr.mxu1 %v11220_v9 }
 0x6de   :  { %2480 = vmatpush1.msra.mxu0 %v11221_v58  ;;  %2551 = vmatpush1.msra.mxu1 %v11222_v57 }
 0x6df   :  { %2481 = vmatprep.subr.mxu0 %v11223_v2  ;;  %2552 = vmatprep.subr.mxu1 %v11224_v3 }
 0x6e0   :  { %2482 = vmatpush1.msra.mxu0 %v11225_v59  ;;  %2553 = vmatpush1.msra.mxu1 %v11226_v8 }
 0x6e1   :  { %2483 = vmatprep.subr.mxu0 %v11227_v7  ;;  %2554 = vmatprep.subr.mxu1 %v11228_v47 }
 0x6e2   :  { %2484 = vmatpush1.msra.mxu0 %v11229_v54  ;;  %2555 = vmatpush1.msra.mxu1 %v11230_v10 }
 0x6e3   :  { %2485 = vmatprep.subr.mxu0 %v7870_v35  ;;  %2556 = vmatprep.subr.mxu1 %v7876_v30 }
 0x6e4   :  { %2486 = vmatpush1.msra.mxu0 %v7882_v53  ;;  %2557 = vmatpush1.msra.mxu1 %v7888_v38 }
 0x6e5   :  { %2487 = vmatprep.subr.mxu0 %v8048_v37  ;;  %2558 = vmatprep.subr.mxu1 %v8054_v20  ;;  %v11318_v20 = vld [vmem:[#allocation110_spill] sm:$0xff] }
 0x6e6   :  { %2488 = vmatpush1.msra.mxu0 %v8060_v42  ;;  %2559 = vmatpush1.msra.mxu1 %v8066_v43  ;;  %v11317_v42 = vld [vmem:[#allocation112_spill] sm:$0xff] }
 0x6e7   :  { %2489 = vmatprep.subr.mxu0 %v8072_v44  ;;  %2560 = vmatprep.subr.mxu1 %v8078_v45  ;;  %v11316_v44 = vld [vmem:[#allocation111_spill] sm:$0xff] }
 0x6e8   :  { %2490 = vmatpush1.msra.mxu0 %v8084_v46  ;;  %2561 = vmatpush1.msra.mxu1 %v8090_v49 }
 0x6e9   :  { %2491 = vmatprep.subr.mxu0 %v8096_v50  ;;  %2562 = vmatprep.subr.mxu1 %v8102_v22  ;;  %v8126_v22 = vld [vmem:[%s9988_s2 + $0x18] sm:$0xff]  ;;  %v11314_v50 = vld [vmem:[#allocation109_spill] sm:$0xff] }
 0x6ea   :  { %2492 = vmatpush1.msra.mxu0 %v8108_v4  ;;  %2563 = vmatpush1.msra.mxu1 %v8114_v21  ;;  %11244 = vst [vmem:[#allocation86_spill] sm:$0xff] %v8126_v22  ;;  %v8132_v4 = vld [vmem:[%s9988_s2] sm:$0xff] }
 0x6eb   :  { %2493 = vmatprep.subr.mxu0 %v8120_v19  ;;  %2564 = vmatprep.subr.mxu1 %v8126_v22  ;;  %11245 = vst [vmem:[#allocation87_spill] sm:$0xff] %v8132_v4  ;;  %v8139_v19 = vld [vmem:[%s9988_s2 + $0x10] sm:$0xff]  ;;  %v8148_v22 = vld [vmem:[%s9989_s4 + $0x1e8] sm:$0xff] }
 0x6ec   :  { %2494 = vmatpush1.msra.mxu0 %v8132_v4  ;;  %2527 = vmatprep.mubr.f32.mxu0 %v11050_v55  ;;  %11246 = vst [vmem:[#allocation88_spill] sm:$0xff] %v8139_v19  ;;  %11247 = vst [vmem:[#allocation4_spill] sm:$0xff] %v8148_v22  ;;  %v8154_v4 = vld [vmem:[%s9989_s4 + $0x1f8] sm:$0xff] }
 0x6ed   :  { %2565 = vmatpush1.msra.mxu1 %v8139_v19  ;;  %2598 = vmatprep.mubr.f32.mxu1 %v11050_v55  ;;  %11248 = vst [vmem:[#allocation5_spill] sm:$0xff] %v8154_v4  ;;  %v8160_v19 = vld [vmem:[%s9989_s4 + $0x1e0] sm:$0xff] }
 0x6ee   :  { %2528 = vmatmul.mubr.f32.vlgmr.msra.gmra.mxu0 %v7995_v1  ;;  %2599 = vmatmul.mubr.f32.vlgmr.msra.gmra.mxu1 %v7995_v1  ;;  %11249 = vst [vmem:[#allocation93_spill] sm:$0xff] %v8160_v19  ;;  %v8166_v1 = vld [vmem:[%s9989_s4 + $0x1f0] sm:$0xff] }
 0x6ef   :  { %2633 = vmatprep.subr.mxu0 %v8148_v22  ;;  %2704 = vmatprep.subr.mxu1 %v8154_v4  ;;  %11250 = vst [vmem:[#allocation95_spill] sm:$0xff] %v8166_v1  ;;  %v8172_v22 = vld [vmem:[%s9989_s4 + $0x1c8] sm:$0xff]  ;;  %v8178_v4 = vld [vmem:[%s9989_s4 + $0x1d8] sm:$0xff] }
 0x6f0   :  { %2634 = vmatpush1.msra.mxu0 %v8160_v19  ;;  %2705 = vmatpush1.msra.mxu1 %v8166_v1  ;;  %11251 = vst [vmem:[#allocation96_spill] sm:$0xff] %v8172_v22  ;;  %11252 = vst [vmem:[#allocation94_spill] sm:$0xff] %v8178_v4  ;;  %v8184_v19 = vld [vmem:[%s9989_s4 + $0x1c0] sm:$0xff]  ;;  %v8190_v1 = vld [vmem:[%s9989_s4 + $0x1d0] sm:$0xff] }
 0x6f1   :  { %2635 = vmatprep.subr.mxu0 %v8172_v22  ;;  %2706 = vmatprep.subr.mxu1 %v8178_v4  ;;  %11253 = vst [vmem:[#allocation10_spill] sm:$0xff] %v8184_v19  ;;  %11254 = vst [vmem:[#allocation11_spill] sm:$0xff] %v8190_v1  ;;  %v8196_v22 = vld [vmem:[%s9989_s4 + $0x1a8] sm:$0xff]  ;;  %v8202_v4 = vld [vmem:[%s9989_s4 + $0x1b8] sm:$0xff] }
 0x6f2   :  { %2636 = vmatpush1.msra.mxu0 %v8184_v19  ;;  %2707 = vmatpush1.msra.mxu1 %v8190_v1  ;;  %11255 = vst [vmem:[#allocation12_spill] sm:$0xff] %v8196_v22  ;;  %11256 = vst [vmem:[#allocation13_spill] sm:$0xff] %v8202_v4  ;;  %v8208_v19 = vld [vmem:[%s9989_s4 + $0x1a0] sm:$0xff]  ;;  %v8214_v1 = vld [vmem:[%s9989_s4 + $0x1b0] sm:$0xff] }
 0x6f3   :  { %2637 = vmatprep.subr.mxu0 %v8196_v22  ;;  %2708 = vmatprep.subr.mxu1 %v8202_v4  ;;  %11257 = vst [vmem:[#allocation14_spill] sm:$0xff] %v8208_v19  ;;  %11258 = vst [vmem:[#allocation15_spill] sm:$0xff] %v8214_v1  ;;  %v8220_v22 = vld [vmem:[%s9989_s4 + $0x188] sm:$0xff]  ;;  %v8226_v4 = vld [vmem:[%s9989_s4 + $0x198] sm:$0xff] }
 0x6f4   :  { %2638 = vmatpush1.msra.mxu0 %v8208_v19  ;;  %2709 = vmatpush1.msra.mxu1 %v8214_v1  ;;  %11259 = vst [vmem:[#allocation16_spill] sm:$0xff] %v8220_v22  ;;  %11260 = vst [vmem:[#allocation17_spill] sm:$0xff] %v8226_v4  ;;  %v8232_v19 = vld [vmem:[%s9989_s4 + $0x180] sm:$0xff]  ;;  %v8238_v1 = vld [vmem:[%s9989_s4 + $0x190] sm:$0xff] }
 0x6f5   :  { %2639 = vmatprep.subr.mxu0 %v8220_v22  ;;  %2710 = vmatprep.subr.mxu1 %v8226_v4  ;;  %11261 = vst [vmem:[#allocation18_spill] sm:$0xff] %v8232_v19  ;;  %11262 = vst [vmem:[#allocation19_spill] sm:$0xff] %v8238_v1  ;;  %v8244_v22 = vld [vmem:[%s9989_s4 + $0x168] sm:$0xff]  ;;  %v8250_v4 = vld [vmem:[%s9989_s4 + $0x178] sm:$0xff] }
 0x6f6   :  { %2640 = vmatpush1.msra.mxu0 %v8232_v19  ;;  %2711 = vmatpush1.msra.mxu1 %v8238_v1  ;;  %11263 = vst [vmem:[#allocation20_spill] sm:$0xff] %v8244_v22  ;;  %11264 = vst [vmem:[#allocation21_spill] sm:$0xff] %v8250_v4  ;;  %v8256_v19 = vld [vmem:[%s9989_s4 + $0x160] sm:$0xff]  ;;  %v8262_v1 = vld [vmem:[%s9989_s4 + $0x170] sm:$0xff] }
 0x6f7   :  { %2641 = vmatprep.subr.mxu0 %v8244_v22  ;;  %2712 = vmatprep.subr.mxu1 %v8250_v4  ;;  %11265 = vst [vmem:[#allocation22_spill] sm:$0xff] %v8256_v19  ;;  %11266 = vst [vmem:[#allocation23_spill] sm:$0xff] %v8262_v1  ;;  %v8268_v22 = vld [vmem:[%s9989_s4 + $0x148] sm:$0xff]  ;;  %v8274_v4 = vld [vmem:[%s9989_s4 + $0x158] sm:$0xff] }
 0x6f8   :  { %2642 = vmatpush1.msra.mxu0 %v8256_v19  ;;  %2713 = vmatpush1.msra.mxu1 %v8262_v1  ;;  %11267 = vst [vmem:[#allocation24_spill] sm:$0xff] %v8268_v22  ;;  %11268 = vst [vmem:[#allocation25_spill] sm:$0xff] %v8274_v4  ;;  %v8280_v19 = vld [vmem:[%s9989_s4 + $0x140] sm:$0xff]  ;;  %v8286_v1 = vld [vmem:[%s9989_s4 + $0x150] sm:$0xff] }
 0x6f9   :  { %2643 = vmatprep.subr.mxu0 %v8268_v22  ;;  %2714 = vmatprep.subr.mxu1 %v8274_v4  ;;  %11269 = vst [vmem:[#allocation26_spill] sm:$0xff] %v8280_v19  ;;  %11270 = vst [vmem:[#allocation27_spill] sm:$0xff] %v8286_v1  ;;  %v8292_v22 = vld [vmem:[%s9989_s4 + $0x128] sm:$0xff]  ;;  %v8298_v4 = vld [vmem:[%s9989_s4 + $0x138] sm:$0xff] }
 0x6fa   :  { %2644 = vmatpush1.msra.mxu0 %v8280_v19  ;;  %2715 = vmatpush1.msra.mxu1 %v8286_v1  ;;  %11271 = vst [vmem:[#allocation28_spill] sm:$0xff] %v8292_v22  ;;  %11272 = vst [vmem:[#allocation29_spill] sm:$0xff] %v8298_v4  ;;  %v8304_v19 = vld [vmem:[%s9989_s4 + $0x120] sm:$0xff]  ;;  %v8310_v1 = vld [vmem:[%s9989_s4 + $0x130] sm:$0xff] }
 0x6fb   :  { %2645 = vmatprep.subr.mxu0 %v8292_v22  ;;  %2716 = vmatprep.subr.mxu1 %v8298_v4  ;;  %11273 = vst [vmem:[#allocation30_spill] sm:$0xff] %v8304_v19  ;;  %11274 = vst [vmem:[#allocation31_spill] sm:$0xff] %v8310_v1  ;;  %v8316_v22 = vld [vmem:[%s9989_s4 + $0x108] sm:$0xff]  ;;  %v8322_v4 = vld [vmem:[%s9989_s4 + $0x118] sm:$0xff] }
 0x6fc   :  { %2646 = vmatpush1.msra.mxu0 %v8304_v19  ;;  %2717 = vmatpush1.msra.mxu1 %v8310_v1  ;;  %11275 = vst [vmem:[#allocation32_spill] sm:$0xff] %v8316_v22  ;;  %11276 = vst [vmem:[#allocation33_spill] sm:$0xff] %v8322_v4  ;;  %v8328_v19 = vld [vmem:[%s9989_s4 + $0x100] sm:$0xff]  ;;  %v8334_v1 = vld [vmem:[%s9989_s4 + $0x110] sm:$0xff] }
 0x6fd   :  { %2647 = vmatprep.subr.mxu0 %v8316_v22  ;;  %2718 = vmatprep.subr.mxu1 %v8322_v4  ;;  %11277 = vst [vmem:[#allocation34_spill] sm:$0xff] %v8328_v19  ;;  %11278 = vst [vmem:[#allocation35_spill] sm:$0xff] %v8334_v1  ;;  %v8340_v22 = vld [vmem:[%s9989_s4 + $0xe8] sm:$0xff]  ;;  %v8346_v4 = vld [vmem:[%s9989_s4 + $0xf8] sm:$0xff] }
 0x6fe   :  { %2648 = vmatpush1.msra.mxu0 %v8328_v19  ;;  %2719 = vmatpush1.msra.mxu1 %v8334_v1  ;;  %11279 = vst [vmem:[#allocation99_spill] sm:$0xff] %v8340_v22  ;;  %11280 = vst [vmem:[#allocation100_spill] sm:$0xff] %v8346_v4  ;;  %v8352_v19 = vld [vmem:[%s9989_s4 + $0xe0] sm:$0xff]  ;;  %v8358_v1 = vld [vmem:[%s9989_s4 + $0xf0] sm:$0xff] }
 0x6ff   :  { %2649 = vmatprep.subr.mxu0 %v8340_v22  ;;  %2720 = vmatprep.subr.mxu1 %v8346_v4  ;;  %11281 = vst [vmem:[#allocation105_spill] sm:$0xff] %v8352_v19  ;;  %11282 = vst [vmem:[#allocation107_spill] sm:$0xff] %v8358_v1  ;;  %v8364_v22 = vld [vmem:[%s9989_s4 + $0xc8] sm:$0xff]  ;;  %v8370_v4 = vld [vmem:[%s9989_s4 + $0xd8] sm:$0xff] }
 0x700   :  { %2650 = vmatpush1.msra.mxu0 %v8352_v19  ;;  %2721 = vmatpush1.msra.mxu1 %v8358_v1  ;;  %11283 = vst [vmem:[#allocation108_spill] sm:$0xff] %v8364_v22  ;;  %11284 = vst [vmem:[#allocation106_spill] sm:$0xff] %v8370_v4  ;;  %v8376_v19 = vld [vmem:[%s9989_s4 + $0xc0] sm:$0xff]  ;;  %v8382_v1 = vld [vmem:[%s9989_s4 + $0xd0] sm:$0xff] }
 0x701   :  { %2651 = vmatprep.subr.mxu0 %v8364_v22  ;;  %2722 = vmatprep.subr.mxu1 %v8370_v4  ;;  %11285 = vst [vmem:[#allocation46_spill] sm:$0xff] %v8376_v19  ;;  %11286 = vst [vmem:[#allocation47_spill] sm:$0xff] %v8382_v1  ;;  %v8388_v22 = vld [vmem:[%s9989_s4 + $0xa8] sm:$0xff]  ;;  %v8394_v4 = vld [vmem:[%s9989_s4 + $0xb8] sm:$0xff] }
 0x702   :  { %2652 = vmatpush1.msra.mxu0 %v8376_v19  ;;  %2723 = vmatpush1.msra.mxu1 %v8382_v1  ;;  %11287 = vst [vmem:[#allocation48_spill] sm:$0xff] %v8388_v22  ;;  %11288 = vst [vmem:[#allocation49_spill] sm:$0xff] %v8394_v4  ;;  %v8400_v19 = vld [vmem:[%s9989_s4 + $0xa0] sm:$0xff]  ;;  %v8406_v1 = vld [vmem:[%s9989_s4 + $0xb0] sm:$0xff] }
 0x703   :  { %2653 = vmatprep.subr.mxu0 %v8388_v22  ;;  %2724 = vmatprep.subr.mxu1 %v8394_v4  ;;  %11289 = vst [vmem:[#allocation50_spill] sm:$0xff] %v8400_v19  ;;  %11290 = vst [vmem:[#allocation51_spill] sm:$0xff] %v8406_v1  ;;  %v8412_v22 = vld [vmem:[%s9989_s4 + $0x88] sm:$0xff]  ;;  %v8418_v4 = vld [vmem:[%s9989_s4 + $0x98] sm:$0xff] }
 0x704   :  { %2654 = vmatpush1.msra.mxu0 %v8400_v19  ;;  %2725 = vmatpush1.msra.mxu1 %v8406_v1  ;;  %11291 = vst [vmem:[#allocation52_spill] sm:$0xff] %v8412_v22  ;;  %11292 = vst [vmem:[#allocation91_spill] sm:$0xff] %v8418_v4  ;;  %v8424_v19 = vld [vmem:[%s9989_s4 + $0x80] sm:$0xff]  ;;  %v8430_v1 = vld [vmem:[%s9989_s4 + $0x90] sm:$0xff] }
 0x705   :  { %2655 = vmatprep.subr.mxu0 %v8412_v22  ;;  %2726 = vmatprep.subr.mxu1 %v8418_v4  ;;  %11293 = vst [vmem:[#allocation92_spill] sm:$0xff] %v8424_v19  ;;  %11294 = vst [vmem:[#allocation90_spill] sm:$0xff] %v8430_v1  ;;  %v8436_v22 = vld [vmem:[%s9989_s4 + $0x68] sm:$0xff]  ;;  %v8442_v4 = vld [vmem:[%s9989_s4 + $0x78] sm:$0xff] }
 0x706   :  { %2656 = vmatpush1.msra.mxu0 %v8424_v19  ;;  %2727 = vmatpush1.msra.mxu1 %v8430_v1  ;;  %11295 = vst [vmem:[#allocation53_spill] sm:$0xff] %v8436_v22  ;;  %11296 = vst [vmem:[#allocation54_spill] sm:$0xff] %v8442_v4  ;;  %v8448_v19 = vld [vmem:[%s9989_s4 + $0x60] sm:$0xff]  ;;  %v8454_v1 = vld [vmem:[%s9989_s4 + $0x70] sm:$0xff] }
 0x707   :  { %2657 = vmatprep.subr.mxu0 %v8436_v22  ;;  %2728 = vmatprep.subr.mxu1 %v8442_v4  ;;  %11297 = vst [vmem:[#allocation55_spill] sm:$0xff] %v8448_v19  ;;  %11298 = vst [vmem:[#allocation56_spill] sm:$0xff] %v8454_v1  ;;  %v8460_v22 = vld [vmem:[%s9989_s4 + $0x48] sm:$0xff]  ;;  %v8466_v4 = vld [vmem:[%s9989_s4 + $0x58] sm:$0xff] }
 0x708   :  { %2658 = vmatpush1.msra.mxu0 %v8448_v19  ;;  %2729 = vmatpush1.msra.mxu1 %v8454_v1  ;;  %11299 = vst [vmem:[#allocation57_spill] sm:$0xff] %v8460_v22  ;;  %11300 = vst [vmem:[#allocation58_spill] sm:$0xff] %v8466_v4  ;;  %v8472_v19 = vld [vmem:[%s9989_s4 + $0x40] sm:$0xff]  ;;  %v8478_v1 = vld [vmem:[%s9989_s4 + $0x50] sm:$0xff] }
 0x709   :  { %2659 = vmatprep.subr.mxu0 %v8460_v22  ;;  %2730 = vmatprep.subr.mxu1 %v8466_v4  ;;  %11301 = vst [vmem:[#allocation59_spill] sm:$0xff] %v8472_v19  ;;  %11302 = vst [vmem:[#allocation60_spill] sm:$0xff] %v8478_v1  ;;  %v8484_v22 = vld [vmem:[%s9989_s4 + $0x28] sm:$0xff]  ;;  %v8490_v4 = vld [vmem:[%s9989_s4 + $0x38] sm:$0xff] }
 0x70a   :  { %2660 = vmatpush1.msra.mxu0 %v8472_v19  ;;  %2731 = vmatpush1.msra.mxu1 %v8478_v1  ;;  %11303 = vst [vmem:[#allocation61_spill] sm:$0xff] %v8484_v22  ;;  %11304 = vst [vmem:[#allocation62_spill] sm:$0xff] %v8490_v4  ;;  %v8496_v19 = vld [vmem:[%s9989_s4 + $0x20] sm:$0xff]  ;;  %v8502_v1 = vld [vmem:[%s9989_s4 + $0x30] sm:$0xff] }
 0x70b   :  { %2661 = vmatprep.subr.mxu0 %v8484_v22  ;;  %2732 = vmatprep.subr.mxu1 %v8490_v4  ;;  %11305 = vst [vmem:[#allocation63_spill] sm:$0xff] %v8496_v19  ;;  %11306 = vst [vmem:[#allocation64_spill] sm:$0xff] %v8502_v1  ;;  %v8508_v22 = vld [vmem:[%s9989_s4 + $0x8] sm:$0xff]  ;;  %v8514_v4 = vld [vmem:[%s9989_s4 + $0x18] sm:$0xff] }
 0x70c   :  { %2662 = vmatpush1.msra.mxu0 %v8496_v19  ;;  %2733 = vmatpush1.msra.mxu1 %v8502_v1  ;;  %11307 = vst [vmem:[#allocation65_spill] sm:$0xff] %v8508_v22  ;;  %11308 = vst [vmem:[#allocation66_spill] sm:$0xff] %v8514_v4  ;;  %v8520_v19 = vld [vmem:[%s9989_s4] sm:$0xff]  ;;  %v8526_v1 = vld [vmem:[%s9989_s4 + $0x10] sm:$0xff] }
 0x70d   :  { %2663 = vmatprep.subr.mxu0 %v8508_v22  ;;  %2734 = vmatprep.subr.mxu1 %v8514_v4  ;;  %11309 = vst [vmem:[#allocation67_spill] sm:$0xff] %v8520_v19  ;;  %11310 = vst [vmem:[#allocation68_spill] sm:$0xff] %v8526_v1 }
 0x70e   :  { %2664 = vmatpush1.msra.mxu0 %v8520_v19  ;;  %2735 = vmatpush1.msra.mxu1 %v8526_v1 }
 0x70f   :  { %2697 = vmatprep.mubr.f32.mxu0 %v11050_v55  ;;  %2768 = vmatprep.mubr.f32.mxu1 %v11050_v55 }
 0x710   :  { %2785 = vmatprep.subr.mxu0 %v11192_v17  ;;  %2856 = vmatprep.subr.mxu1 %v11193_v18 }
 0x78d   :  { %v8533_v4 = vpop.f32.mrf.mxu0  ;;  %v8537_v19 = vpop.f32.mrf.mxu1 }
 0x78e   :  { %11311 = vst [vmem:[#allocation69_spill] sm:$0xff] %v8533_v4  ;;  %11313 = vst [vmem:[#allocation71_spill] sm:$0xff] %v8537_v19 }
 0x78f   :  { %v8535_v22 = vpop.f32.mrf.mxu0  ;;  %v8540_v45 = vpop.f32.mrf.mxu1 }
 0x790   :  { %11312 = vst [vmem:[#allocation70_spill] sm:$0xff] %v8535_v22  ;;  %11315 = vst [vmem:[#allocation109_spill] sm:$0xff] %v8540_v45 }
 0x7ae   :  { %v2529_v21 = vpop.f32.mrf.mxu0  ;;  %v2600_v55 = vpop.f32.mrf.mxu1 }
 0x7af   :  { %v2605_v49 = vadd.f32 %v2529_v21, %v11314_v50  ;;  %v2607_v22 = vadd.f32 %v2600_v55, %v11318_v20  ;;  %v11368_v20 = vld [vmem:[#allocation35_spill] sm:$0xff] }
 0x7b0   :  { %v2531_v46 = vpop.f32.mrf.mxu0  ;;  %v2602_v18 = vpop.f32.mrf.mxu1 }
 0x7b1   :  { %v4581_v1 = vmul.f32 -1.442695, %v2605_v49  ;;  %v2606_v43 = vadd.f32 %v2531_v46, %v11316_v44  ;;  %v2608_v4 = vadd.f32 %v2602_v18, %v11317_v42  ;;  %v11370_v18 = vld [vmem:[#allocation100_spill] sm:$0xff] }
 0x7b3   :  { %4708 = vpow2.f32 %v4581_v1  ;;  %v4582_v17 = vmul.f32 -1.442695, %v2606_v43  ;;  %v4583_v37 = vmul.f32 -1.442695, %v2608_v4  ;;  %v11336_v4 = vld [vmem:[#allocation88_spill] sm:$0xff] }
 0x7b5   :  { %4710 = vpow2.f32 %v4582_v17 }
 0x7b6   :  { %4712 = vtanh.f32 %v2607_v22 }
 0x7b7   :  { %4714 = vpow2.f32 %v4583_v37  ;;  %v11367_v37 = vld [vmem:[#allocation34_spill] sm:$0xff] }
 0x7c0   :  { %v4709_v19 = vpop.eup %4708 }
 0x7c1   :  { %v2612_v38 = vadd.f32 1.0, %v4709_v19 }
 0x7c2   :  { %v4711_v21 = vpop.eup %4710 }
 0x7c3   :  { %4716 = vrcp.f32 %v2612_v38  ;;  %v2618_v50 = vadd.f32 1.0, %v4711_v21  ;;  %v4713_v49 = vpop.eup %4712  ;;  %v11332_v38 = vld [vmem:[#allocation85_spill] sm:$0xff] }
 0x7c4   :  { %v4715_v44 = vpop.eup %4714  ;;  %v11371_v21 = vld [vmem:[#allocation105_spill] sm:$0xff] }
 0x7c5   :  { %4718 = vrcp.f32 %v2618_v50  ;;  %v2625_v17 = vadd.f32 1.0, %v4715_v44  ;;  %v11372_v50 = vld [vmem:[#allocation107_spill] sm:$0xff]  ;;  %v11374_v44 = vld [vmem:[#allocation106_spill] sm:$0xff] }
 0x7c7   :  { %4720 = vrcp.f32 %v2625_v17  ;;  %v11378_v17 = vld [vmem:[#allocation49_spill] sm:$0xff] }
 0x7d0   :  { %v4717_v46 = vpop.eup %4716 }
 0x7d1   :  { %v2629_v1 = vmul.f32 %v4717_v46, %v4713_v49  ;;  %v11373_v49 = vld [vmem:[#allocation108_spill] sm:$0xff]  ;;  %v11375_v46 = vld [vmem:[#allocation46_spill] sm:$0xff] }
 0x7d2   :  { %v4719_v43 = vpop.eup %4718 }
 0x7d3   :  { %v2628_v45 = vmul.f32 %v4719_v43, %v7992_v48  ;;  %v11337_v48 = vld [vmem:[#allocation4_spill] sm:$0xff] }
 0x7d4   :  { %v4721_v55 = vpop.eup %4720  ;;  %v11377_v43 = vld [vmem:[#allocation48_spill] sm:$0xff] }
 0x7d5   :  { %v8546_v42 = vadd.f32 %v2629_v1, %v2628_v45  ;;  %v11369_v45 = vld [vmem:[#allocation99_spill] sm:$0xff] }
 0x7d6   :  { %v11376_v1 = vld [vmem:[#allocation47_spill] sm:$0xff] }
 0x7d7   :  { %4722 = vtanh.f32 %v8546_v42 }
 0x7e4   :  { %v4723_v19 = vpop.eup %4722 }
 0x7e5   :  { %v8549_v22 = vmul.f32 %v4723_v19, %v4721_v55  ;;  %v11379_v55 = vld [vmem:[#allocation50_spill] sm:$0xff]  ;;  %v11380_v19 = vld [vmem:[#allocation51_spill] sm:$0xff] }
 0x7e7   :  { %2698 = vmatmul.mubr.f32.vlgmr.msra.gmra.mxu0 %v8549_v22  ;;  %2769 = vmatmul.mubr.f32.vlgmr.msra.gmra.mxu1 %v8549_v22 }
 0x7e8   :  { %2786 = vmatpush1.msra.mxu0 %v7618_v26  ;;  %2857 = vmatpush1.msra.mxu1 %v7624_v32  ;;  %v11319_v26 = vld [vmem:[#allocation72_spill] sm:$0xff]  ;;  %v11320_v32 = vld [vmem:[#allocation77_spill] sm:$0xff] }
 0x7e9   :  { %2787 = vmatprep.subr.mxu0 %v7630_v28  ;;  %2858 = vmatprep.subr.mxu1 %v7636_v41  ;;  %v11321_v28 = vld [vmem:[#allocation78_spill] sm:$0xff]  ;;  %v11322_v41 = vld [vmem:[#allocation79_spill] sm:$0xff] }
 0x7ea   :  { %2788 = vmatpush1.msra.mxu0 %v7642_v33  ;;  %2859 = vmatpush1.msra.mxu1 %v7648_v61  ;;  %v11323_v33 = vld [vmem:[#allocation80_spill] sm:$0xff]  ;;  %v11324_v61 = vld [vmem:[#allocation81_spill] sm:$0xff] }
 0x7eb   :  { %2789 = vmatprep.subr.mxu0 %v7654_v52  ;;  %2860 = vmatprep.subr.mxu1 %v7660_v39  ;;  %v11325_v52 = vld [vmem:[#allocation82_spill] sm:$0xff]  ;;  %v11326_v39 = vld [vmem:[#allocation83_spill] sm:$0xff] }
 0x7ec   :  { %2790 = vmatpush1.msra.mxu0 %v7666_v34  ;;  %2861 = vmatpush1.msra.mxu1 %v7672_v56  ;;  %v11327_v34 = vld [vmem:[#allocation84_spill] sm:$0xff]  ;;  %v11328_v56 = vld [vmem:[#allocation101_spill] sm:$0xff] }
 0x7ed   :  { %2791 = vmatprep.subr.mxu0 %v7678_v27  ;;  %2862 = vmatprep.subr.mxu1 %v7684_v40  ;;  %v11329_v27 = vld [vmem:[#allocation103_spill] sm:$0xff]  ;;  %v11330_v40 = vld [vmem:[#allocation104_spill] sm:$0xff] }
 0x7ee   :  { %2792 = vmatpush1.msra.mxu0 %v7690_v62  ;;  %2863 = vmatpush1.msra.mxu1 %v11202_v31  ;;  %v11331_v62 = vld [vmem:[#allocation102_spill] sm:$0xff]  ;;  %v11338_v31 = vld [vmem:[#allocation5_spill] sm:$0xff] }
 0x7ef   :  { %2793 = vmatprep.subr.mxu0 %v11203_v0  ;;  %2864 = vmatprep.subr.mxu1 %v11204_v11  ;;  %v11339_v0 = vld [vmem:[#allocation93_spill] sm:$0xff]  ;;  %v11340_v11 = vld [vmem:[#allocation95_spill] sm:$0xff] }
 0x7f0   :  { %2794 = vmatpush1.msra.mxu0 %v11205_v60  ;;  %2865 = vmatpush1.msra.mxu1 %v11206_v63  ;;  %v11341_v60 = vld [vmem:[#allocation96_spill] sm:$0xff]  ;;  %v11342_v63 = vld [vmem:[#allocation94_spill] sm:$0xff] }
 0x7f1   :  { %2795 = vmatprep.subr.mxu0 %v11207_v12  ;;  %2866 = vmatprep.subr.mxu1 %v11208_v13  ;;  %v11343_v12 = vld [vmem:[#allocation10_spill] sm:$0xff]  ;;  %v11344_v13 = vld [vmem:[#allocation11_spill] sm:$0xff] }
 0x7f2   :  { %2796 = vmatpush1.msra.mxu0 %v11209_v14  ;;  %2867 = vmatpush1.msra.mxu1 %v11210_v15  ;;  %v11345_v14 = vld [vmem:[#allocation12_spill] sm:$0xff]  ;;  %v11346_v15 = vld [vmem:[#allocation13_spill] sm:$0xff] }
 0x7f3   :  { %2797 = vmatprep.subr.mxu0 %v11211_v16  ;;  %2868 = vmatprep.subr.mxu1 %v11212_v23  ;;  %v11347_v16 = vld [vmem:[#allocation14_spill] sm:$0xff]  ;;  %v11348_v23 = vld [vmem:[#allocation15_spill] sm:$0xff] }
 0x7f4   :  { %2798 = vmatpush1.msra.mxu0 %v11213_v24  ;;  %2869 = vmatpush1.msra.mxu1 %v11214_v25  ;;  %v11349_v24 = vld [vmem:[#allocation16_spill] sm:$0xff]  ;;  %v11350_v25 = vld [vmem:[#allocation17_spill] sm:$0xff] }
 0x7f5   :  { %2799 = vmatprep.subr.mxu0 %v11215_v36  ;;  %2870 = vmatprep.subr.mxu1 %v11216_v51  ;;  %v11351_v36 = vld [vmem:[#allocation18_spill] sm:$0xff]  ;;  %v11352_v51 = vld [vmem:[#allocation19_spill] sm:$0xff] }
 0x7f6   :  { %2800 = vmatpush1.msra.mxu0 %v11217_v29  ;;  %2871 = vmatpush1.msra.mxu1 %v11218_v5  ;;  %v11353_v29 = vld [vmem:[#allocation20_spill] sm:$0xff]  ;;  %v11354_v5 = vld [vmem:[#allocation21_spill] sm:$0xff] }
 0x7f7   :  { %2801 = vmatprep.subr.mxu0 %v11219_v6  ;;  %2872 = vmatprep.subr.mxu1 %v11220_v9  ;;  %v11355_v6 = vld [vmem:[#allocation22_spill] sm:$0xff]  ;;  %v11356_v9 = vld [vmem:[#allocation23_spill] sm:$0xff] }
 0x7f8   :  { %2802 = vmatpush1.msra.mxu0 %v11221_v58  ;;  %2873 = vmatpush1.msra.mxu1 %v11222_v57  ;;  %v11357_v58 = vld [vmem:[#allocation24_spill] sm:$0xff]  ;;  %v11358_v57 = vld [vmem:[#allocation25_spill] sm:$0xff] }
 0x7f9   :  { %2803 = vmatprep.subr.mxu0 %v11223_v2  ;;  %2874 = vmatprep.subr.mxu1 %v11224_v3  ;;  %v11359_v2 = vld [vmem:[#allocation26_spill] sm:$0xff]  ;;  %v11360_v3 = vld [vmem:[#allocation27_spill] sm:$0xff] }
 0x7fa   :  { %2804 = vmatpush1.msra.mxu0 %v11225_v59  ;;  %2875 = vmatpush1.msra.mxu1 %v11226_v8  ;;  %v11361_v59 = vld [vmem:[#allocation28_spill] sm:$0xff]  ;;  %v11362_v8 = vld [vmem:[#allocation29_spill] sm:$0xff] }
 0x7fb   :  { %2805 = vmatprep.subr.mxu0 %v11227_v7  ;;  %2876 = vmatprep.subr.mxu1 %v11228_v47  ;;  %v11363_v7 = vld [vmem:[#allocation30_spill] sm:$0xff]  ;;  %v11364_v47 = vld [vmem:[#allocation31_spill] sm:$0xff] }
 0x7fc   :  { %2806 = vmatpush1.msra.mxu0 %v11229_v54  ;;  %2877 = vmatpush1.msra.mxu1 %v11230_v10  ;;  %v11365_v54 = vld [vmem:[#allocation32_spill] sm:$0xff]  ;;  %v11366_v10 = vld [vmem:[#allocation33_spill] sm:$0xff] }
 0x7fd   :  { %2807 = vmatprep.subr.mxu0 %v7870_v35  ;;  %2878 = vmatprep.subr.mxu1 %v7876_v30  ;;  %v11333_v35 = vld [vmem:[#allocation86_spill] sm:$0xff]  ;;  %v11334_v30 = vld [vmem:[#allocation87_spill] sm:$0xff] }
 0x7fe   :  { %2808 = vmatpush1.msra.mxu0 %v7882_v53  ;;  %2879 = vmatpush1.msra.mxu1 %v11319_v26  ;;  %v11335_v53 = vmov 0.0   ;;  %v11382_v26 = vld [vmem:[#allocation91_spill] sm:$0xff] }
 0x7ff   :  { %2809 = vmatprep.subr.mxu0 %v11320_v32  ;;  %2880 = vmatprep.subr.mxu1 %v11321_v28  ;;  %v11383_v32 = vld [vmem:[#allocation92_spill] sm:$0xff]  ;;  %v11384_v28 = vld [vmem:[#allocation90_spill] sm:$0xff] }
 0x800   :  { %2810 = vmatpush1.msra.mxu0 %v11322_v41  ;;  %2881 = vmatpush1.msra.mxu1 %v11323_v33  ;;  %v11385_v41 = vld [vmem:[#allocation53_spill] sm:$0xff]  ;;  %v11386_v33 = vld [vmem:[#allocation54_spill] sm:$0xff] }
 0x801   :  { %2811 = vmatprep.subr.mxu0 %v11324_v61  ;;  %2882 = vmatprep.subr.mxu1 %v11325_v52  ;;  %v11387_v61 = vld [vmem:[#allocation55_spill] sm:$0xff]  ;;  %v11388_v52 = vld [vmem:[#allocation56_spill] sm:$0xff] }
 0x802   :  { %2812 = vmatpush1.msra.mxu0 %v11326_v39  ;;  %2883 = vmatpush1.msra.mxu1 %v11327_v34  ;;  %v11389_v39 = vld [vmem:[#allocation57_spill] sm:$0xff]  ;;  %v11390_v34 = vld [vmem:[#allocation58_spill] sm:$0xff] }
 0x803   :  { %2813 = vmatprep.subr.mxu0 %v11328_v56  ;;  %2884 = vmatprep.subr.mxu1 %v11329_v27  ;;  %v11391_v56 = vld [vmem:[#allocation59_spill] sm:$0xff]  ;;  %v11392_v27 = vld [vmem:[#allocation60_spill] sm:$0xff] }
 0x804   :  { %2814 = vmatpush1.msra.mxu0 %v11330_v40  ;;  %2885 = vmatpush1.msra.mxu1 %v11331_v62  ;;  %v11393_v40 = vld [vmem:[#allocation61_spill] sm:$0xff]  ;;  %v11394_v62 = vld [vmem:[#allocation62_spill] sm:$0xff] }
 0x805   :  { %2815 = vmatprep.subr.mxu0 %v11332_v38  ;;  %2886 = vmatprep.subr.mxu1 %v11333_v35  ;;  %v11395_v38 = vld [vmem:[#allocation63_spill] sm:$0xff]  ;;  %v11396_v35 = vld [vmem:[#allocation64_spill] sm:$0xff] }
 0x806   :  { %2816 = vmatpush1.msra.mxu0 %v11334_v30  ;;  %2849 = vmatprep.mubr.f32.mxu0 %v11335_v53  ;;  %v11397_v30 = vld [vmem:[#allocation65_spill] sm:$0xff] }
 0x807   :  { %2887 = vmatpush1.msra.mxu1 %v11336_v4  ;;  %2920 = vmatprep.mubr.f32.mxu1 %v11335_v53  ;;  %v11398_v4 = vld [vmem:[#allocation66_spill] sm:$0xff] }
 0x808   :  { %2850 = vmatmul.mubr.f32.vlgmr.msra.gmra.mxu0 %v8549_v22  ;;  %2921 = vmatmul.mubr.f32.vlgmr.msra.gmra.mxu1 %v8549_v22  ;;  %v11381_v22 = vld [vmem:[#allocation52_spill] sm:$0xff] }
 0x809   :  { %2955 = vmatprep.subr.mxu0 %v11337_v48  ;;  %3026 = vmatprep.subr.mxu1 %v11338_v31  ;;  %v11399_v48 = vld [vmem:[#allocation67_spill] sm:$0xff]  ;;  %v11400_v31 = vld [vmem:[#allocation68_spill] sm:$0xff] }
 0x80a   :  { %2956 = vmatpush1.msra.mxu0 %v11339_v0  ;;  %3027 = vmatpush1.msra.mxu1 %v11340_v11  ;;  %v8688_v0 = vld [vmem:[%s9991_s5 + $0x1e8] sm:$0xff]  ;;  %v8693_v11 = vld [vmem:[%s9991_s5 + $0x1f8] sm:$0xff] }
 0x80b   :  { %2957 = vmatprep.subr.mxu0 %v11341_v60  ;;  %3028 = vmatprep.subr.mxu1 %v11342_v63  ;;  %11401 = vst [vmem:[#allocation111_spill] sm:$0xff] %v8688_v0  ;;  %11402 = vst [vmem:[#allocation112_spill] sm:$0xff] %v8693_v11 }
 0x80c   :  { %2958 = vmatpush1.msra.mxu0 %v11343_v12  ;;  %3029 = vmatpush1.msra.mxu1 %v11344_v13 }
 0x80d   :  { %2959 = vmatprep.subr.mxu0 %v11345_v14  ;;  %3030 = vmatprep.subr.mxu1 %v11346_v15  ;;  %v11406_v14 = vld [vmem:[#allocation113_spill] sm:$0xff] }
 0x80e   :  { %2960 = vmatpush1.msra.mxu0 %v11347_v16  ;;  %3031 = vmatpush1.msra.mxu1 %v11348_v23 }
 0x80f   :  { %2961 = vmatprep.subr.mxu0 %v11349_v24  ;;  %3032 = vmatprep.subr.mxu1 %v11350_v25  ;;  %v11408_v25 = vld [vmem:[#allocation115_spill] sm:$0xff] }
 0x810   :  { %2962 = vmatpush1.msra.mxu0 %v11351_v36  ;;  %3033 = vmatpush1.msra.mxu1 %v11352_v51 }
 0x811   :  { %2963 = vmatprep.subr.mxu0 %v11353_v29  ;;  %3034 = vmatprep.subr.mxu1 %v11354_v5 }
 0x812   :  { %2964 = vmatpush1.msra.mxu0 %v11355_v6  ;;  %3035 = vmatpush1.msra.mxu1 %v11356_v9  ;;  %v11409_v6 = vld [vmem:[#allocation116_spill] sm:$0xff] }
 0x813   :  { %2965 = vmatprep.subr.mxu0 %v11357_v58  ;;  %3036 = vmatprep.subr.mxu1 %v11358_v57  ;;  %v11410_v58 = vld [vmem:[#allocation114_spill] sm:$0xff] }
 0x814   :  { %2966 = vmatpush1.msra.mxu0 %v11359_v2  ;;  %3037 = vmatpush1.msra.mxu1 %v11360_v3 }
 0x815   :  { %2967 = vmatprep.subr.mxu0 %v11361_v59  ;;  %3038 = vmatprep.subr.mxu1 %v11362_v8 }
 0x816   :  { %2968 = vmatpush1.msra.mxu0 %v11363_v7  ;;  %3039 = vmatpush1.msra.mxu1 %v11364_v47 }
 0x817   :  { %2969 = vmatprep.subr.mxu0 %v11365_v54  ;;  %3040 = vmatprep.subr.mxu1 %v11366_v10 }
 0x818   :  { %2970 = vmatpush1.msra.mxu0 %v11367_v37  ;;  %3041 = vmatpush1.msra.mxu1 %v11368_v20 }
 0x819   :  { %2971 = vmatprep.subr.mxu0 %v11369_v45  ;;  %3042 = vmatprep.subr.mxu1 %v11370_v18 }
 0x81a   :  { %2972 = vmatpush1.msra.mxu0 %v11371_v21  ;;  %3043 = vmatpush1.msra.mxu1 %v11372_v50 }
 0x81b   :  { %2973 = vmatprep.subr.mxu0 %v11373_v49  ;;  %3044 = vmatprep.subr.mxu1 %v11374_v44 }
 0x81c   :  { %2974 = vmatpush1.msra.mxu0 %v11375_v46  ;;  %3045 = vmatpush1.msra.mxu1 %v11376_v1  ;;  %v8713_v46 = vld [vmem:[%s9991_s5 + $0x1e0] sm:$0xff]  ;;  %v8718_v1 = vld [vmem:[%s9991_s5 + $0x1f0] sm:$0xff] }
 0x81d   :  { %2975 = vmatprep.subr.mxu0 %v11377_v43  ;;  %3046 = vmatprep.subr.mxu1 %v11378_v17  ;;  %v8728_v43 = vld [vmem:[%s9991_s5 + $0x1d8] sm:$0xff]  ;;  %v8733_v17 = vld [vmem:[%s9991_s5 + $0x1c0] sm:$0xff] }
 0x81e   :  { %2976 = vmatpush1.msra.mxu0 %v11379_v55  ;;  %3047 = vmatpush1.msra.mxu1 %v11380_v19  ;;  %v8738_v55 = vld [vmem:[%s9991_s5 + $0x1d0] sm:$0xff]  ;;  %v8745_v19 = vld [vmem:[%s9991_s5 + $0x1a8] sm:$0xff] }
 0x81f   :  { %2977 = vmatprep.subr.mxu0 %v11381_v22  ;;  %3048 = vmatprep.subr.mxu1 %v11382_v26  ;;  %v8750_v22 = vld [vmem:[%s9991_s5 + $0x1b8] sm:$0xff]  ;;  %v8757_v26 = vld [vmem:[%s9991_s5 + $0x1a0] sm:$0xff] }
 0x820   :  { %2978 = vmatpush1.msra.mxu0 %v11383_v32  ;;  %3049 = vmatpush1.msra.mxu1 %v11384_v28  ;;  %v8762_v32 = vld [vmem:[%s9991_s5 + $0x1b0] sm:$0xff]  ;;  %v8769_v28 = vld [vmem:[%s9991_s5 + $0x188] sm:$0xff] }
 0x821   :  { %2979 = vmatprep.subr.mxu0 %v11385_v41  ;;  %3050 = vmatprep.subr.mxu1 %v11386_v33  ;;  %v8774_v41 = vld [vmem:[%s9991_s5 + $0x198] sm:$0xff]  ;;  %v8781_v33 = vld [vmem:[%s9991_s5 + $0x180] sm:$0xff] }
 0x822   :  { %2980 = vmatpush1.msra.mxu0 %v11387_v61  ;;  %3051 = vmatpush1.msra.mxu1 %v11388_v52  ;;  %v8786_v61 = vld [vmem:[%s9991_s5 + $0x190] sm:$0xff]  ;;  %v8793_v52 = vld [vmem:[%s9991_s5 + $0x168] sm:$0xff] }
 0x823   :  { %2981 = vmatprep.subr.mxu0 %v11389_v39  ;;  %3052 = vmatprep.subr.mxu1 %v11390_v34  ;;  %v8798_v39 = vld [vmem:[%s9991_s5 + $0x178] sm:$0xff]  ;;  %v8805_v34 = vld [vmem:[%s9991_s5 + $0x160] sm:$0xff] }
 0x824   :  { %2982 = vmatpush1.msra.mxu0 %v11391_v56  ;;  %3053 = vmatpush1.msra.mxu1 %v11392_v27  ;;  %v8810_v56 = vld [vmem:[%s9991_s5 + $0x170] sm:$0xff]  ;;  %v8817_v27 = vld [vmem:[%s9991_s5 + $0x148] sm:$0xff] }
 0x825   :  { %2983 = vmatprep.subr.mxu0 %v11393_v40  ;;  %3054 = vmatprep.subr.mxu1 %v11394_v62  ;;  %v8822_v40 = vld [vmem:[%s9991_s5 + $0x158] sm:$0xff]  ;;  %v8829_v62 = vld [vmem:[%s9991_s5 + $0x140] sm:$0xff] }
 0x826   :  { %2984 = vmatpush1.msra.mxu0 %v11395_v38  ;;  %3055 = vmatpush1.msra.mxu1 %v11396_v35  ;;  %v8834_v38 = vld [vmem:[%s9991_s5 + $0x150] sm:$0xff]  ;;  %v8841_v35 = vld [vmem:[%s9991_s5 + $0x128] sm:$0xff] }
 0x827   :  { %2985 = vmatprep.subr.mxu0 %v11397_v30  ;;  %3056 = vmatprep.subr.mxu1 %v11398_v4  ;;  %v8846_v30 = vld [vmem:[%s9991_s5 + $0x138] sm:$0xff]  ;;  %v8853_v4 = vld [vmem:[%s9991_s5 + $0x120] sm:$0xff] }
 0x828   :  { %2986 = vmatpush1.msra.mxu0 %v11399_v48  ;;  %3057 = vmatpush1.msra.mxu1 %v11400_v31  ;;  %v8858_v48 = vld [vmem:[%s9991_s5 + $0x130] sm:$0xff]  ;;  %v8865_v31 = vld [vmem:[%s9991_s5 + $0x108] sm:$0xff] }
 0x829   :  { %3019 = vmatprep.mubr.f32.mxu0 %v11335_v53  ;;  %3090 = vmatprep.mubr.f32.mxu1 %v11335_v53 }
 0x82a   :  { %3170 = vmatprep.subr.mxu0 %v8688_v0  ;;  %3241 = vmatprep.subr.mxu1 %v8693_v11 }
 0x8a7   :  { %v8697_v60 = vpop.f32.mrf.mxu0  ;;  %v8701_v12 = vpop.f32.mrf.mxu1 }
 0x8a8   :  { %11403 = vst [vmem:[#allocation110_spill] sm:$0xff] %v8697_v60  ;;  %11405 = vst [vmem:[#allocation77_spill] sm:$0xff] %v8701_v12  ;;  %v9050_v12 = vld [vmem:[%s9991_s5 + $0x30] sm:$0xff]  ;;  %v9069_v60 = vld [vmem:[%s9991_s5] sm:$0xff] }
 0x8a9   :  { %v8699_v63 = vpop.f32.mrf.mxu0  ;;  %v8704_v23 = vpop.f32.mrf.mxu1  ;;  %11427 = vst [vmem:[#allocation93_spill] sm:$0xff] %v9050_v12  ;;  %11430 = vst [vmem:[#allocation94_spill] sm:$0xff] %v9069_v60 }
 0x8aa   :  { %11404 = vst [vmem:[#allocation72_spill] sm:$0xff] %v8699_v63  ;;  %11407 = vst [vmem:[#allocation78_spill] sm:$0xff] %v8704_v23  ;;  %v9057_v23 = vld [vmem:[%s9991_s5 + $0x8] sm:$0xff]  ;;  %v9062_v63 = vld [vmem:[%s9991_s5 + $0x18] sm:$0xff] }
 0x8ab   :  { %11428 = vst [vmem:[#allocation95_spill] sm:$0xff] %v9057_v23  ;;  %11429 = vst [vmem:[#allocation96_spill] sm:$0xff] %v9062_v63 }
 0x8c8   :  { %v2851_v13 = vpop.f32.mrf.mxu0  ;;  %v2922_v51 = vpop.f32.mrf.mxu1 }
 0x8c9   :  { %v2927_v15 = vadd.f32 %v2851_v13, %v11406_v14  ;;  %v2929_v57 = vadd.f32 %v2922_v51, %v11410_v58  ;;  %v8870_v13 = vld [vmem:[%s9991_s5 + $0x118] sm:$0xff]  ;;  %v8877_v14 = vld [vmem:[%s9991_s5 + $0x100] sm:$0xff]  ;;  %v8913_v51 = vld [vmem:[%s9991_s5 + $0xc8] sm:$0xff] }
 0x8ca   :  { %v2853_v16 = vpop.f32.mrf.mxu0  ;;  %v2924_v5 = vpop.f32.mrf.mxu1  ;;  %v8942_v58 = vld [vmem:[%s9991_s5 + $0xb8] sm:$0xff] }
 0x8cb   :  { %v4584_v24 = vmul.f32 -1.442695, %v2927_v15  ;;  %v2928_v36 = vadd.f32 %v2853_v16, %v11408_v25  ;;  %v2930_v9 = vadd.f32 %v2924_v5, %v11409_v6  ;;  %v8882_v15 = vld [vmem:[%s9991_s5 + $0x110] sm:$0xff]  ;;  %v8889_v16 = vld [vmem:[%s9991_s5 + $0xe8] sm:$0xff]  ;;  %v8901_v25 = vld [vmem:[%s9991_s5 + $0xe0] sm:$0xff] }
 0x8cc   :  { %v8925_v5 = vld [vmem:[%s9991_s5 + $0xc0] sm:$0xff]  ;;  %v8930_v6 = vld [vmem:[%s9991_s5 + $0xd0] sm:$0xff] }
 0x8cd   :  { %4724 = vpow2.f32 %v4584_v24  ;;  %v4585_v29 = vmul.f32 -1.442695, %v2928_v36  ;;  %v4586_v2 = vmul.f32 -1.442695, %v2930_v9  ;;  %v8894_v24 = vld [vmem:[%s9991_s5 + $0xf8] sm:$0xff]  ;;  %v8906_v36 = vld [vmem:[%s9991_s5 + $0xf0] sm:$0xff] }
 0x8ce   :  { %v8937_v9 = vld [vmem:[%s9991_s5 + $0xa8] sm:$0xff] }
 0x8cf   :  { %4726 = vpow2.f32 %v4585_v29  ;;  %v8918_v29 = vld [vmem:[%s9991_s5 + $0xd8] sm:$0xff] }
 0x8d0   :  { %4728 = vtanh.f32 %v2929_v57  ;;  %v8949_v57 = vld [vmem:[%s9991_s5 + $0xa0] sm:$0xff] }
 0x8d1   :  { %4730 = vpow2.f32 %v4586_v2  ;;  %v8954_v2 = vld [vmem:[%s9991_s5 + $0xb0] sm:$0xff] }
 0x8d2   :  { %11411 = vst [vmem:[#allocation79_spill] sm:$0xff] %v8954_v2 }
 0x8da   :  { %v4725_v3 = vpop.eup %4724 }
 0x8db   :  { %v2934_v59 = vadd.f32 1.0, %v4725_v3  ;;  %v8961_v3 = vld [vmem:[%s9991_s5 + $0x88] sm:$0xff] }
 0x8dc   :  { %v4727_v8 = vpop.eup %4726  ;;  %11412 = vst [vmem:[#allocation80_spill] sm:$0xff] %v8961_v3 }
 0x8dd   :  { %4732 = vrcp.f32 %v2934_v59  ;;  %v2940_v7 = vadd.f32 1.0, %v4727_v8  ;;  %v4729_v47 = vpop.eup %4728  ;;  %v8966_v59 = vld [vmem:[%s9991_s5 + $0x98] sm:$0xff]  ;;  %v8973_v8 = vld [vmem:[%s9991_s5 + $0x80] sm:$0xff] }
 0x8de   :  { %v4731_v54 = vpop.eup %4730  ;;  %11413 = vst [vmem:[#allocation81_spill] sm:$0xff] %v8966_v59  ;;  %11414 = vst [vmem:[#allocation82_spill] sm:$0xff] %v8973_v8 }
 0x8df   :  { %4734 = vrcp.f32 %v2940_v7  ;;  %v2947_v45 = vadd.f32 1.0, %v4731_v54  ;;  %v8978_v7 = vld [vmem:[%s9991_s5 + $0x90] sm:$0xff]  ;;  %v8990_v54 = vld [vmem:[%s9991_s5 + $0x78] sm:$0xff] }
 0x8e0   :  { %11415 = vst [vmem:[#allocation83_spill] sm:$0xff] %v8978_v7  ;;  %11417 = vst [vmem:[#allocation101_spill] sm:$0xff] %v8990_v54 }
 0x8e1   :  { %4736 = vrcp.f32 %v2947_v45  ;;  %v9014_v45 = vld [vmem:[%s9991_s5 + $0x58] sm:$0xff] }
 0x8e2   :  { %11421 = vst [vmem:[#allocation85_spill] sm:$0xff] %v9014_v45 }
 0x8ea   :  { %v4733_v10 = vpop.eup %4732 }
 0x8eb   :  { %v2951_v37 = vmul.f32 %v4733_v10, %v4729_v47  ;;  %v8985_v47 = vld [vmem:[%s9991_s5 + $0x68] sm:$0xff]  ;;  %v8997_v10 = vld [vmem:[%s9991_s5 + $0x60] sm:$0xff] }
 0x8ec   :  { %v4735_v20 = vpop.eup %4734  ;;  %11416 = vst [vmem:[#allocation84_spill] sm:$0xff] %v8985_v47  ;;  %11418 = vst [vmem:[#allocation103_spill] sm:$0xff] %v8997_v10 }
 0x8ed   :  { %v2950_v18 = vmul.f32 %v4735_v20, %v8546_v42  ;;  %v8723_v42 = vld [vmem:[%s9991_s5 + $0x1c8] sm:$0xff] }
 0x8ee   :  { %v4737_v50 = vpop.eup %4736  ;;  %v9009_v20 = vld [vmem:[%s9991_s5 + $0x48] sm:$0xff] }
 0x8ef   :  { %v2952_v21 = vadd.f32 %v2951_v37, %v2950_v18  ;;  %v9002_v37 = vld [vmem:[%s9991_s5 + $0x70] sm:$0xff]  ;;  %11420 = vst [vmem:[#allocation102_spill] sm:$0xff] %v9009_v20  ;;  %v9021_v18 = vld [vmem:[%s9991_s5 + $0x40] sm:$0xff] }
 0x8f0   :  { %11419 = vst [vmem:[#allocation104_spill] sm:$0xff] %v9002_v37  ;;  %11422 = vst [vmem:[#allocation86_spill] sm:$0xff] %v9021_v18 }
 0x8f1   :  { %4738 = vtanh.f32 %v2952_v21  ;;  %v9026_v21 = vld [vmem:[%s9991_s5 + $0x50] sm:$0xff] }
 0x8f2   :  { %11423 = vst [vmem:[#allocation87_spill] sm:$0xff] %v9026_v21 }
 0x8fe   :  { %v4739_v49 = vpop.eup %4738 }
 0x8ff   :  { %v2954_v44 = vmul.f32 %v4739_v49, %v4737_v50  ;;  %v9033_v50 = vld [vmem:[%s9991_s5 + $0x28] sm:$0xff]  ;;  %v9038_v49 = vld [vmem:[%s9991_s5 + $0x38] sm:$0xff] }
 0x900   :  { %11424 = vst [vmem:[#allocation88_spill] sm:$0xff] %v9033_v50  ;;  %11425 = vst [vmem:[#allocation4_spill] sm:$0xff] %v9038_v49 }
 0x901   :  { %3020 = vmatmul.mubr.f32.vlgmr.msra.gmra.mxu0 %v2954_v44  ;;  %3091 = vmatmul.mubr.f32.vlgmr.msra.gmra.mxu1 %v2954_v44  ;;  %v9045_v44 = vld [vmem:[%s9991_s5 + $0x20] sm:$0xff] }
 0x902   :  { %3171 = vmatpush1.msra.mxu0 %v8713_v46  ;;  %3242 = vmatpush1.msra.mxu1 %v8718_v1  ;;  %11426 = vst [vmem:[#allocation5_spill] sm:$0xff] %v9045_v44 }
 0x903   :  { %3172 = vmatprep.subr.mxu0 %v8723_v42  ;;  %3243 = vmatprep.subr.mxu1 %v8728_v43 }
 0x904   :  { %3173 = vmatpush1.msra.mxu0 %v8733_v17  ;;  %3244 = vmatpush1.msra.mxu1 %v8738_v55 }
 0x905   :  { %3174 = vmatprep.subr.mxu0 %v8745_v19  ;;  %3245 = vmatprep.subr.mxu1 %v8750_v22 }
 0x906   :  { %3175 = vmatpush1.msra.mxu0 %v8757_v26  ;;  %3246 = vmatpush1.msra.mxu1 %v8762_v32 }
 0x907   :  { %3176 = vmatprep.subr.mxu0 %v8769_v28  ;;  %3247 = vmatprep.subr.mxu1 %v8774_v41 }
 0x908   :  { %3177 = vmatpush1.msra.mxu0 %v8781_v33  ;;  %3248 = vmatpush1.msra.mxu1 %v8786_v61 }
 0x909   :  { %3178 = vmatprep.subr.mxu0 %v8793_v52  ;;  %3249 = vmatprep.subr.mxu1 %v8798_v39 }
 0x90a   :  { %3179 = vmatpush1.msra.mxu0 %v8805_v34  ;;  %3250 = vmatpush1.msra.mxu1 %v8810_v56 }
 0x90b   :  { %3180 = vmatprep.subr.mxu0 %v8817_v27  ;;  %3251 = vmatprep.subr.mxu1 %v8822_v40 }
 0x90c   :  { %3181 = vmatpush1.msra.mxu0 %v8829_v62  ;;  %3252 = vmatpush1.msra.mxu1 %v8834_v38 }
 0x90d   :  { %3182 = vmatprep.subr.mxu0 %v8841_v35  ;;  %3253 = vmatprep.subr.mxu1 %v8846_v30 }
 0x90e   :  { %3183 = vmatpush1.msra.mxu0 %v8853_v4  ;;  %3254 = vmatpush1.msra.mxu1 %v8858_v48 }
 0x90f   :  { %3184 = vmatprep.subr.mxu0 %v8865_v31  ;;  %3255 = vmatprep.subr.mxu1 %v8870_v13 }
 0x910   :  { %3185 = vmatpush1.msra.mxu0 %v8877_v14  ;;  %3256 = vmatpush1.msra.mxu1 %v8882_v15 }
 0x911   :  { %3186 = vmatprep.subr.mxu0 %v8889_v16  ;;  %3257 = vmatprep.subr.mxu1 %v8894_v24 }
 0x912   :  { %3187 = vmatpush1.msra.mxu0 %v8901_v25  ;;  %3258 = vmatpush1.msra.mxu1 %v8906_v36 }
 0x913   :  { %3188 = vmatprep.subr.mxu0 %v8913_v51  ;;  %3259 = vmatprep.subr.mxu1 %v8918_v29 }
 0x914   :  { %3189 = vmatpush1.msra.mxu0 %v8925_v5  ;;  %3260 = vmatpush1.msra.mxu1 %v8930_v6 }
 0x915   :  { %3190 = vmatprep.subr.mxu0 %v8937_v9  ;;  %3261 = vmatprep.subr.mxu1 %v8942_v58 }
 0x916   :  { %3191 = vmatpush1.msra.mxu0 %v8949_v57  ;;  %3262 = vmatpush1.msra.mxu1 %v8954_v2 }
 0x917   :  { %3192 = vmatprep.subr.mxu0 %v8961_v3  ;;  %3263 = vmatprep.subr.mxu1 %v8966_v59 }
 0x918   :  { %3193 = vmatpush1.msra.mxu0 %v8973_v8  ;;  %3264 = vmatpush1.msra.mxu1 %v8978_v7 }
 0x919   :  { %3194 = vmatprep.subr.mxu0 %v8985_v47  ;;  %3265 = vmatprep.subr.mxu1 %v8990_v54 }
 0x91a   :  { %3195 = vmatpush1.msra.mxu0 %v8997_v10  ;;  %3266 = vmatpush1.msra.mxu1 %v9002_v37 }
 0x91b   :  { %3196 = vmatprep.subr.mxu0 %v9009_v20  ;;  %3267 = vmatprep.subr.mxu1 %v9014_v45 }
 0x91c   :  { %3197 = vmatpush1.msra.mxu0 %v9021_v18  ;;  %3268 = vmatpush1.msra.mxu1 %v9026_v21  ;;  %v9076_v21 = vld [vmem:[%s9991_s5 + $0x10] sm:$0xff] }
 0x91d   :  { %3198 = vmatprep.subr.mxu0 %v9033_v50  ;;  %3269 = vmatprep.subr.mxu1 %v9038_v49  ;;  %11431 = vst [vmem:[#allocation10_spill] sm:$0xff] %v9076_v21 }
 0x91e   :  { %3199 = vmatpush1.msra.mxu0 %v9045_v44  ;;  %3270 = vmatpush1.msra.mxu1 %v9050_v12 }
 0x91f   :  { %3200 = vmatprep.subr.mxu0 %v9057_v23  ;;  %3271 = vmatprep.subr.mxu1 %v9062_v63 }
 0x920   :  { %3201 = vmatpush1.msra.mxu0 %v9069_v60  ;;  %3234 = vmatprep.mubr.f32.mxu0 %v11335_v53 }
 0x921   :  { %3272 = vmatpush1.msra.mxu1 %v9076_v21  ;;  %3305 = vmatprep.mubr.f32.mxu1 %v11335_v53 }
 0x922   :  { %3235 = vmatmul.mubr.f32.vlgmr.msra.gmra.mxu0 %v11335_v53  ;;  %3306 = vmatmul.mubr.f32.vlgmr.msra.gmra.mxu1 %v11335_v53 }
 0x923   :  { %3344 = vmatprep.subr.mxu0 %v8688_v0  ;;  %3415 = vmatprep.subr.mxu1 %v8693_v11 }
 0x924   :  { %3345 = vmatpush1.msra.mxu0 %v8713_v46  ;;  %3416 = vmatpush1.msra.mxu1 %v8718_v1 }
 0x925   :  { %3346 = vmatprep.subr.mxu0 %v8723_v42  ;;  %3417 = vmatprep.subr.mxu1 %v8728_v43 }
 0x926   :  { %3347 = vmatpush1.msra.mxu0 %v8733_v17  ;;  %3418 = vmatpush1.msra.mxu1 %v8738_v55 }
 0x927   :  { %3348 = vmatprep.subr.mxu0 %v8745_v19  ;;  %3419 = vmatprep.subr.mxu1 %v8750_v22 }
 0x928   :  { %3349 = vmatpush1.msra.mxu0 %v8757_v26  ;;  %3420 = vmatpush1.msra.mxu1 %v8762_v32 }
 0x929   :  { %3350 = vmatprep.subr.mxu0 %v8769_v28  ;;  %3421 = vmatprep.subr.mxu1 %v8774_v41 }
 0x92a   :  { %3351 = vmatpush1.msra.mxu0 %v8781_v33  ;;  %3422 = vmatpush1.msra.mxu1 %v8786_v61 }
 0x92b   :  { %3352 = vmatprep.subr.mxu0 %v8793_v52  ;;  %3423 = vmatprep.subr.mxu1 %v8798_v39 }
 0x92c   :  { %3353 = vmatpush1.msra.mxu0 %v8805_v34  ;;  %3424 = vmatpush1.msra.mxu1 %v8810_v56 }
 0x92d   :  { %3354 = vmatprep.subr.mxu0 %v8817_v27  ;;  %3425 = vmatprep.subr.mxu1 %v8822_v40 }
 0x92e   :  { %3355 = vmatpush1.msra.mxu0 %v8829_v62  ;;  %3426 = vmatpush1.msra.mxu1 %v8834_v38 }
 0x92f   :  { %3356 = vmatprep.subr.mxu0 %v8841_v35  ;;  %3427 = vmatprep.subr.mxu1 %v8846_v30 }
 0x930   :  { %3357 = vmatpush1.msra.mxu0 %v8853_v4  ;;  %3428 = vmatpush1.msra.mxu1 %v8858_v48 }
 0x931   :  { %3358 = vmatprep.subr.mxu0 %v8865_v31  ;;  %3429 = vmatprep.subr.mxu1 %v8870_v13 }
 0x932   :  { %3359 = vmatpush1.msra.mxu0 %v8877_v14  ;;  %3430 = vmatpush1.msra.mxu1 %v8882_v15 }
 0x933   :  { %3360 = vmatprep.subr.mxu0 %v8889_v16  ;;  %3431 = vmatprep.subr.mxu1 %v8894_v24 }
 0x934   :  { %3361 = vmatpush1.msra.mxu0 %v8901_v25  ;;  %3432 = vmatpush1.msra.mxu1 %v8906_v36 }
 0x935   :  { %3362 = vmatprep.subr.mxu0 %v8913_v51  ;;  %3433 = vmatprep.subr.mxu1 %v8918_v29 }
 0x936   :  { %3363 = vmatpush1.msra.mxu0 %v8925_v5  ;;  %3434 = vmatpush1.msra.mxu1 %v8930_v6 }
 0x937   :  { %3364 = vmatprep.subr.mxu0 %v8937_v9  ;;  %3435 = vmatprep.subr.mxu1 %v8942_v58 }
 0x938   :  { %3365 = vmatpush1.msra.mxu0 %v8949_v57  ;;  %3436 = vmatpush1.msra.mxu1 %v8954_v2 }
 0x939   :  { %3366 = vmatprep.subr.mxu0 %v8961_v3  ;;  %3437 = vmatprep.subr.mxu1 %v8966_v59  ;;  %v11432_v3 = vld [vmem:[#allocation87_spill] sm:$0xff] }
 0x93a   :  { %3367 = vmatpush1.msra.mxu0 %v8973_v8  ;;  %3438 = vmatpush1.msra.mxu1 %v8978_v7 }
 0x93b   :  { %3368 = vmatprep.subr.mxu0 %v8985_v47  ;;  %3439 = vmatprep.subr.mxu1 %v8990_v54 }
 0x93c   :  { %3369 = vmatpush1.msra.mxu0 %v8997_v10  ;;  %3440 = vmatpush1.msra.mxu1 %v9002_v37 }
 0x93d   :  { %3370 = vmatprep.subr.mxu0 %v9009_v20  ;;  %3441 = vmatprep.subr.mxu1 %v9014_v45 }
 0x93e   :  { %3371 = vmatpush1.msra.mxu0 %v9021_v18  ;;  %3442 = vmatpush1.msra.mxu1 %v11432_v3  ;;  %v11442_v18 = vld [vmem:[#allocation7_spill] sm:$0xff] }
 0x93f   :  { %3372 = vmatprep.subr.mxu0 %v9033_v50  ;;  %3443 = vmatprep.subr.mxu1 %v9038_v49 }
 0x940   :  { %3373 = vmatpush1.msra.mxu0 %v9045_v44  ;;  %3444 = vmatpush1.msra.mxu1 %v9050_v12  ;;  %v506_v12 = vld [vmem:[%s9992_s6] sm:$0xf] }
 0x941   :  { %3374 = vmatprep.subr.mxu0 %v9057_v23  ;;  %3445 = vmatprep.subr.mxu1 %v9062_v63  ;;  %v11434_v23 = vld [vmem:[#allocation89_spill] sm:$0xff] }
 0x942   :  { %3375 = vmatpush1.msra.mxu0 %v9069_v60  ;;  %3408 = vmatprep.mubr.f32.mxu0 %v11335_v53  ;;  %v11435_v63 = vsub.s32 0, %v11434_v23  ;;  %v11437_v60 = vsub.s32 1, %v11434_v23 }
 0x943   :  { %3446 = vmatpush1.msra.mxu1 %v9076_v21  ;;  %3479 = vmatprep.mubr.f32.mxu1 %v11335_v53 }
 0x944   :  { %3518 = vmatprep.subr.mxu0 %v8688_v0  ;;  %3589 = vmatprep.subr.mxu1 %v8693_v11  ;;  %v9161_v49 = vrot.slane %v506_v12, %v11435_v63  ;;  %v9165_v50 = vrot.slane %v506_v12, %v11437_v60  ;;  %v11440_v0 = vld [vmem:[#allocation6_spill] sm:$0xff] }
 0x946   :  { %11436 = vst [vmem:[#allocation12_spill] sm:$0xff] %v9161_v49  ;;  %11438 = vst [vmem:[#allocation13_spill] sm:$0xff] %v9165_v50  ;;  %v769_v53 = vadd.f32 %v11440_v0, %v9161_v49  ;;  %v771_v45 = vadd.f32 %v11442_v18, %v9165_v50  ;;  %v11445_v0 = vsub.s32 2, %v11434_v23 }
 0x9c1   :  { %v9157_v44 = vpop.f32.mrf.mxu0  ;;  %v9171_v11 = vpop.f32.mrf.mxu1 }
 0x9c2   :  { %11433 = vst [vmem:[#allocation11_spill] sm:$0xff] %v9157_v44  ;;  %11441 = vst [vmem:[#allocation15_spill] sm:$0xff] %v9171_v11  ;;  %v9183_v11 = vrot.slane %v506_v12, %v11445_v0 }
 0x9c3   :  { %v9167_v21 = vpop.f32.mrf.mxu0  ;;  %v9175_v37 = vpop.f32.mrf.mxu1 }
 0x9c4   :  { %11439 = vst [vmem:[#allocation14_spill] sm:$0xff] %v9167_v21  ;;  %11443 = vst [vmem:[#allocation16_spill] sm:$0xff] %v9175_v37  ;;  %v11444_v21 = vsub.s32 3, %v11434_v23 }
 0x9c6   :  { %v9179_v47 = vrot.slane %v506_v12, %v11444_v21 }
 0x9e2   :  { %v3236_v3 = vpop.f32.mrf.mxu0  ;;  %v3307_v60 = vpop.f32.mrf.mxu1 }
 0x9e3   :  { %v3312_v44 = vadd.f32 %v3236_v3, %v769_v53  ;;  %v11446_v53 = vld [vmem:[#allocation9_spill] sm:$0xff] }
 0x9e4   :  { %v3238_v20 = vpop.f32.mrf.mxu0  ;;  %v3309_v49 = vpop.f32.mrf.mxu1  ;;  %v842_v3 = vadd.f32 %v11446_v53, %v9179_v47 }
 0x9e5   :  { %v4587_v63 = vmul.f32 -1.442695, %v3312_v44  ;;  %v3313_v10 = vadd.f32 %v3238_v20, %v771_v45  ;;  %v11447_v44 = vld [vmem:[#allocation8_spill] sm:$0xff] }
 0x9e6   :  { %v3315_v18 = vadd.f32 %v3309_v49, %v842_v3  ;;  %v840_v20 = vadd.f32 %v11447_v44, %v9183_v11 }
 0x9e7   :  { %4740 = vpow2.f32 %v4587_v63  ;;  %v4588_v54 = vmul.f32 -1.442695, %v3313_v10 }
 0x9e8   :  { %v3314_v45 = vadd.f32 %v3307_v60, %v840_v20  ;;  %v4589_v63 = vmul.f32 -1.442695, %v3315_v18  ;;  %v11451_v20 = vld [vmem:[#allocation101_spill] sm:$0xff] }
 0x9e9   :  { %4742 = vpow2.f32 %v4588_v54 }
 0x9ea   :  { %4744 = vtanh.f32 %v3314_v45  ;;  %v11452_v45 = vld [vmem:[#allocation103_spill] sm:$0xff] }
 0x9eb   :  { %4746 = vpow2.f32 %v4589_v63  ;;  %v11453_v63 = vld [vmem:[#allocation104_spill] sm:$0xff] }
 0x9f4   :  { %v4741_v10 = vpop.eup %4740 }
 0x9f5   :  { %v3319_v37 = vadd.f32 1.0, %v4741_v10  ;;  %v11454_v10 = vld [vmem:[#allocation102_spill] sm:$0xff] }
 0x9f6   :  { %v4743_v21 = vpop.eup %4742 }
 0x9f7   :  { %4748 = vrcp.f32 %v3319_v37  ;;  %v3325_v54 = vadd.f32 1.0, %v4743_v21  ;;  %v4745_v12 = vpop.eup %4744  ;;  %v11449_v37 = vld [vmem:[#allocation83_spill] sm:$0xff]  ;;  %v11455_v21 = vld [vmem:[#allocation85_spill] sm:$0xff] }
 0x9f8   :  { %v4747_v23 = vpop.eup %4746 }
 0x9f9   :  { %4750 = vrcp.f32 %v3325_v54  ;;  %v3332_v53 = vadd.f32 1.0, %v4747_v23  ;;  %v11456_v54 = vld [vmem:[#allocation86_spill] sm:$0xff]  ;;  %v11458_v23 = vld [vmem:[#allocation88_spill] sm:$0xff] }
 0x9fb   :  { %4752 = vrcp.f32 %v3332_v53  ;;  %v11460_v53 = vld [vmem:[#allocation5_spill] sm:$0xff] }
 0xa04   :  { %v4749_v0 = vpop.eup %4748 }
 0xa05   :  { %v3336_v50 = vmul.f32 %v4749_v0, %v4745_v12  ;;  %v11457_v12 = vld [vmem:[#allocation87_spill] sm:$0xff]  ;;  %v11459_v0 = vld [vmem:[#allocation4_spill] sm:$0xff] }
 0xa06   :  { %v4751_v7 = vpop.eup %4750 }
 0xa07   :  { %v3335_v49 = vmul.f32 0.0, %v4751_v7  ;;  %v11448_v7 = vld [vmem:[#allocation80_spill] sm:$0xff] }
 0xa08   :  { %v4753_v60 = vpop.eup %4752 }
 0xa09   :  { %v9189_v3 = vadd.f32 %v3336_v50, %v3335_v49  ;;  %v11450_v50 = vld [vmem:[#allocation84_spill] sm:$0xff]  ;;  %v11461_v49 = vld [vmem:[#allocation93_spill] sm:$0xff] }
 0xa0b   :  { %4754 = vtanh.f32 %v9189_v3 }
 0xa18   :  { %v4755_v18 = vpop.eup %4754 }
 0xa19   :  { %v3339_v44 = vmul.f32 %v4755_v18, %v4753_v60  ;;  %v11462_v60 = vld [vmem:[#allocation95_spill] sm:$0xff]  ;;  %v11463_v18 = vld [vmem:[#allocation96_spill] sm:$0xff] }
 0xa1b   :  { %3409 = vmatmul.mubr.f32.vlgmr.msra.gmra.mxu0 %v3339_v44  ;;  %3480 = vmatmul.mubr.f32.vlgmr.msra.gmra.mxu1 %v3339_v44  ;;  %v11464_v44 = vld [vmem:[#allocation94_spill] sm:$0xff] }
 0xa1c   :  { %3519 = vmatpush1.msra.mxu0 %v8713_v46  ;;  %3590 = vmatpush1.msra.mxu1 %v8718_v1 }
 0xa1d   :  { %3520 = vmatprep.subr.mxu0 %v8723_v42  ;;  %3591 = vmatprep.subr.mxu1 %v8728_v43 }
 0xa1e   :  { %3521 = vmatpush1.msra.mxu0 %v8733_v17  ;;  %3592 = vmatpush1.msra.mxu1 %v8738_v55 }
 0xa1f   :  { %3522 = vmatprep.subr.mxu0 %v8745_v19  ;;  %3593 = vmatprep.subr.mxu1 %v8750_v22 }
 0xa20   :  { %3523 = vmatpush1.msra.mxu0 %v8757_v26  ;;  %3594 = vmatpush1.msra.mxu1 %v8762_v32 }
 0xa21   :  { %3524 = vmatprep.subr.mxu0 %v8769_v28  ;;  %3595 = vmatprep.subr.mxu1 %v8774_v41 }
 0xa22   :  { %3525 = vmatpush1.msra.mxu0 %v8781_v33  ;;  %3596 = vmatpush1.msra.mxu1 %v8786_v61 }
 0xa23   :  { %3526 = vmatprep.subr.mxu0 %v8793_v52  ;;  %3597 = vmatprep.subr.mxu1 %v8798_v39 }
 0xa24   :  { %3527 = vmatpush1.msra.mxu0 %v8805_v34  ;;  %3598 = vmatpush1.msra.mxu1 %v8810_v56 }
 0xa25   :  { %3528 = vmatprep.subr.mxu0 %v8817_v27  ;;  %3599 = vmatprep.subr.mxu1 %v8822_v40 }
 0xa26   :  { %3529 = vmatpush1.msra.mxu0 %v8829_v62  ;;  %3600 = vmatpush1.msra.mxu1 %v8834_v38 }
 0xa27   :  { %3530 = vmatprep.subr.mxu0 %v8841_v35  ;;  %3601 = vmatprep.subr.mxu1 %v8846_v30 }
 0xa28   :  { %3531 = vmatpush1.msra.mxu0 %v8853_v4  ;;  %3602 = vmatpush1.msra.mxu1 %v8858_v48 }
 0xa29   :  { %3532 = vmatprep.subr.mxu0 %v8865_v31  ;;  %3603 = vmatprep.subr.mxu1 %v8870_v13 }
 0xa2a   :  { %3533 = vmatpush1.msra.mxu0 %v8877_v14  ;;  %3604 = vmatpush1.msra.mxu1 %v8882_v15 }
 0xa2b   :  { %3534 = vmatprep.subr.mxu0 %v8889_v16  ;;  %3605 = vmatprep.subr.mxu1 %v8894_v24 }
 0xa2c   :  { %3535 = vmatpush1.msra.mxu0 %v8901_v25  ;;  %3606 = vmatpush1.msra.mxu1 %v8906_v36 }
 0xa2d   :  { %3536 = vmatprep.subr.mxu0 %v8913_v51  ;;  %3607 = vmatprep.subr.mxu1 %v8918_v29 }
 0xa2e   :  { %3537 = vmatpush1.msra.mxu0 %v8925_v5  ;;  %3608 = vmatpush1.msra.mxu1 %v8930_v6 }
 0xa2f   :  { %3538 = vmatprep.subr.mxu0 %v8937_v9  ;;  %3609 = vmatprep.subr.mxu1 %v8942_v58 }
 0xa30   :  { %3539 = vmatpush1.msra.mxu0 %v8949_v57  ;;  %3610 = vmatpush1.msra.mxu1 %v8954_v2 }
 0xa31   :  { %3540 = vmatprep.subr.mxu0 %v11448_v7  ;;  %3611 = vmatprep.subr.mxu1 %v8966_v59  ;;  %v11474_v59 = vld [vmem:[#allocation42_spill] sm:$0xff] }
 0xa32   :  { %3541 = vmatpush1.msra.mxu0 %v8973_v8  ;;  %3612 = vmatpush1.msra.mxu1 %v11449_v37 }
 0xa33   :  { %3542 = vmatprep.subr.mxu0 %v11450_v50  ;;  %3613 = vmatprep.subr.mxu1 %v11451_v20 }
 0xa34   :  { %3543 = vmatpush1.msra.mxu0 %v11452_v45  ;;  %3614 = vmatpush1.msra.mxu1 %v11453_v63  ;;  %v11471_v63 = vld [vmem:[#allocation13_spill] sm:$0xff] }
 0xa35   :  { %3544 = vmatprep.subr.mxu0 %v11454_v10  ;;  %3615 = vmatprep.subr.mxu1 %v11455_v21  ;;  %v11465_v10 = vmov 0.0   ;;  %v11466_v21 = vld [vmem:[#allocation10_spill] sm:$0xff] }
 0xa36   :  { %3545 = vmatpush1.msra.mxu0 %v11456_v54  ;;  %3616 = vmatpush1.msra.mxu1 %v11457_v12  ;;  %v11467_v12 = vld [vmem:[#allocation111_spill] sm:$0xff] }
 0xa37   :  { %3546 = vmatprep.subr.mxu0 %v11458_v23  ;;  %3617 = vmatprep.subr.mxu1 %v11459_v0  ;;  %v11468_v23 = vld [vmem:[#allocation112_spill] sm:$0xff] }
 0xa38   :  { %3547 = vmatpush1.msra.mxu0 %v11460_v53  ;;  %3618 = vmatpush1.msra.mxu1 %v11461_v49  ;;  %v11469_v0 = vld [vmem:[#allocation12_spill] sm:$0xff] }
 0xa39   :  { %3548 = vmatprep.subr.mxu0 %v11462_v60  ;;  %3619 = vmatprep.subr.mxu1 %v11463_v18  ;;  %v11470_v53 = vld [vmem:[#allocation40_spill] sm:$0xff]  ;;  %v11472_v60 = vld [vmem:[#allocation41_spill] sm:$0xff] }
 0xa3a   :  { %3549 = vmatpush1.msra.mxu0 %v11464_v44  ;;  %3582 = vmatprep.mubr.f32.mxu0 %v11465_v10  ;;  %v1090_v54 = vadd.f32 %v11470_v53, %v11469_v0  ;;  %v1092_v45 = vadd.f32 %v11472_v60, %v11471_v63  ;;  %v1161_v53 = vadd.f32 %v11474_v59, %v9183_v11 }
 0xa3b   :  { %3620 = vmatpush1.msra.mxu1 %v11466_v21  ;;  %3653 = vmatprep.mubr.f32.mxu1 %v11465_v10 }
 0xa3c   :  { %3692 = vmatprep.subr.mxu0 %v11467_v12  ;;  %3763 = vmatprep.subr.mxu1 %v11468_v23  ;;  %v11473_v12 = vld [vmem:[#allocation43_spill] sm:$0xff] }
 0xa3d   :  { %v1163_v8 = vadd.f32 %v11473_v12, %v9179_v47 }
 0xadb   :  { %v3410_v49 = vpop.f32.mrf.mxu0  ;;  %v3481_v37 = vpop.f32.mrf.mxu1 }
 0xadc   :  { %v3486_v18 = vadd.f32 %v3410_v49, %v1090_v54  ;;  %v3488_v0 = vadd.f32 %v3481_v37, %v1161_v53  ;;  %v11480_v53 = vld [vmem:[#allocation84_spill] sm:$0xff] }
 0xadd   :  { %v3412_v20 = vpop.f32.mrf.mxu0  ;;  %v3483_v10 = vpop.f32.mrf.mxu1 }
 0xade   :  { %v4590_v44 = vmul.f32 -1.442695, %v3486_v18  ;;  %v3487_v50 = vadd.f32 %v3412_v20, %v1092_v45  ;;  %v3489_v23 = vadd.f32 %v3483_v10, %v1163_v8 }
 0xae0   :  { %4756 = vpow2.f32 %v4590_v44  ;;  %v4591_v21 = vmul.f32 -1.442695, %v3487_v50  ;;  %v4592_v7 = vmul.f32 -1.442695, %v3489_v23  ;;  %v11477_v23 = vld [vmem:[#allocation81_spill] sm:$0xff]  ;;  %v11479_v44 = vld [vmem:[#allocation83_spill] sm:$0xff] }
 0xae2   :  { %4758 = vpow2.f32 %v4591_v21 }
 0xae3   :  { %4760 = vtanh.f32 %v3488_v0  ;;  %v11478_v0 = vld [vmem:[#allocation82_spill] sm:$0xff] }
 0xae4   :  { %4762 = vpow2.f32 %v4592_v7  ;;  %v11476_v7 = vld [vmem:[#allocation80_spill] sm:$0xff] }
 0xaed   :  { %v4757_v2 = vpop.eup %4756 }
 0xaee   :  { %v3493_v60 = vadd.f32 1.0, %v4757_v2 }
 0xaef   :  { %v4759_v54 = vpop.eup %4758 }
 0xaf0   :  { %4764 = vrcp.f32 %v3493_v60  ;;  %v3499_v20 = vadd.f32 1.0, %v4759_v54  ;;  %v4761_v50 = vpop.eup %4760  ;;  %v11481_v60 = vld [vmem:[#allocation101_spill] sm:$0xff]  ;;  %v11482_v54 = vld [vmem:[#allocation103_spill] sm:$0xff] }
 0xaf1   :  { %v4763_v45 = vpop.eup %4762 }
 0xaf2   :  { %4766 = vrcp.f32 %v3499_v20  ;;  %v3506_v12 = vadd.f32 1.0, %v4763_v45  ;;  %v11483_v20 = vld [vmem:[#allocation104_spill] sm:$0xff]  ;;  %v11485_v45 = vld [vmem:[#allocation85_spill] sm:$0xff] }
 0xaf4   :  { %4768 = vrcp.f32 %v3506_v12  ;;  %v11489_v12 = vld [vmem:[#allocation4_spill] sm:$0xff] }
 0xafd   :  { %v4765_v21 = vpop.eup %4764 }
 0xafe   :  { %v3510_v49 = vmul.f32 %v4765_v21, %v4761_v50  ;;  %v11484_v50 = vld [vmem:[#allocation102_spill] sm:$0xff] }
 0xaff   :  { %v4767_v18 = vpop.eup %4766  ;;  %v11486_v21 = vld [vmem:[#allocation86_spill] sm:$0xff] }
 0xb00   :  { %v3509_v8 = vmul.f32 %v4767_v18, %v9189_v3  ;;  %v11475_v3 = vld [vmem:[#allocation79_spill] sm:$0xff]  ;;  %v11488_v18 = vld [vmem:[#allocation88_spill] sm:$0xff] }
 0xb01   :  { %v4769_v2 = vpop.eup %4768 }
 0xb02   :  { %v9267_v10 = vadd.f32 %v3510_v49, %v3509_v8  ;;  %v11487_v49 = vld [vmem:[#allocation87_spill] sm:$0xff]  ;;  %v11490_v8 = vld [vmem:[#allocation5_spill] sm:$0xff] }
 0xb04   :  { %4770 = vtanh.f32 %v9267_v10 }
 0xb11   :  { %v4771_v59 = vpop.eup %4770 }
 0xb12   :  { %v3513_v37 = vmul.f32 %v4771_v59, %v4769_v2  ;;  %v11491_v2 = vld [vmem:[#allocation93_spill] sm:$0xff]  ;;  %v11492_v59 = vld [vmem:[#allocation95_spill] sm:$0xff] }
 0xb14   :  { %3583 = vmatmul.mubr.f32.vlgmr.msra.gmra.mxu0 %v3513_v37  ;;  %3654 = vmatmul.mubr.f32.vlgmr.msra.gmra.mxu1 %v3513_v37  ;;  %v11493_v37 = vld [vmem:[#allocation96_spill] sm:$0xff] }
 0xb15   :  { %3693 = vmatpush1.msra.mxu0 %v8713_v46  ;;  %3764 = vmatpush1.msra.mxu1 %v8718_v1 }
 0xb16   :  { %3694 = vmatprep.subr.mxu0 %v8723_v42  ;;  %3765 = vmatprep.subr.mxu1 %v8728_v43 }
 0xb17   :  { %3695 = vmatpush1.msra.mxu0 %v8733_v17  ;;  %3766 = vmatpush1.msra.mxu1 %v8738_v55 }
 0xb18   :  { %3696 = vmatprep.subr.mxu0 %v8745_v19  ;;  %3767 = vmatprep.subr.mxu1 %v8750_v22 }
 0xb19   :  { %3697 = vmatpush1.msra.mxu0 %v8757_v26  ;;  %3768 = vmatpush1.msra.mxu1 %v8762_v32 }
 0xb1a   :  { %3698 = vmatprep.subr.mxu0 %v8769_v28  ;;  %3769 = vmatprep.subr.mxu1 %v8774_v41 }
 0xb1b   :  { %3699 = vmatpush1.msra.mxu0 %v8781_v33  ;;  %3770 = vmatpush1.msra.mxu1 %v8786_v61 }
 0xb1c   :  { %3700 = vmatprep.subr.mxu0 %v8793_v52  ;;  %3771 = vmatprep.subr.mxu1 %v8798_v39 }
 0xb1d   :  { %3701 = vmatpush1.msra.mxu0 %v8805_v34  ;;  %3772 = vmatpush1.msra.mxu1 %v8810_v56 }
 0xb1e   :  { %3702 = vmatprep.subr.mxu0 %v8817_v27  ;;  %3773 = vmatprep.subr.mxu1 %v8822_v40 }
 0xb1f   :  { %3703 = vmatpush1.msra.mxu0 %v8829_v62  ;;  %3774 = vmatpush1.msra.mxu1 %v8834_v38 }
 0xb20   :  { %3704 = vmatprep.subr.mxu0 %v8841_v35  ;;  %3775 = vmatprep.subr.mxu1 %v8846_v30 }
 0xb21   :  { %3705 = vmatpush1.msra.mxu0 %v8853_v4  ;;  %3776 = vmatpush1.msra.mxu1 %v8858_v48 }
 0xb22   :  { %3706 = vmatprep.subr.mxu0 %v8865_v31  ;;  %3777 = vmatprep.subr.mxu1 %v8870_v13 }
 0xb23   :  { %3707 = vmatpush1.msra.mxu0 %v8877_v14  ;;  %3778 = vmatpush1.msra.mxu1 %v8882_v15 }
 0xb24   :  { %3708 = vmatprep.subr.mxu0 %v8889_v16  ;;  %3779 = vmatprep.subr.mxu1 %v8894_v24 }
 0xb25   :  { %3709 = vmatpush1.msra.mxu0 %v8901_v25  ;;  %3780 = vmatpush1.msra.mxu1 %v8906_v36 }
 0xb26   :  { %3710 = vmatprep.subr.mxu0 %v8913_v51  ;;  %3781 = vmatprep.subr.mxu1 %v8918_v29 }
 0xb27   :  { %3711 = vmatpush1.msra.mxu0 %v8925_v5  ;;  %3782 = vmatpush1.msra.mxu1 %v8930_v6 }
 0xb28   :  { %3712 = vmatprep.subr.mxu0 %v8937_v9  ;;  %3783 = vmatprep.subr.mxu1 %v8942_v58 }
 0xb29   :  { %3713 = vmatpush1.msra.mxu0 %v8949_v57  ;;  %3784 = vmatpush1.msra.mxu1 %v11475_v3 }
 0xb2a   :  { %3714 = vmatprep.subr.mxu0 %v11476_v7  ;;  %3785 = vmatprep.subr.mxu1 %v11477_v23  ;;  %v11503_v23 = vld [vmem:[#allocation38_spill] sm:$0xff] }
 0xb2b   :  { %3715 = vmatpush1.msra.mxu0 %v11478_v0  ;;  %3786 = vmatpush1.msra.mxu1 %v11479_v44 }
 0xb2c   :  { %3716 = vmatprep.subr.mxu0 %v11480_v53  ;;  %3787 = vmatprep.subr.mxu1 %v11481_v60 }
 0xb2d   :  { %3717 = vmatpush1.msra.mxu0 %v11482_v54  ;;  %3788 = vmatpush1.msra.mxu1 %v11483_v20  ;;  %v11494_v20 = vld [vmem:[#allocation94_spill] sm:$0xff] }
 0xb2e   :  { %3718 = vmatprep.subr.mxu0 %v11484_v50  ;;  %3789 = vmatprep.subr.mxu1 %v11485_v45  ;;  %v11495_v50 = vmov 0.0   ;;  %v11496_v45 = vld [vmem:[#allocation10_spill] sm:$0xff] }
 0xb2f   :  { %3719 = vmatpush1.msra.mxu0 %v11486_v21  ;;  %3790 = vmatpush1.msra.mxu1 %v11487_v49  ;;  %v11497_v49 = vld [vmem:[#allocation111_spill] sm:$0xff] }
 0xb30   :  { %3720 = vmatprep.subr.mxu0 %v11488_v18  ;;  %3791 = vmatprep.subr.mxu1 %v11489_v12  ;;  %v11498_v18 = vld [vmem:[#allocation112_spill] sm:$0xff] }
 0xb31   :  { %3721 = vmatpush1.msra.mxu0 %v11490_v8  ;;  %3792 = vmatpush1.msra.mxu1 %v11491_v2  ;;  %v11499_v12 = vld [vmem:[#allocation12_spill] sm:$0xff] }
 0xb32   :  { %3722 = vmatprep.subr.mxu0 %v11492_v59  ;;  %3793 = vmatprep.subr.mxu1 %v11493_v37  ;;  %v11500_v8 = vld [vmem:[#allocation36_spill] sm:$0xff]  ;;  %v11501_v59 = vld [vmem:[#allocation37_spill] sm:$0xff] }
 0xb33   :  { %3723 = vmatpush1.msra.mxu0 %v11494_v20  ;;  %3756 = vmatprep.mubr.f32.mxu0 %v11495_v50  ;;  %v1412_v21 = vadd.f32 %v11500_v8, %v11499_v12  ;;  %v1414_v54 = vadd.f32 %v11501_v59, %v11471_v63  ;;  %v1483_v8 = vadd.f32 %v11503_v23, %v9183_v11 }
 0xb34   :  { %3794 = vmatpush1.msra.mxu1 %v11496_v45  ;;  %3827 = vmatprep.mubr.f32.mxu1 %v11495_v50 }
 0xb35   :  { %3866 = vmatprep.subr.mxu0 %v11497_v49  ;;  %3937 = vmatprep.subr.mxu1 %v11498_v18  ;;  %v11502_v49 = vld [vmem:[#allocation97_spill] sm:$0xff] }
 0xb36   :  { %v1485_v0 = vadd.f32 %v11502_v49, %v9179_v47 }
 0xbd4   :  { %v3584_v2 = vpop.f32.mrf.mxu0  ;;  %v3655_v44 = vpop.f32.mrf.mxu1 }
 0xbd5   :  { %v3660_v37 = vadd.f32 %v3584_v2, %v1412_v21  ;;  %v3662_v12 = vadd.f32 %v3655_v44, %v1483_v8 }
 0xbd6   :  { %v3586_v60 = vpop.f32.mrf.mxu0  ;;  %v3657_v50 = vpop.f32.mrf.mxu1 }
 0xbd7   :  { %v4593_v20 = vmul.f32 -1.442695, %v3660_v37  ;;  %v3661_v53 = vadd.f32 %v3586_v60, %v1414_v54  ;;  %v3663_v18 = vadd.f32 %v3657_v50, %v1485_v0 }
 0xbd9   :  { %4772 = vpow2.f32 %v4593_v20  ;;  %v4594_v45 = vmul.f32 -1.442695, %v3661_v53  ;;  %v4595_v7 = vmul.f32 -1.442695, %v3663_v18 }
 0xbdb   :  { %4774 = vpow2.f32 %v4594_v45 }
 0xbdc   :  { %4776 = vtanh.f32 %v3662_v12 }
 0xbdd   :  { %4778 = vpow2.f32 %v4595_v7 }
 0xbe6   :  { %v4773_v3 = vpop.eup %4772 }
 0xbe7   :  { %v3667_v59 = vadd.f32 1.0, %v4773_v3 }
 0xbe8   :  { %v4775_v21 = vpop.eup %4774 }
 0xbe9   :  { %4780 = vrcp.f32 %v3667_v59  ;;  %v3673_v60 = vadd.f32 1.0, %v4775_v21  ;;  %v4777_v53 = vpop.eup %4776 }
 0xbea   :  { %v4779_v54 = vpop.eup %4778 }
 0xbeb   :  { %4782 = vrcp.f32 %v3673_v60  ;;  %v3680_v37 = vadd.f32 1.0, %v4779_v54 }
 0xbed   :  { %4784 = vrcp.f32 %v3680_v37 }
 0xbf6   :  { %v4781_v20 = vpop.eup %4780 }
 0xbf7   :  { %v3684_v45 = vmul.f32 %v4781_v20, %v4777_v53 }
 0xbf8   :  { %v4783_v2 = vpop.eup %4782 }
 0xbf9   :  { %v3683_v0 = vmul.f32 %v4783_v2, %v9267_v10 }
 0xbfa   :  { %v4785_v3 = vpop.eup %4784 }
 0xbfb   :  { %v9345_v50 = vadd.f32 %v3684_v45, %v3683_v0 }
 0xbfd   :  { %4786 = vtanh.f32 %v9345_v50 }
 0xc0a   :  { %v4787_v23 = vpop.eup %4786 }
 0xc0b   :  { %v3687_v44 = vmul.f32 %v4787_v23, %v4785_v3 }
 0xc0d   :  { %3757 = vmatmul.mubr.f32.vlgmr.msra.gmra.mxu0 %v3687_v44  ;;  %3828 = vmatmul.mubr.f32.vlgmr.msra.gmra.mxu1 %v3687_v44  ;;  %v9439_v44 = vld [vmem:[%s9991_s5 + $0x1e0] sm:$0xff] }
 0xc0e   :  { %3867 = vmatpush1.msra.mxu0 %v8713_v46  ;;  %3938 = vmatpush1.msra.mxu1 %v8718_v1  ;;  %v11504_v46 = vld [vmem:[#allocation79_spill] sm:$0xff]  ;;  %v11505_v1 = vld [vmem:[#allocation80_spill] sm:$0xff] }
 0xc0f   :  { %3868 = vmatprep.subr.mxu0 %v8723_v42  ;;  %3939 = vmatprep.subr.mxu1 %v8728_v43  ;;  %v11506_v42 = vld [vmem:[#allocation81_spill] sm:$0xff]  ;;  %v11507_v43 = vld [vmem:[#allocation82_spill] sm:$0xff] }
 0xc10   :  { %3869 = vmatpush1.msra.mxu0 %v8733_v17  ;;  %3940 = vmatpush1.msra.mxu1 %v8738_v55  ;;  %v11508_v17 = vld [vmem:[#allocation83_spill] sm:$0xff]  ;;  %v11509_v55 = vld [vmem:[#allocation84_spill] sm:$0xff] }
 0xc11   :  { %3870 = vmatprep.subr.mxu0 %v8745_v19  ;;  %3941 = vmatprep.subr.mxu1 %v8750_v22  ;;  %v11510_v19 = vld [vmem:[#allocation101_spill] sm:$0xff]  ;;  %v11511_v22 = vld [vmem:[#allocation103_spill] sm:$0xff] }
 0xc12   :  { %3871 = vmatpush1.msra.mxu0 %v8757_v26  ;;  %3942 = vmatpush1.msra.mxu1 %v8762_v32  ;;  %v11512_v26 = vld [vmem:[#allocation104_spill] sm:$0xff]  ;;  %v11513_v32 = vld [vmem:[#allocation102_spill] sm:$0xff] }
 0xc13   :  { %3872 = vmatprep.subr.mxu0 %v8769_v28  ;;  %3943 = vmatprep.subr.mxu1 %v8774_v41  ;;  %v11514_v28 = vld [vmem:[#allocation85_spill] sm:$0xff]  ;;  %v11515_v41 = vld [vmem:[#allocation86_spill] sm:$0xff] }
 0xc14   :  { %3873 = vmatpush1.msra.mxu0 %v8781_v33  ;;  %3944 = vmatpush1.msra.mxu1 %v8786_v61  ;;  %v11516_v33 = vld [vmem:[#allocation87_spill] sm:$0xff]  ;;  %v11517_v61 = vld [vmem:[#allocation88_spill] sm:$0xff] }
 0xc15   :  { %3874 = vmatprep.subr.mxu0 %v8793_v52  ;;  %3945 = vmatprep.subr.mxu1 %v8798_v39  ;;  %v11518_v52 = vld [vmem:[#allocation4_spill] sm:$0xff]  ;;  %v11519_v39 = vld [vmem:[#allocation5_spill] sm:$0xff] }
 0xc16   :  { %3875 = vmatpush1.msra.mxu0 %v8805_v34  ;;  %3946 = vmatpush1.msra.mxu1 %v8810_v56  ;;  %v11520_v34 = vld [vmem:[#allocation93_spill] sm:$0xff]  ;;  %v11521_v56 = vld [vmem:[#allocation95_spill] sm:$0xff] }
 0xc17   :  { %3876 = vmatprep.subr.mxu0 %v8817_v27  ;;  %3947 = vmatprep.subr.mxu1 %v8822_v40  ;;  %v11522_v27 = vld [vmem:[#allocation96_spill] sm:$0xff]  ;;  %v11523_v40 = vld [vmem:[#allocation94_spill] sm:$0xff] }
 0xc18   :  { %3877 = vmatpush1.msra.mxu0 %v8829_v62  ;;  %3948 = vmatpush1.msra.mxu1 %v8834_v38  ;;  %v11524_v62 = vmov 0.0   ;;  %v11525_v38 = vld [vmem:[#allocation10_spill] sm:$0xff] }
 0xc19   :  { %3878 = vmatprep.subr.mxu0 %v8841_v35  ;;  %3949 = vmatprep.subr.mxu1 %v8846_v30  ;;  %v9415_v35 = vld [vmem:[%s9991_s5 + $0x1e8] sm:$0xff]  ;;  %v9421_v30 = vld [vmem:[%s9991_s5 + $0x1f8] sm:$0xff] }
 0xc1a   :  { %3879 = vmatpush1.msra.mxu0 %v8853_v4  ;;  %3950 = vmatpush1.msra.mxu1 %v8858_v48  ;;  %11526 = vst [vmem:[#allocation17_spill] sm:$0xff] %v9415_v35  ;;  %11527 = vst [vmem:[#allocation18_spill] sm:$0xff] %v9421_v30  ;;  %v11528_v4 = vld [vmem:[#allocation12_spill] sm:$0xff]  ;;  %v11529_v48 = vld [vmem:[#allocation98_spill] sm:$0xff] }
 0xc1b   :  { %3880 = vmatprep.subr.mxu0 %v8865_v31  ;;  %3951 = vmatprep.subr.mxu1 %v8870_v13  ;;  %v1734_v31 = vadd.f32 %v11529_v48, %v11528_v4  ;;  %v9553_v48 = vld [vmem:[%s9991_s5 + $0x158] sm:$0xff] }
 0xc1c   :  { %3881 = vmatpush1.msra.mxu0 %v8877_v14  ;;  %3952 = vmatpush1.msra.mxu1 %v8882_v15  ;;  %v11530_v14 = vld [vmem:[#allocation39_spill] sm:$0xff] }
 0xc1d   :  { %3882 = vmatprep.subr.mxu0 %v8889_v16  ;;  %3953 = vmatprep.subr.mxu1 %v8894_v24  ;;  %v1736_v15 = vadd.f32 %v11530_v14, %v11471_v63  ;;  %v9571_v14 = vld [vmem:[%s9991_s5 + $0x128] sm:$0xff] }
 0xc1e   :  { %3883 = vmatpush1.msra.mxu0 %v8901_v25  ;;  %3954 = vmatpush1.msra.mxu1 %v8906_v36 }
 0xc1f   :  { %3884 = vmatprep.subr.mxu0 %v8913_v51  ;;  %3955 = vmatprep.subr.mxu1 %v8918_v29 }
 0xc20   :  { %3885 = vmatpush1.msra.mxu0 %v8925_v5  ;;  %3956 = vmatpush1.msra.mxu1 %v8930_v6  ;;  %v11531_v6 = vld [vmem:[#allocation45_spill] sm:$0xff] }
 0xc21   :  { %3886 = vmatprep.subr.mxu0 %v8937_v9  ;;  %3957 = vmatprep.subr.mxu1 %v8942_v58  ;;  %v1807_v9 = vadd.f32 %v11531_v6, %v9179_v47  ;;  %v9625_v6 = vld [vmem:[%s9991_s5 + $0xf8] sm:$0xff] }
 0xc22   :  { %3887 = vmatpush1.msra.mxu0 %v8949_v57  ;;  %3958 = vmatpush1.msra.mxu1 %v11504_v46  ;;  %v11532_v57 = vld [vmem:[#allocation44_spill] sm:$0xff]  ;;  %v9451_v46 = vld [vmem:[%s9991_s5 + $0x1c8] sm:$0xff] }
 0xc23   :  { %3888 = vmatprep.subr.mxu0 %v11505_v1  ;;  %3959 = vmatprep.subr.mxu1 %v11506_v42  ;;  %v1805_v10 = vadd.f32 %v11532_v57, %v9183_v11  ;;  %v9457_v1 = vld [vmem:[%s9991_s5 + $0x1d8] sm:$0xff]  ;;  %v9463_v42 = vld [vmem:[%s9991_s5 + $0x1c0] sm:$0xff]  ;;  %v9643_v57 = vld [vmem:[%s9991_s5 + $0xc8] sm:$0xff] }
 0xc24   :  { %3889 = vmatpush1.msra.mxu0 %v11507_v43  ;;  %3960 = vmatpush1.msra.mxu1 %v11508_v17  ;;  %v9469_v43 = vld [vmem:[%s9991_s5 + $0x1d0] sm:$0xff]  ;;  %v9475_v17 = vld [vmem:[%s9991_s5 + $0x1a8] sm:$0xff] }
 0xc25   :  { %3890 = vmatprep.subr.mxu0 %v11509_v55  ;;  %3961 = vmatprep.subr.mxu1 %v11510_v19  ;;  %v9481_v55 = vld [vmem:[%s9991_s5 + $0x1b8] sm:$0xff]  ;;  %v9487_v19 = vld [vmem:[%s9991_s5 + $0x1a0] sm:$0xff] }
 0xc26   :  { %3891 = vmatpush1.msra.mxu0 %v11511_v22  ;;  %3962 = vmatpush1.msra.mxu1 %v11512_v26  ;;  %v9493_v22 = vld [vmem:[%s9991_s5 + $0x1b0] sm:$0xff]  ;;  %v9499_v26 = vld [vmem:[%s9991_s5 + $0x188] sm:$0xff] }
 0xc27   :  { %3892 = vmatprep.subr.mxu0 %v11513_v32  ;;  %3963 = vmatprep.subr.mxu1 %v11514_v28  ;;  %v9505_v32 = vld [vmem:[%s9991_s5 + $0x198] sm:$0xff]  ;;  %v9511_v28 = vld [vmem:[%s9991_s5 + $0x180] sm:$0xff] }
 0xc28   :  { %3893 = vmatpush1.msra.mxu0 %v11515_v41  ;;  %3964 = vmatpush1.msra.mxu1 %v11516_v33  ;;  %v9517_v41 = vld [vmem:[%s9991_s5 + $0x190] sm:$0xff]  ;;  %v9523_v33 = vld [vmem:[%s9991_s5 + $0x168] sm:$0xff] }
 0xc29   :  { %3894 = vmatprep.subr.mxu0 %v11517_v61  ;;  %3965 = vmatprep.subr.mxu1 %v11518_v52  ;;  %v9529_v61 = vld [vmem:[%s9991_s5 + $0x178] sm:$0xff]  ;;  %v9535_v52 = vld [vmem:[%s9991_s5 + $0x160] sm:$0xff] }
 0xc2a   :  { %3895 = vmatpush1.msra.mxu0 %v11519_v39  ;;  %3966 = vmatpush1.msra.mxu1 %v11520_v34  ;;  %v9541_v39 = vld [vmem:[%s9991_s5 + $0x170] sm:$0xff]  ;;  %v9547_v34 = vld [vmem:[%s9991_s5 + $0x148] sm:$0xff] }
 0xc2b   :  { %3896 = vmatprep.subr.mxu0 %v11521_v56  ;;  %3967 = vmatprep.subr.mxu1 %v11522_v27 }
 0xc2c   :  { %3897 = vmatpush1.msra.mxu0 %v11523_v40  ;;  %3930 = vmatprep.mubr.f32.mxu0 %v11524_v62 }
 0xc2d   :  { %3968 = vmatpush1.msra.mxu1 %v11525_v38  ;;  %4001 = vmatprep.mubr.f32.mxu1 %v11524_v62 }
 0xc2e   :  { %4040 = vmatprep.subr.mxu0 %v9415_v35  ;;  %4111 = vmatprep.subr.mxu1 %v9421_v30 }
 0xccd   :  { %v3758_v13 = vpop.f32.mrf.mxu0  ;;  %v3829_v51 = vpop.f32.mrf.mxu1 }
 0xcce   :  { %v3834_v16 = vadd.f32 %v3758_v13, %v1734_v31  ;;  %v3836_v7 = vadd.f32 %v3829_v51, %v1805_v10  ;;  %v9559_v31 = vld [vmem:[%s9991_s5 + $0x140] sm:$0xff]  ;;  %v9565_v13 = vld [vmem:[%s9991_s5 + $0x150] sm:$0xff]  ;;  %v9649_v10 = vld [vmem:[%s9991_s5 + $0xd8] sm:$0xff] }
 0xccf   :  { %v3760_v24 = vpop.f32.mrf.mxu0  ;;  %v3831_v5 = vpop.f32.mrf.mxu1  ;;  %v9607_v51 = vld [vmem:[%s9991_s5 + $0x100] sm:$0xff] }
 0xcd0   :  { %v4596_v25 = vmul.f32 -1.442695, %v3834_v16  ;;  %v3835_v36 = vadd.f32 %v3760_v24, %v1736_v15  ;;  %v3837_v58 = vadd.f32 %v3831_v5, %v1807_v9  ;;  %v9577_v15 = vld [vmem:[%s9991_s5 + $0x138] sm:$0xff]  ;;  %v9583_v16 = vld [vmem:[%s9991_s5 + $0x120] sm:$0xff]  ;;  %v9589_v24 = vld [vmem:[%s9991_s5 + $0x130] sm:$0xff] }
 0xcd1   :  { %v9619_v5 = vld [vmem:[%s9991_s5 + $0xe8] sm:$0xff]  ;;  %v9631_v9 = vld [vmem:[%s9991_s5 + $0xe0] sm:$0xff] }
 0xcd2   :  { %4788 = vpow2.f32 %v4596_v25  ;;  %v4597_v29 = vmul.f32 -1.442695, %v3835_v36  ;;  %v4598_v12 = vmul.f32 -1.442695, %v3837_v58  ;;  %v9595_v25 = vld [vmem:[%s9991_s5 + $0x108] sm:$0xff]  ;;  %v9601_v36 = vld [vmem:[%s9991_s5 + $0x118] sm:$0xff] }
 0xcd3   :  { %v9637_v58 = vld [vmem:[%s9991_s5 + $0xf0] sm:$0xff] }
 0xcd4   :  { %4790 = vpow2.f32 %v4597_v29  ;;  %v9613_v29 = vld [vmem:[%s9991_s5 + $0x110] sm:$0xff] }
 0xcd5   :  { %4792 = vtanh.f32 %v3836_v7  ;;  %v9655_v7 = vld [vmem:[%s9991_s5 + $0xc0] sm:$0xff] }
 0xcd6   :  { %4794 = vpow2.f32 %v4598_v12  ;;  %v9661_v12 = vld [vmem:[%s9991_s5 + $0xd0] sm:$0xff] }
 0xcdf   :  { %v4789_v49 = vpop.eup %4788 }
 0xce0   :  { %v3841_v18 = vadd.f32 1.0, %v4789_v49  ;;  %v9667_v49 = vld [vmem:[%s9991_s5 + $0xa8] sm:$0xff] }
 0xce1   :  { %v4791_v8 = vpop.eup %4790 }
 0xce2   :  { %4796 = vrcp.f32 %v3841_v18  ;;  %v3847_v59 = vadd.f32 1.0, %v4791_v8  ;;  %v4793_v21 = vpop.eup %4792  ;;  %v9673_v18 = vld [vmem:[%s9991_s5 + $0xb8] sm:$0xff]  ;;  %v9679_v8 = vld [vmem:[%s9991_s5 + $0xa0] sm:$0xff] }
 0xce3   :  { %v4795_v60 = vpop.eup %4794 }
 0xce4   :  { %4798 = vrcp.f32 %v3847_v59  ;;  %v3854_v45 = vadd.f32 1.0, %v4795_v60  ;;  %v9685_v59 = vld [vmem:[%s9991_s5 + $0xb0] sm:$0xff]  ;;  %v9697_v60 = vld [vmem:[%s9991_s5 + $0x98] sm:$0xff] }
 0xce5   :  { %11533 = vst [vmem:[#allocation19_spill] sm:$0xff] %v9685_v59  ;;  %11535 = vst [vmem:[#allocation21_spill] sm:$0xff] %v9697_v60 }
 0xce6   :  { %4800 = vrcp.f32 %v3854_v45  ;;  %v9721_v45 = vld [vmem:[%s9991_s5 + $0x78] sm:$0xff] }
 0xce7   :  { %11539 = vst [vmem:[#allocation25_spill] sm:$0xff] %v9721_v45 }
 0xcef   :  { %v4797_v53 = vpop.eup %4796 }
 0xcf0   :  { %v3858_v54 = vmul.f32 %v4797_v53, %v4793_v21  ;;  %v9691_v21 = vld [vmem:[%s9991_s5 + $0x88] sm:$0xff]  ;;  %v9703_v53 = vld [vmem:[%s9991_s5 + $0x80] sm:$0xff] }
 0xcf1   :  { %v4799_v20 = vpop.eup %4798  ;;  %11534 = vst [vmem:[#allocation20_spill] sm:$0xff] %v9691_v21  ;;  %11536 = vst [vmem:[#allocation22_spill] sm:$0xff] %v9703_v53 }
 0xcf2   :  { %v3857_v2 = vmul.f32 %v4799_v20, %v9345_v50  ;;  %v9445_v50 = vld [vmem:[%s9991_s5 + $0x1f0] sm:$0xff]  ;;  %v9715_v20 = vld [vmem:[%s9991_s5 + $0x68] sm:$0xff] }
 0xcf3   :  { %v4801_v0 = vpop.eup %4800  ;;  %11538 = vst [vmem:[#allocation24_spill] sm:$0xff] %v9715_v20 }
 0xcf4   :  { %v9433_v37 = vadd.f32 %v3858_v54, %v3857_v2  ;;  %v9709_v54 = vld [vmem:[%s9991_s5 + $0x90] sm:$0xff]  ;;  %v9727_v2 = vld [vmem:[%s9991_s5 + $0x60] sm:$0xff] }
 0xcf5   :  { %11537 = vst [vmem:[#allocation23_spill] sm:$0xff] %v9709_v54  ;;  %11540 = vst [vmem:[#allocation26_spill] sm:$0xff] %v9727_v2 }
 0xcf6   :  { %4802 = vtanh.f32 %v9433_v37 }
 0xd03   :  { %v4803_v3 = vpop.eup %4802 }
 0xd04   :  { %v3861_v23 = vmul.f32 %v4803_v3, %v4801_v0  ;;  %v9733_v0 = vld [vmem:[%s9991_s5 + $0x70] sm:$0xff]  ;;  %v9739_v3 = vld [vmem:[%s9991_s5 + $0x48] sm:$0xff] }
 0xd05   :  { %11541 = vst [vmem:[#allocation27_spill] sm:$0xff] %v9733_v0  ;;  %11542 = vst [vmem:[#allocation28_spill] sm:$0xff] %v9739_v3 }
 0xd06   :  { %3931 = vmatmul.mubr.f32.vlgmr.msra.gmra.mxu0 %v3861_v23  ;;  %4002 = vmatmul.mubr.f32.vlgmr.msra.gmra.mxu1 %v3861_v23  ;;  %v9745_v23 = vld [vmem:[%s9991_s5 + $0x58] sm:$0xff] }
 0xd07   :  { %4041 = vmatpush1.msra.mxu0 %v9439_v44  ;;  %4112 = vmatpush1.msra.mxu1 %v9445_v50  ;;  %11543 = vst [vmem:[#allocation29_spill] sm:$0xff] %v9745_v23 }
 0xd08   :  { %4042 = vmatprep.subr.mxu0 %v9451_v46  ;;  %4113 = vmatprep.subr.mxu1 %v9457_v1 }
 0xd09   :  { %4043 = vmatpush1.msra.mxu0 %v9463_v42  ;;  %4114 = vmatpush1.msra.mxu1 %v9469_v43 }
 0xd0a   :  { %4044 = vmatprep.subr.mxu0 %v9475_v17  ;;  %4115 = vmatprep.subr.mxu1 %v9481_v55 }
 0xd0b   :  { %4045 = vmatpush1.msra.mxu0 %v9487_v19  ;;  %4116 = vmatpush1.msra.mxu1 %v9493_v22 }
 0xd0c   :  { %4046 = vmatprep.subr.mxu0 %v9499_v26  ;;  %4117 = vmatprep.subr.mxu1 %v9505_v32 }
 0xd0d   :  { %4047 = vmatpush1.msra.mxu0 %v9511_v28  ;;  %4118 = vmatpush1.msra.mxu1 %v9517_v41 }
 0xd0e   :  { %4048 = vmatprep.subr.mxu0 %v9523_v33  ;;  %4119 = vmatprep.subr.mxu1 %v9529_v61 }
 0xd0f   :  { %4049 = vmatpush1.msra.mxu0 %v9535_v52  ;;  %4120 = vmatpush1.msra.mxu1 %v9541_v39 }
 0xd10   :  { %4050 = vmatprep.subr.mxu0 %v9547_v34  ;;  %4121 = vmatprep.subr.mxu1 %v9553_v48 }
 0xd11   :  { %4051 = vmatpush1.msra.mxu0 %v9559_v31  ;;  %4122 = vmatpush1.msra.mxu1 %v9565_v13 }
 0xd12   :  { %4052 = vmatprep.subr.mxu0 %v9571_v14  ;;  %4123 = vmatprep.subr.mxu1 %v9577_v15 }
 0xd13   :  { %4053 = vmatpush1.msra.mxu0 %v9583_v16  ;;  %4124 = vmatpush1.msra.mxu1 %v9589_v24 }
 0xd14   :  { %4054 = vmatprep.subr.mxu0 %v9595_v25  ;;  %4125 = vmatprep.subr.mxu1 %v9601_v36 }
 0xd15   :  { %4055 = vmatpush1.msra.mxu0 %v9607_v51  ;;  %4126 = vmatpush1.msra.mxu1 %v9613_v29 }
 0xd16   :  { %4056 = vmatprep.subr.mxu0 %v9619_v5  ;;  %4127 = vmatprep.subr.mxu1 %v9625_v6 }
 0xd17   :  { %4057 = vmatpush1.msra.mxu0 %v9631_v9  ;;  %4128 = vmatpush1.msra.mxu1 %v9637_v58 }
 0xd18   :  { %4058 = vmatprep.subr.mxu0 %v9643_v57  ;;  %4129 = vmatprep.subr.mxu1 %v9649_v10 }
 0xd19   :  { %4059 = vmatpush1.msra.mxu0 %v9655_v7  ;;  %4130 = vmatpush1.msra.mxu1 %v9661_v12 }
 0xd1a   :  { %4060 = vmatprep.subr.mxu0 %v9667_v49  ;;  %4131 = vmatprep.subr.mxu1 %v9673_v18 }
 0xd1b   :  { %4061 = vmatpush1.msra.mxu0 %v9679_v8  ;;  %4132 = vmatpush1.msra.mxu1 %v9685_v59 }
 0xd1c   :  { %4062 = vmatprep.subr.mxu0 %v9691_v21  ;;  %4133 = vmatprep.subr.mxu1 %v9697_v60  ;;  %v11553_v60 = vld [vmem:[#allocation75_spill] sm:$0xff] }
 0xd1d   :  { %4063 = vmatpush1.msra.mxu0 %v9703_v53  ;;  %4134 = vmatpush1.msra.mxu1 %v9709_v54 }
 0xd1e   :  { %4064 = vmatprep.subr.mxu0 %v9715_v20  ;;  %4135 = vmatprep.subr.mxu1 %v9721_v45 }
 0xd1f   :  { %4065 = vmatpush1.msra.mxu0 %v9727_v2  ;;  %4136 = vmatpush1.msra.mxu1 %v9733_v0  ;;  %v9751_v2 = vld [vmem:[%s9991_s5 + $0x40] sm:$0xff]  ;;  %v9757_v0 = vld [vmem:[%s9991_s5 + $0x50] sm:$0xff] }
 0xd20   :  { %4066 = vmatprep.subr.mxu0 %v9739_v3  ;;  %4137 = vmatprep.subr.mxu1 %v9745_v23  ;;  %11544 = vst [vmem:[#allocation30_spill] sm:$0xff] %v9751_v2  ;;  %11545 = vst [vmem:[#allocation31_spill] sm:$0xff] %v9757_v0  ;;  %v9763_v3 = vld [vmem:[%s9991_s5 + $0x28] sm:$0xff]  ;;  %v9769_v23 = vld [vmem:[%s9991_s5 + $0x38] sm:$0xff] }
 0xd21   :  { %4067 = vmatpush1.msra.mxu0 %v9751_v2  ;;  %4138 = vmatpush1.msra.mxu1 %v9757_v0  ;;  %11546 = vst [vmem:[#allocation32_spill] sm:$0xff] %v9763_v3  ;;  %11547 = vst [vmem:[#allocation33_spill] sm:$0xff] %v9769_v23  ;;  %v9775_v2 = vld [vmem:[%s9991_s5 + $0x20] sm:$0xff]  ;;  %v9781_v0 = vld [vmem:[%s9991_s5 + $0x30] sm:$0xff] }
 0xd22   :  { %4068 = vmatprep.subr.mxu0 %v9763_v3  ;;  %4139 = vmatprep.subr.mxu1 %v9769_v23  ;;  %11548 = vst [vmem:[#allocation34_spill] sm:$0xff] %v9775_v2  ;;  %11549 = vst [vmem:[#allocation35_spill] sm:$0xff] %v9781_v0 }
 0xd23   :  { %4069 = vmatpush1.msra.mxu0 %v9775_v2  ;;  %4140 = vmatpush1.msra.mxu1 %v9781_v0  ;;  %v11550_v2 = vld [vmem:[#allocation73_spill] sm:$0xff] }
 0xd24   :  { %4070 = vmatprep.subr.mxu0 %v11521_v56  ;;  %4141 = vmatprep.subr.mxu1 %v11522_v27  ;;  %v2056_v23 = vadd.f32 %v11550_v2, %v11528_v4  ;;  %v11551_v56 = vld [vmem:[#allocation74_spill] sm:$0xff]  ;;  %v2127_v2 = vadd.f32 %v11553_v60, %v9183_v11  ;;  %v11556_v60 = vld [vmem:[#allocation21_spill] sm:$0xff] }
 0xd25   :  { %4071 = vmatpush1.msra.mxu0 %v11523_v40  ;;  %4104 = vmatprep.mubr.f32.mxu0 %v11524_v62  ;;  %v2058_v3 = vadd.f32 %v11551_v56, %v11471_v63 }
 0xd26   :  { %4142 = vmatpush1.msra.mxu1 %v11525_v38  ;;  %4175 = vmatprep.mubr.f32.mxu1 %v11524_v62 }
 0xd27   :  { %4214 = vmatprep.subr.mxu0 %v9415_v35  ;;  %4285 = vmatprep.subr.mxu1 %v9421_v30  ;;  %v11552_v35 = vld [vmem:[#allocation76_spill] sm:$0xff] }
 0xd28   :  { %v2129_v53 = vadd.f32 %v11552_v35, %v9179_v47 }
 0xdc6   :  { %v3932_v0 = vpop.f32.mrf.mxu0  ;;  %v4003_v54 = vpop.f32.mrf.mxu1 }
 0xdc7   :  { %v4008_v27 = vadd.f32 %v3932_v0, %v2056_v23  ;;  %v4010_v4 = vadd.f32 %v4003_v54, %v2127_v2  ;;  %v11557_v54 = vld [vmem:[#allocation22_spill] sm:$0xff]  ;;  %v11559_v2 = vld [vmem:[#allocation24_spill] sm:$0xff] }
 0xdc8   :  { %v3934_v45 = vpop.f32.mrf.mxu0  ;;  %v4005_v62 = vpop.f32.mrf.mxu1 }
 0xdc9   :  { %v4599_v40 = vmul.f32 -1.442695, %v4008_v27  ;;  %v4009_v20 = vadd.f32 %v3934_v45, %v2058_v3  ;;  %v4011_v30 = vadd.f32 %v4005_v62, %v2129_v53 }
 0xdcb   :  { %4804 = vpow2.f32 %v4599_v40  ;;  %v4600_v38 = vmul.f32 -1.442695, %v4009_v20  ;;  %v4601_v21 = vmul.f32 -1.442695, %v4011_v30 }
 0xdcd   :  { %4806 = vpow2.f32 %v4600_v38  ;;  %v11558_v38 = vld [vmem:[#allocation23_spill] sm:$0xff] }
 0xdce   :  { %4808 = vtanh.f32 %v4010_v4 }
 0xdcf   :  { %4810 = vpow2.f32 %v4601_v21  ;;  %v11555_v21 = vld [vmem:[#allocation20_spill] sm:$0xff] }
 0xdd8   :  { %v4805_v59 = vpop.eup %4804 }
 0xdd9   :  { %v4015_v56 = vadd.f32 1.0, %v4805_v59 }
 0xdda   :  { %v4807_v0 = vpop.eup %4806 }
 0xddb   :  { %4812 = vrcp.f32 %v4015_v56  ;;  %v4021_v45 = vadd.f32 1.0, %v4807_v0  ;;  %v4809_v20 = vpop.eup %4808  ;;  %v11560_v56 = vld [vmem:[#allocation25_spill] sm:$0xff]  ;;  %v11561_v0 = vld [vmem:[#allocation26_spill] sm:$0xff] }
 0xddc   :  { %v4811_v3 = vpop.eup %4810 }
 0xddd   :  { %4814 = vrcp.f32 %v4021_v45  ;;  %v4028_v35 = vadd.f32 1.0, %v4811_v3  ;;  %v11562_v45 = vld [vmem:[#allocation27_spill] sm:$0xff]  ;;  %v11564_v3 = vld [vmem:[#allocation29_spill] sm:$0xff] }
 0xddf   :  { %4816 = vrcp.f32 %v4028_v35  ;;  %v11568_v35 = vld [vmem:[#allocation33_spill] sm:$0xff] }
 0xde8   :  { %v4813_v23 = vpop.eup %4812 }
 0xde9   :  { %v4032_v27 = vmul.f32 %v4813_v23, %v4809_v20  ;;  %v11563_v20 = vld [vmem:[#allocation28_spill] sm:$0xff]  ;;  %v11565_v23 = vld [vmem:[#allocation30_spill] sm:$0xff] }
 0xdea   :  { %v4815_v40 = vpop.eup %4814 }
 0xdeb   :  { %v4031_v62 = vmul.f32 %v4815_v40, %v9433_v37  ;;  %v11554_v37 = vld [vmem:[#allocation19_spill] sm:$0xff]  ;;  %v11567_v40 = vld [vmem:[#allocation32_spill] sm:$0xff] }
 0xdec   :  { %v4817_v30 = vpop.eup %4816 }
 0xded   :  { %v9801_v53 = vadd.f32 %v4032_v27, %v4031_v62  ;;  %v11566_v27 = vld [vmem:[#allocation31_spill] sm:$0xff]  ;;  %v11569_v62 = vld [vmem:[#allocation34_spill] sm:$0xff] }
 0xdef   :  { %4818 = vtanh.f32 %v9801_v53 }
 0xdfc   :  { %v4819_v4 = vpop.eup %4818 }
 0xdfd   :  { %v4035_v59 = vmul.f32 %v4819_v4, %v4817_v30  ;;  %v11570_v30 = vld [vmem:[#allocation35_spill] sm:$0xff]  ;;  %v9865_v4 = vld [vmem:[%s9991_s5 + $0x8] sm:$0xff] }
 0xdfe   :  { %11571 = vst [vmem:[#allocation99_spill] sm:$0xff] %v9865_v4 }
 0xdff   :  { %4105 = vmatmul.mubr.f32.vlgmr.msra.gmra.mxu0 %v4035_v59  ;;  %4176 = vmatmul.mubr.f32.vlgmr.msra.gmra.mxu1 %v4035_v59  ;;  %v9871_v59 = vld [vmem:[%s9991_s5 + $0x18] sm:$0xff] }
 0xe00   :  { %4215 = vmatpush1.msra.mxu0 %v9439_v44  ;;  %4286 = vmatpush1.msra.mxu1 %v9445_v50  ;;  %11572 = vst [vmem:[#allocation100_spill] sm:$0xff] %v9871_v59 }
 0xe01   :  { %4216 = vmatprep.subr.mxu0 %v9451_v46  ;;  %4287 = vmatprep.subr.mxu1 %v9457_v1 }
 0xe02   :  { %4217 = vmatpush1.msra.mxu0 %v9463_v42  ;;  %4288 = vmatpush1.msra.mxu1 %v9469_v43 }
 0xe03   :  { %4218 = vmatprep.subr.mxu0 %v9475_v17  ;;  %4289 = vmatprep.subr.mxu1 %v9481_v55 }
 0xe04   :  { %4219 = vmatpush1.msra.mxu0 %v9487_v19  ;;  %4290 = vmatpush1.msra.mxu1 %v9493_v22 }
 0xe05   :  { %4220 = vmatprep.subr.mxu0 %v9499_v26  ;;  %4291 = vmatprep.subr.mxu1 %v9505_v32 }
 0xe06   :  { %4221 = vmatpush1.msra.mxu0 %v9511_v28  ;;  %4292 = vmatpush1.msra.mxu1 %v9517_v41 }
 0xe07   :  { %4222 = vmatprep.subr.mxu0 %v9523_v33  ;;  %4293 = vmatprep.subr.mxu1 %v9529_v61 }
 0xe08   :  { %4223 = vmatpush1.msra.mxu0 %v9535_v52  ;;  %4294 = vmatpush1.msra.mxu1 %v9541_v39 }
 0xe09   :  { %4224 = vmatprep.subr.mxu0 %v9547_v34  ;;  %4295 = vmatprep.subr.mxu1 %v9553_v48 }
 0xe0a   :  { %4225 = vmatpush1.msra.mxu0 %v9559_v31  ;;  %4296 = vmatpush1.msra.mxu1 %v9565_v13 }
 0xe0b   :  { %4226 = vmatprep.subr.mxu0 %v9571_v14  ;;  %4297 = vmatprep.subr.mxu1 %v9577_v15 }
 0xe0c   :  { %4227 = vmatpush1.msra.mxu0 %v9583_v16  ;;  %4298 = vmatpush1.msra.mxu1 %v9589_v24 }
 0xe0d   :  { %4228 = vmatprep.subr.mxu0 %v9595_v25  ;;  %4299 = vmatprep.subr.mxu1 %v9601_v36 }
 0xe0e   :  { %4229 = vmatpush1.msra.mxu0 %v9607_v51  ;;  %4300 = vmatpush1.msra.mxu1 %v9613_v29 }
 0xe0f   :  { %4230 = vmatprep.subr.mxu0 %v9619_v5  ;;  %4301 = vmatprep.subr.mxu1 %v9625_v6 }
 0xe10   :  { %4231 = vmatpush1.msra.mxu0 %v9631_v9  ;;  %4302 = vmatpush1.msra.mxu1 %v9637_v58 }
 0xe11   :  { %4232 = vmatprep.subr.mxu0 %v9643_v57  ;;  %4303 = vmatprep.subr.mxu1 %v9649_v10 }
 0xe12   :  { %4233 = vmatpush1.msra.mxu0 %v9655_v7  ;;  %4304 = vmatpush1.msra.mxu1 %v9661_v12 }
 0xe13   :  { %4234 = vmatprep.subr.mxu0 %v9667_v49  ;;  %4305 = vmatprep.subr.mxu1 %v9673_v18 }
 0xe14   :  { %4235 = vmatpush1.msra.mxu0 %v9679_v8  ;;  %4306 = vmatpush1.msra.mxu1 %v11554_v37 }
 0xe15   :  { %4236 = vmatprep.subr.mxu0 %v11555_v21  ;;  %4307 = vmatprep.subr.mxu1 %v11556_v60  ;;  %v11582_v60 = vld [vmem:[#allocation71_spill] sm:$0xff] }
 0xe16   :  { %4237 = vmatpush1.msra.mxu0 %v11557_v54  ;;  %4308 = vmatpush1.msra.mxu1 %v11558_v38 }
 0xe17   :  { %4238 = vmatprep.subr.mxu0 %v11559_v2  ;;  %4309 = vmatprep.subr.mxu1 %v11560_v56 }
 0xe18   :  { %4239 = vmatpush1.msra.mxu0 %v11561_v0  ;;  %4310 = vmatpush1.msra.mxu1 %v11562_v45 }
 0xe19   :  { %4240 = vmatprep.subr.mxu0 %v11563_v20  ;;  %4311 = vmatprep.subr.mxu1 %v11564_v3 }
 0xe1a   :  { %4241 = vmatpush1.msra.mxu0 %v11565_v23  ;;  %4312 = vmatpush1.msra.mxu1 %v11566_v27  ;;  %v11579_v27 = vld [vmem:[#allocation69_spill] sm:$0xff] }
 0xe1b   :  { %4242 = vmatprep.subr.mxu0 %v11567_v40  ;;  %4313 = vmatprep.subr.mxu1 %v11568_v35  ;;  %v11576_v35 = vld [vmem:[#allocation17_spill] sm:$0xff]  ;;  %v11578_v40 = vld [vmem:[#allocation12_spill] sm:$0xff] }
 0xe1c   :  { %4243 = vmatpush1.msra.mxu0 %v11569_v62  ;;  %4314 = vmatpush1.msra.mxu1 %v11570_v30  ;;  %v9877_v62 = vld [vmem:[%s9991_s5] sm:$0xff]  ;;  %v11574_v30 = vmov 0.0   ;;  %v2378_v23 = vadd.f32 %v11579_v27, %v11578_v40  ;;  %v2449_v27 = vadd.f32 %v11582_v60, %v9183_v11 }
 0xe1d   :  { %4244 = vmatprep.subr.mxu0 %v9865_v4  ;;  %4315 = vmatprep.subr.mxu1 %v9871_v59  ;;  %11573 = vst [vmem:[#allocation105_spill] sm:$0xff] %v9877_v62  ;;  %v9884_v4 = vld [vmem:[%s9991_s5 + $0x10] sm:$0xff] }
 0xe1e   :  { %4245 = vmatpush1.msra.mxu0 %v9877_v62  ;;  %4278 = vmatprep.mubr.f32.mxu0 %v11574_v30  ;;  %11575 = vst [vmem:[#allocation107_spill] sm:$0xff] %v9884_v4  ;;  %v11577_v59 = vld [vmem:[#allocation18_spill] sm:$0xff] }
 0xe1f   :  { %4316 = vmatpush1.msra.mxu1 %v9884_v4  ;;  %4349 = vmatprep.mubr.f32.mxu1 %v11574_v30  ;;  %v11580_v62 = vld [vmem:[#allocation70_spill] sm:$0xff] }
 0xe20   :  { %4388 = vmatprep.subr.mxu0 %v11576_v35  ;;  %4459 = vmatprep.subr.mxu1 %v11577_v59  ;;  %v2380_v20 = vadd.f32 %v11580_v62, %v11471_v63  ;;  %v11581_v35 = vld [vmem:[#allocation109_spill] sm:$0xff] }
 0xe21   :  { %v2451_v54 = vadd.f32 %v11581_v35, %v9179_v47 }
 0xebf   :  { %v4106_v3 = vpop.f32.mrf.mxu0  ;;  %v4177_v38 = vpop.f32.mrf.mxu1 }
 0xec0   :  { %v4182_v45 = vadd.f32 %v4106_v3, %v2378_v23  ;;  %v4184_v40 = vadd.f32 %v4177_v38, %v2449_v27 }
 0xec1   :  { %v4108_v0 = vpop.f32.mrf.mxu0  ;;  %v4179_v30 = vpop.f32.mrf.mxu1 }
 0xec2   :  { %v4602_v56 = vmul.f32 -1.442695, %v4182_v45  ;;  %v4183_v2 = vadd.f32 %v4108_v0, %v2380_v20  ;;  %v4185_v59 = vadd.f32 %v4179_v30, %v2451_v54 }
 0xec4   :  { %4820 = vpow2.f32 %v4602_v56  ;;  %v4603_v4 = vmul.f32 -1.442695, %v4183_v2  ;;  %v4604_v21 = vmul.f32 -1.442695, %v4185_v59 }
 0xec6   :  { %4822 = vpow2.f32 %v4603_v4 }
 0xec7   :  { %4824 = vtanh.f32 %v4184_v40 }
 0xec8   :  { %4826 = vpow2.f32 %v4604_v21 }
 0xed1   :  { %v4821_v37 = vpop.eup %4820 }
 0xed2   :  { %v4189_v62 = vadd.f32 1.0, %v4821_v37 }
 0xed3   :  { %v4823_v3 = vpop.eup %4822 }
 0xed4   :  { %4828 = vrcp.f32 %v4189_v62  ;;  %v4195_v56 = vadd.f32 1.0, %v4823_v3  ;;  %v4825_v2 = vpop.eup %4824 }
 0xed5   :  { %v4827_v0 = vpop.eup %4826 }
 0xed6   :  { %4830 = vrcp.f32 %v4195_v56  ;;  %v4202_v4 = vadd.f32 1.0, %v4827_v0 }
 0xed8   :  { %4832 = vrcp.f32 %v4202_v4 }
 0xee1   :  { %v4829_v45 = vpop.eup %4828 }
 0xee2   :  { %v4206_v20 = vmul.f32 %v4829_v45, %v4825_v2 }
 0xee3   :  { %v4831_v23 = vpop.eup %4830 }
 0xee4   :  { %v4205_v54 = vmul.f32 %v4831_v23, %v9801_v53 }
 0xee5   :  { %v4833_v37 = vpop.eup %4832 }
 0xee6   :  { %v9899_v30 = vadd.f32 %v4206_v20, %v4205_v54 }
 0xee8   :  { %4834 = vtanh.f32 %v9899_v30 }
 0xef5   :  { %v4835_v60 = vpop.eup %4834 }
 0xef6   :  { %v4209_v38 = vmul.f32 %v4835_v60, %v4833_v37  ;;  %v11610_v37 = vld [vmem:[#allocation11_spill] sm:$0xff] }
 0xef8   :  { %4279 = vmatmul.mubr.f32.vlgmr.msra.gmra.mxu0 %v4209_v38  ;;  %4350 = vmatmul.mubr.f32.vlgmr.msra.gmra.mxu1 %v4209_v38 }
 0xef9   :  { %4389 = vmatpush1.msra.mxu0 %v9439_v44  ;;  %4460 = vmatpush1.msra.mxu1 %v9445_v50  ;;  %v11583_v44 = vld [vmem:[#allocation19_spill] sm:$0xff]  ;;  %v11584_v50 = vld [vmem:[#allocation20_spill] sm:$0xff] }
 0xefa   :  { %4390 = vmatprep.subr.mxu0 %v9451_v46  ;;  %4461 = vmatprep.subr.mxu1 %v9457_v1  ;;  %v11585_v46 = vld [vmem:[#allocation21_spill] sm:$0xff]  ;;  %v11586_v1 = vld [vmem:[#allocation22_spill] sm:$0xff] }
 0xefb   :  { %4391 = vmatpush1.msra.mxu0 %v9463_v42  ;;  %4462 = vmatpush1.msra.mxu1 %v9469_v43  ;;  %v11587_v42 = vld [vmem:[#allocation23_spill] sm:$0xff]  ;;  %v11588_v43 = vld [vmem:[#allocation24_spill] sm:$0xff] }
 0xefc   :  { %4392 = vmatprep.subr.mxu0 %v9475_v17  ;;  %4463 = vmatprep.subr.mxu1 %v9481_v55  ;;  %v11589_v17 = vld [vmem:[#allocation25_spill] sm:$0xff]  ;;  %v11590_v55 = vld [vmem:[#allocation26_spill] sm:$0xff] }
 0xefd   :  { %4393 = vmatpush1.msra.mxu0 %v9487_v19  ;;  %4464 = vmatpush1.msra.mxu1 %v9493_v22  ;;  %v11591_v19 = vld [vmem:[#allocation27_spill] sm:$0xff]  ;;  %v11592_v22 = vld [vmem:[#allocation28_spill] sm:$0xff] }
 0xefe   :  { %4394 = vmatprep.subr.mxu0 %v9499_v26  ;;  %4465 = vmatprep.subr.mxu1 %v9505_v32  ;;  %v11593_v26 = vld [vmem:[#allocation29_spill] sm:$0xff]  ;;  %v11594_v32 = vld [vmem:[#allocation30_spill] sm:$0xff] }
 0xeff   :  { %4395 = vmatpush1.msra.mxu0 %v9511_v28  ;;  %4466 = vmatpush1.msra.mxu1 %v9517_v41  ;;  %v11595_v28 = vld [vmem:[#allocation31_spill] sm:$0xff]  ;;  %v11596_v41 = vld [vmem:[#allocation32_spill] sm:$0xff] }
 0xf00   :  { %4396 = vmatprep.subr.mxu0 %v9523_v33  ;;  %4467 = vmatprep.subr.mxu1 %v9529_v61  ;;  %v11597_v33 = vld [vmem:[#allocation33_spill] sm:$0xff]  ;;  %v11598_v61 = vld [vmem:[#allocation34_spill] sm:$0xff] }
 0xf01   :  { %4397 = vmatpush1.msra.mxu0 %v9535_v52  ;;  %4468 = vmatpush1.msra.mxu1 %v9541_v39  ;;  %v11599_v52 = vld [vmem:[#allocation35_spill] sm:$0xff] }
 0xf02   :  { %4398 = vmatprep.subr.mxu0 %v9547_v34  ;;  %4469 = vmatprep.subr.mxu1 %v9553_v48  ;;  %v11600_v39 = vld [vmem:[#allocation99_spill] sm:$0xff]  ;;  %v11601_v34 = vld [vmem:[#allocation100_spill] sm:$0xff]  ;;  %v11602_v48 = vld [vmem:[#allocation105_spill] sm:$0xff] }
 0xf03   :  { %4399 = vmatpush1.msra.mxu0 %v9559_v31  ;;  %4470 = vmatpush1.msra.mxu1 %v9565_v13  ;;  %v11603_v31 = vmov 0.0   ;;  %v11604_v13 = vld [vmem:[#allocation107_spill] sm:$0xff] }
 0xf04   :  { %4400 = vmatprep.subr.mxu0 %v9571_v14  ;;  %4471 = vmatprep.subr.mxu1 %v9577_v15  ;;  %v11605_v14 = vld [vmem:[#allocation12_spill] sm:$0xff]  ;;  %v11606_v15 = vld [vmem:[#allocation110_spill] sm:$0xff] }
 0xf05   :  { %4401 = vmatpush1.msra.mxu0 %v9583_v16  ;;  %4472 = vmatpush1.msra.mxu1 %v9589_v24  ;;  %v2700_v16 = vadd.f32 %v11606_v15, %v11605_v14  ;;  %v3022_v60 = vadd.f32 %v11610_v37, %v11605_v14 }
 0xf06   :  { %4402 = vmatprep.subr.mxu0 %v9595_v25  ;;  %4473 = vmatprep.subr.mxu1 %v9601_v36  ;;  %v11607_v25 = vld [vmem:[#allocation72_spill] sm:$0xff] }
 0xf07   :  { %4403 = vmatpush1.msra.mxu0 %v9607_v51  ;;  %4474 = vmatpush1.msra.mxu1 %v9613_v29  ;;  %v2702_v36 = vadd.f32 %v11607_v25, %v11471_v63 }
 0xf08   :  { %4404 = vmatprep.subr.mxu0 %v9619_v5  ;;  %4475 = vmatprep.subr.mxu1 %v9625_v6 }
 0xf09   :  { %4405 = vmatpush1.msra.mxu0 %v9631_v9  ;;  %4476 = vmatpush1.msra.mxu1 %v9637_v58 }
 0xf0a   :  { %4406 = vmatprep.subr.mxu0 %v9643_v57  ;;  %4477 = vmatprep.subr.mxu1 %v9649_v10  ;;  %v11608_v10 = vld [vmem:[#allocation78_spill] sm:$0xff] }
 0xf0b   :  { %4407 = vmatpush1.msra.mxu0 %v9655_v7  ;;  %4478 = vmatpush1.msra.mxu1 %v9661_v12  ;;  %v2773_v7 = vadd.f32 %v11608_v10, %v9179_v47 }
 0xf0c   :  { %4408 = vmatprep.subr.mxu0 %v9667_v49  ;;  %4479 = vmatprep.subr.mxu1 %v9673_v18  ;;  %v11609_v49 = vld [vmem:[#allocation77_spill] sm:$0xff] }
 0xf0d   :  { %4409 = vmatpush1.msra.mxu0 %v9679_v8  ;;  %4480 = vmatpush1.msra.mxu1 %v11583_v44  ;;  %v2771_v18 = vadd.f32 %v11609_v49, %v9183_v11  ;;  %v11611_v44 = vld [vmem:[#allocation14_spill] sm:$0xff] }
 0xf0e   :  { %4410 = vmatprep.subr.mxu0 %v11584_v50  ;;  %4481 = vmatprep.subr.mxu1 %v11585_v46  ;;  %v3024_v50 = vadd.f32 %v11611_v44, %v11471_v63 }
 0xf0f   :  { %4411 = vmatpush1.msra.mxu0 %v11586_v1  ;;  %4482 = vmatpush1.msra.mxu1 %v11587_v42 }
 0xf10   :  { %4412 = vmatprep.subr.mxu0 %v11588_v43  ;;  %4483 = vmatprep.subr.mxu1 %v11589_v17 }
 0xf11   :  { %4413 = vmatpush1.msra.mxu0 %v11590_v55  ;;  %4484 = vmatpush1.msra.mxu1 %v11591_v19  ;;  %v11612_v19 = vld [vmem:[#allocation16_spill] sm:$0xff] }
 0xf12   :  { %4414 = vmatprep.subr.mxu0 %v11592_v22  ;;  %4485 = vmatprep.subr.mxu1 %v11593_v26  ;;  %v3095_v22 = vadd.f32 %v11612_v19, %v9179_v47 }
 0xf13   :  { %4415 = vmatpush1.msra.mxu0 %v11594_v32  ;;  %4486 = vmatpush1.msra.mxu1 %v11595_v28  ;;  %v11613_v32 = vld [vmem:[#allocation15_spill] sm:$0xff] }
 0xf14   :  { %4416 = vmatprep.subr.mxu0 %v11596_v41  ;;  %4487 = vmatprep.subr.mxu1 %v11597_v33  ;;  %v3093_v28 = vadd.f32 %v11613_v32, %v9183_v11 }
 0xf15   :  { %4417 = vmatpush1.msra.mxu0 %v11598_v61  ;;  %4488 = vmatpush1.msra.mxu1 %v11599_v52 }
 0xf16   :  { %4418 = vmatprep.subr.mxu0 %v11600_v39  ;;  %4489 = vmatprep.subr.mxu1 %v11601_v34 }
 0xf17   :  { %4419 = vmatpush1.msra.mxu0 %v11602_v48  ;;  %4452 = vmatprep.mubr.f32.mxu0 %v11603_v31 }
 0xf18   :  { %4490 = vmatpush1.msra.mxu1 %v11604_v13  ;;  %4523 = vmatprep.mubr.f32.mxu1 %v11603_v31 }
 0xfb8   :  { %v4280_v24 = vpop.f32.mrf.mxu0  ;;  %v4351_v9 = vpop.f32.mrf.mxu1 }
 0xfb9   :  { %v4356_v51 = vadd.f32 %v4280_v24, %v2700_v16  ;;  %v4358_v8 = vadd.f32 %v4351_v9, %v2771_v18 }
 0xfba   :  { %v4282_v29 = vpop.f32.mrf.mxu0  ;;  %v4353_v57 = vpop.f32.mrf.mxu1 }
 0xfbb   :  { %v4605_v5 = vmul.f32 -1.442695, %v4356_v51  ;;  %v4357_v6 = vadd.f32 %v4282_v29, %v2702_v36  ;;  %v4359_v12 = vadd.f32 %v4353_v57, %v2773_v7 }
 0xfbd   :  { %4836 = vpow2.f32 %v4605_v5  ;;  %v4606_v58 = vmul.f32 -1.442695, %v4357_v6  ;;  %v4607_v53 = vmul.f32 -1.442695, %v4359_v12 }
 0xfbf   :  { %4838 = vpow2.f32 %v4606_v58 }
 0xfc0   :  { %4840 = vtanh.f32 %v4358_v8 }
 0xfc1   :  { %4842 = vpow2.f32 %v4607_v53 }
 0xfca   :  { %v4837_v21 = vpop.eup %4836 }
 0xfcb   :  { %v4363_v40 = vadd.f32 1.0, %v4837_v21 }
 0xfcc   :  { %v4839_v35 = vpop.eup %4838 }
 0xfcd   :  { %4844 = vrcp.f32 %v4363_v40  ;;  %v4369_v59 = vadd.f32 1.0, %v4839_v35  ;;  %v4841_v27 = vpop.eup %4840 }
 0xfce   :  { %v4843_v62 = vpop.eup %4842 }
 0xfcf   :  { %4846 = vrcp.f32 %v4369_v59  ;;  %v4376_v0 = vadd.f32 1.0, %v4843_v62 }
 0xfd1   :  { %4848 = vrcp.f32 %v4376_v0 }
 0xfda   :  { %v4845_v3 = vpop.eup %4844 }
 0xfdb   :  { %v4380_v56 = vmul.f32 %v4845_v3, %v4841_v27 }
 0xfdc   :  { %v4847_v2 = vpop.eup %4846 }
 0xfdd   :  { %v4379_v45 = vmul.f32 %v4847_v2, %v9899_v30 }
 0xfde   :  { %v4849_v23 = vpop.eup %4848 }
 0xfdf   :  { %v4381_v20 = vadd.f32 %v4380_v56, %v4379_v45 }
 0xfe1   :  { %4850 = vtanh.f32 %v4381_v20 }
 0xfee   :  { %v4851_v4 = vpop.eup %4850 }
 0xfef   :  { %v4383_v54 = vmul.f32 %v4851_v4, %v4849_v23 }
 0xff1   :  { %4453 = vmatmul.mubr.f32.vlgmr.msra.gmra.mxu0 %v4383_v54  ;;  %4524 = vmatmul.mubr.f32.vlgmr.msra.gmra.mxu1 %v4383_v54 }
0x10b1   :  { %v4454_v38 = vpop.f32.mrf.mxu0  ;;  %v4525_v30 = vpop.f32.mrf.mxu1 }
0x10b2   :  { %v4530_v46 = vadd.f32 %v4454_v38, %v3022_v60  ;;  %v4532_v41 = vadd.f32 %v4525_v30, %v3093_v28 }
0x10b3   :  { %v4456_v1 = vpop.f32.mrf.mxu0  ;;  %v4527_v55 = vpop.f32.mrf.mxu1 }
0x10b4   :  { %v4608_v42 = vmul.f32 -1.442695, %v4530_v46  ;;  %v4531_v43 = vadd.f32 %v4456_v1, %v3024_v50  ;;  %v4533_v26 = vadd.f32 %v4527_v55, %v3095_v22 }
0x10b6   :  { %4852 = vpow2.f32 %v4608_v42  ;;  %v4609_v17 = vmul.f32 -1.442695, %v4531_v43  ;;  %v4610_v33 = vmul.f32 -1.442695, %v4533_v26 }
0x10b8   :  { %4854 = vpow2.f32 %v4609_v17 }
0x10b9   :  { %4856 = vtanh.f32 %v4532_v41 }
0x10ba   :  { %4858 = vpow2.f32 %v4610_v33 }
0x10c3   :  { %v4853_v61 = vpop.eup %4852 }
0x10c4   :  { %v4537_v63 = vadd.f32 1.0, %v4853_v61 }
0x10c5   :  { %v4855_v52 = vpop.eup %4854 }
0x10c6   :  { %4860 = vrcp.f32 %v4537_v63  ;;  %v4543_v39 = vadd.f32 1.0, %v4855_v52  ;;  %v4857_v34 = vpop.eup %4856 }
0x10c7   :  { %v4859_v48 = vpop.eup %4858 }
0x10c8   :  { %4862 = vrcp.f32 %v4543_v39  ;;  %v4550_v47 = vadd.f32 1.0, %v4859_v48 }
0x10ca   :  { %4864 = vrcp.f32 %v4550_v47 }
0x10d3   :  { %v4861_v31 = vpop.eup %4860 }
0x10d4   :  { %v4554_v13 = vmul.f32 %v4861_v31, %v4857_v34 }
0x10d5   :  { %v4863_v14 = vpop.eup %4862 }
0x10d6   :  { %v4553_v15 = vmul.f32 %v4863_v14, %v4381_v20 }
0x10d7   :  { %v4865_v11 = vpop.eup %4864 }
0x10d8   :  { %v4555_v16 = vadd.f32 %v4554_v13, %v4553_v15 }
0x10da   :  { %4866 = vtanh.f32 %v4555_v16 }
0x10e7   :  { %v4867_v24 = vpop.eup %4866 }
0x10e8   :  { %v4557_v25 = vmul.f32 %v4867_v24, %v4865_v11 }
0x10ea   :  { %4558 = vst [vmem:[%s9993_s7] sm:$0xff] %v4557_v25 }

</bundles_post_ra>
